<compile_context>
chip_gen: v5e
topology: v5e:2x2
jax: 0.10.0
libtpu: 0.0.40
codegen_flags: <defaults>
</compile_context>

<pallas_src>
import functools

import jax
import jax.numpy as jnp
import numpy as np
from jax.experimental import pallas as pl
from jax.experimental.pallas import tpu as pltpu

LRELU_SLOPE = 0.2
IN_EPS = 1e-5
LANE = 128


# ----------------------------- Pallas kernel --------------------------------

def _conv_fused_kernel(p_ref, w_ref, b_ref, o_ref, *, apply_in, apply_lrelu):
    # p_ref: (1, L, K) bf16   w_ref: (K, ct) bf16   b_ref: (1, ct) f32
    # o_ref: (1, L, ct)  — one sample x one channel tile per grid step.
    x = p_ref[0]                                           # (L, K)
    acc = jnp.dot(x, w_ref[...], preferred_element_type=jnp.float32)
    acc = acc + b_ref[...]                                 # bias, f32
    if apply_in:
        # InstanceNorm2d over the spatial axis (per-sample, per-channel),
        # biased variance + eps=1e-5 (PyTorch defaults), computed in f32.
        mean = jnp.mean(acc, axis=0, keepdims=True)
        var = jnp.mean(jnp.square(acc - mean), axis=0, keepdims=True)
        acc = (acc - mean) * jax.lax.rsqrt(var + IN_EPS)
    if apply_lrelu:
        acc = jnp.where(acc > 0, acc, LRELU_SLOPE * acc)
    o_ref[0] = acc.astype(o_ref.dtype)


# ------------------------------ JAX glue -------------------------------------

def im2col_nlk(x_nhwc, k, stride, pad):
    """(N, H, W, C) -> (N, OH*OW, k*k*C) with K ordering (ki, kj, cin)."""
    N, H, W, C = x_nhwc.shape
    xp = jnp.pad(x_nhwc, ((0, 0), (pad, pad), (pad, pad), (0, 0)))
    OH = (H + 2 * pad - k) // stride + 1
    OW = (W + 2 * pad - k) // stride + 1
    cols = []
    for i in range(k):
        for j in range(k):
            cols.append(xp[:, i:i + stride * OH:stride,
                           j:j + stride * OW:stride, :])
    p = jnp.stack(cols, axis=3)                    # (N, OH, OW, k*k, C)
    return p.reshape(N, OH * OW, k * k * C), OH, OW


def conv2d_fused(x_nhwc, w_packed, b_packed, stride, pad, *, k=4,
                 apply_in, apply_lrelu, out_dtype):
    """Fused Conv2d (+bias, +optional InstanceNorm, +optional LeakyReLU).

    x_nhwc:   (N, H, W, Cin)       w_packed: (K=k*k*Cin, Cout) bf16
    b_packed: (1, Cout) f32        returns   (N, OH, OW, Cout) out_dtype
    """
    N = x_nhwc.shape[0]
    K, Cout = w_packed.shape
    patches, OH, OW = im2col_nlk(x_nhwc.astype(jnp.bfloat16), k, stride, pad)
    L = OH * OW
    # Channel tile: 128 lanes when Cout is a multiple of 128, otherwise the
    # full (unpadded) Cout — block last dim == full array dim is legal.
    ct = LANE if Cout % LANE == 0 else Cout

    out = pl.pallas_call(
        functools.partial(_conv_fused_kernel,
                          apply_in=apply_in, apply_lrelu=apply_lrelu),
        out_shape=jax.ShapeDtypeStruct((N, L, Cout), out_dtype),
        grid_spec=pltpu.PrefetchScalarGridSpec(
            num_scalar_prefetch=0,
            # Inner axis = N so the weight tile is reused (not re-fetched)
            # across samples; both axes are independent -> "parallel".
            grid=(Cout // ct, N),
            in_specs=[
                pl.BlockSpec((1, L, K), lambda c, n: (n, 0, 0)),
                pl.BlockSpec((K, ct), lambda c, n: (0, c)),
                pl.BlockSpec((1, ct), lambda c, n: (0, c)),
            ],
            out_specs=pl.BlockSpec((1, L, ct), lambda c, n: (n, 0, c)),
        ),
        compiler_params=pltpu.CompilerParams(
            dimension_semantics=("parallel", "parallel"),
        ),
    )(patches, w_packed, b_packed)
    return out.reshape(N, OH, OW, Cout)


def pack_params(params):
    """One-time repack of PyTorch-layout params into the kernel layout."""
    packed = {}
    for i in range(1, 6):
        w = params[f"w{i}"]                        # (Cout, Cin, kh, kw)
        Cout, Cin, kh, kw = w.shape
        # K ordering (ki, kj, cin) matches im2col_nlk.
        packed[f"w{i}"] = (jnp.transpose(w, (2, 3, 1, 0))
                           .reshape(kh * kw * Cin, Cout)
                           .astype(jnp.bfloat16))
        packed[f"b{i}"] = params[f"b{i}"].reshape(1, Cout).astype(jnp.float32)
    return packed


def discriminator_forward(packed, x_nchw):
    x = jnp.transpose(x_nchw, (0, 2, 3, 1))        # -> NHWC

    # Conv(3->64, k4, s2, p1) + LeakyReLU
    x = conv2d_fused(x, packed["w1"], packed["b1"], 2, 1,
                     apply_in=False, apply_lrelu=True, out_dtype=jnp.bfloat16)
    # Conv(64->128, k4, s2, p1) + InstanceNorm + LeakyReLU (all fused)
    x = conv2d_fused(x, packed["w2"], packed["b2"], 2, 1,
                     apply_in=True, apply_lrelu=True, out_dtype=jnp.bfloat16)
    # Conv(128->256, k4, s2, p1) + InstanceNorm + LeakyReLU (all fused)
    x = conv2d_fused(x, packed["w3"], packed["b3"], 2, 1,
                     apply_in=True, apply_lrelu=True, out_dtype=jnp.bfloat16)
    # Conv(256->512, k4, s1, p1) + InstanceNorm + LeakyReLU (all fused)
    x = conv2d_fused(x, packed["w4"], packed["b4"], 1, 1,
                     apply_in=True, apply_lrelu=True, out_dtype=jnp.bfloat16)
    # Conv(512->1, k4, s1, p1) — true Cout=1, no lane padding
    x = conv2d_fused(x, packed["w5"], packed["b5"], 1, 1,
                     apply_in=False, apply_lrelu=False, out_dtype=jnp.float32)

    return jnp.transpose(x, (0, 3, 1, 2))          # -> NCHW


# ------------------------------ reference ------------------------------------

def reference_forward(params, x_nchw):
    def conv(x, w, b, stride, pad):
        y = jax.lax.conv_general_dilated(
            x, w, (stride, stride), [(pad, pad), (pad, pad)],
            dimension_numbers=("NCHW", "OIHW", "NCHW"),
            precision=jax.lax.Precision.HIGHEST)
        return y + b.reshape(1, -1, 1, 1)

    def inorm(x):
        mean = jnp.mean(x, axis=(2, 3), keepdims=True)
        var = jnp.mean(jnp.square(x - mean), axis=(2, 3), keepdims=True)
        return (x - mean) * jax.lax.rsqrt(var + IN_EPS)

    def lrelu(x):
        return jnp.where(x > 0, x, LRELU_SLOPE * x)

    x = lrelu(conv(x_nchw, params["w1"], params["b1"], 2, 1))
    x = lrelu(inorm(conv(x, params["w2"], params["b2"], 2, 1)))
    x = lrelu(inorm(conv(x, params["w3"], params["b3"], 2, 1)))
    x = lrelu(inorm(conv(x, params["w4"], params["b4"], 1, 1)))
    x = conv(x, params["w5"], params["b5"], 1, 1)
    return x


# --------------------------------- main ---------------------------------------

def init_params(key):
    shapes = [
        ("w1", (64, 3, 4, 4)), ("b1", (64,)),
        ("w2", (128, 64, 4, 4)), ("b2", (128,)),
        ("w3", (256, 128, 4, 4)), ("b3", (256,)),
        ("w4", (512, 256, 4, 4)), ("b4", (512,)),
        ("w5", (1, 512, 4, 4)), ("b5", (1,)),
    ]
    keys = jax.random.split(key, len(shapes))
    params = {}
    for (name, shape), k in zip(shapes, keys):
        if name.startswith("w"):
            fan_in = shape[1] * shape[2] * shape[3]
            params[name] = (jax.random.normal(k, shape, jnp.float32)
                            / jnp.sqrt(jnp.float32(fan_in)))
        else:
            params[name] = jax.random.normal(k, shape, jnp.float32) * 0.01
    return params


if __name__ == "__main__":
    root = jax.random.PRNGKey(0)
    pkey, xkey = jax.random.split(root)
    params = init_params(pkey)
    packed = pack_params(params)   # one-time repack into kernel layout

    # small input consistent with the module: 3 input channels, 32x32 spatial
    x = jax.random.normal(xkey, (2, 3, 32, 32), jnp.float32)

    fwd = jax.jit(discriminator_forward)
    out = jax.block_until_ready(fwd(packed, x))

    ref = reference_forward(params, x)
    assert out.shape == ref.shape == (2, 1, 2, 2), out.shape
    # bf16 MXU operands + bf16 intermediate activations (f32 accumulation and
    # f32 IN statistics in-kernel) through 5 conv layers -> bf16 tolerance.
    np.testing.assert_allclose(np.asarray(out), np.asarray(ref),
                               rtol=1e-1, atol=1e-1)
    print("KERNEL_OK")
</pallas_src>

<mosaic_0001>
module attributes {stable_mosaic.version = 11 : i64} {
  func.func @_conv_fused_kernel(%arg0: i32, %arg1: i32, %arg2: memref<1x256x48xbf16, #tpu.memory_space<vmem>>, %arg3: memref<48x64xbf16, #tpu.memory_space<vmem>>, %arg4: memref<1x64xf32, #tpu.memory_space<vmem>>, %arg5: memref<1x256x64xbf16, #tpu.memory_space<vmem>>) attributes {dimension_semantics = [#tpu.dimension_semantics<parallel>, #tpu.dimension_semantics<parallel>], iteration_bounds = array<i64: 1, 2>, scalar_prefetch = 0 : i64, scratch_operands = 0 : i64, tpu.core_type = #tpu.core_type<tc>, window_params = [{transform_indices = @transform_0, window_bounds = array<i64: 1, 256, 48>}, {transform_indices = @transform_1, window_bounds = array<i64: 48, 64>}, {transform_indices = @transform_2, window_bounds = array<i64: 1, 64>}, {transform_indices = @transform_3, window_bounds = array<i64: 1, 256, 64>}]} {
    %c0 = arith.constant 0 : index
    %c0_0 = arith.constant 0 : index
    %c0_1 = arith.constant 0 : index
    %0 = vector.load %arg2[%c0, %c0_0, %c0_1] : memref<1x256x48xbf16, #tpu.memory_space<vmem>>, vector<1x256x48xbf16>
    %1 = vector.shape_cast %0 : vector<1x256x48xbf16> to vector<256x48xbf16>
    %c0_2 = arith.constant 0 : index
    %c0_3 = arith.constant 0 : index
    %2 = vector.load %arg3[%c0_2, %c0_3] : memref<48x64xbf16, #tpu.memory_space<vmem>>, vector<48x64xbf16>
    %cst = arith.constant dense<0.000000e+00> : vector<256x64xf32>
    %3 = tpu.matmul %1, %2, %cst {dimension_numbers = #tpu.dot_dimension_numbers<[1], [0], [0], [1], [0, 0, 1, 1], [], []>} : vector<256x48xbf16>, vector<48x64xbf16>, vector<256x64xf32> -> vector<256x64xf32>
    %c0_4 = arith.constant 0 : index
    %c0_5 = arith.constant 0 : index
    %4 = vector.load %arg4[%c0_4, %c0_5] : memref<1x64xf32, #tpu.memory_space<vmem>>, vector<1x64xf32>
    %5 = vector.broadcast %4 : vector<1x64xf32> to vector<256x64xf32>
    %6 = arith.addf %3, %5 : vector<256x64xf32>
    %cst_6 = arith.constant 0.000000e+00 : f32
    %7 = vector.broadcast %cst_6 : f32 to vector<256x64xf32>
    %8 = arith.cmpf ogt, %6, %7 : vector<256x64xf32>
    %cst_7 = arith.constant 2.000000e-01 : f32
    %9 = vector.broadcast %cst_7 : f32 to vector<256x64xf32>
    %10 = arith.mulf %9, %6 : vector<256x64xf32>
    %11 = arith.select %8, %6, %10 : vector<256x64xi1>, vector<256x64xf32>
    %12 = arith.truncf %11 : vector<256x64xf32> to vector<256x64xbf16>
    %c0_8 = arith.constant 0 : index
    %c0_9 = arith.constant 0 : index
    %c0_10 = arith.constant 0 : index
    %13 = vector.load %arg5[%c0_8, %c0_9, %c0_10] : memref<1x256x64xbf16, #tpu.memory_space<vmem>>, vector<1x256x64xbf16>
    %14 = vector.shape_cast %13 : vector<1x256x64xbf16> to vector<256x64xbf16>
    %15 = vector.shape_cast %12 : vector<256x64xbf16> to vector<1x256x64xbf16>
    tpu.vector_store %arg5[%c0_8, %c0_9, %c0_10], %15 {strides = array<i32>} : memref<1x256x64xbf16, #tpu.memory_space<vmem>>, vector<1x256x64xbf16>,
    return
  }
  func.func @transform_0(%arg0: i32, %arg1: i32) -> (i32, i32, i32) {
    %c0_i32 = arith.constant 0 : i32
    %c0_i32_0 = arith.constant 0 : i32
    %c0_i32_1 = arith.constant 0 : i32
    return %arg1, %c0_i32, %c0_i32_0 : i32, i32, i32
  }
  func.func @transform_1(%arg0: i32, %arg1: i32) -> (i32, i32) {
    %c0_i32 = arith.constant 0 : i32
    %c0_i32_0 = arith.constant 0 : i32
    return %c0_i32, %arg0 : i32, i32
  }
  func.func @transform_2(%arg0: i32, %arg1: i32) -> (i32, i32) {
    %c0_i32 = arith.constant 0 : i32
    %c0_i32_0 = arith.constant 0 : i32
    return %c0_i32, %arg0 : i32, i32
  }
  func.func @transform_3(%arg0: i32, %arg1: i32) -> (i32, i32, i32) {
    %c0_i32 = arith.constant 0 : i32
    %c0_i32_0 = arith.constant 0 : i32
    return %arg1, %c0_i32, %arg0 : i32, i32, i32
  }
}

module attributes {stable_mosaic.version = 11 : i64} {
  func.func @_conv_fused_kernel(%arg0: i32, %arg1: i32, %arg2: memref<1x64x1024xbf16, #tpu.memory_space<vmem>>, %arg3: memref<1024x128xbf16, #tpu.memory_space<vmem>>, %arg4: memref<1x128xf32, #tpu.memory_space<vmem>>, %arg5: memref<1x64x128xbf16, #tpu.memory_space<vmem>>) attributes {dimension_semantics = [#tpu.dimension_semantics<parallel>, #tpu.dimension_semantics<parallel>], iteration_bounds = array<i64: 1, 2>, scalar_prefetch = 0 : i64, scratch_operands = 0 : i64, tpu.core_type = #tpu.core_type<tc>, window_params = [{transform_indices = @transform_0, window_bounds = array<i64: 1, 64, 1024>}, {transform_indices = @transform_1, window_bounds = array<i64: 1024, 128>}, {transform_indices = @transform_2, window_bounds = array<i64: 1, 128>}, {transform_indices = @transform_3, window_bounds = array<i64: 1, 64, 128>}]} {
    %c0 = arith.constant 0 : index
    %c0_0 = arith.constant 0 : index
    %c0_1 = arith.constant 0 : index
    %0 = vector.load %arg2[%c0, %c0_0, %c0_1] : memref<1x64x1024xbf16, #tpu.memory_space<vmem>>, vector<1x64x1024xbf16>
    %1 = vector.shape_cast %0 : vector<1x64x1024xbf16> to vector<64x1024xbf16>
    %c0_2 = arith.constant 0 : index
    %c0_3 = arith.constant 0 : index
    %2 = vector.load %arg3[%c0_2, %c0_3] : memref<1024x128xbf16, #tpu.memory_space<vmem>>, vector<1024x128xbf16>
    %cst = arith.constant dense<0.000000e+00> : vector<64x128xf32>
    %3 = tpu.matmul %1, %2, %cst {dimension_numbers = #tpu.dot_dimension_numbers<[1], [0], [0], [1], [0, 0, 1, 1], [], []>} : vector<64x1024xbf16>, vector<1024x128xbf16>, vector<64x128xf32> -> vector<64x128xf32>
    %c0_4 = arith.constant 0 : index
    %c0_5 = arith.constant 0 : index
    %4 = vector.load %arg4[%c0_4, %c0_5] : memref<1x128xf32, #tpu.memory_space<vmem>>, vector<1x128xf32>
    %5 = vector.broadcast %4 : vector<1x128xf32> to vector<64x128xf32>
    %6 = arith.addf %3, %5 : vector<64x128xf32>
    %cst_6 = arith.constant dense<0.000000e+00> : vector<128xf32>
    %7 = vector.multi_reduction <add>, %6, %cst_6 [0] : vector<64x128xf32> to vector<128xf32>
    %8 = vector.shape_cast %7 : vector<128xf32> to vector<1x128xf32>
    %cst_7 = arith.constant 6.400000e+01 : f32
    %9 = vector.broadcast %cst_7 : f32 to vector<1x128xf32>
    %10 = arith.divf %8, %9 : vector<1x128xf32>
    %11 = vector.broadcast %10 : vector<1x128xf32> to vector<64x128xf32>
    %12 = arith.subf %6, %11 : vector<64x128xf32>
    %13 = arith.mulf %12, %12 : vector<64x128xf32>
    %cst_8 = arith.constant dense<0.000000e+00> : vector<128xf32>
    %14 = vector.multi_reduction <add>, %13, %cst_8 [0] : vector<64x128xf32> to vector<128xf32>
    %15 = vector.shape_cast %14 : vector<128xf32> to vector<1x128xf32>
    %cst_9 = arith.constant 6.400000e+01 : f32
    %16 = vector.broadcast %cst_9 : f32 to vector<1x128xf32>
    %17 = arith.divf %15, %16 : vector<1x128xf32>
    %18 = vector.broadcast %10 : vector<1x128xf32> to vector<64x128xf32>
    %19 = arith.subf %6, %18 : vector<64x128xf32>
    %cst_10 = arith.constant 9.99999974E-6 : f32
    %20 = vector.broadcast %cst_10 : f32 to vector<1x128xf32>
    %21 = arith.addf %17, %20 : vector<1x128xf32>
    %22 = math.rsqrt %21 : vector<1x128xf32>
    %23 = vector.broadcast %22 : vector<1x128xf32> to vector<64x128xf32>
    %24 = arith.mulf %19, %23 : vector<64x128xf32>
    %cst_11 = arith.constant 0.000000e+00 : f32
    %25 = vector.broadcast %cst_11 : f32 to vector<64x128xf32>
    %26 = arith.cmpf ogt, %24, %25 : vector<64x128xf32>
    %cst_12 = arith.constant 2.000000e-01 : f32
    %27 = vector.broadcast %cst_12 : f32 to vector<64x128xf32>
    %28 = arith.mulf %27, %24 : vector<64x128xf32>
    %29 = arith.select %26, %24, %28 : vector<64x128xi1>, vector<64x128xf32>
    %30 = arith.truncf %29 : vector<64x128xf32> to vector<64x128xbf16>
    %c0_13 = arith.constant 0 : index
    %c0_14 = arith.constant 0 : index
    %c0_15 = arith.constant 0 : index
    %31 = vector.load %arg5[%c0_13, %c0_14, %c0_15] : memref<1x64x128xbf16, #tpu.memory_space<vmem>>, vector<1x64x128xbf16>
    %32 = vector.shape_cast %31 : vector<1x64x128xbf16> to vector<64x128xbf16>
    %33 = vector.shape_cast %30 : vector<64x128xbf16> to vector<1x64x128xbf16>
    tpu.vector_store %arg5[%c0_13, %c0_14, %c0_15], %33 {strides = array<i32>} : memref<1x64x128xbf16, #tpu.memory_space<vmem>>, vector<1x64x128xbf16>,
    return
  }
  func.func @transform_0(%arg0: i32, %arg1: i32) -> (i32, i32, i32) {
    %c0_i32 = arith.constant 0 : i32
    %c0_i32_0 = arith.constant 0 : i32
    %c0_i32_1 = arith.constant 0 : i32
    return %arg1, %c0_i32, %c0_i32_0 : i32, i32, i32
  }
  func.func @transform_1(%arg0: i32, %arg1: i32) -> (i32, i32) {
    %c0_i32 = arith.constant 0 : i32
    %c0_i32_0 = arith.constant 0 : i32
    return %c0_i32, %arg0 : i32, i32
  }
  func.func @transform_2(%arg0: i32, %arg1: i32) -> (i32, i32) {
    %c0_i32 = arith.constant 0 : i32
    %c0_i32_0 = arith.constant 0 : i32
    return %c0_i32, %arg0 : i32, i32
  }
  func.func @transform_3(%arg0: i32, %arg1: i32) -> (i32, i32, i32) {
    %c0_i32 = arith.constant 0 : i32
    %c0_i32_0 = arith.constant 0 : i32
    return %arg1, %c0_i32, %arg0 : i32, i32, i32
  }
}

module attributes {stable_mosaic.version = 11 : i64} {
  func.func @_conv_fused_kernel(%arg0: i32, %arg1: i32, %arg2: memref<1x16x2048xbf16, #tpu.memory_space<vmem>>, %arg3: memref<2048x128xbf16, #tpu.memory_space<vmem>>, %arg4: memref<1x128xf32, #tpu.memory_space<vmem>>, %arg5: memref<1x16x128xbf16, #tpu.memory_space<vmem>>) attributes {dimension_semantics = [#tpu.dimension_semantics<parallel>, #tpu.dimension_semantics<parallel>], iteration_bounds = array<i64: 2, 2>, scalar_prefetch = 0 : i64, scratch_operands = 0 : i64, tpu.core_type = #tpu.core_type<tc>, window_params = [{transform_indices = @transform_0, window_bounds = array<i64: 1, 16, 2048>}, {transform_indices = @transform_1, window_bounds = array<i64: 2048, 128>}, {transform_indices = @transform_2, window_bounds = array<i64: 1, 128>}, {transform_indices = @transform_3, window_bounds = array<i64: 1, 16, 128>}]} {
    %c0 = arith.constant 0 : index
    %c0_0 = arith.constant 0 : index
    %c0_1 = arith.constant 0 : index
    %0 = vector.load %arg2[%c0, %c0_0, %c0_1] : memref<1x16x2048xbf16, #tpu.memory_space<vmem>>, vector<1x16x2048xbf16>
    %1 = vector.shape_cast %0 : vector<1x16x2048xbf16> to vector<16x2048xbf16>
    %c0_2 = arith.constant 0 : index
    %c0_3 = arith.constant 0 : index
    %2 = vector.load %arg3[%c0_2, %c0_3] : memref<2048x128xbf16, #tpu.memory_space<vmem>>, vector<2048x128xbf16>
    %cst = arith.constant dense<0.000000e+00> : vector<16x128xf32>
    %3 = tpu.matmul %1, %2, %cst {dimension_numbers = #tpu.dot_dimension_numbers<[1], [0], [0], [1], [0, 0, 1, 1], [], []>} : vector<16x2048xbf16>, vector<2048x128xbf16>, vector<16x128xf32> -> vector<16x128xf32>
    %c0_4 = arith.constant 0 : index
    %c0_5 = arith.constant 0 : index
    %4 = vector.load %arg4[%c0_4, %c0_5] : memref<1x128xf32, #tpu.memory_space<vmem>>, vector<1x128xf32>
    %5 = vector.broadcast %4 : vector<1x128xf32> to vector<16x128xf32>
    %6 = arith.addf %3, %5 : vector<16x128xf32>
    %cst_6 = arith.constant dense<0.000000e+00> : vector<128xf32>
    %7 = vector.multi_reduction <add>, %6, %cst_6 [0] : vector<16x128xf32> to vector<128xf32>
    %8 = vector.shape_cast %7 : vector<128xf32> to vector<1x128xf32>
    %cst_7 = arith.constant 1.600000e+01 : f32
    %9 = vector.broadcast %cst_7 : f32 to vector<1x128xf32>
    %10 = arith.divf %8, %9 : vector<1x128xf32>
    %11 = vector.broadcast %10 : vector<1x128xf32> to vector<16x128xf32>
    %12 = arith.subf %6, %11 : vector<16x128xf32>
    %13 = arith.mulf %12, %12 : vector<16x128xf32>
    %cst_8 = arith.constant dense<0.000000e+00> : vector<128xf32>
    %14 = vector.multi_reduction <add>, %13, %cst_8 [0] : vector<16x128xf32> to vector<128xf32>
    %15 = vector.shape_cast %14 : vector<128xf32> to vector<1x128xf32>
    %cst_9 = arith.constant 1.600000e+01 : f32
    %16 = vector.broadcast %cst_9 : f32 to vector<1x128xf32>
    %17 = arith.divf %15, %16 : vector<1x128xf32>
    %18 = vector.broadcast %10 : vector<1x128xf32> to vector<16x128xf32>
    %19 = arith.subf %6, %18 : vector<16x128xf32>
    %cst_10 = arith.constant 9.99999974E-6 : f32
    %20 = vector.broadcast %cst_10 : f32 to vector<1x128xf32>
    %21 = arith.addf %17, %20 : vector<1x128xf32>
    %22 = math.rsqrt %21 : vector<1x128xf32>
    %23 = vector.broadcast %22 : vector<1x128xf32> to vector<16x128xf32>
    %24 = arith.mulf %19, %23 : vector<16x128xf32>
    %cst_11 = arith.constant 0.000000e+00 : f32
    %25 = vector.broadcast %cst_11 : f32 to vector<16x128xf32>
    %26 = arith.cmpf ogt, %24, %25 : vector<16x128xf32>
    %cst_12 = arith.constant 2.000000e-01 : f32
    %27 = vector.broadcast %cst_12 : f32 to vector<16x128xf32>
    %28 = arith.mulf %27, %24 : vector<16x128xf32>
    %29 = arith.select %26, %24, %28 : vector<16x128xi1>, vector<16x128xf32>
    %30 = arith.truncf %29 : vector<16x128xf32> to vector<16x128xbf16>
    %c0_13 = arith.constant 0 : index
    %c0_14 = arith.constant 0 : index
    %c0_15 = arith.constant 0 : index
    %31 = vector.load %arg5[%c0_13, %c0_14, %c0_15] : memref<1x16x128xbf16, #tpu.memory_space<vmem>>, vector<1x16x128xbf16>
    %32 = vector.shape_cast %31 : vector<1x16x128xbf16> to vector<16x128xbf16>
    %33 = vector.shape_cast %30 : vector<16x128xbf16> to vector<1x16x128xbf16>
    tpu.vector_store %arg5[%c0_13, %c0_14, %c0_15], %33 {strides = array<i32>} : memref<1x16x128xbf16, #tpu.memory_space<vmem>>, vector<1x16x128xbf16>,
    return
  }
  func.func @transform_0(%arg0: i32, %arg1: i32) -> (i32, i32, i32) {
    %c0_i32 = arith.constant 0 : i32
    %c0_i32_0 = arith.constant 0 : i32
    %c0_i32_1 = arith.constant 0 : i32
    return %arg1, %c0_i32, %c0_i32_0 : i32, i32, i32
  }
  func.func @transform_1(%arg0: i32, %arg1: i32) -> (i32, i32) {
    %c0_i32 = arith.constant 0 : i32
    %c0_i32_0 = arith.constant 0 : i32
    return %c0_i32, %arg0 : i32, i32
  }
  func.func @transform_2(%arg0: i32, %arg1: i32) -> (i32, i32) {
    %c0_i32 = arith.constant 0 : i32
    %c0_i32_0 = arith.constant 0 : i32
    return %c0_i32, %arg0 : i32, i32
  }
  func.func @transform_3(%arg0: i32, %arg1: i32) -> (i32, i32, i32) {
    %c0_i32 = arith.constant 0 : i32
    %c0_i32_0 = arith.constant 0 : i32
    return %arg1, %c0_i32, %arg0 : i32, i32, i32
  }
}

module attributes {stable_mosaic.version = 11 : i64} {
  func.func @_conv_fused_kernel(%arg0: i32, %arg1: i32, %arg2: memref<1x9x4096xbf16, #tpu.memory_space<vmem>>, %arg3: memref<4096x128xbf16, #tpu.memory_space<vmem>>, %arg4: memref<1x128xf32, #tpu.memory_space<vmem>>, %arg5: memref<1x9x128xbf16, #tpu.memory_space<vmem>>) attributes {dimension_semantics = [#tpu.dimension_semantics<parallel>, #tpu.dimension_semantics<parallel>], iteration_bounds = array<i64: 4, 2>, scalar_prefetch = 0 : i64, scratch_operands = 0 : i64, tpu.core_type = #tpu.core_type<tc>, window_params = [{transform_indices = @transform_0, window_bounds = array<i64: 1, 9, 4096>}, {transform_indices = @transform_1, window_bounds = array<i64: 4096, 128>}, {transform_indices = @transform_2, window_bounds = array<i64: 1, 128>}, {transform_indices = @transform_3, window_bounds = array<i64: 1, 9, 128>}]} {
    %c0 = arith.constant 0 : index
    %c0_0 = arith.constant 0 : index
    %c0_1 = arith.constant 0 : index
    %0 = vector.load %arg2[%c0, %c0_0, %c0_1] : memref<1x9x4096xbf16, #tpu.memory_space<vmem>>, vector<1x9x4096xbf16>
    %1 = vector.shape_cast %0 : vector<1x9x4096xbf16> to vector<9x4096xbf16>
    %c0_2 = arith.constant 0 : index
    %c0_3 = arith.constant 0 : index
    %2 = vector.load %arg3[%c0_2, %c0_3] : memref<4096x128xbf16, #tpu.memory_space<vmem>>, vector<4096x128xbf16>
    %cst = arith.constant dense<0.000000e+00> : vector<9x128xf32>
    %3 = tpu.matmul %1, %2, %cst {dimension_numbers = #tpu.dot_dimension_numbers<[1], [0], [0], [1], [0, 0, 1, 1], [], []>} : vector<9x4096xbf16>, vector<4096x128xbf16>, vector<9x128xf32> -> vector<9x128xf32>
    %c0_4 = arith.constant 0 : index
    %c0_5 = arith.constant 0 : index
    %4 = vector.load %arg4[%c0_4, %c0_5] : memref<1x128xf32, #tpu.memory_space<vmem>>, vector<1x128xf32>
    %5 = vector.broadcast %4 : vector<1x128xf32> to vector<9x128xf32>
    %6 = arith.addf %3, %5 : vector<9x128xf32>
    %cst_6 = arith.constant dense<0.000000e+00> : vector<128xf32>
    %7 = vector.multi_reduction <add>, %6, %cst_6 [0] : vector<9x128xf32> to vector<128xf32>
    %8 = vector.shape_cast %7 : vector<128xf32> to vector<1x128xf32>
    %cst_7 = arith.constant 9.000000e+00 : f32
    %9 = vector.broadcast %cst_7 : f32 to vector<1x128xf32>
    %10 = arith.divf %8, %9 : vector<1x128xf32>
    %11 = vector.broadcast %10 : vector<1x128xf32> to vector<9x128xf32>
    %12 = arith.subf %6, %11 : vector<9x128xf32>
    %13 = arith.mulf %12, %12 : vector<9x128xf32>
    %cst_8 = arith.constant dense<0.000000e+00> : vector<128xf32>
    %14 = vector.multi_reduction <add>, %13, %cst_8 [0] : vector<9x128xf32> to vector<128xf32>
    %15 = vector.shape_cast %14 : vector<128xf32> to vector<1x128xf32>
    %cst_9 = arith.constant 9.000000e+00 : f32
    %16 = vector.broadcast %cst_9 : f32 to vector<1x128xf32>
    %17 = arith.divf %15, %16 : vector<1x128xf32>
    %18 = vector.broadcast %10 : vector<1x128xf32> to vector<9x128xf32>
    %19 = arith.subf %6, %18 : vector<9x128xf32>
    %cst_10 = arith.constant 9.99999974E-6 : f32
    %20 = vector.broadcast %cst_10 : f32 to vector<1x128xf32>
    %21 = arith.addf %17, %20 : vector<1x128xf32>
    %22 = math.rsqrt %21 : vector<1x128xf32>
    %23 = vector.broadcast %22 : vector<1x128xf32> to vector<9x128xf32>
    %24 = arith.mulf %19, %23 : vector<9x128xf32>
    %cst_11 = arith.constant 0.000000e+00 : f32
    %25 = vector.broadcast %cst_11 : f32 to vector<9x128xf32>
    %26 = arith.cmpf ogt, %24, %25 : vector<9x128xf32>
    %cst_12 = arith.constant 2.000000e-01 : f32
    %27 = vector.broadcast %cst_12 : f32 to vector<9x128xf32>
    %28 = arith.mulf %27, %24 : vector<9x128xf32>
    %29 = arith.select %26, %24, %28 : vector<9x128xi1>, vector<9x128xf32>
    %30 = arith.truncf %29 : vector<9x128xf32> to vector<9x128xbf16>
    %c0_13 = arith.constant 0 : index
    %c0_14 = arith.constant 0 : index
    %c0_15 = arith.constant 0 : index
    %31 = vector.load %arg5[%c0_13, %c0_14, %c0_15] : memref<1x9x128xbf16, #tpu.memory_space<vmem>>, vector<1x9x128xbf16>
    %32 = vector.shape_cast %31 : vector<1x9x128xbf16> to vector<9x128xbf16>
    %33 = vector.shape_cast %30 : vector<9x128xbf16> to vector<1x9x128xbf16>
    tpu.vector_store %arg5[%c0_13, %c0_14, %c0_15], %33 {strides = array<i32>} : memref<1x9x128xbf16, #tpu.memory_space<vmem>>, vector<1x9x128xbf16>,
    return
  }
  func.func @transform_0(%arg0: i32, %arg1: i32) -> (i32, i32, i32) {
    %c0_i32 = arith.constant 0 : i32
    %c0_i32_0 = arith.constant 0 : i32
    %c0_i32_1 = arith.constant 0 : i32
    return %arg1, %c0_i32, %c0_i32_0 : i32, i32, i32
  }
  func.func @transform_1(%arg0: i32, %arg1: i32) -> (i32, i32) {
    %c0_i32 = arith.constant 0 : i32
    %c0_i32_0 = arith.constant 0 : i32
    return %c0_i32, %arg0 : i32, i32
  }
  func.func @transform_2(%arg0: i32, %arg1: i32) -> (i32, i32) {
    %c0_i32 = arith.constant 0 : i32
    %c0_i32_0 = arith.constant 0 : i32
    return %c0_i32, %arg0 : i32, i32
  }
  func.func @transform_3(%arg0: i32, %arg1: i32) -> (i32, i32, i32) {
    %c0_i32 = arith.constant 0 : i32
    %c0_i32_0 = arith.constant 0 : i32
    return %arg1, %c0_i32, %arg0 : i32, i32, i32
  }
}

module attributes {stable_mosaic.version = 11 : i64} {
  func.func @_conv_fused_kernel(%arg0: i32, %arg1: i32, %arg2: memref<1x4x8192xbf16, #tpu.memory_space<vmem>>, %arg3: memref<8192x1xbf16, #tpu.memory_space<vmem>>, %arg4: memref<1x1xf32, #tpu.memory_space<vmem>>, %arg5: memref<1x4x1xf32, #tpu.memory_space<vmem>>) attributes {dimension_semantics = [#tpu.dimension_semantics<parallel>, #tpu.dimension_semantics<parallel>], iteration_bounds = array<i64: 1, 2>, scalar_prefetch = 0 : i64, scratch_operands = 0 : i64, tpu.core_type = #tpu.core_type<tc>, window_params = [{transform_indices = @transform_0, window_bounds = array<i64: 1, 4, 8192>}, {transform_indices = @transform_1, window_bounds = array<i64: 8192, 1>}, {transform_indices = @transform_2, window_bounds = array<i64: 1, 1>}, {transform_indices = @transform_3, window_bounds = array<i64: 1, 4, 1>}]} {
    %c0 = arith.constant 0 : index
    %c0_0 = arith.constant 0 : index
    %c0_1 = arith.constant 0 : index
    %0 = vector.load %arg2[%c0, %c0_0, %c0_1] : memref<1x4x8192xbf16, #tpu.memory_space<vmem>>, vector<1x4x8192xbf16>
    %1 = vector.shape_cast %0 : vector<1x4x8192xbf16> to vector<4x8192xbf16>
    %c0_2 = arith.constant 0 : index
    %c0_3 = arith.constant 0 : index
    %2 = vector.load %arg3[%c0_2, %c0_3] : memref<8192x1xbf16, #tpu.memory_space<vmem>>, vector<8192x1xbf16>
    %cst = arith.constant dense<0.000000e+00> : vector<4x1xf32>
    %3 = tpu.matmul %1, %2, %cst {dimension_numbers = #tpu.dot_dimension_numbers<[1], [0], [0], [1], [0, 0, 1, 1], [], []>} : vector<4x8192xbf16>, vector<8192x1xbf16>, vector<4x1xf32> -> vector<4x1xf32>
    %c0_4 = arith.constant 0 : index
    %c0_5 = arith.constant 0 : index
    %4 = vector.load %arg4[%c0_4, %c0_5] : memref<1x1xf32, #tpu.memory_space<vmem>>, vector<1x1xf32>
    %5 = vector.broadcast %4 : vector<1x1xf32> to vector<4x1xf32>
    %6 = arith.addf %3, %5 : vector<4x1xf32>
    %c0_6 = arith.constant 0 : index
    %c0_7 = arith.constant 0 : index
    %c0_8 = arith.constant 0 : index
    %7 = vector.load %arg5[%c0_6, %c0_7, %c0_8] : memref<1x4x1xf32, #tpu.memory_space<vmem>>, vector<1x4x1xf32>
    %8 = vector.shape_cast %7 : vector<1x4x1xf32> to vector<4x1xf32>
    %9 = vector.shape_cast %6 : vector<4x1xf32> to vector<1x4x1xf32>
    tpu.vector_store %arg5[%c0_6, %c0_7, %c0_8], %9 {strides = array<i32>} : memref<1x4x1xf32, #tpu.memory_space<vmem>>, vector<1x4x1xf32>,
    return
  }
  func.func @transform_0(%arg0: i32, %arg1: i32) -> (i32, i32, i32) {
    %c0_i32 = arith.constant 0 : i32
    %c0_i32_0 = arith.constant 0 : i32
    %c0_i32_1 = arith.constant 0 : i32
    return %arg1, %c0_i32, %c0_i32_0 : i32, i32, i32
  }
  func.func @transform_1(%arg0: i32, %arg1: i32) -> (i32, i32) {
    %c0_i32 = arith.constant 0 : i32
    %c0_i32_0 = arith.constant 0 : i32
    return %c0_i32, %arg0 : i32, i32
  }
  func.func @transform_2(%arg0: i32, %arg1: i32) -> (i32, i32) {
    %c0_i32 = arith.constant 0 : i32
    %c0_i32_0 = arith.constant 0 : i32
    return %c0_i32, %arg0 : i32, i32
  }
  func.func @transform_3(%arg0: i32, %arg1: i32) -> (i32, i32, i32) {
    %c0_i32 = arith.constant 0 : i32
    %c0_i32_0 = arith.constant 0 : i32
    return %arg1, %c0_i32, %arg0 : i32, i32, i32
  }
}

</mosaic_0001>

<bundles_post_ra>
// kernel: discriminator_forward.5
= control target key start
LH: loop header
LB: loop body
LE: loop exit
PB: predicated region body
PF: predicated region fallthrough
CT: control target
= control target key end

     0   :  { %8 = vsyncpa [#allocation3], 0  ;;  %s1287_s0 = inlined_call_operand.vmem [shape: bf16[2,256,48], index: 0, kind: input, shape index: {}]   ;;  %s1288_s1 = inlined_call_operand.hbm [shape: bf16[48,64], index: 1, kind: input, shape index: {}]   ;;  %s1289_s2 = inlined_call_operand.hbm [shape: f32[1,64], index: 2, kind: input, shape index: {}]   ;;  %s1290_s3 = inlined_call_operand.vmem [shape: bf16[2,256,64], index: 3, kind: output, shape index: {}]  }
   0x1   :  { %9 = vsyncpa [#allocation5], 0  ;;  %s1080_s12 = smov 0   ;;  %s1082_s13 = smov 0  }
   0x2   :  { %s1084_s14 = smov 0  }
   0x3 LB: > { %s779_s15 = sadd.s32 4294967295, %s1054_s14   ;;  %s24_s16 = sadd.s32 1, %s1050_s13  ;;  %s1054_s14 = sphi %s1084_s14, %s15_s14   ;;  %s1050_s13 = sphi %s1082_s13, %s1294_s13   ;;  %s1046_s12 = sphi %s1080_s12, %s1293_s12  }
   0x4   : > { %p25_p0 = scmp.ge.s32.totalorder %s24_s16, 2  ;;  %p781_p1 = scmp.ge.s32.totalorder %s1054_s14, 1 }
   0x5   : > { %p138_p2 = scmp.lt.s32.totalorder %s1054_s14, 3  ;;  %p1105_p4 = scmp.eq.s32.totalorder %s779_s15, 0 }
   0x6   : > { %s1296_s16 = smov (%p25_p0, %s24_s16), 0  ;;  %s151_s21 = sshll.u32 %s1288_s1, 4  ;;  %s152_s21 = int_to_ptr.hbm [resolvable:$true] %s151_s21 }
   0x7   : > { %p1101_p3 = pnand %p781_p1, %p138_p2  ;;  %s1056_s22 = smov [#allocation2]  }
   0x8   : > { %s153_s23 = sshll.u32 %s1056_s22, 4  ;;  %s167_s26 = sshll.u32 %s1289_s2, 4  ;;  %s154_s23 = int_to_ptr.vmem [resolvable:$true] %s153_s23  ;;  %s168_s26 = int_to_ptr.hbm [resolvable:$true] %s167_s26 }
   0x9   : > { %p924_p5 = pneg %p1101_p3  ;;  %s1057_s27 = smov 64  }
   0xa   : > { %s1058_s28 = smov 4   ;;  %s1059_s29 = smov [#allocation4]  }
   0xb   : > { %p925_p6 = pnand %p1105_p4, %p924_p5  ;;  %s169_s30 = sshll.u32 %s1059_s29, 4  ;;  %s170_s30 = int_to_ptr.vmem [resolvable:$true] %s169_s30 }
   0xc   : > { %190 = sbr.rel (%p1101_p3) target bundleno = 230 (0xe6), region = 32 }
   0xd   : > { %927 = dma.hbm_to_vmem [thread:$0]  (!%p925_p6), %s152_s21, 384, %s154_s23, [#allocation3], %s1057_s27, %s1057_s27, %s1058_s28  }
   0xe   : > { %930 = dma.hbm_to_vmem [thread:$0]  (!%p925_p6), %s168_s26, 16, %s170_s30, [#allocation5]  }
  0x11   : > { %1037 = dma.done.wait (%p1105_p4), [#allocation3], 384  }
  0x12   : > { %1039 = vsyncadd (%p1105_p4), [#allocation3], 4294966912 }
  0x13   : > { %1041 = dma.done.wait (%p1105_p4), [#allocation5], 16  }
  0x14   : > { %1043 = vsyncadd (%p1105_p4), [#allocation5], 4294967280  ;;  %p223_p7 = scmp.lt.s32.totalorder %s1046_s12, 1  ;;  %v906_v0 = vld [vmem:[#allocation2 + $0x10] sm:$0xff]  ;;  %v905_v1 = vld [vmem:[#allocation2 + $0x8] sm:$0xff]  ;;  %vm377_vm0 = vcmask 392192  }
  0x15   : > { %431 = vmatpush.bf16.msra.mxu0 %v906_v0  ;;  %907 = vmatpush.bf16.msra.mxu1 %v906_v0  ;;  %v904_v2 = vld [vmem:[#allocation2] sm:$0xff]  ;;  %v1173_v19 = vld [vmem:[#allocation4] ss:$0 sm:$0xff]  ;;  %vm643_vm3 = vcmask 519168  }
  0x16   : > { %s1298_s12 = smov (!%p223_p7, %s1046_s12), 1  ;;  %908 = vmatpush.bf16.msra.mxu2 %v906_v0  ;;  %909 = vmatpush.bf16.msra.mxu3 %v906_v0 }
  0x17   : > { %s886_s4 = sshll.u32 %s1298_s12, 7 }
  0x18   : > { %s1139_s7 = scalar_lea.vmem %s1287_s0, %s886_s4  ;;  %s1182_s10 = scalar_lea.vmem %s1290_s3, %s886_s4 }
  0x19   : > { %432 = vmatpush.bf16.msra.mxu0 %v905_v1  ;;  %910 = vmatpush.bf16.msra.mxu1 %v905_v1  ;;  %v888_v3 = vld [vmem:[%s1139_s7] sm:$0xff]  ;;  %v889_v7 = vld [vmem:[%s1139_s7 + $0x8] sm:$0xff]  ;;  %v890_v11 = vld [vmem:[%s1139_s7 + $0x10] sm:$0xff] }
  0x1a   : > { %911 = vmatpush.bf16.msra.mxu2 %v905_v1  ;;  %912 = vmatpush.bf16.msra.mxu3 %v905_v1  ;;  %v892_v4 = vld [vmem:[%s1139_s7 + $0x20] sm:$0xff]  ;;  %v893_v8 = vld [vmem:[%s1139_s7 + $0x28] sm:$0xff]  ;;  %v894_v12 = vld [vmem:[%s1139_s7 + $0x30] sm:$0xff] }
  0x1b   : > { %v896_v5 = vld [vmem:[%s1139_s7 + $0x40] sm:$0xff]  ;;  %v897_v9 = vld [vmem:[%s1139_s7 + $0x48] sm:$0xff]  ;;  %v898_v13 = vld [vmem:[%s1139_s7 + $0x50] sm:$0xff] }
  0x1c   : > { %v900_v6 = vld [vmem:[%s1139_s7 + $0x60] sm:$0xff]  ;;  %v901_v10 = vld [vmem:[%s1139_s7 + $0x68] sm:$0xff]  ;;  %v902_v14 = vld [vmem:[%s1139_s7 + $0x70] sm:$0xff] }
  0x1d   : > { %433 = vmatpush.bf16.msra.mxu0 %v904_v2  ;;  %913 = vmatpush.bf16.msra.mxu1 %v904_v2  ;;  %v891_v15 = vld [vmem:[%s1139_s7 + $0x18] sm:$0xff] }
  0x1e   : > { %914 = vmatpush.bf16.msra.mxu2 %v904_v2  ;;  %915 = vmatpush.bf16.msra.mxu3 %v904_v2  ;;  %v895_v16 = vld [vmem:[%s1139_s7 + $0x38] sm:$0xff] }
  0x1f   : > { %v899_v17 = vld [vmem:[%s1139_s7 + $0x58] sm:$0xff] }
  0x20   : > { %868 = vmatmul.msk.bf16.vlgmr.msra.gmra.mxu0 %vm377_vm0, %v888_v3  ;;  %872 = vmatmul.msk.bf16.vlgmr.msra.gmra.mxu1 %vm377_vm0, %v892_v4  ;;  %v903_v18 = vld [vmem:[%s1139_s7 + $0x78] sm:$0xff] }
  0x21   : > { %876 = vmatmul.msk.bf16.vlgmr.msra.gmra.mxu2 %vm377_vm0, %v896_v5  ;;  %880 = vmatmul.msk.bf16.vlgmr.msra.gmra.mxu3 %vm377_vm0, %v900_v6 }
  0x30   : > { %869 = vmatmul.msk.bf16.gmra.mxu0 %vm377_vm0, %v889_v7  ;;  %873 = vmatmul.msk.bf16.gmra.mxu1 %vm377_vm0, %v893_v8 }
  0x31   : > { %877 = vmatmul.msk.bf16.gmra.mxu2 %vm377_vm0, %v897_v9  ;;  %881 = vmatmul.msk.bf16.gmra.mxu3 %vm377_vm0, %v901_v10 }
  0x40   : > { %870 = vmatmul.msk.bf16.gmra.mxu0 %vm377_vm0, %v890_v11  ;;  %874 = vmatmul.msk.bf16.gmra.mxu1 %vm377_vm0, %v894_v12 }
  0x41   : > { %878 = vmatmul.msk.bf16.gmra.mxu2 %vm377_vm0, %v898_v13  ;;  %882 = vmatmul.msk.bf16.gmra.mxu3 %vm377_vm0, %v902_v14 }
  0x50   : > { %871 = vmatmul.msk.bf16.gmra.mxu0 %vm377_vm0, %v891_v15  ;;  %875 = vmatmul.msk.bf16.gmra.mxu1 %vm377_vm0, %v895_v16 }
  0x51   : > { %879 = vmatmul.msk.bf16.gmra.mxu2 %vm377_vm0, %v899_v17  ;;  %883 = vmatmul.msk.bf16.gmra.mxu3 %vm377_vm0, %v903_v18 }
  0x9d   : > { %v435_v20 = vpop.f32.mrf.mxu0  ;;  %v455_v21 = vpop.f32.mrf.mxu1 }
  0x9e   : > { %v436_v22 = vadd.f32 %v1173_v19, %v435_v20  ;;  %v456_v23 = vadd.f32 %v1173_v19, %v455_v21 }
  0xa0   : > { %vm515_vm1 = vcmp.gt.f32.partialorder %v436_v22, 0.0  ;;  %v547_v24 = vmul.f32 0.2, %v436_v22  ;;  %vm523_vm2 = vcmp.gt.f32.partialorder %v456_v23, 0.0  ;;  %v555_v25 = vmul.f32 0.2, %v456_v23 }
  0xa2   : > { %v579_v26 = vsel %vm515_vm1, %v436_v22, %v547_v24  ;;  %v587_v27 = vsel %vm523_vm2, %v456_v23, %v555_v25 }
  0xa3   : > { %v611_v28 = vpack.c.bf16 %v579_v26, %v579_v26  ;;  %v619_v29 = vpack.c.bf16 %v587_v27, %v587_v27 }
  0xa4   : > { %v475_v30 = vpop.f32.mrf.mxu2  ;;  %v495_v31 = vpop.f32.mrf.mxu3 }
  0xa5   : > { %644 = vst.msk [vmem:[%s1182_s10] sm:$0xf] %vm643_vm3, %v611_v28  ;;  %v476_v32 = vadd.f32 %v1173_v19, %v475_v30  ;;  %v496_v33 = vadd.f32 %v1173_v19, %v495_v31  ;;  %v437_v34 = vpop.f32.mrf.mxu0  ;;  %v457_v35 = vpop.f32.mrf.mxu1 }
  0xa6   : > { %652 = vst.msk [vmem:[%s1182_s10 + $0x20] sm:$0xf] %vm643_vm3, %v619_v29  ;;  %v438_v36 = vadd.f32 %v1173_v19, %v437_v34  ;;  %v458_v37 = vadd.f32 %v1173_v19, %v457_v35 }
  0xa7   : > { %vm531_vm4 = vcmp.gt.f32.partialorder %v476_v32, 0.0  ;;  %v563_v38 = vmul.f32 0.2, %v476_v32  ;;  %vm539_vm5 = vcmp.gt.f32.partialorder %v496_v33, 0.0  ;;  %v571_v39 = vmul.f32 0.2, %v496_v33 }
  0xa8   : > { %vm516_vm6 = vcmp.gt.f32.partialorder %v438_v36, 0.0  ;;  %v548_v40 = vmul.f32 0.2, %v438_v36  ;;  %vm524_vm7 = vcmp.gt.f32.partialorder %v458_v37, 0.0  ;;  %v556_v41 = vmul.f32 0.2, %v458_v37 }
  0xa9   : > { %v595_v42 = vsel %vm531_vm4, %v476_v32, %v563_v38  ;;  %v603_v43 = vsel %vm539_vm5, %v496_v33, %v571_v39 }
  0xaa   : > { %v627_v44 = vpack.c.bf16 %v595_v42, %v595_v42  ;;  %v635_v45 = vpack.c.bf16 %v603_v43, %v603_v43  ;;  %v580_v46 = vsel %vm516_vm6, %v438_v36, %v548_v40  ;;  %v588_v47 = vsel %vm524_vm7, %v458_v37, %v556_v41 }
  0xab   : > { %v612_v48 = vpack.c.bf16 %v580_v46, %v580_v46  ;;  %v620_v49 = vpack.c.bf16 %v588_v47, %v588_v47 }
  0xac   : > { %660 = vst.msk [vmem:[%s1182_s10 + $0x40] sm:$0xf] %vm643_vm3, %v627_v44  ;;  %v477_v50 = vpop.f32.mrf.mxu2  ;;  %v497_v51 = vpop.f32.mrf.mxu3 }
  0xad   : > { %668 = vst.msk [vmem:[%s1182_s10 + $0x60] sm:$0xf] %vm643_vm3, %v635_v45  ;;  %v478_v52 = vadd.f32 %v1173_v19, %v477_v50  ;;  %v498_v53 = vadd.f32 %v1173_v19, %v497_v51  ;;  %v440_v54 = vpop.f32.mrf.mxu0  ;;  %v460_v55 = vpop.f32.mrf.mxu1 }
  0xae   : > { %645 = vst.msk [vmem:[%s1182_s10 + $0x4] sm:$0xf] %vm643_vm3, %v612_v48  ;;  %v441_v56 = vadd.f32 %v1173_v19, %v440_v54  ;;  %v461_v57 = vadd.f32 %v1173_v19, %v460_v55 }
  0xaf   : > { %653 = vst.msk [vmem:[%s1182_s10 + $0x24] sm:$0xf] %vm643_vm3, %v620_v49  ;;  %vm532_vm8 = vcmp.gt.f32.partialorder %v478_v52, 0.0  ;;  %v564_v58 = vmul.f32 0.2, %v478_v52  ;;  %vm540_vm9 = vcmp.gt.f32.partialorder %v498_v53, 0.0 }
  0xb0   : > { %v572_v59 = vmul.f32 0.2, %v498_v53  ;;  %vm517_vm10 = vcmp.gt.f32.partialorder %v441_v56, 0.0  ;;  %v549_v60 = vmul.f32 0.2, %v441_v56  ;;  %vm525_vm11 = vcmp.gt.f32.partialorder %v461_v57, 0.0 }
  0xb1   : > { %v596_v61 = vsel %vm532_vm8, %v478_v52, %v564_v58  ;;  %v557_v62 = vmul.f32 0.2, %v461_v57 }
  0xb2   : > { %v628_v63 = vpack.c.bf16 %v596_v61, %v596_v61  ;;  %v604_v0 = vsel %vm540_vm9, %v498_v53, %v572_v59  ;;  %v581_v1 = vsel %vm517_vm10, %v441_v56, %v549_v60 }
  0xb3   : > { %v636_v2 = vpack.c.bf16 %v604_v0, %v604_v0  ;;  %v613_v3 = vpack.c.bf16 %v581_v1, %v581_v1  ;;  %v589_v4 = vsel %vm525_vm11, %v461_v57, %v557_v62 }
  0xb4   : > { %661 = vst.msk [vmem:[%s1182_s10 + $0x44] sm:$0xf] %vm643_vm3, %v628_v63  ;;  %v621_v5 = vpack.c.bf16 %v589_v4, %v589_v4  ;;  %v480_v6 = vpop.f32.mrf.mxu2  ;;  %v500_v7 = vpop.f32.mrf.mxu3 }
  0xb5   : > { %669 = vst.msk [vmem:[%s1182_s10 + $0x64] sm:$0xf] %vm643_vm3, %v636_v2  ;;  %v481_v8 = vadd.f32 %v1173_v19, %v480_v6  ;;  %v501_v9 = vadd.f32 %v1173_v19, %v500_v7  ;;  %v442_v10 = vpop.f32.mrf.mxu0  ;;  %v462_v11 = vpop.f32.mrf.mxu1 }
  0xb6   : > { %646 = vst.msk [vmem:[%s1182_s10 + $0x8] sm:$0xf] %vm643_vm3, %v613_v3  ;;  %v443_v12 = vadd.f32 %v1173_v19, %v442_v10  ;;  %v463_v13 = vadd.f32 %v1173_v19, %v462_v11 }
  0xb7   : > { %654 = vst.msk [vmem:[%s1182_s10 + $0x28] sm:$0xf] %vm643_vm3, %v621_v5  ;;  %vm533_vm12 = vcmp.gt.f32.partialorder %v481_v8, 0.0  ;;  %v565_v14 = vmul.f32 0.2, %v481_v8  ;;  %vm541_vm13 = vcmp.gt.f32.partialorder %v501_v9, 0.0 }
  0xb8   : > { %v573_v15 = vmul.f32 0.2, %v501_v9  ;;  %vm518_vm14 = vcmp.gt.f32.partialorder %v443_v12, 0.0  ;;  %v550_v16 = vmul.f32 0.2, %v443_v12  ;;  %vm526_vm15 = vcmp.gt.f32.partialorder %v463_v13, 0.0 }
  0xb9   : > { %v597_v17 = vsel %vm533_vm12, %v481_v8, %v565_v14  ;;  %v558_v18 = vmul.f32 0.2, %v463_v13 }
  0xba   : > { %v629_v20 = vpack.c.bf16 %v597_v17, %v597_v17  ;;  %v605_v21 = vsel %vm541_vm13, %v501_v9, %v573_v15  ;;  %v582_v22 = vsel %vm518_vm14, %v443_v12, %v550_v16 }
  0xbb   : > { %v637_v23 = vpack.c.bf16 %v605_v21, %v605_v21  ;;  %v614_v24 = vpack.c.bf16 %v582_v22, %v582_v22  ;;  %v590_v25 = vsel %vm526_vm15, %v463_v13, %v558_v18 }
  0xbc   : > { %662 = vst.msk [vmem:[%s1182_s10 + $0x48] sm:$0xf] %vm643_vm3, %v629_v20  ;;  %v622_v26 = vpack.c.bf16 %v590_v25, %v590_v25  ;;  %v482_v27 = vpop.f32.mrf.mxu2  ;;  %v502_v28 = vpop.f32.mrf.mxu3 }
  0xbd   : > { %670 = vst.msk [vmem:[%s1182_s10 + $0x68] sm:$0xf] %vm643_vm3, %v637_v23  ;;  %v483_v29 = vadd.f32 %v1173_v19, %v482_v27  ;;  %v503_v30 = vadd.f32 %v1173_v19, %v502_v28  ;;  %v445_v31 = vpop.f32.mrf.mxu0  ;;  %v465_v32 = vpop.f32.mrf.mxu1 }
  0xbe   : > { %647 = vst.msk [vmem:[%s1182_s10 + $0xc] sm:$0xf] %vm643_vm3, %v614_v24  ;;  %v446_v33 = vadd.f32 %v1173_v19, %v445_v31  ;;  %v466_v34 = vadd.f32 %v1173_v19, %v465_v32 }
  0xbf   : > { %655 = vst.msk [vmem:[%s1182_s10 + $0x2c] sm:$0xf] %vm643_vm3, %v622_v26  ;;  %vm534_vm0 = vcmp.gt.f32.partialorder %v483_v29, 0.0  ;;  %v566_v35 = vmul.f32 0.2, %v483_v29  ;;  %vm542_vm1 = vcmp.gt.f32.partialorder %v503_v30, 0.0 }
  0xc0   : > { %v574_v36 = vmul.f32 0.2, %v503_v30  ;;  %vm519_vm2 = vcmp.gt.f32.partialorder %v446_v33, 0.0  ;;  %v551_v37 = vmul.f32 0.2, %v446_v33  ;;  %vm527_vm4 = vcmp.gt.f32.partialorder %v466_v34, 0.0 }
  0xc1   : > { %v598_v38 = vsel %vm534_vm0, %v483_v29, %v566_v35  ;;  %v559_v39 = vmul.f32 0.2, %v466_v34 }
  0xc2   : > { %v630_v40 = vpack.c.bf16 %v598_v38, %v598_v38  ;;  %v606_v41 = vsel %vm542_vm1, %v503_v30, %v574_v36  ;;  %v583_v42 = vsel %vm519_vm2, %v446_v33, %v551_v37 }
  0xc3   : > { %v638_v43 = vpack.c.bf16 %v606_v41, %v606_v41  ;;  %v615_v44 = vpack.c.bf16 %v583_v42, %v583_v42  ;;  %v591_v45 = vsel %vm527_vm4, %v466_v34, %v559_v39 }
  0xc4   : > { %663 = vst.msk [vmem:[%s1182_s10 + $0x4c] sm:$0xf] %vm643_vm3, %v630_v40  ;;  %v623_v46 = vpack.c.bf16 %v591_v45, %v591_v45  ;;  %v485_v47 = vpop.f32.mrf.mxu2  ;;  %v505_v48 = vpop.f32.mrf.mxu3 }
  0xc5   : > { %671 = vst.msk [vmem:[%s1182_s10 + $0x6c] sm:$0xf] %vm643_vm3, %v638_v43  ;;  %v486_v49 = vadd.f32 %v1173_v19, %v485_v47  ;;  %v506_v50 = vadd.f32 %v1173_v19, %v505_v48  ;;  %v447_v51 = vpop.f32.mrf.mxu0  ;;  %v467_v52 = vpop.f32.mrf.mxu1 }
  0xc6   : > { %648 = vst.msk [vmem:[%s1182_s10 + $0x10] sm:$0xf] %vm643_vm3, %v615_v44  ;;  %v448_v53 = vadd.f32 %v1173_v19, %v447_v51  ;;  %v468_v54 = vadd.f32 %v1173_v19, %v467_v52 }
  0xc7   : > { %656 = vst.msk [vmem:[%s1182_s10 + $0x30] sm:$0xf] %vm643_vm3, %v623_v46  ;;  %vm535_vm5 = vcmp.gt.f32.partialorder %v486_v49, 0.0  ;;  %v567_v55 = vmul.f32 0.2, %v486_v49  ;;  %vm543_vm6 = vcmp.gt.f32.partialorder %v506_v50, 0.0 }
  0xc8   : > { %v575_v56 = vmul.f32 0.2, %v506_v50  ;;  %vm520_vm7 = vcmp.gt.f32.partialorder %v448_v53, 0.0  ;;  %v552_v57 = vmul.f32 0.2, %v448_v53  ;;  %vm528_vm8 = vcmp.gt.f32.partialorder %v468_v54, 0.0 }
  0xc9   : > { %v599_v58 = vsel %vm535_vm5, %v486_v49, %v567_v55  ;;  %v560_v59 = vmul.f32 0.2, %v468_v54 }
  0xca   : > { %v631_v60 = vpack.c.bf16 %v599_v58, %v599_v58  ;;  %v607_v61 = vsel %vm543_vm6, %v506_v50, %v575_v56  ;;  %v584_v62 = vsel %vm520_vm7, %v448_v53, %v552_v57 }
  0xcb   : > { %v639_v63 = vpack.c.bf16 %v607_v61, %v607_v61  ;;  %v616_v0 = vpack.c.bf16 %v584_v62, %v584_v62  ;;  %v592_v1 = vsel %vm528_vm8, %v468_v54, %v560_v59 }
  0xcc   : > { %664 = vst.msk [vmem:[%s1182_s10 + $0x50] sm:$0xf] %vm643_vm3, %v631_v60  ;;  %v624_v2 = vpack.c.bf16 %v592_v1, %v592_v1  ;;  %v487_v3 = vpop.f32.mrf.mxu2  ;;  %v507_v4 = vpop.f32.mrf.mxu3 }
  0xcd   : > { %672 = vst.msk [vmem:[%s1182_s10 + $0x70] sm:$0xf] %vm643_vm3, %v639_v63  ;;  %v488_v5 = vadd.f32 %v1173_v19, %v487_v3  ;;  %v508_v6 = vadd.f32 %v1173_v19, %v507_v4  ;;  %v450_v7 = vpop.f32.mrf.mxu0  ;;  %v470_v8 = vpop.f32.mrf.mxu1 }
  0xce   : > { %649 = vst.msk [vmem:[%s1182_s10 + $0x14] sm:$0xf] %vm643_vm3, %v616_v0  ;;  %v451_v9 = vadd.f32 %v1173_v19, %v450_v7  ;;  %v471_v10 = vadd.f32 %v1173_v19, %v470_v8 }
  0xcf   : > { %657 = vst.msk [vmem:[%s1182_s10 + $0x34] sm:$0xf] %vm643_vm3, %v624_v2  ;;  %vm536_vm9 = vcmp.gt.f32.partialorder %v488_v5, 0.0  ;;  %v568_v11 = vmul.f32 0.2, %v488_v5  ;;  %vm544_vm10 = vcmp.gt.f32.partialorder %v508_v6, 0.0 }
  0xd0   : > { %v576_v12 = vmul.f32 0.2, %v508_v6  ;;  %vm521_vm11 = vcmp.gt.f32.partialorder %v451_v9, 0.0  ;;  %v553_v13 = vmul.f32 0.2, %v451_v9  ;;  %vm529_vm12 = vcmp.gt.f32.partialorder %v471_v10, 0.0 }
  0xd1   : > { %v600_v14 = vsel %vm536_vm9, %v488_v5, %v568_v11  ;;  %v561_v15 = vmul.f32 0.2, %v471_v10 }
  0xd2   : > { %v632_v16 = vpack.c.bf16 %v600_v14, %v600_v14  ;;  %v608_v17 = vsel %vm544_vm10, %v508_v6, %v576_v12  ;;  %v585_v18 = vsel %vm521_vm11, %v451_v9, %v553_v13 }
  0xd3   : > { %v640_v20 = vpack.c.bf16 %v608_v17, %v608_v17  ;;  %v617_v21 = vpack.c.bf16 %v585_v18, %v585_v18  ;;  %v593_v22 = vsel %vm529_vm12, %v471_v10, %v561_v15 }
  0xd4   : > { %665 = vst.msk [vmem:[%s1182_s10 + $0x54] sm:$0xf] %vm643_vm3, %v632_v16  ;;  %v625_v23 = vpack.c.bf16 %v593_v22, %v593_v22  ;;  %v490_v24 = vpop.f32.mrf.mxu2  ;;  %v510_v25 = vpop.f32.mrf.mxu3 }
  0xd5   : > { %673 = vst.msk [vmem:[%s1182_s10 + $0x74] sm:$0xf] %vm643_vm3, %v640_v20  ;;  %v491_v26 = vadd.f32 %v1173_v19, %v490_v24  ;;  %v511_v27 = vadd.f32 %v1173_v19, %v510_v25  ;;  %v452_v28 = vpop.f32.mrf.mxu0  ;;  %v472_v29 = vpop.f32.mrf.mxu1 }
  0xd6   : > { %650 = vst.msk [vmem:[%s1182_s10 + $0x18] sm:$0xf] %vm643_vm3, %v617_v21  ;;  %v453_v30 = vadd.f32 %v1173_v19, %v452_v28  ;;  %v473_v31 = vadd.f32 %v1173_v19, %v472_v29 }
  0xd7   : > { %658 = vst.msk [vmem:[%s1182_s10 + $0x38] sm:$0xf] %vm643_vm3, %v625_v23  ;;  %vm537_vm13 = vcmp.gt.f32.partialorder %v491_v26, 0.0  ;;  %v569_v32 = vmul.f32 0.2, %v491_v26  ;;  %vm545_vm14 = vcmp.gt.f32.partialorder %v511_v27, 0.0 }
  0xd8   : > { %v577_v33 = vmul.f32 0.2, %v511_v27  ;;  %vm522_vm15 = vcmp.gt.f32.partialorder %v453_v30, 0.0  ;;  %v554_v34 = vmul.f32 0.2, %v453_v30  ;;  %vm530_vm0 = vcmp.gt.f32.partialorder %v473_v31, 0.0 }
  0xd9   : > { %v601_v35 = vsel %vm537_vm13, %v491_v26, %v569_v32  ;;  %v562_v36 = vmul.f32 0.2, %v473_v31 }
  0xda   : > { %v633_v37 = vpack.c.bf16 %v601_v35, %v601_v35  ;;  %v609_v38 = vsel %vm545_vm14, %v511_v27, %v577_v33  ;;  %v586_v39 = vsel %vm522_vm15, %v453_v30, %v554_v34 }
  0xdb   : > { %v641_v40 = vpack.c.bf16 %v609_v38, %v609_v38  ;;  %v618_v41 = vpack.c.bf16 %v586_v39, %v586_v39  ;;  %v594_v42 = vsel %vm530_vm0, %v473_v31, %v562_v36 }
  0xdc   : > { %666 = vst.msk [vmem:[%s1182_s10 + $0x58] sm:$0xf] %vm643_vm3, %v633_v37  ;;  %v626_v43 = vpack.c.bf16 %v594_v42, %v594_v42  ;;  %v492_v44 = vpop.f32.mrf.mxu2  ;;  %v512_v45 = vpop.f32.mrf.mxu3 }
  0xdd   : > { %674 = vst.msk [vmem:[%s1182_s10 + $0x78] sm:$0xf] %vm643_vm3, %v641_v40  ;;  %v493_v46 = vadd.f32 %v1173_v19, %v492_v44  ;;  %v513_v47 = vadd.f32 %v1173_v19, %v512_v45 }
  0xde   : > { %651 = vst.msk [vmem:[%s1182_s10 + $0x1c] sm:$0xf] %vm643_vm3, %v618_v41 }
  0xdf   : > { %659 = vst.msk [vmem:[%s1182_s10 + $0x3c] sm:$0xf] %vm643_vm3, %v626_v43  ;;  %vm538_vm1 = vcmp.gt.f32.partialorder %v493_v46, 0.0  ;;  %v570_v48 = vmul.f32 0.2, %v493_v46  ;;  %vm546_vm2 = vcmp.gt.f32.partialorder %v513_v47, 0.0 }
  0xe0   : > { %v578_v49 = vmul.f32 0.2, %v513_v47 }
  0xe1   : > { %v602_v50 = vsel %vm538_vm1, %v493_v46, %v570_v48 }
  0xe2   : > { %v634_v51 = vpack.c.bf16 %v602_v50, %v602_v50  ;;  %v610_v52 = vsel %vm546_vm2, %v513_v47, %v578_v49 }
  0xe3   : > { %v642_v53 = vpack.c.bf16 %v610_v52, %v610_v52 }
  0xe4   : > { %667 = vst.msk [vmem:[%s1182_s10 + $0x5c] sm:$0xf] %vm643_vm3, %v634_v51 }
  0xe5   : > { %675 = vst.msk [vmem:[%s1182_s10 + $0x7c] sm:$0xf] %vm643_vm3, %v642_v53 }
  0xe6 PF: > { %s15_s14 = sadd.s32 1, %s1054_s14   ;;  %s1293_s12 = smov %s1050_s13 }
  0xe7   : > { %p12_p8 = scmp.ge.s32.totalorder %s15_s14, 4   ;;  %s1294_s13 = smov %s1296_s16 }
  0xe9   :  { %14 = sbr.rel (!%p12_p8) target bundleno = 3 (0x3), region = 73 }
  0xee   :  { %703 = vsyncpa [#allocation3], 1 }
  0xef   :  { %705 = vsyncpa [#allocation3 + $0x1], 1 }
  0xf0   :  { %706 = vsyncpa [#allocation5], 1 }

// kernel: discriminator_forward.6
= control target key start
LH: loop header
LB: loop body
LE: loop exit
PB: predicated region body
PF: predicated region fallthrough
CT: control target
= control target key end

     0   :  { %s1970_s12 = smov 0   ;;  %s1972_s13 = smov 0   ;;  %s2309_s0 = inlined_call_operand.vmem [shape: bf16[2,64,1024], index: 0, kind: input, shape index: {}]   ;;  %s2310_s1 = inlined_call_operand.vmem [shape: bf16[1024,128], index: 1, kind: input, shape index: {}]   ;;  %s2311_s2 = inlined_call_operand.vmem [shape: f32[1,128], index: 2, kind: input, shape index: {}]   ;;  %s2312_s3 = inlined_call_operand.vmem [shape: bf16[2,64,128], index: 3, kind: output, shape index: {}]  }
   0x1   :  { %s1974_s14 = smov 0  }
   0x2 LB: > { %s22_s15 = sadd.s32 1, %s1943_s13  ;;  %p1383_p0 = scmp.ge.s32.totalorder %s1947_s14, 1  ;;  %s1947_s14 = sphi %s1974_s14, %s13_s14   ;;  %s1943_s13 = sphi %s1972_s13, %s2314_s13   ;;  %s1939_s12 = sphi %s1970_s12, %s2313_s12  }
   0x3   : > { %p23_p1 = scmp.ge.s32.totalorder %s22_s15, 2  ;;  %p168_p2 = scmp.lt.s32.totalorder %s1947_s14, 3 }
   0x5   : > { %s2316_s15 = smov (%p23_p1, %s22_s15), 0  ;;  %p169_p3 = pnand %p1383_p0, %p168_p2 }
   0x6   : > { %p202_p4 = scmp.lt.s32.totalorder (!%p169_p3), %s1939_s12, 1 }
   0x7   : > { %172 = sbr.rel (%p169_p3) target bundleno = 384 (0x180), region = 32 }
   0xc   : > { %v1815_v0 = vld [vmem:[%s2310_s1 + $0x38] sm:$0xff]  ;;  %v1814_v4 = vld [vmem:[%s2310_s1 + $0x30] sm:$0xff]  ;;  %v1813_v8 = vld [vmem:[%s2310_s1 + $0x28] sm:$0xff]  ;;  %s2318_s12 = smov (!%p202_p4, %s1939_s12), 1 }
   0xd   : > { %v1823_v1 = vld [vmem:[%s2310_s1 + $0x78] sm:$0xff]  ;;  %930 = vmatpush.bf16.msra.mxu0 %v1815_v0  ;;  %v1822_v5 = vld [vmem:[%s2310_s1 + $0x70] sm:$0xff]  ;;  %v1821_v9 = vld [vmem:[%s2310_s1 + $0x68] sm:$0xff]  ;;  %s1774_s18 = sshll.u32 %s2318_s12, 8 }
   0xe   : > { %v1831_v2 = vld [vmem:[%s2310_s1 + $0xb8] sm:$0xff]  ;;  %959 = vmatpush.bf16.msra.mxu1 %v1823_v1  ;;  %v1830_v6 = vld [vmem:[%s2310_s1 + $0xb0] sm:$0xff]  ;;  %v1829_v10 = vld [vmem:[%s2310_s1 + $0xa8] sm:$0xff]  ;;  %s2076_s25 = scalar_lea.vmem %s2309_s0, %s1774_s18 }
   0xf   : > { %v1839_v3 = vld [vmem:[%s2310_s1 + $0xf8] sm:$0xff]  ;;  %988 = vmatpush.bf16.msra.mxu2 %v1831_v2  ;;  %v1838_v7 = vld [vmem:[%s2310_s1 + $0xf0] sm:$0xff]  ;;  %v1837_v11 = vld [vmem:[%s2310_s1 + $0xe8] sm:$0xff] }
  0x10   : > { %1017 = vmatpush.bf16.msra.mxu3 %v1839_v3  ;;  %v1812_v12 = vld [vmem:[%s2310_s1 + $0x20] sm:$0xff]  ;;  %v1811_v16 = vld [vmem:[%s2310_s1 + $0x18] sm:$0xff]  ;;  %v1810_v20 = vld [vmem:[%s2310_s1 + $0x10] sm:$0xff] }
  0x11   : > { %931 = vmatpush.bf16.msra.mxu0 %v1814_v4  ;;  %v1820_v13 = vld [vmem:[%s2310_s1 + $0x60] sm:$0xff]  ;;  %v1819_v17 = vld [vmem:[%s2310_s1 + $0x58] sm:$0xff]  ;;  %v1818_v21 = vld [vmem:[%s2310_s1 + $0x50] sm:$0xff] }
  0x12   : > { %960 = vmatpush.bf16.msra.mxu1 %v1822_v5  ;;  %v1828_v14 = vld [vmem:[%s2310_s1 + $0xa0] sm:$0xff]  ;;  %v1827_v18 = vld [vmem:[%s2310_s1 + $0x98] sm:$0xff]  ;;  %v1826_v22 = vld [vmem:[%s2310_s1 + $0x90] sm:$0xff] }
  0x13   : > { %989 = vmatpush.bf16.msra.mxu2 %v1830_v6  ;;  %v1836_v15 = vld [vmem:[%s2310_s1 + $0xe0] sm:$0xff]  ;;  %v1835_v19 = vld [vmem:[%s2310_s1 + $0xd8] sm:$0xff]  ;;  %v1834_v23 = vld [vmem:[%s2310_s1 + $0xd0] sm:$0xff] }
  0x14   : > { %1018 = vmatpush.bf16.msra.mxu3 %v1838_v7  ;;  %v1809_v24 = vld [vmem:[%s2310_s1 + $0x8] sm:$0xff]  ;;  %v1808_v28 = vld [vmem:[%s2310_s1] sm:$0xff]  ;;  %v1863_v40 = vld [vmem:[%s2310_s1 + $0x1b8] sm:$0xff] }
  0x15   : > { %932 = vmatpush.bf16.msra.mxu0 %v1813_v8  ;;  %v1817_v25 = vld [vmem:[%s2310_s1 + $0x48] sm:$0xff]  ;;  %v1816_v29 = vld [vmem:[%s2310_s1 + $0x40] sm:$0xff]  ;;  %v1847_v41 = vld [vmem:[%s2310_s1 + $0x138] sm:$0xff] }
  0x16   : > { %961 = vmatpush.bf16.msra.mxu1 %v1821_v9  ;;  %v1825_v26 = vld [vmem:[%s2310_s1 + $0x88] sm:$0xff]  ;;  %v1824_v30 = vld [vmem:[%s2310_s1 + $0x80] sm:$0xff]  ;;  %v1871_v46 = vld [vmem:[%s2310_s1 + $0x1f8] sm:$0xff] }
  0x17   : > { %990 = vmatpush.bf16.msra.mxu2 %v1829_v10  ;;  %v1833_v27 = vld [vmem:[%s2310_s1 + $0xc8] sm:$0xff]  ;;  %v1832_v31 = vld [vmem:[%s2310_s1 + $0xc0] sm:$0xff]  ;;  %v1855_v47 = vld [vmem:[%s2310_s1 + $0x178] sm:$0xff] }
  0x18   : > { %1019 = vmatpush.bf16.msra.mxu3 %v1837_v11  ;;  %v1390_v32 = vld [vmem:[%s2076_s25] sm:$0xf]  ;;  %v1776_v34 = vld [vmem:[%s2076_s25 + $0x4] sm:$0xf]  ;;  %v1398_v36 = vld [vmem:[%s2076_s25 + $0x8] sm:$0xf] }
  0x19   : > { %933 = vmatpush.bf16.msra.mxu0 %v1812_v12  ;;  %v1780_v33 = vld [vmem:[%s2076_s25 + $0x1c] sm:$0xf0]  ;;  %v1392_v35 = vld [vmem:[%s2076_s25 + $0x20] sm:$0xf0]  ;;  %v1781_v37 = vld [vmem:[%s2076_s25 + $0x24] sm:$0xf0] }
  0x1a   : > { %962 = vmatpush.bf16.msra.mxu1 %v1820_v13  ;;  %v1777_v38 = vld [vmem:[%s2076_s25 + $0xc] sm:$0xf]  ;;  %v1391_v42 = vor.u32 %v1780_v33, %v1390_v32  ;;  %v1395_v43 = vor.u32 %v1776_v34, %v1392_v35  ;;  %v1399_v44 = vor.u32 %v1781_v37, %v1398_v36  ;;  %v1862_v48 = vld [vmem:[%s2310_s1 + $0x1b0] sm:$0xff]  ;;  %v1422_v56 = vld [vmem:[%s2076_s25 + $0x40] sm:$0xf] }
  0x1b   : > { %991 = vmatpush.bf16.msra.mxu2 %v1828_v14  ;;  %v1400_v39 = vld [vmem:[%s2076_s25 + $0x28] sm:$0xf0]  ;;  %v1846_v49 = vld [vmem:[%s2310_s1 + $0x130] sm:$0xff]  ;;  %v1860_v57 = vld [vmem:[%s2310_s1 + $0x1a0] sm:$0xff] }
  0x1c   : > { %1020 = vmatpush.bf16.msra.mxu3 %v1836_v15  ;;  %v1403_v45 = vor.u32 %v1777_v38, %v1400_v39  ;;  %v1870_v50 = vld [vmem:[%s2310_s1 + $0x1f0] sm:$0xff]  ;;  %v1861_v52 = vld [vmem:[%s2310_s1 + $0x1a8] sm:$0xff]  ;;  %v1844_v58 = vld [vmem:[%s2310_s1 + $0x120] sm:$0xff] }
  0x1d   : > { %934 = vmatpush.bf16.msra.mxu0 %v1811_v16  ;;  %v1854_v51 = vld [vmem:[%s2310_s1 + $0x170] sm:$0xff]  ;;  %v1845_v53 = vld [vmem:[%s2310_s1 + $0x128] sm:$0xff]  ;;  %v1788_v59 = vld [vmem:[%s2076_s25 + $0x5c] sm:$0xf0] }
  0x1e   : > { %963 = vmatpush.bf16.msra.mxu1 %v1819_v17  ;;  %v1869_v54 = vld [vmem:[%s2310_s1 + $0x1e8] sm:$0xff]  ;;  %v1784_v60 = vld [vmem:[%s2076_s25 + $0x44] sm:$0xf]  ;;  %v1859_v4 = vld [vmem:[%s2310_s1 + $0x198] sm:$0xff]  ;;  %v1423_v6 = vor.u32 %v1788_v59, %v1422_v56 }
  0x1f   : > { %992 = vmatpush.bf16.msra.mxu2 %v1827_v18  ;;  %v1853_v55 = vld [vmem:[%s2310_s1 + $0x168] sm:$0xff]  ;;  %v1424_v61 = vld [vmem:[%s2076_s25 + $0x60] sm:$0xf0]  ;;  %v1843_v5 = vld [vmem:[%s2310_s1 + $0x118] sm:$0xff] }
  0x20   : > { %1021 = vmatpush.bf16.msra.mxu3 %v1835_v19  ;;  %v1430_v62 = vld [vmem:[%s2076_s25 + $0x48] sm:$0xf]  ;;  %v1785_v0 = vld [vmem:[%s2076_s25 + $0x4c] sm:$0xf]  ;;  %v1868_v2 = vld [vmem:[%s2310_s1 + $0x1e0] sm:$0xff]  ;;  %v1427_v7 = vor.u32 %v1784_v60, %v1424_v61 }
  0x21   : > { %935 = vmatpush.bf16.msra.mxu0 %v1810_v20  ;;  %v1789_v63 = vld [vmem:[%s2076_s25 + $0x64] sm:$0xf0]  ;;  %v1432_v1 = vld [vmem:[%s2076_s25 + $0x68] sm:$0xf0]  ;;  %v1852_v3 = vld [vmem:[%s2310_s1 + $0x160] sm:$0xff] }
  0x22   : > { %964 = vmatpush.bf16.msra.mxu1 %v1818_v21  ;;  %v1431_v8 = vor.u32 %v1789_v63, %v1430_v62  ;;  %v1435_v9 = vor.u32 %v1785_v0, %v1432_v1  ;;  %v1867_v10 = vld [vmem:[%s2310_s1 + $0x1d8] sm:$0xff]  ;;  %v1858_v12 = vld [vmem:[%s2310_s1 + $0x190] sm:$0xff]  ;;  %v1857_v16 = vld [vmem:[%s2310_s1 + $0x188] sm:$0xff] }
  0x23   : > { %993 = vmatpush.bf16.msra.mxu2 %v1826_v22  ;;  %v1851_v11 = vld [vmem:[%s2310_s1 + $0x158] sm:$0xff]  ;;  %v1842_v13 = vld [vmem:[%s2310_s1 + $0x110] sm:$0xff]  ;;  %v1841_v17 = vld [vmem:[%s2310_s1 + $0x108] sm:$0xff] }
  0x24   : > { %1022 = vmatpush.bf16.msra.mxu3 %v1834_v23  ;;  %v1866_v14 = vld [vmem:[%s2310_s1 + $0x1d0] sm:$0xff]  ;;  %v1865_v18 = vld [vmem:[%s2310_s1 + $0x1c8] sm:$0xff]  ;;  %v1454_v20 = vld [vmem:[%s2076_s25 + $0x80] sm:$0xf] }
  0x25   : > { %936 = vmatpush.bf16.msra.mxu0 %v1809_v24  ;;  %v1850_v15 = vld [vmem:[%s2310_s1 + $0x150] sm:$0xff]  ;;  %v1849_v19 = vld [vmem:[%s2310_s1 + $0x148] sm:$0xff]  ;;  %v1856_v21 = vld [vmem:[%s2310_s1 + $0x180] sm:$0xff] }
  0x26   : > { %965 = vmatpush.bf16.msra.mxu1 %v1817_v25  ;;  %v1840_v22 = vld [vmem:[%s2310_s1 + $0x100] sm:$0xff]  ;;  %v1438_v60 = vld [vmem:[%s2076_s25 + $0x50] sm:$0xf]  ;;  %v1786_v62 = vld [vmem:[%s2076_s25 + $0x54] sm:$0xf] }
  0x27   : > { %994 = vmatpush.bf16.msra.mxu2 %v1825_v26  ;;  %v1796_v23 = vld [vmem:[%s2076_s25 + $0x9c] sm:$0xf0]  ;;  %v1792_v24 = vld [vmem:[%s2076_s25 + $0x84] sm:$0xf]  ;;  %v1462_v26 = vld [vmem:[%s2076_s25 + $0x88] sm:$0xf] }
  0x28   : > { %1023 = vmatpush.bf16.msra.mxu3 %v1833_v27  ;;  %v1456_v25 = vld [vmem:[%s2076_s25 + $0xa0] sm:$0xf0]  ;;  %v1797_v27 = vld [vmem:[%s2076_s25 + $0xa4] sm:$0xf0]  ;;  %v1455_v32 = vor.u32 %v1796_v23, %v1454_v20  ;;  %v1486_v36 = vld [vmem:[%s2076_s25 + $0xc0] sm:$0xf] }
  0x29   : > { %937 = vmatpush.bf16.msra.mxu0 %v1808_v28  ;;  %v1793_v28 = vld [vmem:[%s2076_s25 + $0x8c] sm:$0xf]  ;;  %v1459_v33 = vor.u32 %v1792_v24, %v1456_v25  ;;  %v1463_v34 = vor.u32 %v1797_v27, %v1462_v26  ;;  %v1804_v37 = vld [vmem:[%s2076_s25 + $0xdc] sm:$0xf0]  ;;  %v1800_v38 = vld [vmem:[%s2076_s25 + $0xc4] sm:$0xf] }
  0x2a   : > { %966 = vmatpush.bf16.msra.mxu1 %v1816_v29  ;;  %v1464_v29 = vld [vmem:[%s2076_s25 + $0xa8] sm:$0xf0]  ;;  %v1488_v39 = vld [vmem:[%s2076_s25 + $0xe0] sm:$0xf0]  ;;  %v1790_v61 = vld [vmem:[%s2076_s25 + $0x6c] sm:$0xf0] }
  0x2b   : > { %995 = vmatpush.bf16.msra.mxu2 %v1824_v30  ;;  %v1864_v30 = vld [vmem:[%s2310_s1 + $0x1c0] sm:$0xff]  ;;  %v1467_v35 = vor.u32 %v1793_v28, %v1464_v29  ;;  %v1440_v63 = vld [vmem:[%s2076_s25 + $0x70] sm:$0xf0]  ;;  %v1446_v0 = vld [vmem:[%s2076_s25 + $0x58] sm:$0xf] }
  0x2c   : > { %1024 = vmatpush.bf16.msra.mxu3 %v1832_v31  ;;  %938 = vmatmul.bf16.vlgmr.msra.gmra.mxu0 %v1391_v42  ;;  %v1848_v31 = vld [vmem:[%s2310_s1 + $0x140] sm:$0xff]  ;;  %v1801_v42 = vld [vmem:[%s2076_s25 + $0xcc] sm:$0xf]  ;;  %v1791_v1 = vld [vmem:[%s2076_s25 + $0x74] sm:$0xf0] }
  0x2d   : > { %1046 = vmatpush.bf16.msrb.mxu0 %v1847_v41  ;;  %967 = vmatmul.bf16.vlgmr.msra.gmra.mxu1 %v1395_v43  ;;  %v1805_v41 = vld [vmem:[%s2076_s25 + $0xe4] sm:$0xf0]  ;;  %v1496_v43 = vld [vmem:[%s2076_s25 + $0xe8] sm:$0xf0]  ;;  %v1502_v20 = vld [vmem:[%s2076_s25 + $0xd0] sm:$0xf] }
  0x2e   : > { %996 = vmatmul.bf16.vlgmr.msra.gmra.mxu2 %v1399_v44  ;;  %1075 = vmatpush.bf16.msrb.mxu1 %v1855_v47  ;;  %v1487_v44 = vor.u32 %v1804_v37, %v1486_v36  ;;  %v1499_v47 = vor.u32 %v1801_v42, %v1496_v43  ;;  %v1504_v23 = vld [vmem:[%s2076_s25 + $0xf0] sm:$0xf0]  ;;  %v1510_v24 = vld [vmem:[%s2076_s25 + $0xd8] sm:$0xf]  ;;  %v1803_v26 = vld [vmem:[%s2076_s25 + $0xdc] sm:$0xf] }
  0x2f   : > { %1104 = vmatpush.bf16.msrb.mxu2 %v1863_v40  ;;  %1025 = vmatmul.bf16.vlgmr.msra.gmra.mxu3 %v1403_v45  ;;  %v1494_v40 = vld [vmem:[%s2076_s25 + $0xc8] sm:$0xf]  ;;  %v1491_v45 = vor.u32 %v1800_v38, %v1488_v39  ;;  %v1807_v25 = vld [vmem:[%s2076_s25 + $0xf4] sm:$0xf0]  ;;  %v1512_v27 = vld [vmem:[%s2076_s25 + $0xf8] sm:$0xf0] }
  0x30   : > { %1133 = vmatpush.bf16.msrb.mxu3 %v1871_v46  ;;  %v1495_v46 = vor.u32 %v1805_v41, %v1494_v40 }
  0x31   : > { %1047 = vmatpush.bf16.msrb.mxu0 %v1846_v49  ;;  %v1782_v49 = vld [vmem:[%s2076_s25 + $0x2c] sm:$0xf0] }
  0x32   : > { %1076 = vmatpush.bf16.msrb.mxu1 %v1854_v51  ;;  %v1408_v51 = vld [vmem:[%s2076_s25 + $0x30] sm:$0xf0] }
  0x33   : > { %1105 = vmatpush.bf16.msrb.mxu2 %v1862_v48  ;;  %v1406_v48 = vld [vmem:[%s2076_s25 + $0x10] sm:$0xf] }
  0x34   : > { %1134 = vmatpush.bf16.msrb.mxu3 %v1870_v50  ;;  %v1778_v50 = vld [vmem:[%s2076_s25 + $0x14] sm:$0xf]  ;;  %v1407_v56 = vor.u32 %v1782_v49, %v1406_v48 }
  0x35   : > { %1048 = vmatpush.bf16.msrb.mxu0 %v1845_v53  ;;  %v1783_v53 = vld [vmem:[%s2076_s25 + $0x34] sm:$0xf0] }
  0x36   : > { %1077 = vmatpush.bf16.msrb.mxu1 %v1853_v55  ;;  %v1416_v55 = vld [vmem:[%s2076_s25 + $0x38] sm:$0xf0] }
  0x37   : > { %1106 = vmatpush.bf16.msrb.mxu2 %v1861_v52  ;;  %v1414_v52 = vld [vmem:[%s2076_s25 + $0x18] sm:$0xf] }
  0x38   : > { %1135 = vmatpush.bf16.msrb.mxu3 %v1869_v54  ;;  %v1779_v54 = vld [vmem:[%s2076_s25 + $0x1c] sm:$0xf] }
  0x39   : > { %1049 = vmatpush.bf16.msrb.mxu0 %v1844_v58  ;;  %v1415_v58 = vor.u32 %v1783_v53, %v1414_v52  ;;  %v1419_v59 = vor.u32 %v1779_v54, %v1416_v55 }
  0x3a   : > { %1078 = vmatpush.bf16.msrb.mxu1 %v1852_v3  ;;  %v1448_v3 = vld [vmem:[%s2076_s25 + $0x78] sm:$0xf0] }
  0x3b   : > { %1107 = vmatpush.bf16.msrb.mxu2 %v1860_v57  ;;  %v1411_v57 = vor.u32 %v1778_v50, %v1408_v51 }
  0x3c   : > { %1136 = vmatpush.bf16.msrb.mxu3 %v1868_v2  ;;  %943 = vmatmul.bf16.gmra.mxu0 %v1423_v6  ;;  %v1787_v2 = vld [vmem:[%s2076_s25 + $0x5c] sm:$0xf]  ;;  %v1447_v6 = vor.u32 %v1791_v1, %v1446_v0 }
  0x3d   : > { %1050 = vmatpush.bf16.msrb.mxu0 %v1843_v5  ;;  %972 = vmatmul.bf16.gmra.mxu1 %v1427_v7  ;;  %v1443_v5 = vor.u32 %v1786_v62, %v1440_v63  ;;  %v1451_v7 = vor.u32 %v1787_v2, %v1448_v3 }
  0x3e   : > { %1001 = vmatmul.bf16.gmra.mxu2 %v1431_v8  ;;  %1079 = vmatpush.bf16.msrb.mxu1 %v1851_v11  ;;  %v1470_v8 = vld [vmem:[%s2076_s25 + $0x90] sm:$0xf]  ;;  %v1472_v11 = vld [vmem:[%s2076_s25 + $0xb0] sm:$0xf0] }
  0x3f   : > { %1108 = vmatpush.bf16.msrb.mxu2 %v1859_v4  ;;  %1030 = vmatmul.bf16.gmra.mxu3 %v1435_v9  ;;  %v1439_v4 = vor.u32 %v1790_v61, %v1438_v60  ;;  %v1798_v9 = vld [vmem:[%s2076_s25 + $0xac] sm:$0xf0] }
  0x40   : > { %1137 = vmatpush.bf16.msrb.mxu3 %v1867_v10  ;;  %v1794_v10 = vld [vmem:[%s2076_s25 + $0x94] sm:$0xf] }
  0x41   : > { %1051 = vmatpush.bf16.msrb.mxu0 %v1842_v13  ;;  %v1799_v13 = vld [vmem:[%s2076_s25 + $0xb4] sm:$0xf0] }
  0x42   : > { %1080 = vmatpush.bf16.msrb.mxu1 %v1850_v15  ;;  %v1480_v15 = vld [vmem:[%s2076_s25 + $0xb8] sm:$0xf0] }
  0x43   : > { %1109 = vmatpush.bf16.msrb.mxu2 %v1858_v12  ;;  %v1478_v12 = vld [vmem:[%s2076_s25 + $0x98] sm:$0xf] }
  0x44   : > { %1138 = vmatpush.bf16.msrb.mxu3 %v1866_v14  ;;  %v1795_v14 = vld [vmem:[%s2076_s25 + $0x9c] sm:$0xf] }
  0x45   : > { %1052 = vmatpush.bf16.msrb.mxu0 %v1841_v17  ;;  %v1475_v17 = vor.u32 %v1794_v10, %v1472_v11 }
  0x46   : > { %1081 = vmatpush.bf16.msrb.mxu1 %v1849_v19  ;;  %v1483_v19 = vor.u32 %v1795_v14, %v1480_v15 }
  0x47   : > { %1110 = vmatpush.bf16.msrb.mxu2 %v1857_v16  ;;  %v1471_v16 = vor.u32 %v1798_v9, %v1470_v8 }
  0x48   : > { %1139 = vmatpush.bf16.msrb.mxu3 %v1865_v18  ;;  %v1479_v18 = vor.u32 %v1799_v13, %v1478_v12 }
  0x49   : > { %1053 = vmatpush.bf16.msrb.mxu0 %v1840_v22  ;;  %v1802_v22 = vld [vmem:[%s2076_s25 + $0xd4] sm:$0xf] }
  0x4a   : > { %1082 = vmatpush.bf16.msrb.mxu1 %v1848_v31  ;;  %v1507_v29 = vor.u32 %v1802_v22, %v1504_v23  ;;  %v1515_v31 = vor.u32 %v1803_v26, %v1512_v27 }
  0x4b   : > { %1111 = vmatpush.bf16.msrb.mxu2 %v1856_v21  ;;  %v1806_v21 = vld [vmem:[%s2076_s25 + $0xec] sm:$0xf0]  ;;  %s1775_s25 = sshll.u32 %s2318_s12, 5 }
  0x4c   : > { %1140 = vmatpush.bf16.msrb.mxu3 %v1864_v30  ;;  %948 = vmatmul.bf16.gmra.mxu0 %v1455_v32  ;;  %v1503_v28 = vor.u32 %v1806_v21, %v1502_v20  ;;  %v1511_v30 = vor.u32 %v1807_v25, %v1510_v24  ;;  %v2259_v32 = vld [vmem:[%s2311_s2] ss:$0 sm:$0xff]  ;;  %s221_s12 = scalar_lea.vmem %s2312_s3, %s1775_s25 }
  0x4d   : > { %977 = vmatmul.bf16.gmra.mxu1 %v1459_v33 }
  0x4e   : > { %1006 = vmatmul.bf16.gmra.mxu2 %v1463_v34 }
  0x4f   : > { %1035 = vmatmul.bf16.gmra.mxu3 %v1467_v35 }
  0x5c   : > { %953 = vmatmul.bf16.gmra.mxu0 %v1487_v44 }
  0x5d   : > { %982 = vmatmul.bf16.gmra.mxu1 %v1491_v45 }
  0x5e   : > { %1011 = vmatmul.bf16.gmra.mxu2 %v1495_v46 }
  0x5f   : > { %1040 = vmatmul.bf16.gmra.mxu3 %v1499_v47 }
  0x6c   : > { %1054 = vmatmul.bf16.vlgmr.msrb.gmra.mxu0 %v1407_v56 }
  0x6d   : > { %1083 = vmatmul.bf16.vlgmr.msrb.gmra.mxu1 %v1411_v57 }
  0x6e   : > { %1112 = vmatmul.bf16.vlgmr.msrb.gmra.mxu2 %v1415_v58 }
  0x6f   : > { %1141 = vmatmul.bf16.vlgmr.msrb.gmra.mxu3 %v1419_v59 }
  0x7c   : > { %1059 = vmatmul.bf16.gmra.mxu0 %v1439_v4 }
  0x7d   : > { %1088 = vmatmul.bf16.gmra.mxu1 %v1443_v5 }
  0x7e   : > { %1117 = vmatmul.bf16.gmra.mxu2 %v1447_v6 }
  0x7f   : > { %1146 = vmatmul.bf16.gmra.mxu3 %v1451_v7 }
  0x8c   : > { %1064 = vmatmul.bf16.gmra.mxu0 %v1471_v16 }
  0x8d   : > { %1093 = vmatmul.bf16.gmra.mxu1 %v1475_v17 }
  0x8e   : > { %1122 = vmatmul.bf16.gmra.mxu2 %v1479_v18 }
  0x8f   : > { %1151 = vmatmul.bf16.gmra.mxu3 %v1483_v19 }
  0x9c   : > { %1069 = vmatmul.bf16.gmra.mxu0 %v1503_v28 }
  0x9d   : > { %1098 = vmatmul.bf16.gmra.mxu1 %v1507_v29 }
  0x9e   : > { %1127 = vmatmul.bf16.gmra.mxu2 %v1511_v30 }
  0x9f   : > { %1156 = vmatmul.bf16.gmra.mxu3 %v1515_v31 }
  0xa9   : > { %v939_v33 = vpop.f32.mrf.mxu0 }
  0xaa   : > { %v968_v34 = vpop.f32.mrf.mxu1  ;;  %v940_v35 = vadd.f32 %v2259_v32, %v939_v33 }
  0xac   : > { %v969_v36 = vadd.f32 %v968_v34, %v940_v35 }
  0xb1   : > { %v997_v37 = vpop.f32.mrf.mxu2  ;;  %v941_v40 = vpop.f32.mrf.mxu0 }
  0xb2   : > { %v1026_v38 = vpop.f32.mrf.mxu3  ;;  %v998_v39 = vadd.f32 %v997_v37, %v969_v36  ;;  %v970_v41 = vpop.f32.mrf.mxu1  ;;  %v942_v42 = vadd.f32 %v2259_v32, %v941_v40 }
  0xb4   : > { %v1027_v43 = vadd.f32 %v1026_v38, %v998_v39  ;;  %v971_v44 = vadd.f32 %v970_v41, %v942_v42 }
  0xb9   : > { %v999_v45 = vpop.f32.mrf.mxu2  ;;  %v944_v48 = vpop.f32.mrf.mxu0 }
  0xba   : > { %v1028_v46 = vpop.f32.mrf.mxu3  ;;  %v1000_v47 = vadd.f32 %v999_v45, %v971_v44  ;;  %v973_v49 = vpop.f32.mrf.mxu1  ;;  %v945_v50 = vadd.f32 %v2259_v32, %v944_v48 }
  0xbc   : > { %v1029_v51 = vadd.f32 %v1028_v46, %v1000_v47  ;;  %v974_v52 = vadd.f32 %v973_v49, %v945_v50 }
  0xc1   : > { %v1002_v53 = vpop.f32.mrf.mxu2  ;;  %v946_v56 = vpop.f32.mrf.mxu0 }
  0xc2   : > { %v1031_v54 = vpop.f32.mrf.mxu3  ;;  %v1003_v55 = vadd.f32 %v1002_v53, %v974_v52  ;;  %v975_v57 = vpop.f32.mrf.mxu1  ;;  %v947_v58 = vadd.f32 %v2259_v32, %v946_v56 }
  0xc4   : > { %v1032_v59 = vadd.f32 %v1031_v54, %v1003_v55  ;;  %v976_v60 = vadd.f32 %v975_v57, %v947_v58 }
  0xc9   : > { %v1004_v61 = vpop.f32.mrf.mxu2  ;;  %v949_v0 = vpop.f32.mrf.mxu0 }
  0xca   : > { %v1033_v62 = vpop.f32.mrf.mxu3  ;;  %v1005_v63 = vadd.f32 %v1004_v61, %v976_v60  ;;  %v978_v1 = vpop.f32.mrf.mxu1  ;;  %v950_v2 = vadd.f32 %v2259_v32, %v949_v0 }
  0xcc   : > { %v1034_v3 = vadd.f32 %v1033_v62, %v1005_v63  ;;  %v979_v4 = vadd.f32 %v978_v1, %v950_v2 }
  0xd1   : > { %v1007_v5 = vpop.f32.mrf.mxu2  ;;  %v951_v8 = vpop.f32.mrf.mxu0 }
  0xd2   : > { %v1036_v6 = vpop.f32.mrf.mxu3  ;;  %v1008_v7 = vadd.f32 %v1007_v5, %v979_v4  ;;  %v980_v9 = vpop.f32.mrf.mxu1  ;;  %v952_v10 = vadd.f32 %v2259_v32, %v951_v8 }
  0xd4   : > { %v1037_v11 = vadd.f32 %v1036_v6, %v1008_v7  ;;  %v981_v12 = vadd.f32 %v980_v9, %v952_v10 }
  0xd9   : > { %v1009_v13 = vpop.f32.mrf.mxu2  ;;  %v954_v16 = vpop.f32.mrf.mxu0 }
  0xda   : > { %v1038_v14 = vpop.f32.mrf.mxu3  ;;  %v1010_v15 = vadd.f32 %v1009_v13, %v981_v12  ;;  %v983_v17 = vpop.f32.mrf.mxu1  ;;  %v955_v0 = vadd.f32 %v2259_v32, %v954_v16 }
  0xdc   : > { %v1039_v18 = vadd.f32 %v1038_v14, %v1010_v15  ;;  %v984_v7 = vadd.f32 %v983_v17, %v955_v0 }
  0xe1   : > { %v1012_v19 = vpop.f32.mrf.mxu2  ;;  %v956_v21 = vpop.f32.mrf.mxu0 }
  0xe2   : > { %v1041_v20 = vpop.f32.mrf.mxu3  ;;  %v985_v22 = vpop.f32.mrf.mxu1  ;;  %v1013_v12 = vadd.f32 %v1012_v19, %v984_v7  ;;  %v957_v13 = vadd.f32 %v2259_v32, %v956_v21 }
  0xe4   : > { %v986_v16 = vadd.f32 %v985_v22, %v957_v13 }
  0xe9   : > { %v1014_v23 = vpop.f32.mrf.mxu2  ;;  %v1055_v25 = vpop.f32.mrf.mxu0 }
  0xea   : > { %v2267_v24 = vpop.f32.mrf.mxu3  ;;  %v1084_v26 = vpop.f32.mrf.mxu1  ;;  %v1056_v29 = vadd.f32 %v1055_v25, %v1027_v43 }
  0xec   : > { %v1085_v34 = vadd.f32 %v1084_v26, %v1056_v29 }
  0xf1   : > { %v1113_v27 = vpop.f32.mrf.mxu2  ;;  %v1057_v30 = vpop.f32.mrf.mxu0 }
  0xf2   : > { %v1142_v28 = vpop.f32.mrf.mxu3  ;;  %v1086_v31 = vpop.f32.mrf.mxu1  ;;  %v1058_v33 = vadd.f32 %v1057_v30, %v1029_v51  ;;  %v1114_v35 = vadd.f32 %v1113_v27, %v1085_v34  ;;  %v1042_v27 = vadd.f32 %v1041_v20, %v1013_v12  ;;  %v1015_v30 = vadd.f32 %v1014_v23, %v986_v16 }
  0xf3   : > { %v1949_v34 = vmov 64.0  }
  0xf4   : > { %v1087_v36 = vadd.f32 %v1086_v31, %v1058_v33  ;;  %v2269_v42 = vadd.f32 %v1142_v28, %v1114_v35  ;;  %1921 = vrcp.f32 %v1949_v34  ;;  %v1044_v19 = vadd.f32 %v2267_v24, %v1015_v30 }
  0xf9   : > { %v1115_v37 = vpop.f32.mrf.mxu2  ;;  %v1060_v40 = vpop.f32.mrf.mxu0 }
  0xfa   : > { %v1144_v38 = vpop.f32.mrf.mxu3  ;;  %v1116_v39 = vadd.f32 %v1115_v37, %v1087_v36  ;;  %v1089_v41 = vpop.f32.mrf.mxu1  ;;  %v1061_v45 = vadd.f32 %v1060_v40, %v1032_v59 }
  0xfb   : > { %v1922_v37 = vpop.eup %1921 }
  0xfc   : > { %v2271_v44 = vadd.f32 %v1144_v38, %v1116_v39  ;;  %v1090_v43 = vadd.f32 %v1089_v41, %v1061_v45  ;;  %v1176_v40 = vmul.f32 64.0, %v1922_v37  ;;  %vm1180_vm0 = vweird.f32 %v1922_v37 }
  0xfe   : > { %v1162_v46 = vadd.f32 %v2271_v44, %v2269_v42 }
 0x101   : > { %v1118_v47 = vpop.f32.mrf.mxu2  ;;  %v1062_v50 = vpop.f32.mrf.mxu0 }
 0x102   : > { %v1147_v48 = vpop.f32.mrf.mxu3  ;;  %v1119_v49 = vadd.f32 %v1118_v47, %v1090_v43  ;;  %v1091_v51 = vpop.f32.mrf.mxu1  ;;  %v1063_v53 = vadd.f32 %v1062_v50, %v1034_v3  ;;  %v1177_v43 = vsub.f32 1.0, %v1176_v40 }
 0x104   : > { %v2275_v52 = vadd.f32 %v1147_v48, %v1119_v49  ;;  %v1092_v55 = vadd.f32 %v1091_v51, %v1063_v53  ;;  %v1178_v49 = vmul.f32 %v1922_v37, %v1177_v43 }
 0x106   : > { %v1163_v54 = vadd.f32 %v1162_v46, %v2275_v52  ;;  %v1179_v51 = vadd.f32 %v1922_v37, %v1178_v49 }
 0x109   : > { %v1120_v56 = vpop.f32.mrf.mxu2  ;;  %v1065_v60 = vpop.f32.mrf.mxu0 }
 0x10a   : > { %v1149_v57 = vpop.f32.mrf.mxu3  ;;  %v1121_v58 = vadd.f32 %v1120_v56, %v1092_v55  ;;  %v1094_v59 = vpop.f32.mrf.mxu1  ;;  %v1066_v62 = vadd.f32 %v1065_v60, %v1037_v11  ;;  %v1181_v55 = vsel %vm1180_vm0, %v1922_v37, %v1179_v51 }
 0x10c   : > { %v2278_v61 = vadd.f32 %v1149_v57, %v1121_v58  ;;  %v1095_v1 = vadd.f32 %v1094_v59, %v1066_v62 }
 0x10e   : > { %v1164_v63 = vadd.f32 %v1163_v54, %v2278_v61 }
 0x111   : > { %v1123_v2 = vpop.f32.mrf.mxu2  ;;  %v1067_v3 = vpop.f32.mrf.mxu0 }
 0x112   : > { %v1152_v4 = vpop.f32.mrf.mxu3  ;;  %v1124_v5 = vadd.f32 %v1123_v2, %v1095_v1  ;;  %v1096_v6 = vpop.f32.mrf.mxu1  ;;  %v1068_v9 = vadd.f32 %v1067_v3, %v1039_v18 }
 0x114   : > { %v1153_v8 = vadd.f32 %v1152_v4, %v1124_v5  ;;  %v1097_v14 = vadd.f32 %v1096_v6, %v1068_v9 }
 0x116   : > { %v1165_v10 = vadd.f32 %v1164_v63, %v1153_v8 }
 0x119   : > { %v1125_v15 = vpop.f32.mrf.mxu2  ;;  %v1070_v26 = vpop.f32.mrf.mxu0 }
 0x11a   : > { %v1154_v11 = vpop.f32.mrf.mxu3  ;;  %v1126_v25 = vadd.f32 %v1125_v15, %v1097_v14  ;;  %v1099_v29 = vpop.f32.mrf.mxu1  ;;  %v1071_v33 = vadd.f32 %v1070_v26, %v1042_v27 }
 0x11c   : > { %v1155_v28 = vadd.f32 %v1154_v11, %v1126_v25  ;;  %v1100_v35 = vadd.f32 %v1099_v29, %v1071_v33 }
 0x11e   : > { %v1166_v31 = vadd.f32 %v1165_v10, %v1155_v28 }
 0x121   : > { %v1128_v17 = vpop.f32.mrf.mxu2  ;;  %v1072_v32 = vpop.f32.mrf.mxu0 }
 0x122   : > { %v1157_v18 = vpop.f32.mrf.mxu3  ;;  %v1129_v21 = vadd.f32 %v1128_v17, %v1100_v35  ;;  %v1073_v36 = vadd.f32 %v1072_v32, %v1044_v19  ;;  %v1101_v38 = vpop.f32.mrf.mxu1 }
 0x124   : > { %v1158_v39 = vadd.f32 %v1157_v18, %v1129_v21  ;;  %v1102_v20 = vadd.f32 %v1101_v38, %v1073_v36 }
 0x126   : > { %v1167_v45 = vadd.f32 %v1166_v31, %v1158_v39 }
 0x129   : > { %v1130_v22 = vpop.f32.mrf.mxu2 }
 0x12a   : > { %v1131_v41 = vadd.f32 %v1130_v22, %v1102_v20  ;;  %v1159_v23 = vpop.f32.mrf.mxu3 }
 0x12c   : > { %v1160_v46 = vadd.f32 %v1159_v23, %v1131_v41 }
 0x12e   : > { %v1168_v47 = vadd.f32 %v1167_v45, %v1160_v46 }
 0x130   : > { %v1169_v48 = vrot.slane %v1168_v47, 4 }
 0x132   : > { %v1170_v50 = vadd.f32 %v1169_v48, %v1168_v47 }
 0x134   : > { %v1171_v24 = vrot.slane %v1170_v50, 2 }
 0x136   : > { %v1172_v53 = vadd.f32 %v1171_v24, %v1170_v50 }
 0x138   : > { %v1173_v54 = vrot.slane %v1172_v53, 1 }
 0x13a   : > { %v1174_v56 = vadd.f32 %v1173_v54, %v1172_v53 }
 0x13c   : > { %v1182_v57 = vmul.f32 %v1181_v55, %v1174_v56 }
 0x13e   : > { %v1183_v58 = vsub.f32 %v2269_v42, %v1182_v57  ;;  %v1184_v60 = vsub.f32 %v2271_v44, %v1182_v57  ;;  %v1185_v59 = vsub.f32 %v2275_v52, %v1182_v57  ;;  %v1186_v62 = vsub.f32 %v2278_v61, %v1182_v57 }
 0x13f   : > { %v1187_v63 = vsub.f32 %v1153_v8, %v1182_v57  ;;  %v1188_v0 = vsub.f32 %v1155_v28, %v1182_v57  ;;  %v1189_v7 = vsub.f32 %v1158_v39, %v1182_v57  ;;  %v1190_v12 = vsub.f32 %v1160_v46, %v1182_v57 }
 0x140   : > { %v1191_v1 = vmul.f32 %v1183_v58, %v1183_v58  ;;  %v1192_v2 = vmul.f32 %v1184_v60, %v1184_v60  ;;  %v1193_v4 = vmul.f32 %v1185_v59, %v1185_v59  ;;  %v1194_v3 = vmul.f32 %v1186_v62, %v1186_v62 }
 0x141   : > { %v1195_v9 = vmul.f32 %v1187_v63, %v1187_v63  ;;  %v1196_v13 = vmul.f32 %v1188_v0, %v1188_v0  ;;  %v1197_v14 = vmul.f32 %v1189_v7, %v1189_v7  ;;  %v1198_v15 = vmul.f32 %v1190_v12, %v1190_v12 }
 0x142   : > { %v1199_v5 = vadd.f32 %v1192_v2, %v1191_v1 }
 0x144   : > { %v1200_v6 = vadd.f32 %v1199_v5, %v1193_v4 }
 0x146   : > { %v1201_v10 = vadd.f32 %v1200_v6, %v1194_v3 }
 0x148   : > { %v1202_v42 = vadd.f32 %v1201_v10, %v1195_v9 }
 0x14a   : > { %v1203_v44 = vadd.f32 %v1202_v42, %v1196_v13 }
 0x14c   : > { %v1204_v52 = vadd.f32 %v1203_v44, %v1197_v14 }
 0x14e   : > { %v1205_v11 = vadd.f32 %v1204_v52, %v1198_v15 }
 0x150   : > { %v1206_v61 = vrot.slane %v1205_v11, 4 }
 0x152   : > { %v1207_v8 = vadd.f32 %v1206_v61, %v1205_v11 }
 0x154   : > { %v1208_v25 = vrot.slane %v1207_v8, 2 }
 0x156   : > { %v1209_v26 = vadd.f32 %v1208_v25, %v1207_v8 }
 0x158   : > { %v1210_v27 = vrot.slane %v1209_v26, 1 }
 0x15a   : > { %v1211_v16 = vadd.f32 %v1210_v27, %v1209_v26 }
 0x15c   : > { %v1212_v28 = vmul.f32 %v1211_v16, %v1181_v55 }
 0x15e   : > { %v1213_v29 = vadd.f32 1e-05, %v1212_v28 }
 0x160   : > { %1923 = vrsqrt.f32 %v1213_v29  ;;  %vm1220_vm2 = vweird.f32 %v1213_v29 }
 0x166   : > { %v1924_v30 = vpop.eup %1923 }
 0x167   : > { %v1215_v31 = vmul.f32 %v1924_v30, %v1213_v29  ;;  %vm1221_vm1 = vweird.f32 %v1924_v30 }
 0x168   : > { %vm1222_vm3 = vmor %vm1220_vm2, %vm1221_vm1 }
 0x169   : > { %v1216_v33 = vmul.f32 %v1924_v30, %v1215_v31 }
 0x16b   : > { %v1217_v34 = vmul.f32 0.5, %v1216_v33 }
 0x16d   : > { %v1218_v17 = vsub.f32 1.5, %v1217_v34 }
 0x16f   : > { %v1219_v18 = vmul.f32 %v1924_v30, %v1218_v17 }
 0x171   : > { %v1223_v19 = vsel %vm1222_vm3, %v1924_v30, %v1219_v18 }
 0x172   : > { %v1224_v35 = vmul.f32 %v1223_v19, %v1183_v58  ;;  %v1225_v32 = vmul.f32 %v1223_v19, %v1184_v60  ;;  %v1226_v21 = vmul.f32 %v1223_v19, %v1185_v59  ;;  %v1227_v36 = vmul.f32 %v1223_v19, %v1186_v62 }
 0x173   : > { %v1228_v37 = vmul.f32 %v1223_v19, %v1187_v63  ;;  %v1229_v38 = vmul.f32 %v1223_v19, %v1188_v0  ;;  %v1230_v39 = vmul.f32 %v1223_v19, %v1189_v7  ;;  %v1231_v20 = vmul.f32 %v1223_v19, %v1190_v12 }
 0x174   : > { %vm1232_vm4 = vcmp.gt.f32.partialorder %v1224_v35, 0.0  ;;  %vm1233_vm5 = vcmp.gt.f32.partialorder %v1225_v32, 0.0  ;;  %vm1234_vm6 = vcmp.gt.f32.partialorder %v1226_v21, 0.0  ;;  %vm1235_vm7 = vcmp.gt.f32.partialorder %v1227_v36, 0.0 }
 0x175   : > { %vm1236_vm8 = vcmp.gt.f32.partialorder %v1228_v37, 0.0  ;;  %vm1237_vm9 = vcmp.gt.f32.partialorder %v1229_v38, 0.0  ;;  %vm1238_vm10 = vcmp.gt.f32.partialorder %v1230_v39, 0.0  ;;  %vm1239_vm11 = vcmp.gt.f32.partialorder %v1231_v20, 0.0 }
 0x176   : > { %v1240_v22 = vmul.f32 0.2, %v1224_v35  ;;  %v1241_v40 = vmul.f32 0.2, %v1225_v32  ;;  %v1242_v41 = vmul.f32 0.2, %v1226_v21 }
 0x177   : > { %v1243_v23 = vmul.f32 0.2, %v1227_v36  ;;  %v1244_v45 = vmul.f32 0.2, %v1228_v37  ;;  %v1245_v46 = vmul.f32 0.2, %v1229_v38 }
 0x178   : > { %v1246_v43 = vmul.f32 0.2, %v1230_v39  ;;  %v1247_v47 = vmul.f32 0.2, %v1231_v20  ;;  %v1248_v48 = vsel %vm1232_vm4, %v1224_v35, %v1240_v22  ;;  %v1249_v49 = vsel %vm1233_vm5, %v1225_v32, %v1241_v40 }
 0x179   : > { %v1250_v50 = vsel %vm1234_vm6, %v1226_v21, %v1242_v41  ;;  %v1251_v24 = vsel %vm1235_vm7, %v1227_v36, %v1243_v23  ;;  %v1252_v51 = vsel %vm1236_vm8, %v1228_v37, %v1244_v45  ;;  %v1253_v53 = vsel %vm1237_vm9, %v1229_v38, %v1245_v46 }
 0x17a   : > { %v1254_v54 = vsel %vm1238_vm10, %v1230_v39, %v1246_v43  ;;  %v1255_v55 = vsel %vm1239_vm11, %v1231_v20, %v1247_v47  ;;  %v1875_v56 = vpack.c.bf16 %v1249_v49, %v1248_v48  ;;  %v1880_v57 = vpack.c.bf16 %v1251_v24, %v1250_v50 }
 0x17b   : > { %v1885_v58 = vpack.c.bf16 %v1253_v53, %v1252_v51  ;;  %v1890_v60 = vpack.c.bf16 %v1255_v55, %v1254_v54 }
 0x17c   : > { %1876 = vst [vmem:[%s221_s12] sm:$0xff] %v1875_v56  }
 0x17d   : > { %1892 = vst [vmem:[%s221_s12 + $0x8] sm:$0xff] %v1880_v57  }
 0x17e   : > { %1893 = vst [vmem:[%s221_s12 + $0x10] sm:$0xff] %v1885_v58  }
 0x17f   : > { %1894 = vst [vmem:[%s221_s12 + $0x18] sm:$0xff] %v1890_v60  }
 0x180 PF: > { %s13_s14 = sadd.s32 1, %s1947_s14   ;;  %s2313_s12 = smov %s1943_s13 }
 0x181   : > { %p10_p5 = scmp.ge.s32.totalorder %s13_s14, 4   ;;  %s2314_s13 = smov %s2316_s15 }
 0x183   :  { %12 = sbr.rel (!%p10_p5) target bundleno = 2 (0x2), region = 68 }

// kernel: discriminator_forward.7
= control target key start
LH: loop header
LB: loop body
LE: loop exit
PB: predicated region body
PF: predicated region fallthrough
CT: control target
= control target key end

     0   :  { %s4792_s12 = smov 0   ;;  %s4794_s13 = smov 0   ;;  %s5614_s0 = inlined_call_operand.vmem [shape: bf16[2,16,2048], index: 0, kind: input, shape index: {}]   ;;  %s5615_s1 = inlined_call_operand.vmem [shape: bf16[2048,256], index: 1, kind: input, shape index: {}]   ;;  %s5616_s2 = inlined_call_operand.vmem [shape: f32[1,256], index: 2, kind: input, shape index: {}]   ;;  %s5617_s3 = inlined_call_operand.vmem [shape: bf16[2,16,256], index: 3, kind: output, shape index: {}]  }
   0x1   :  { %s4796_s14 = smov 0   ;;  %s4798_s15 = smov 0  }
   0x2   :  { %s4800_s16 = smov 0   ;;  %s4802_s17 = smov 0  }
   0x3   :  { %s4804_s18 = smov 0   ;;  %s4806_s19 = smov 0  }
   0x4   :  { %s4808_s20 = smov 0  }
   0x5 LB: > { %s22_s21 = sadd.s32 1, %s4761_s18  ;;  %s25_s22 = sadd.s32 1, %s4765_s19  ;;  %s4769_s20 = sphi %s4808_s20, %s13_s20   ;;  %s4765_s19 = sphi %s4806_s19, %s5627_s19   ;;  %s4761_s18 = sphi %s4804_s18, %s5626_s18   ;;  %s4757_s17 = sphi %s4802_s17, %s5625_s17   ;;  %s4753_s16 = sphi %s4800_s16, %s5624_s16   ;;  %s4749_s15 = sphi %s4798_s15, %s5623_s15   ;;  %s4745_s14 = sphi %s4796_s14, %s5622_s14   ;;  %s4741_s13 = sphi %s4794_s13, %s5621_s13   ;;  %s4737_s12 = sphi %s4792_s12, %s5620_s12  }
   0x6   : > { %p23_p0 = scmp.ge.s32.totalorder %s22_s21, 2  ;;  %p65_p1 = scmp.ne.s32.totalorder %s4749_s15, %s4745_s14 }
   0x7   : > { %s3879_s23 = sadd.s32 4294967295, %s4769_s20   ;;  %p66_p2 = scmp.eq.s32.totalorder %s4769_s20, 0 }
   0x8   : > { %s5629_s21 = smov (%p23_p0, %s22_s21), 0  ;;  %s5631_s22 = smov (!%p23_p0, %s25_s22), %s4765_s19 }
   0x9   : > { %p27_p3 = scmp.ge.s32.totalorder %s5631_s22, 2  ;;  %s107_s24 = ssub.s32 %s4761_s18, %s5629_s21 }
   0xa   : > { %p4848_p4 = por %p66_p2, %p65_p1  ;;  %p122_p5 = scmp.ne.s32.totalorder %s4741_s13, %s4737_s12 }
   0xb   : > { %s5633_s22 = smov (%p27_p3, %s5631_s22), 0  ;;  %s58_s26 = sadd.s32 1, %s4749_s15 }
   0xc   : > { %p123_p6 = scmp.eq.s32.totalorder %s3879_s23, 3  ;;  %s55_s27 = ssub.s32 %s4765_s19, %s5633_s22 }
   0xd   : > { %s112_s28 = sadd.s32 1, %s4741_s13  ;;  %p56_p7 = scmp.eq.s32.totalorder %s55_s27, 0 }
   0xe   : > { %s109_s29 = sor.u32 %s107_s24, %s55_s27  ;;  %p4860_p9 = por %p123_p6, %p122_p5 }
   0xf   : > { %p110_p8 = scmp.eq.s32.totalorder %s109_s29, 0  ;;  %p3882_p10 = scmp.ge.s32.totalorder %s4769_s20, 4 }
  0x10   : > { %s4865_s4 = scalar_select %p56_p7, %s4749_s15, %s58_s26  }
  0x11   : > { %s4868_s5 = scalar_select %p110_p8, %s4741_s13, %s112_s28  }
  0x12   : > { %145 = sbr.rel (%p3882_p10) target bundleno = 283 (0x11b), region = 16 }
  0x17   : > { %156 = sbr.rel (!%p4848_p4) target bundleno = 283 (0x11b), region = 24  ;;  %s158_s6 = sand.u32 (%p4848_p4), 1, %s4749_s15  }
  0x18   : > { %s3884_s7 = sshll.u32 (%p4848_p4), %s4765_s19, 2  ;;  %s3883_s8 = sshll.u32 (%p4848_p4), %s158_s6, 10 }
  0x19   : > { %s4878_s11 = scalar_lea.vmem (%p4848_p4), %s5615_s1, %s3884_s7  ;;  %s4882_s23 = scalar_lea.vmem (%p4848_p4), [#allocation2], %s3883_s8 }
  0x1a   : > { %v179_v0 = vld [vmem:[%s4878_s11] sm:$0xf] (%p4848_p4)  ;;  %v181_v1 = vld [vmem:[%s4878_s11 + $0x8] sm:$0xf] (%p4848_p4)  ;;  %v183_v2 = vld [vmem:[%s4878_s11 + $0x10] sm:$0xf] (%p4848_p4) }
  0x1b   : > { %180 = vst [vmem:[%s4882_s23] sm:$0xf] (%p4848_p4), %v179_v0  ;;  %v185_v3 = vld [vmem:[%s4878_s11 + $0x18] sm:$0xf] (%p4848_p4)  ;;  %v187_v4 = vld [vmem:[%s4878_s11 + $0x20] sm:$0xf] (%p4848_p4) }
  0x1c   : > { %182 = vst [vmem:[%s4882_s23 + $0x4] sm:$0xf] %v181_v1  ;;  %v189_v5 = vld [vmem:[%s4878_s11 + $0x28] sm:$0xf]  ;;  %v191_v6 = vld [vmem:[%s4878_s11 + $0x30] sm:$0xf] }
  0x1d   : > { %184 = vst [vmem:[%s4882_s23 + $0x8] sm:$0xf] %v183_v2  ;;  %v193_v7 = vld [vmem:[%s4878_s11 + $0x38] sm:$0xf]  ;;  %v195_v8 = vld [vmem:[%s4878_s11 + $0x40] sm:$0xf] }
  0x1e   : > { %186 = vst [vmem:[%s4882_s23 + $0xc] sm:$0xf] %v185_v3  ;;  %v197_v9 = vld [vmem:[%s4878_s11 + $0x48] sm:$0xf]  ;;  %v199_v10 = vld [vmem:[%s4878_s11 + $0x50] sm:$0xf] }
  0x1f   : > { %188 = vst [vmem:[%s4882_s23 + $0x10] sm:$0xf] %v187_v4  ;;  %v201_v11 = vld [vmem:[%s4878_s11 + $0x58] sm:$0xf]  ;;  %v203_v12 = vld [vmem:[%s4878_s11 + $0x60] sm:$0xf] }
  0x20   : > { %190 = vst [vmem:[%s4882_s23 + $0x14] sm:$0xf] %v189_v5  ;;  %v205_v13 = vld [vmem:[%s4878_s11 + $0x68] sm:$0xf]  ;;  %v207_v14 = vld [vmem:[%s4878_s11 + $0x70] sm:$0xf] }
  0x21   : > { %192 = vst [vmem:[%s4882_s23 + $0x18] sm:$0xf] %v191_v6  ;;  %v209_v15 = vld [vmem:[%s4878_s11 + $0x78] sm:$0xf]  ;;  %v211_v16 = vld [vmem:[%s4878_s11 + $0x80] sm:$0xf] }
  0x22   : > { %194 = vst [vmem:[%s4882_s23 + $0x1c] sm:$0xf] %v193_v7  ;;  %v213_v17 = vld [vmem:[%s4878_s11 + $0x88] sm:$0xf]  ;;  %v215_v18 = vld [vmem:[%s4878_s11 + $0x90] sm:$0xf] }
  0x23   : > { %196 = vst [vmem:[%s4882_s23 + $0x20] sm:$0xf] %v195_v8  ;;  %v217_v19 = vld [vmem:[%s4878_s11 + $0x98] sm:$0xf]  ;;  %v219_v20 = vld [vmem:[%s4878_s11 + $0xa0] sm:$0xf] }
  0x24   : > { %198 = vst [vmem:[%s4882_s23 + $0x24] sm:$0xf] %v197_v9  ;;  %v221_v21 = vld [vmem:[%s4878_s11 + $0xa8] sm:$0xf]  ;;  %v223_v22 = vld [vmem:[%s4878_s11 + $0xb0] sm:$0xf] }
  0x25   : > { %200 = vst [vmem:[%s4882_s23 + $0x28] sm:$0xf] %v199_v10  ;;  %v225_v23 = vld [vmem:[%s4878_s11 + $0xb8] sm:$0xf]  ;;  %v227_v24 = vld [vmem:[%s4878_s11 + $0xc0] sm:$0xf] }
  0x26   : > { %202 = vst [vmem:[%s4882_s23 + $0x2c] sm:$0xf] %v201_v11  ;;  %v229_v25 = vld [vmem:[%s4878_s11 + $0xc8] sm:$0xf]  ;;  %v231_v26 = vld [vmem:[%s4878_s11 + $0xd0] sm:$0xf] }
  0x27   : > { %204 = vst [vmem:[%s4882_s23 + $0x30] sm:$0xf] %v203_v12  ;;  %v233_v27 = vld [vmem:[%s4878_s11 + $0xd8] sm:$0xf]  ;;  %v235_v28 = vld [vmem:[%s4878_s11 + $0xe0] sm:$0xf] }
  0x28   : > { %206 = vst [vmem:[%s4882_s23 + $0x34] sm:$0xf] %v205_v13  ;;  %v237_v29 = vld [vmem:[%s4878_s11 + $0xe8] sm:$0xf]  ;;  %v239_v30 = vld [vmem:[%s4878_s11 + $0xf0] sm:$0xf] }
  0x29   : > { %208 = vst [vmem:[%s4882_s23 + $0x38] sm:$0xf] %v207_v14  ;;  %v241_v31 = vld [vmem:[%s4878_s11 + $0xf8] sm:$0xf]  ;;  %v243_v32 = vld [vmem:[%s4878_s11 + $0x100] sm:$0xf] }
  0x2a   : > { %210 = vst [vmem:[%s4882_s23 + $0x3c] sm:$0xf] %v209_v15  ;;  %v245_v33 = vld [vmem:[%s4878_s11 + $0x108] sm:$0xf]  ;;  %v247_v34 = vld [vmem:[%s4878_s11 + $0x110] sm:$0xf] }
  0x2b   : > { %212 = vst [vmem:[%s4882_s23 + $0x40] sm:$0xf] %v211_v16  ;;  %v249_v35 = vld [vmem:[%s4878_s11 + $0x118] sm:$0xf]  ;;  %v251_v36 = vld [vmem:[%s4878_s11 + $0x120] sm:$0xf] }
  0x2c   : > { %214 = vst [vmem:[%s4882_s23 + $0x44] sm:$0xf] %v213_v17  ;;  %v253_v37 = vld [vmem:[%s4878_s11 + $0x128] sm:$0xf]  ;;  %v255_v38 = vld [vmem:[%s4878_s11 + $0x130] sm:$0xf] }
  0x2d   : > { %216 = vst [vmem:[%s4882_s23 + $0x48] sm:$0xf] %v215_v18  ;;  %v257_v39 = vld [vmem:[%s4878_s11 + $0x138] sm:$0xf]  ;;  %v259_v40 = vld [vmem:[%s4878_s11 + $0x140] sm:$0xf] }
  0x2e   : > { %218 = vst [vmem:[%s4882_s23 + $0x4c] sm:$0xf] %v217_v19  ;;  %v261_v41 = vld [vmem:[%s4878_s11 + $0x148] sm:$0xf]  ;;  %v263_v42 = vld [vmem:[%s4878_s11 + $0x150] sm:$0xf] }
  0x2f   : > { %220 = vst [vmem:[%s4882_s23 + $0x50] sm:$0xf] %v219_v20  ;;  %v265_v43 = vld [vmem:[%s4878_s11 + $0x158] sm:$0xf]  ;;  %v267_v44 = vld [vmem:[%s4878_s11 + $0x160] sm:$0xf] }
  0x30   : > { %222 = vst [vmem:[%s4882_s23 + $0x54] sm:$0xf] %v221_v21  ;;  %v269_v45 = vld [vmem:[%s4878_s11 + $0x168] sm:$0xf]  ;;  %v271_v46 = vld [vmem:[%s4878_s11 + $0x170] sm:$0xf] }
  0x31   : > { %224 = vst [vmem:[%s4882_s23 + $0x58] sm:$0xf] %v223_v22  ;;  %v273_v47 = vld [vmem:[%s4878_s11 + $0x178] sm:$0xf]  ;;  %v275_v48 = vld [vmem:[%s4878_s11 + $0x180] sm:$0xf] }
  0x32   : > { %226 = vst [vmem:[%s4882_s23 + $0x5c] sm:$0xf] %v225_v23  ;;  %v277_v49 = vld [vmem:[%s4878_s11 + $0x188] sm:$0xf]  ;;  %v279_v50 = vld [vmem:[%s4878_s11 + $0x190] sm:$0xf] }
  0x33   : > { %228 = vst [vmem:[%s4882_s23 + $0x60] sm:$0xf] %v227_v24  ;;  %v281_v51 = vld [vmem:[%s4878_s11 + $0x198] sm:$0xf]  ;;  %v283_v52 = vld [vmem:[%s4878_s11 + $0x1a0] sm:$0xf] }
  0x34   : > { %230 = vst [vmem:[%s4882_s23 + $0x64] sm:$0xf] %v229_v25  ;;  %v285_v53 = vld [vmem:[%s4878_s11 + $0x1a8] sm:$0xf]  ;;  %v287_v54 = vld [vmem:[%s4878_s11 + $0x1b0] sm:$0xf] }
  0x35   : > { %232 = vst [vmem:[%s4882_s23 + $0x68] sm:$0xf] %v231_v26  ;;  %v289_v55 = vld [vmem:[%s4878_s11 + $0x1b8] sm:$0xf]  ;;  %v291_v56 = vld [vmem:[%s4878_s11 + $0x1c0] sm:$0xf] }
  0x36   : > { %234 = vst [vmem:[%s4882_s23 + $0x6c] sm:$0xf] %v233_v27  ;;  %v293_v57 = vld [vmem:[%s4878_s11 + $0x1c8] sm:$0xf]  ;;  %v295_v58 = vld [vmem:[%s4878_s11 + $0x1d0] sm:$0xf] }
  0x37   : > { %236 = vst [vmem:[%s4882_s23 + $0x70] sm:$0xf] %v235_v28  ;;  %v297_v59 = vld [vmem:[%s4878_s11 + $0x1d8] sm:$0xf]  ;;  %v299_v60 = vld [vmem:[%s4878_s11 + $0x1e0] sm:$0xf] }
  0x38   : > { %238 = vst [vmem:[%s4882_s23 + $0x74] sm:$0xf] %v237_v29  ;;  %v301_v61 = vld [vmem:[%s4878_s11 + $0x1e8] sm:$0xf]  ;;  %v303_v62 = vld [vmem:[%s4878_s11 + $0x1f0] sm:$0xf] }
  0x39   : > { %240 = vst [vmem:[%s4882_s23 + $0x78] sm:$0xf] %v239_v30  ;;  %v305_v63 = vld [vmem:[%s4878_s11 + $0x1f8] sm:$0xf]  ;;  %v307_v0 = vld [vmem:[%s4878_s11 + $0x200] sm:$0xf] }
  0x3a   : > { %242 = vst [vmem:[%s4882_s23 + $0x7c] sm:$0xf] %v241_v31  ;;  %v309_v1 = vld [vmem:[%s4878_s11 + $0x208] sm:$0xf]  ;;  %v311_v2 = vld [vmem:[%s4878_s11 + $0x210] sm:$0xf] }
  0x3b   : > { %244 = vst [vmem:[%s4882_s23 + $0x80] sm:$0xf] %v243_v32  ;;  %v313_v3 = vld [vmem:[%s4878_s11 + $0x218] sm:$0xf]  ;;  %v315_v4 = vld [vmem:[%s4878_s11 + $0x220] sm:$0xf] }
  0x3c   : > { %246 = vst [vmem:[%s4882_s23 + $0x84] sm:$0xf] %v245_v33  ;;  %v317_v5 = vld [vmem:[%s4878_s11 + $0x228] sm:$0xf]  ;;  %v319_v6 = vld [vmem:[%s4878_s11 + $0x230] sm:$0xf] }
  0x3d   : > { %248 = vst [vmem:[%s4882_s23 + $0x88] sm:$0xf] %v247_v34  ;;  %v321_v7 = vld [vmem:[%s4878_s11 + $0x238] sm:$0xf]  ;;  %v323_v8 = vld [vmem:[%s4878_s11 + $0x240] sm:$0xf] }
  0x3e   : > { %250 = vst [vmem:[%s4882_s23 + $0x8c] sm:$0xf] %v249_v35  ;;  %v325_v9 = vld [vmem:[%s4878_s11 + $0x248] sm:$0xf]  ;;  %v327_v10 = vld [vmem:[%s4878_s11 + $0x250] sm:$0xf] }
  0x3f   : > { %252 = vst [vmem:[%s4882_s23 + $0x90] sm:$0xf] %v251_v36  ;;  %v329_v11 = vld [vmem:[%s4878_s11 + $0x258] sm:$0xf]  ;;  %v331_v12 = vld [vmem:[%s4878_s11 + $0x260] sm:$0xf] }
  0x40   : > { %254 = vst [vmem:[%s4882_s23 + $0x94] sm:$0xf] %v253_v37  ;;  %v333_v13 = vld [vmem:[%s4878_s11 + $0x268] sm:$0xf]  ;;  %v335_v14 = vld [vmem:[%s4878_s11 + $0x270] sm:$0xf] }
  0x41   : > { %256 = vst [vmem:[%s4882_s23 + $0x98] sm:$0xf] %v255_v38  ;;  %v337_v15 = vld [vmem:[%s4878_s11 + $0x278] sm:$0xf]  ;;  %v339_v16 = vld [vmem:[%s4878_s11 + $0x280] sm:$0xf] }
  0x42   : > { %258 = vst [vmem:[%s4882_s23 + $0x9c] sm:$0xf] %v257_v39  ;;  %v341_v17 = vld [vmem:[%s4878_s11 + $0x288] sm:$0xf]  ;;  %v343_v18 = vld [vmem:[%s4878_s11 + $0x290] sm:$0xf] }
  0x43   : > { %260 = vst [vmem:[%s4882_s23 + $0xa0] sm:$0xf] %v259_v40  ;;  %v345_v19 = vld [vmem:[%s4878_s11 + $0x298] sm:$0xf]  ;;  %v347_v20 = vld [vmem:[%s4878_s11 + $0x2a0] sm:$0xf] }
  0x44   : > { %262 = vst [vmem:[%s4882_s23 + $0xa4] sm:$0xf] %v261_v41  ;;  %v349_v21 = vld [vmem:[%s4878_s11 + $0x2a8] sm:$0xf]  ;;  %v351_v22 = vld [vmem:[%s4878_s11 + $0x2b0] sm:$0xf] }
  0x45   : > { %264 = vst [vmem:[%s4882_s23 + $0xa8] sm:$0xf] %v263_v42  ;;  %v353_v23 = vld [vmem:[%s4878_s11 + $0x2b8] sm:$0xf]  ;;  %v355_v24 = vld [vmem:[%s4878_s11 + $0x2c0] sm:$0xf] }
  0x46   : > { %266 = vst [vmem:[%s4882_s23 + $0xac] sm:$0xf] %v265_v43  ;;  %v357_v25 = vld [vmem:[%s4878_s11 + $0x2c8] sm:$0xf]  ;;  %v359_v26 = vld [vmem:[%s4878_s11 + $0x2d0] sm:$0xf] }
  0x47   : > { %268 = vst [vmem:[%s4882_s23 + $0xb0] sm:$0xf] %v267_v44  ;;  %v361_v27 = vld [vmem:[%s4878_s11 + $0x2d8] sm:$0xf]  ;;  %v363_v28 = vld [vmem:[%s4878_s11 + $0x2e0] sm:$0xf] }
  0x48   : > { %270 = vst [vmem:[%s4882_s23 + $0xb4] sm:$0xf] %v269_v45  ;;  %v365_v29 = vld [vmem:[%s4878_s11 + $0x2e8] sm:$0xf]  ;;  %v367_v30 = vld [vmem:[%s4878_s11 + $0x2f0] sm:$0xf] }
  0x49   : > { %272 = vst [vmem:[%s4882_s23 + $0xb8] sm:$0xf] %v271_v46  ;;  %v369_v31 = vld [vmem:[%s4878_s11 + $0x2f8] sm:$0xf]  ;;  %v371_v32 = vld [vmem:[%s4878_s11 + $0x300] sm:$0xf] }
  0x4a   : > { %274 = vst [vmem:[%s4882_s23 + $0xbc] sm:$0xf] %v273_v47  ;;  %v373_v33 = vld [vmem:[%s4878_s11 + $0x308] sm:$0xf]  ;;  %v375_v34 = vld [vmem:[%s4878_s11 + $0x310] sm:$0xf] }
  0x4b   : > { %276 = vst [vmem:[%s4882_s23 + $0xc0] sm:$0xf] %v275_v48  ;;  %v377_v35 = vld [vmem:[%s4878_s11 + $0x318] sm:$0xf]  ;;  %v379_v36 = vld [vmem:[%s4878_s11 + $0x320] sm:$0xf] }
  0x4c   : > { %278 = vst [vmem:[%s4882_s23 + $0xc4] sm:$0xf] %v277_v49  ;;  %v381_v37 = vld [vmem:[%s4878_s11 + $0x328] sm:$0xf]  ;;  %v383_v38 = vld [vmem:[%s4878_s11 + $0x330] sm:$0xf] }
  0x4d   : > { %280 = vst [vmem:[%s4882_s23 + $0xc8] sm:$0xf] %v279_v50  ;;  %v385_v39 = vld [vmem:[%s4878_s11 + $0x338] sm:$0xf]  ;;  %v387_v40 = vld [vmem:[%s4878_s11 + $0x340] sm:$0xf] }
  0x4e   : > { %282 = vst [vmem:[%s4882_s23 + $0xcc] sm:$0xf] %v281_v51  ;;  %v389_v41 = vld [vmem:[%s4878_s11 + $0x348] sm:$0xf]  ;;  %v391_v42 = vld [vmem:[%s4878_s11 + $0x350] sm:$0xf] }
  0x4f   : > { %284 = vst [vmem:[%s4882_s23 + $0xd0] sm:$0xf] %v283_v52  ;;  %v393_v43 = vld [vmem:[%s4878_s11 + $0x358] sm:$0xf]  ;;  %v395_v44 = vld [vmem:[%s4878_s11 + $0x360] sm:$0xf] }
  0x50   : > { %286 = vst [vmem:[%s4882_s23 + $0xd4] sm:$0xf] %v285_v53  ;;  %v397_v45 = vld [vmem:[%s4878_s11 + $0x368] sm:$0xf]  ;;  %v399_v46 = vld [vmem:[%s4878_s11 + $0x370] sm:$0xf] }
  0x51   : > { %288 = vst [vmem:[%s4882_s23 + $0xd8] sm:$0xf] %v287_v54  ;;  %v401_v47 = vld [vmem:[%s4878_s11 + $0x378] sm:$0xf]  ;;  %v403_v48 = vld [vmem:[%s4878_s11 + $0x380] sm:$0xf] }
  0x52   : > { %290 = vst [vmem:[%s4882_s23 + $0xdc] sm:$0xf] %v289_v55  ;;  %v405_v49 = vld [vmem:[%s4878_s11 + $0x388] sm:$0xf]  ;;  %v407_v50 = vld [vmem:[%s4878_s11 + $0x390] sm:$0xf] }
  0x53   : > { %292 = vst [vmem:[%s4882_s23 + $0xe0] sm:$0xf] %v291_v56  ;;  %v409_v51 = vld [vmem:[%s4878_s11 + $0x398] sm:$0xf]  ;;  %v411_v52 = vld [vmem:[%s4878_s11 + $0x3a0] sm:$0xf] }
  0x54   : > { %294 = vst [vmem:[%s4882_s23 + $0xe4] sm:$0xf] %v293_v57  ;;  %v413_v53 = vld [vmem:[%s4878_s11 + $0x3a8] sm:$0xf]  ;;  %v415_v54 = vld [vmem:[%s4878_s11 + $0x3b0] sm:$0xf] }
  0x55   : > { %296 = vst [vmem:[%s4882_s23 + $0xe8] sm:$0xf] %v295_v58  ;;  %v417_v55 = vld [vmem:[%s4878_s11 + $0x3b8] sm:$0xf]  ;;  %v419_v56 = vld [vmem:[%s4878_s11 + $0x3c0] sm:$0xf] }
  0x56   : > { %298 = vst [vmem:[%s4882_s23 + $0xec] sm:$0xf] %v297_v59  ;;  %v421_v57 = vld [vmem:[%s4878_s11 + $0x3c8] sm:$0xf]  ;;  %v423_v58 = vld [vmem:[%s4878_s11 + $0x3d0] sm:$0xf] }
  0x57   : > { %300 = vst [vmem:[%s4882_s23 + $0xf0] sm:$0xf] %v299_v60  ;;  %v425_v59 = vld [vmem:[%s4878_s11 + $0x3d8] sm:$0xf]  ;;  %v427_v60 = vld [vmem:[%s4878_s11 + $0x3e0] sm:$0xf] }
  0x58   : > { %302 = vst [vmem:[%s4882_s23 + $0xf4] sm:$0xf] %v301_v61  ;;  %v429_v61 = vld [vmem:[%s4878_s11 + $0x3e8] sm:$0xf] }
  0x59   : > { %304 = vst [vmem:[%s4882_s23 + $0xf8] sm:$0xf] %v303_v62  ;;  %v431_v62 = vld [vmem:[%s4878_s11 + $0x3f0] sm:$0xf] }
  0x5a   : > { %306 = vst [vmem:[%s4882_s23 + $0xfc] sm:$0xf] %v305_v63  ;;  %v433_v63 = vld [vmem:[%s4878_s11 + $0x3f8] sm:$0xf] }
  0x5b   : > { %308 = vst [vmem:[%s4882_s23 + $0x100] sm:$0xf] %v307_v0  ;;  %v435_v0 = vld [vmem:[%s4878_s11 + $0x400] sm:$0xf] }
  0x5c   : > { %310 = vst [vmem:[%s4882_s23 + $0x104] sm:$0xf] %v309_v1  ;;  %v437_v1 = vld [vmem:[%s4878_s11 + $0x408] sm:$0xf] }
  0x5d   : > { %312 = vst [vmem:[%s4882_s23 + $0x108] sm:$0xf] %v311_v2  ;;  %v439_v2 = vld [vmem:[%s4878_s11 + $0x410] sm:$0xf] }
  0x5e   : > { %314 = vst [vmem:[%s4882_s23 + $0x10c] sm:$0xf] %v313_v3  ;;  %v441_v3 = vld [vmem:[%s4878_s11 + $0x418] sm:$0xf] }
  0x5f   : > { %316 = vst [vmem:[%s4882_s23 + $0x110] sm:$0xf] %v315_v4  ;;  %v443_v4 = vld [vmem:[%s4878_s11 + $0x420] sm:$0xf] }
  0x60   : > { %318 = vst [vmem:[%s4882_s23 + $0x114] sm:$0xf] %v317_v5  ;;  %v445_v5 = vld [vmem:[%s4878_s11 + $0x428] sm:$0xf] }
  0x61   : > { %320 = vst [vmem:[%s4882_s23 + $0x118] sm:$0xf] %v319_v6  ;;  %v447_v6 = vld [vmem:[%s4878_s11 + $0x430] sm:$0xf] }
  0x62   : > { %322 = vst [vmem:[%s4882_s23 + $0x11c] sm:$0xf] %v321_v7  ;;  %v449_v7 = vld [vmem:[%s4878_s11 + $0x438] sm:$0xf] }
  0x63   : > { %324 = vst [vmem:[%s4882_s23 + $0x120] sm:$0xf] %v323_v8  ;;  %v451_v8 = vld [vmem:[%s4878_s11 + $0x440] sm:$0xf] }
  0x64   : > { %326 = vst [vmem:[%s4882_s23 + $0x124] sm:$0xf] %v325_v9  ;;  %v453_v9 = vld [vmem:[%s4878_s11 + $0x448] sm:$0xf] }
  0x65   : > { %328 = vst [vmem:[%s4882_s23 + $0x128] sm:$0xf] %v327_v10  ;;  %v455_v10 = vld [vmem:[%s4878_s11 + $0x450] sm:$0xf] }
  0x66   : > { %330 = vst [vmem:[%s4882_s23 + $0x12c] sm:$0xf] %v329_v11  ;;  %v457_v11 = vld [vmem:[%s4878_s11 + $0x458] sm:$0xf] }
  0x67   : > { %332 = vst [vmem:[%s4882_s23 + $0x130] sm:$0xf] %v331_v12  ;;  %v459_v12 = vld [vmem:[%s4878_s11 + $0x460] sm:$0xf] }
  0x68   : > { %334 = vst [vmem:[%s4882_s23 + $0x134] sm:$0xf] %v333_v13  ;;  %v461_v13 = vld [vmem:[%s4878_s11 + $0x468] sm:$0xf] }
  0x69   : > { %336 = vst [vmem:[%s4882_s23 + $0x138] sm:$0xf] %v335_v14  ;;  %v463_v14 = vld [vmem:[%s4878_s11 + $0x470] sm:$0xf] }
  0x6a   : > { %338 = vst [vmem:[%s4882_s23 + $0x13c] sm:$0xf] %v337_v15  ;;  %v465_v15 = vld [vmem:[%s4878_s11 + $0x478] sm:$0xf] }
  0x6b   : > { %340 = vst [vmem:[%s4882_s23 + $0x140] sm:$0xf] %v339_v16  ;;  %v467_v16 = vld [vmem:[%s4878_s11 + $0x480] sm:$0xf] }
  0x6c   : > { %342 = vst [vmem:[%s4882_s23 + $0x144] sm:$0xf] %v341_v17  ;;  %v469_v17 = vld [vmem:[%s4878_s11 + $0x488] sm:$0xf] }
  0x6d   : > { %344 = vst [vmem:[%s4882_s23 + $0x148] sm:$0xf] %v343_v18  ;;  %v471_v18 = vld [vmem:[%s4878_s11 + $0x490] sm:$0xf] }
  0x6e   : > { %346 = vst [vmem:[%s4882_s23 + $0x14c] sm:$0xf] %v345_v19  ;;  %v473_v19 = vld [vmem:[%s4878_s11 + $0x498] sm:$0xf] }
  0x6f   : > { %348 = vst [vmem:[%s4882_s23 + $0x150] sm:$0xf] %v347_v20  ;;  %v475_v20 = vld [vmem:[%s4878_s11 + $0x4a0] sm:$0xf] }
  0x70   : > { %350 = vst [vmem:[%s4882_s23 + $0x154] sm:$0xf] %v349_v21  ;;  %v477_v21 = vld [vmem:[%s4878_s11 + $0x4a8] sm:$0xf] }
  0x71   : > { %352 = vst [vmem:[%s4882_s23 + $0x158] sm:$0xf] %v351_v22  ;;  %v479_v22 = vld [vmem:[%s4878_s11 + $0x4b0] sm:$0xf] }
  0x72   : > { %354 = vst [vmem:[%s4882_s23 + $0x15c] sm:$0xf] %v353_v23  ;;  %v481_v23 = vld [vmem:[%s4878_s11 + $0x4b8] sm:$0xf] }
  0x73   : > { %356 = vst [vmem:[%s4882_s23 + $0x160] sm:$0xf] %v355_v24  ;;  %v483_v24 = vld [vmem:[%s4878_s11 + $0x4c0] sm:$0xf] }
  0x74   : > { %358 = vst [vmem:[%s4882_s23 + $0x164] sm:$0xf] %v357_v25  ;;  %v485_v25 = vld [vmem:[%s4878_s11 + $0x4c8] sm:$0xf] }
  0x75   : > { %360 = vst [vmem:[%s4882_s23 + $0x168] sm:$0xf] %v359_v26  ;;  %v487_v26 = vld [vmem:[%s4878_s11 + $0x4d0] sm:$0xf] }
  0x76   : > { %362 = vst [vmem:[%s4882_s23 + $0x16c] sm:$0xf] %v361_v27  ;;  %v489_v27 = vld [vmem:[%s4878_s11 + $0x4d8] sm:$0xf] }
  0x77   : > { %364 = vst [vmem:[%s4882_s23 + $0x170] sm:$0xf] %v363_v28  ;;  %v491_v28 = vld [vmem:[%s4878_s11 + $0x4e0] sm:$0xf] }
  0x78   : > { %366 = vst [vmem:[%s4882_s23 + $0x174] sm:$0xf] %v365_v29  ;;  %v493_v29 = vld [vmem:[%s4878_s11 + $0x4e8] sm:$0xf] }
  0x79   : > { %368 = vst [vmem:[%s4882_s23 + $0x178] sm:$0xf] %v367_v30  ;;  %v495_v30 = vld [vmem:[%s4878_s11 + $0x4f0] sm:$0xf] }
  0x7a   : > { %370 = vst [vmem:[%s4882_s23 + $0x17c] sm:$0xf] %v369_v31  ;;  %v497_v31 = vld [vmem:[%s4878_s11 + $0x4f8] sm:$0xf] }
  0x7b   : > { %372 = vst [vmem:[%s4882_s23 + $0x180] sm:$0xf] %v371_v32  ;;  %v499_v32 = vld [vmem:[%s4878_s11 + $0x500] sm:$0xf] }
  0x7c   : > { %374 = vst [vmem:[%s4882_s23 + $0x184] sm:$0xf] %v373_v33  ;;  %v501_v33 = vld [vmem:[%s4878_s11 + $0x508] sm:$0xf] }
  0x7d   : > { %376 = vst [vmem:[%s4882_s23 + $0x188] sm:$0xf] %v375_v34  ;;  %v503_v34 = vld [vmem:[%s4878_s11 + $0x510] sm:$0xf] }
  0x7e   : > { %378 = vst [vmem:[%s4882_s23 + $0x18c] sm:$0xf] %v377_v35  ;;  %v505_v35 = vld [vmem:[%s4878_s11 + $0x518] sm:$0xf] }
  0x7f   : > { %380 = vst [vmem:[%s4882_s23 + $0x190] sm:$0xf] %v379_v36  ;;  %v507_v36 = vld [vmem:[%s4878_s11 + $0x520] sm:$0xf] }
  0x80   : > { %382 = vst [vmem:[%s4882_s23 + $0x194] sm:$0xf] %v381_v37  ;;  %v509_v37 = vld [vmem:[%s4878_s11 + $0x528] sm:$0xf] }
  0x81   : > { %384 = vst [vmem:[%s4882_s23 + $0x198] sm:$0xf] %v383_v38  ;;  %v511_v38 = vld [vmem:[%s4878_s11 + $0x530] sm:$0xf] }
  0x82   : > { %386 = vst [vmem:[%s4882_s23 + $0x19c] sm:$0xf] %v385_v39  ;;  %v513_v39 = vld [vmem:[%s4878_s11 + $0x538] sm:$0xf] }
  0x83   : > { %388 = vst [vmem:[%s4882_s23 + $0x1a0] sm:$0xf] %v387_v40  ;;  %v515_v40 = vld [vmem:[%s4878_s11 + $0x540] sm:$0xf] }
  0x84   : > { %390 = vst [vmem:[%s4882_s23 + $0x1a4] sm:$0xf] %v389_v41  ;;  %v517_v41 = vld [vmem:[%s4878_s11 + $0x548] sm:$0xf] }
  0x85   : > { %392 = vst [vmem:[%s4882_s23 + $0x1a8] sm:$0xf] %v391_v42  ;;  %v519_v42 = vld [vmem:[%s4878_s11 + $0x550] sm:$0xf] }
  0x86   : > { %394 = vst [vmem:[%s4882_s23 + $0x1ac] sm:$0xf] %v393_v43  ;;  %v521_v43 = vld [vmem:[%s4878_s11 + $0x558] sm:$0xf] }
  0x87   : > { %396 = vst [vmem:[%s4882_s23 + $0x1b0] sm:$0xf] %v395_v44  ;;  %v523_v44 = vld [vmem:[%s4878_s11 + $0x560] sm:$0xf] }
  0x88   : > { %398 = vst [vmem:[%s4882_s23 + $0x1b4] sm:$0xf] %v397_v45  ;;  %v525_v45 = vld [vmem:[%s4878_s11 + $0x568] sm:$0xf] }
  0x89   : > { %400 = vst [vmem:[%s4882_s23 + $0x1b8] sm:$0xf] %v399_v46  ;;  %v527_v46 = vld [vmem:[%s4878_s11 + $0x570] sm:$0xf] }
  0x8a   : > { %402 = vst [vmem:[%s4882_s23 + $0x1bc] sm:$0xf] %v401_v47  ;;  %v529_v47 = vld [vmem:[%s4878_s11 + $0x578] sm:$0xf] }
  0x8b   : > { %404 = vst [vmem:[%s4882_s23 + $0x1c0] sm:$0xf] %v403_v48  ;;  %v531_v48 = vld [vmem:[%s4878_s11 + $0x580] sm:$0xf] }
  0x8c   : > { %406 = vst [vmem:[%s4882_s23 + $0x1c4] sm:$0xf] %v405_v49  ;;  %v533_v49 = vld [vmem:[%s4878_s11 + $0x588] sm:$0xf] }
  0x8d   : > { %408 = vst [vmem:[%s4882_s23 + $0x1c8] sm:$0xf] %v407_v50  ;;  %v535_v50 = vld [vmem:[%s4878_s11 + $0x590] sm:$0xf] }
  0x8e   : > { %410 = vst [vmem:[%s4882_s23 + $0x1cc] sm:$0xf] %v409_v51  ;;  %v537_v51 = vld [vmem:[%s4878_s11 + $0x598] sm:$0xf] }
  0x8f   : > { %412 = vst [vmem:[%s4882_s23 + $0x1d0] sm:$0xf] %v411_v52  ;;  %v539_v52 = vld [vmem:[%s4878_s11 + $0x5a0] sm:$0xf] }
  0x90   : > { %414 = vst [vmem:[%s4882_s23 + $0x1d4] sm:$0xf] %v413_v53  ;;  %v541_v53 = vld [vmem:[%s4878_s11 + $0x5a8] sm:$0xf] }
  0x91   : > { %416 = vst [vmem:[%s4882_s23 + $0x1d8] sm:$0xf] %v415_v54  ;;  %v543_v54 = vld [vmem:[%s4878_s11 + $0x5b0] sm:$0xf] }
  0x92   : > { %418 = vst [vmem:[%s4882_s23 + $0x1dc] sm:$0xf] %v417_v55  ;;  %v545_v55 = vld [vmem:[%s4878_s11 + $0x5b8] sm:$0xf] }
  0x93   : > { %420 = vst [vmem:[%s4882_s23 + $0x1e0] sm:$0xf] %v419_v56  ;;  %v547_v56 = vld [vmem:[%s4878_s11 + $0x5c0] sm:$0xf] }
  0x94   : > { %422 = vst [vmem:[%s4882_s23 + $0x1e4] sm:$0xf] %v421_v57  ;;  %v549_v57 = vld [vmem:[%s4878_s11 + $0x5c8] sm:$0xf] }
  0x95   : > { %424 = vst [vmem:[%s4882_s23 + $0x1e8] sm:$0xf] %v423_v58  ;;  %v551_v58 = vld [vmem:[%s4878_s11 + $0x5d0] sm:$0xf] }
  0x96   : > { %426 = vst [vmem:[%s4882_s23 + $0x1ec] sm:$0xf] %v425_v59  ;;  %v553_v59 = vld [vmem:[%s4878_s11 + $0x5d8] sm:$0xf] }
  0x97   : > { %428 = vst [vmem:[%s4882_s23 + $0x1f0] sm:$0xf] %v427_v60  ;;  %v555_v60 = vld [vmem:[%s4878_s11 + $0x5e0] sm:$0xf] }
  0x98   : > { %430 = vst [vmem:[%s4882_s23 + $0x1f4] sm:$0xf] %v429_v61  ;;  %v557_v61 = vld [vmem:[%s4878_s11 + $0x5e8] sm:$0xf] }
  0x99   : > { %432 = vst [vmem:[%s4882_s23 + $0x1f8] sm:$0xf] %v431_v62  ;;  %v559_v62 = vld [vmem:[%s4878_s11 + $0x5f0] sm:$0xf] }
  0x9a   : > { %434 = vst [vmem:[%s4882_s23 + $0x1fc] sm:$0xf] %v433_v63  ;;  %v561_v63 = vld [vmem:[%s4878_s11 + $0x5f8] sm:$0xf] }
  0x9b   : > { %436 = vst [vmem:[%s4882_s23 + $0x200] sm:$0xf] %v435_v0  ;;  %v563_v0 = vld [vmem:[%s4878_s11 + $0x600] sm:$0xf] }
  0x9c   : > { %438 = vst [vmem:[%s4882_s23 + $0x204] sm:$0xf] %v437_v1  ;;  %v565_v1 = vld [vmem:[%s4878_s11 + $0x608] sm:$0xf] }
  0x9d   : > { %440 = vst [vmem:[%s4882_s23 + $0x208] sm:$0xf] %v439_v2  ;;  %v567_v2 = vld [vmem:[%s4878_s11 + $0x610] sm:$0xf] }
  0x9e   : > { %442 = vst [vmem:[%s4882_s23 + $0x20c] sm:$0xf] %v441_v3  ;;  %v569_v3 = vld [vmem:[%s4878_s11 + $0x618] sm:$0xf] }
  0x9f   : > { %444 = vst [vmem:[%s4882_s23 + $0x210] sm:$0xf] %v443_v4  ;;  %v571_v4 = vld [vmem:[%s4878_s11 + $0x620] sm:$0xf] }
  0xa0   : > { %446 = vst [vmem:[%s4882_s23 + $0x214] sm:$0xf] %v445_v5  ;;  %v573_v5 = vld [vmem:[%s4878_s11 + $0x628] sm:$0xf] }
  0xa1   : > { %448 = vst [vmem:[%s4882_s23 + $0x218] sm:$0xf] %v447_v6  ;;  %v575_v6 = vld [vmem:[%s4878_s11 + $0x630] sm:$0xf] }
  0xa2   : > { %450 = vst [vmem:[%s4882_s23 + $0x21c] sm:$0xf] %v449_v7  ;;  %v577_v7 = vld [vmem:[%s4878_s11 + $0x638] sm:$0xf] }
  0xa3   : > { %452 = vst [vmem:[%s4882_s23 + $0x220] sm:$0xf] %v451_v8  ;;  %v579_v8 = vld [vmem:[%s4878_s11 + $0x640] sm:$0xf] }
  0xa4   : > { %454 = vst [vmem:[%s4882_s23 + $0x224] sm:$0xf] %v453_v9  ;;  %v581_v9 = vld [vmem:[%s4878_s11 + $0x648] sm:$0xf] }
  0xa5   : > { %456 = vst [vmem:[%s4882_s23 + $0x228] sm:$0xf] %v455_v10  ;;  %v583_v10 = vld [vmem:[%s4878_s11 + $0x650] sm:$0xf] }
  0xa6   : > { %458 = vst [vmem:[%s4882_s23 + $0x22c] sm:$0xf] %v457_v11  ;;  %v585_v11 = vld [vmem:[%s4878_s11 + $0x658] sm:$0xf] }
  0xa7   : > { %460 = vst [vmem:[%s4882_s23 + $0x230] sm:$0xf] %v459_v12  ;;  %v587_v12 = vld [vmem:[%s4878_s11 + $0x660] sm:$0xf] }
  0xa8   : > { %462 = vst [vmem:[%s4882_s23 + $0x234] sm:$0xf] %v461_v13  ;;  %v589_v13 = vld [vmem:[%s4878_s11 + $0x668] sm:$0xf] }
  0xa9   : > { %464 = vst [vmem:[%s4882_s23 + $0x238] sm:$0xf] %v463_v14  ;;  %v591_v14 = vld [vmem:[%s4878_s11 + $0x670] sm:$0xf] }
  0xaa   : > { %466 = vst [vmem:[%s4882_s23 + $0x23c] sm:$0xf] %v465_v15  ;;  %v593_v15 = vld [vmem:[%s4878_s11 + $0x678] sm:$0xf] }
  0xab   : > { %468 = vst [vmem:[%s4882_s23 + $0x240] sm:$0xf] %v467_v16  ;;  %v595_v16 = vld [vmem:[%s4878_s11 + $0x680] sm:$0xf] }
  0xac   : > { %470 = vst [vmem:[%s4882_s23 + $0x244] sm:$0xf] %v469_v17  ;;  %v597_v17 = vld [vmem:[%s4878_s11 + $0x688] sm:$0xf] }
  0xad   : > { %472 = vst [vmem:[%s4882_s23 + $0x248] sm:$0xf] %v471_v18  ;;  %v599_v18 = vld [vmem:[%s4878_s11 + $0x690] sm:$0xf] }
  0xae   : > { %474 = vst [vmem:[%s4882_s23 + $0x24c] sm:$0xf] %v473_v19  ;;  %v601_v19 = vld [vmem:[%s4878_s11 + $0x698] sm:$0xf] }
  0xaf   : > { %476 = vst [vmem:[%s4882_s23 + $0x250] sm:$0xf] %v475_v20  ;;  %v603_v20 = vld [vmem:[%s4878_s11 + $0x6a0] sm:$0xf] }
  0xb0   : > { %478 = vst [vmem:[%s4882_s23 + $0x254] sm:$0xf] %v477_v21  ;;  %v605_v21 = vld [vmem:[%s4878_s11 + $0x6a8] sm:$0xf] }
  0xb1   : > { %480 = vst [vmem:[%s4882_s23 + $0x258] sm:$0xf] %v479_v22  ;;  %v607_v22 = vld [vmem:[%s4878_s11 + $0x6b0] sm:$0xf] }
  0xb2   : > { %482 = vst [vmem:[%s4882_s23 + $0x25c] sm:$0xf] %v481_v23  ;;  %v609_v23 = vld [vmem:[%s4878_s11 + $0x6b8] sm:$0xf] }
  0xb3   : > { %484 = vst [vmem:[%s4882_s23 + $0x260] sm:$0xf] %v483_v24  ;;  %v611_v24 = vld [vmem:[%s4878_s11 + $0x6c0] sm:$0xf] }
  0xb4   : > { %486 = vst [vmem:[%s4882_s23 + $0x264] sm:$0xf] %v485_v25  ;;  %v613_v25 = vld [vmem:[%s4878_s11 + $0x6c8] sm:$0xf] }
  0xb5   : > { %488 = vst [vmem:[%s4882_s23 + $0x268] sm:$0xf] %v487_v26  ;;  %v615_v26 = vld [vmem:[%s4878_s11 + $0x6d0] sm:$0xf] }
  0xb6   : > { %490 = vst [vmem:[%s4882_s23 + $0x26c] sm:$0xf] %v489_v27  ;;  %v617_v27 = vld [vmem:[%s4878_s11 + $0x6d8] sm:$0xf] }
  0xb7   : > { %492 = vst [vmem:[%s4882_s23 + $0x270] sm:$0xf] %v491_v28  ;;  %v619_v28 = vld [vmem:[%s4878_s11 + $0x6e0] sm:$0xf] }
  0xb8   : > { %494 = vst [vmem:[%s4882_s23 + $0x274] sm:$0xf] %v493_v29  ;;  %v621_v29 = vld [vmem:[%s4878_s11 + $0x6e8] sm:$0xf] }
  0xb9   : > { %496 = vst [vmem:[%s4882_s23 + $0x278] sm:$0xf] %v495_v30  ;;  %v623_v30 = vld [vmem:[%s4878_s11 + $0x6f0] sm:$0xf] }
  0xba   : > { %498 = vst [vmem:[%s4882_s23 + $0x27c] sm:$0xf] %v497_v31  ;;  %v625_v31 = vld [vmem:[%s4878_s11 + $0x6f8] sm:$0xf] }
  0xbb   : > { %500 = vst [vmem:[%s4882_s23 + $0x280] sm:$0xf] %v499_v32  ;;  %v627_v32 = vld [vmem:[%s4878_s11 + $0x700] sm:$0xf] }
  0xbc   : > { %502 = vst [vmem:[%s4882_s23 + $0x284] sm:$0xf] %v501_v33  ;;  %v629_v33 = vld [vmem:[%s4878_s11 + $0x708] sm:$0xf] }
  0xbd   : > { %504 = vst [vmem:[%s4882_s23 + $0x288] sm:$0xf] %v503_v34  ;;  %v631_v34 = vld [vmem:[%s4878_s11 + $0x710] sm:$0xf] }
  0xbe   : > { %506 = vst [vmem:[%s4882_s23 + $0x28c] sm:$0xf] %v505_v35  ;;  %v633_v35 = vld [vmem:[%s4878_s11 + $0x718] sm:$0xf] }
  0xbf   : > { %508 = vst [vmem:[%s4882_s23 + $0x290] sm:$0xf] %v507_v36  ;;  %v635_v36 = vld [vmem:[%s4878_s11 + $0x720] sm:$0xf] }
  0xc0   : > { %510 = vst [vmem:[%s4882_s23 + $0x294] sm:$0xf] %v509_v37  ;;  %v637_v37 = vld [vmem:[%s4878_s11 + $0x728] sm:$0xf] }
  0xc1   : > { %512 = vst [vmem:[%s4882_s23 + $0x298] sm:$0xf] %v511_v38  ;;  %v639_v38 = vld [vmem:[%s4878_s11 + $0x730] sm:$0xf] }
  0xc2   : > { %514 = vst [vmem:[%s4882_s23 + $0x29c] sm:$0xf] %v513_v39  ;;  %v641_v39 = vld [vmem:[%s4878_s11 + $0x738] sm:$0xf] }
  0xc3   : > { %516 = vst [vmem:[%s4882_s23 + $0x2a0] sm:$0xf] %v515_v40  ;;  %v643_v40 = vld [vmem:[%s4878_s11 + $0x740] sm:$0xf] }
  0xc4   : > { %518 = vst [vmem:[%s4882_s23 + $0x2a4] sm:$0xf] %v517_v41  ;;  %v645_v41 = vld [vmem:[%s4878_s11 + $0x748] sm:$0xf] }
  0xc5   : > { %520 = vst [vmem:[%s4882_s23 + $0x2a8] sm:$0xf] %v519_v42  ;;  %v647_v42 = vld [vmem:[%s4878_s11 + $0x750] sm:$0xf] }
  0xc6   : > { %522 = vst [vmem:[%s4882_s23 + $0x2ac] sm:$0xf] %v521_v43  ;;  %v649_v43 = vld [vmem:[%s4878_s11 + $0x758] sm:$0xf] }
  0xc7   : > { %524 = vst [vmem:[%s4882_s23 + $0x2b0] sm:$0xf] %v523_v44  ;;  %v651_v44 = vld [vmem:[%s4878_s11 + $0x760] sm:$0xf] }
  0xc8   : > { %526 = vst [vmem:[%s4882_s23 + $0x2b4] sm:$0xf] %v525_v45  ;;  %v653_v45 = vld [vmem:[%s4878_s11 + $0x768] sm:$0xf] }
  0xc9   : > { %528 = vst [vmem:[%s4882_s23 + $0x2b8] sm:$0xf] %v527_v46  ;;  %v655_v46 = vld [vmem:[%s4878_s11 + $0x770] sm:$0xf] }
  0xca   : > { %530 = vst [vmem:[%s4882_s23 + $0x2bc] sm:$0xf] %v529_v47  ;;  %v657_v47 = vld [vmem:[%s4878_s11 + $0x778] sm:$0xf] }
  0xcb   : > { %532 = vst [vmem:[%s4882_s23 + $0x2c0] sm:$0xf] %v531_v48  ;;  %v659_v48 = vld [vmem:[%s4878_s11 + $0x780] sm:$0xf] }
  0xcc   : > { %534 = vst [vmem:[%s4882_s23 + $0x2c4] sm:$0xf] %v533_v49  ;;  %v661_v49 = vld [vmem:[%s4878_s11 + $0x788] sm:$0xf] }
  0xcd   : > { %536 = vst [vmem:[%s4882_s23 + $0x2c8] sm:$0xf] %v535_v50  ;;  %v663_v50 = vld [vmem:[%s4878_s11 + $0x790] sm:$0xf] }
  0xce   : > { %538 = vst [vmem:[%s4882_s23 + $0x2cc] sm:$0xf] %v537_v51  ;;  %v665_v51 = vld [vmem:[%s4878_s11 + $0x798] sm:$0xf] }
  0xcf   : > { %540 = vst [vmem:[%s4882_s23 + $0x2d0] sm:$0xf] %v539_v52  ;;  %v667_v52 = vld [vmem:[%s4878_s11 + $0x7a0] sm:$0xf] }
  0xd0   : > { %542 = vst [vmem:[%s4882_s23 + $0x2d4] sm:$0xf] %v541_v53  ;;  %v669_v53 = vld [vmem:[%s4878_s11 + $0x7a8] sm:$0xf] }
  0xd1   : > { %544 = vst [vmem:[%s4882_s23 + $0x2d8] sm:$0xf] %v543_v54  ;;  %v671_v54 = vld [vmem:[%s4878_s11 + $0x7b0] sm:$0xf] }
  0xd2   : > { %546 = vst [vmem:[%s4882_s23 + $0x2dc] sm:$0xf] %v545_v55  ;;  %v673_v55 = vld [vmem:[%s4878_s11 + $0x7b8] sm:$0xf] }
  0xd3   : > { %548 = vst [vmem:[%s4882_s23 + $0x2e0] sm:$0xf] %v547_v56  ;;  %v675_v56 = vld [vmem:[%s4878_s11 + $0x7c0] sm:$0xf] }
  0xd4   : > { %550 = vst [vmem:[%s4882_s23 + $0x2e4] sm:$0xf] %v549_v57  ;;  %v677_v57 = vld [vmem:[%s4878_s11 + $0x7c8] sm:$0xf] }
  0xd5   : > { %552 = vst [vmem:[%s4882_s23 + $0x2e8] sm:$0xf] %v551_v58  ;;  %v679_v58 = vld [vmem:[%s4878_s11 + $0x7d0] sm:$0xf] }
  0xd6   : > { %554 = vst [vmem:[%s4882_s23 + $0x2ec] sm:$0xf] %v553_v59  ;;  %v681_v59 = vld [vmem:[%s4878_s11 + $0x7d8] sm:$0xf] }
  0xd7   : > { %556 = vst [vmem:[%s4882_s23 + $0x2f0] sm:$0xf] %v555_v60  ;;  %v683_v60 = vld [vmem:[%s4878_s11 + $0x7e0] sm:$0xf] }
  0xd8   : > { %558 = vst [vmem:[%s4882_s23 + $0x2f4] sm:$0xf] %v557_v61  ;;  %v685_v61 = vld [vmem:[%s4878_s11 + $0x7e8] sm:$0xf] }
  0xd9   : > { %560 = vst [vmem:[%s4882_s23 + $0x2f8] sm:$0xf] %v559_v62  ;;  %v687_v62 = vld [vmem:[%s4878_s11 + $0x7f0] sm:$0xf] }
  0xda   : > { %562 = vst [vmem:[%s4882_s23 + $0x2fc] sm:$0xf] %v561_v63  ;;  %v689_v63 = vld [vmem:[%s4878_s11 + $0x7f8] sm:$0xf] }
  0xdb   : > { %564 = vst [vmem:[%s4882_s23 + $0x300] sm:$0xf] %v563_v0 }
  0xdc   : > { %566 = vst [vmem:[%s4882_s23 + $0x304] sm:$0xf] %v565_v1 }
  0xdd   : > { %568 = vst [vmem:[%s4882_s23 + $0x308] sm:$0xf] %v567_v2 }
  0xde   : > { %570 = vst [vmem:[%s4882_s23 + $0x30c] sm:$0xf] %v569_v3 }
  0xdf   : > { %572 = vst [vmem:[%s4882_s23 + $0x310] sm:$0xf] %v571_v4 }
  0xe0   : > { %574 = vst [vmem:[%s4882_s23 + $0x314] sm:$0xf] %v573_v5 }
  0xe1   : > { %576 = vst [vmem:[%s4882_s23 + $0x318] sm:$0xf] %v575_v6 }
  0xe2   : > { %578 = vst [vmem:[%s4882_s23 + $0x31c] sm:$0xf] %v577_v7 }
  0xe3   : > { %580 = vst [vmem:[%s4882_s23 + $0x320] sm:$0xf] %v579_v8 }
  0xe4   : > { %582 = vst [vmem:[%s4882_s23 + $0x324] sm:$0xf] %v581_v9 }
  0xe5   : > { %584 = vst [vmem:[%s4882_s23 + $0x328] sm:$0xf] %v583_v10 }
  0xe6   : > { %586 = vst [vmem:[%s4882_s23 + $0x32c] sm:$0xf] %v585_v11 }
  0xe7   : > { %588 = vst [vmem:[%s4882_s23 + $0x330] sm:$0xf] %v587_v12 }
  0xe8   : > { %590 = vst [vmem:[%s4882_s23 + $0x334] sm:$0xf] %v589_v13 }
  0xe9   : > { %592 = vst [vmem:[%s4882_s23 + $0x338] sm:$0xf] %v591_v14 }
  0xea   : > { %594 = vst [vmem:[%s4882_s23 + $0x33c] sm:$0xf] %v593_v15 }
  0xeb   : > { %596 = vst [vmem:[%s4882_s23 + $0x340] sm:$0xf] %v595_v16 }
  0xec   : > { %598 = vst [vmem:[%s4882_s23 + $0x344] sm:$0xf] %v597_v17 }
  0xed   : > { %600 = vst [vmem:[%s4882_s23 + $0x348] sm:$0xf] %v599_v18 }
  0xee   : > { %602 = vst [vmem:[%s4882_s23 + $0x34c] sm:$0xf] %v601_v19 }
  0xef   : > { %604 = vst [vmem:[%s4882_s23 + $0x350] sm:$0xf] %v603_v20 }
  0xf0   : > { %606 = vst [vmem:[%s4882_s23 + $0x354] sm:$0xf] %v605_v21 }
  0xf1   : > { %608 = vst [vmem:[%s4882_s23 + $0x358] sm:$0xf] %v607_v22 }
  0xf2   : > { %610 = vst [vmem:[%s4882_s23 + $0x35c] sm:$0xf] %v609_v23 }
  0xf3   : > { %612 = vst [vmem:[%s4882_s23 + $0x360] sm:$0xf] %v611_v24 }
  0xf4   : > { %614 = vst [vmem:[%s4882_s23 + $0x364] sm:$0xf] %v613_v25 }
  0xf5   : > { %616 = vst [vmem:[%s4882_s23 + $0x368] sm:$0xf] %v615_v26 }
  0xf6   : > { %618 = vst [vmem:[%s4882_s23 + $0x36c] sm:$0xf] %v617_v27 }
  0xf7   : > { %620 = vst [vmem:[%s4882_s23 + $0x370] sm:$0xf] %v619_v28 }
  0xf8   : > { %622 = vst [vmem:[%s4882_s23 + $0x374] sm:$0xf] %v621_v29 }
  0xf9   : > { %624 = vst [vmem:[%s4882_s23 + $0x378] sm:$0xf] %v623_v30 }
  0xfa   : > { %626 = vst [vmem:[%s4882_s23 + $0x37c] sm:$0xf] %v625_v31 }
  0xfb   : > { %628 = vst [vmem:[%s4882_s23 + $0x380] sm:$0xf] %v627_v32 }
  0xfc   : > { %630 = vst [vmem:[%s4882_s23 + $0x384] sm:$0xf] %v629_v33 }
  0xfd   : > { %632 = vst [vmem:[%s4882_s23 + $0x388] sm:$0xf] %v631_v34 }
  0xfe   : > { %634 = vst [vmem:[%s4882_s23 + $0x38c] sm:$0xf] %v633_v35 }
  0xff   : > { %636 = vst [vmem:[%s4882_s23 + $0x390] sm:$0xf] %v635_v36 }
 0x100   : > { %638 = vst [vmem:[%s4882_s23 + $0x394] sm:$0xf] %v637_v37 }
 0x101   : > { %640 = vst [vmem:[%s4882_s23 + $0x398] sm:$0xf] %v639_v38 }
 0x102   : > { %642 = vst [vmem:[%s4882_s23 + $0x39c] sm:$0xf] %v641_v39 }
 0x103   : > { %644 = vst [vmem:[%s4882_s23 + $0x3a0] sm:$0xf] %v643_v40 }
 0x104   : > { %646 = vst [vmem:[%s4882_s23 + $0x3a4] sm:$0xf] %v645_v41 }
 0x105   : > { %648 = vst [vmem:[%s4882_s23 + $0x3a8] sm:$0xf] %v647_v42 }
 0x106   : > { %650 = vst [vmem:[%s4882_s23 + $0x3ac] sm:$0xf] %v649_v43 }
 0x107   : > { %652 = vst [vmem:[%s4882_s23 + $0x3b0] sm:$0xf] %v651_v44 }
 0x108   : > { %654 = vst [vmem:[%s4882_s23 + $0x3b4] sm:$0xf] %v653_v45 }
 0x109   : > { %656 = vst [vmem:[%s4882_s23 + $0x3b8] sm:$0xf] %v655_v46 }
 0x10a   : > { %658 = vst [vmem:[%s4882_s23 + $0x3bc] sm:$0xf] %v657_v47 }
 0x10b   : > { %660 = vst [vmem:[%s4882_s23 + $0x3c0] sm:$0xf] %v659_v48 }
 0x10c   : > { %662 = vst [vmem:[%s4882_s23 + $0x3c4] sm:$0xf] %v661_v49 }
 0x10d   : > { %664 = vst [vmem:[%s4882_s23 + $0x3c8] sm:$0xf] %v663_v50 }
 0x10e   : > { %666 = vst [vmem:[%s4882_s23 + $0x3cc] sm:$0xf] %v665_v51 }
 0x10f   : > { %668 = vst [vmem:[%s4882_s23 + $0x3d0] sm:$0xf] %v667_v52 }
 0x110   : > { %670 = vst [vmem:[%s4882_s23 + $0x3d4] sm:$0xf] %v669_v53 }
 0x111   : > { %672 = vst [vmem:[%s4882_s23 + $0x3d8] sm:$0xf] %v671_v54 }
 0x112   : > { %674 = vst [vmem:[%s4882_s23 + $0x3dc] sm:$0xf] %v673_v55 }
 0x113   : > { %676 = vst [vmem:[%s4882_s23 + $0x3e0] sm:$0xf] %v675_v56 }
 0x114   : > { %678 = vst [vmem:[%s4882_s23 + $0x3e4] sm:$0xf] %v677_v57 }
 0x115   : > { %680 = vst [vmem:[%s4882_s23 + $0x3e8] sm:$0xf] %v679_v58 }
 0x116   : > { %682 = vst [vmem:[%s4882_s23 + $0x3ec] sm:$0xf] %v681_v59 }
 0x117   : > { %684 = vst [vmem:[%s4882_s23 + $0x3f0] sm:$0xf] %v683_v60 }
 0x118   : > { %686 = vst [vmem:[%s4882_s23 + $0x3f4] sm:$0xf] %v685_v61 }
 0x119   : > { %688 = vst [vmem:[%s4882_s23 + $0x3f8] sm:$0xf] %v687_v62 }
 0x11a   : > { %690 = vst [vmem:[%s4882_s23 + $0x3fc] sm:$0xf] %v689_v63 }
 0x11b PF: > { %p3885_p11 = scmp.ge.s32.totalorder %s4769_s20, 1  ;;  %p2281_p12 = scmp.lt.s32.totalorder %s4769_s20, 5 }
 0x11d   : > { %p2282_p13 = pnand %p3885_p11, %p2281_p12 }
 0x11e   : > { %s2288_s24 = sand.u32 (!%p2282_p13), 1, %s4745_s14   ;;  %p2318_p0 = scmp.lt.s32.totalorder (!%p2282_p13), %s4753_s16, 1 }
 0x11f   : > { %2285 = sbr.rel (%p2282_p13) target bundleno = 639 (0x27f), region = 80  ;;  %s3886_s25 = sshll.u32 (!%p2282_p13), %s2288_s24, 10 }
 0x120   : > { %s5397_s26 = scalar_lea.vmem (!%p2282_p13), [#allocation2], %s3886_s25  ;;  %p2323_p1 = scmp.lt.s32.totalorder (!%p2282_p13), %s4757_s17, 1 }
 0x121   : > { %s2315_s24 = sand.u32 (!%p2282_p13), 1, %s4737_s12  }
 0x122   : > { %s3887_s25 = sshll.u32 (!%p2282_p13), %s2315_s24, 3 }
 0x124   : > { %v4495_v0 = vld [vmem:[%s5397_s26 + $0x38] sm:$0xff]  ;;  %v4494_v4 = vld [vmem:[%s5397_s26 + $0x30] sm:$0xff]  ;;  %v4493_v8 = vld [vmem:[%s5397_s26 + $0x28] sm:$0xff]  ;;  %s2319_s14 = scalar_select %p2318_p0, %s4753_s16, 1 }
 0x125   : > { %v4503_v1 = vld [vmem:[%s5397_s26 + $0x78] sm:$0xff]  ;;  %3450 = vmatpush.bf16.msra.mxu0 %v4495_v0  ;;  %v4502_v5 = vld [vmem:[%s5397_s26 + $0x70] sm:$0xff]  ;;  %v4501_v9 = vld [vmem:[%s5397_s26 + $0x68] sm:$0xff]  ;;  %s5423_s27 = scalar_select %p2323_p1, %s4757_s17, 1 }
 0x126   : > { %v4511_v2 = vld [vmem:[%s5397_s26 + $0xb8] sm:$0xff]  ;;  %3464 = vmatpush.bf16.msra.mxu1 %v4503_v1  ;;  %v4510_v6 = vld [vmem:[%s5397_s26 + $0xb0] sm:$0xff]  ;;  %v4509_v10 = vld [vmem:[%s5397_s26 + $0xa8] sm:$0xff]  ;;  %s4471_s28 = sshll.u32 %s2319_s14, 7  ;;  %s4467_s12 = sshll.u32 (%p4860_p9), %s4753_s16, 2 }
 0x127   : > { %v4519_v3 = vld [vmem:[%s5397_s26 + $0xf8] sm:$0xff]  ;;  %3478 = vmatpush.bf16.msra.mxu2 %v4511_v2  ;;  %v4518_v7 = vld [vmem:[%s5397_s26 + $0xf0] sm:$0xff]  ;;  %v4517_v11 = vld [vmem:[%s5397_s26 + $0xe8] sm:$0xff]  ;;  %s2325_s7 = scalar_lea.vmem %s5616_s2, %s5423_s27  ;;  %s5440_s10 = scalar_lea.vmem %s5614_s0, %s4471_s28 }
 0x128   : > { %3492 = vmatpush.bf16.msra.mxu3 %v4519_v3  ;;  %v4492_v12 = vld [vmem:[%s5397_s26 + $0x20] sm:$0xff]  ;;  %v4491_v16 = vld [vmem:[%s5397_s26 + $0x18] sm:$0xff]  ;;  %v4490_v20 = vld [vmem:[%s5397_s26 + $0x10] sm:$0xff]  ;;  %s3732_s14 = sadd.s32 (%p4860_p9), %s4757_s17, %s4467_s12 }
 0x129   : > { %3451 = vmatpush.bf16.msra.mxu0 %v4494_v4  ;;  %v4500_v13 = vld [vmem:[%s5397_s26 + $0x60] sm:$0xff]  ;;  %v4499_v17 = vld [vmem:[%s5397_s26 + $0x58] sm:$0xff]  ;;  %v4498_v21 = vld [vmem:[%s5397_s26 + $0x50] sm:$0xff]  ;;  %s4468_s27 = sshll.u32 (%p4860_p9), %s3732_s14, 2 }
 0x12a   : > { %3465 = vmatpush.bf16.msra.mxu1 %v4502_v5  ;;  %v4508_v14 = vld [vmem:[%s5397_s26 + $0xa0] sm:$0xff]  ;;  %v4507_v18 = vld [vmem:[%s5397_s26 + $0x98] sm:$0xff]  ;;  %v4506_v22 = vld [vmem:[%s5397_s26 + $0x90] sm:$0xff]  ;;  %s3734_s6 = scalar_lea.vmem (%p4860_p9), %s5617_s3, %s4468_s27 }
 0x12b   : > { %3479 = vmatpush.bf16.msra.mxu2 %v4510_v6  ;;  %v4516_v15 = vld [vmem:[%s5397_s26 + $0xe0] sm:$0xff]  ;;  %v4515_v19 = vld [vmem:[%s5397_s26 + $0xd8] sm:$0xff]  ;;  %v4514_v23 = vld [vmem:[%s5397_s26 + $0xd0] sm:$0xff] }
 0x12c   : > { %3493 = vmatpush.bf16.msra.mxu3 %v4518_v7  ;;  %v4489_v24 = vld [vmem:[%s5397_s26 + $0x8] sm:$0xff]  ;;  %v4488_v28 = vld [vmem:[%s5397_s26] sm:$0xff]  ;;  %v4527_v32 = vld [vmem:[%s5397_s26 + $0x138] sm:$0xff] }
 0x12d   : > { %3452 = vmatpush.bf16.msra.mxu0 %v4493_v8  ;;  %v4497_v25 = vld [vmem:[%s5397_s26 + $0x48] sm:$0xff]  ;;  %v4496_v29 = vld [vmem:[%s5397_s26 + $0x40] sm:$0xff]  ;;  %v4535_v33 = vld [vmem:[%s5397_s26 + $0x178] sm:$0xff] }
 0x12e   : > { %3466 = vmatpush.bf16.msra.mxu1 %v4501_v9  ;;  %v4505_v26 = vld [vmem:[%s5397_s26 + $0x88] sm:$0xff]  ;;  %v4504_v30 = vld [vmem:[%s5397_s26 + $0x80] sm:$0xff]  ;;  %v4543_v42 = vld [vmem:[%s5397_s26 + $0x1b8] sm:$0xff] }
 0x12f   : > { %3480 = vmatpush.bf16.msra.mxu2 %v4509_v10  ;;  %v4513_v27 = vld [vmem:[%s5397_s26 + $0xc8] sm:$0xff]  ;;  %v4512_v31 = vld [vmem:[%s5397_s26 + $0xc0] sm:$0xff]  ;;  %v4551_v43 = vld [vmem:[%s5397_s26 + $0x1f8] sm:$0xff] }
 0x130   : > { %3494 = vmatpush.bf16.msra.mxu3 %v4517_v11  ;;  %v3892_v34 = vld [vmem:[%s5440_s10] sm:$0xf]  ;;  %v3900_v36 = vld [vmem:[%s5440_s10 + $0x8] sm:$0xf]  ;;  %v4472_v38 = vld [vmem:[%s5440_s10 + $0x4] sm:$0xf] }
 0x131   : > { %3453 = vmatpush.bf16.msra.mxu0 %v4492_v12  ;;  %v4480_v35 = vld [vmem:[%s5440_s10 + $0x3c] sm:$0xf0]  ;;  %v4481_v37 = vld [vmem:[%s5440_s10 + $0x44] sm:$0xf0]  ;;  %v3894_v39 = vld [vmem:[%s5440_s10 + $0x40] sm:$0xf0] }
 0x132   : > { %3467 = vmatpush.bf16.msra.mxu1 %v4500_v13  ;;  %v4473_v40 = vld [vmem:[%s5440_s10 + $0xc] sm:$0xf]  ;;  %v3893_v44 = vor.u32 %v4480_v35, %v3892_v34  ;;  %v3901_v45 = vor.u32 %v4481_v37, %v3900_v36  ;;  %v3897_v46 = vor.u32 %v4472_v38, %v3894_v39  ;;  %v4526_v48 = vld [vmem:[%s5397_s26 + $0x130] sm:$0xff]  ;;  %v4524_v56 = vld [vmem:[%s5397_s26 + $0x120] sm:$0xff] }
 0x133   : > { %3481 = vmatpush.bf16.msra.mxu2 %v4508_v14  ;;  %v3902_v41 = vld [vmem:[%s5440_s10 + $0x48] sm:$0xf0]  ;;  %v4534_v49 = vld [vmem:[%s5397_s26 + $0x170] sm:$0xff]  ;;  %v4532_v57 = vld [vmem:[%s5397_s26 + $0x160] sm:$0xff] }
 0x134   : > { %3495 = vmatpush.bf16.msra.mxu3 %v4516_v15  ;;  %v3905_v47 = vor.u32 %v4473_v40, %v3902_v41  ;;  %v4542_v50 = vld [vmem:[%s5397_s26 + $0x1b0] sm:$0xff]  ;;  %v4525_v52 = vld [vmem:[%s5397_s26 + $0x128] sm:$0xff]  ;;  %v4540_v58 = vld [vmem:[%s5397_s26 + $0x1a0] sm:$0xff] }
 0x135   : > { %3454 = vmatpush.bf16.msra.mxu0 %v4491_v16  ;;  %v4550_v51 = vld [vmem:[%s5397_s26 + $0x1f0] sm:$0xff]  ;;  %v4533_v53 = vld [vmem:[%s5397_s26 + $0x168] sm:$0xff]  ;;  %v4548_v59 = vld [vmem:[%s5397_s26 + $0x1e0] sm:$0xff] }
 0x136   : > { %3468 = vmatpush.bf16.msra.mxu1 %v4499_v17  ;;  %v4541_v54 = vld [vmem:[%s5397_s26 + $0x1a8] sm:$0xff]  ;;  %v4523_v60 = vld [vmem:[%s5397_s26 + $0x118] sm:$0xff]  ;;  %v4522_v0 = vld [vmem:[%s5397_s26 + $0x110] sm:$0xff] }
 0x137   : > { %3482 = vmatpush.bf16.msra.mxu2 %v4507_v18  ;;  %v4549_v55 = vld [vmem:[%s5397_s26 + $0x1e8] sm:$0xff]  ;;  %v4531_v61 = vld [vmem:[%s5397_s26 + $0x158] sm:$0xff]  ;;  %v4530_v1 = vld [vmem:[%s5397_s26 + $0x150] sm:$0xff] }
 0x138   : > { %3496 = vmatpush.bf16.msra.mxu3 %v4515_v19  ;;  %v4539_v62 = vld [vmem:[%s5397_s26 + $0x198] sm:$0xff]  ;;  %v4538_v2 = vld [vmem:[%s5397_s26 + $0x190] sm:$0xff]  ;;  %v4521_v4 = vld [vmem:[%s5397_s26 + $0x108] sm:$0xff] }
 0x139   : > { %3455 = vmatpush.bf16.msra.mxu0 %v4490_v20  ;;  %v4547_v63 = vld [vmem:[%s5397_s26 + $0x1d8] sm:$0xff]  ;;  %v4546_v3 = vld [vmem:[%s5397_s26 + $0x1d0] sm:$0xff]  ;;  %v4529_v5 = vld [vmem:[%s5397_s26 + $0x148] sm:$0xff] }
 0x13a   : > { %3469 = vmatpush.bf16.msra.mxu1 %v4498_v21  ;;  %v4537_v6 = vld [vmem:[%s5397_s26 + $0x188] sm:$0xff]  ;;  %v4520_v8 = vld [vmem:[%s5397_s26 + $0x100] sm:$0xff]  ;;  %v4559_v12 = vld [vmem:[%s5397_s26 + $0x238] sm:$0xff] }
 0x13b   : > { %3483 = vmatpush.bf16.msra.mxu2 %v4506_v22  ;;  %v4545_v7 = vld [vmem:[%s5397_s26 + $0x1c8] sm:$0xff]  ;;  %v4528_v9 = vld [vmem:[%s5397_s26 + $0x140] sm:$0xff]  ;;  %v4567_v13 = vld [vmem:[%s5397_s26 + $0x278] sm:$0xff] }
 0x13c   : > { %3497 = vmatpush.bf16.msra.mxu3 %v4514_v23  ;;  %v4536_v10 = vld [vmem:[%s5397_s26 + $0x180] sm:$0xff]  ;;  %v3908_v14 = vld [vmem:[%s5440_s10 + $0x10] sm:$0xf]  ;;  %v3916_v16 = vld [vmem:[%s5440_s10 + $0x18] sm:$0xf] }
 0x13d   : > { %3456 = vmatpush.bf16.msra.mxu0 %v4489_v24  ;;  %v4544_v11 = vld [vmem:[%s5397_s26 + $0x1c0] sm:$0xff]  ;;  %v4482_v15 = vld [vmem:[%s5440_s10 + $0x4c] sm:$0xf0]  ;;  %v4483_v17 = vld [vmem:[%s5440_s10 + $0x54] sm:$0xf0] }
 0x13e   : > { %3470 = vmatpush.bf16.msra.mxu1 %v4497_v25  ;;  %v4474_v18 = vld [vmem:[%s5440_s10 + $0x14] sm:$0xf]  ;;  %v4475_v20 = vld [vmem:[%s5440_s10 + $0x1c] sm:$0xf]  ;;  %v3909_v24 = vor.u32 %v4482_v15, %v3908_v14  ;;  %v3917_v25 = vor.u32 %v4483_v17, %v3916_v16  ;;  %v4573_v34 = vld [vmem:[%s5397_s26 + $0x2a8] sm:$0xff] }
 0x13f   : > { %3484 = vmatpush.bf16.msra.mxu2 %v4505_v26  ;;  %v3910_v19 = vld [vmem:[%s5440_s10 + $0x50] sm:$0xf0]  ;;  %v3918_v21 = vld [vmem:[%s5440_s10 + $0x58] sm:$0xf0]  ;;  %v4581_v35 = vld [vmem:[%s5397_s26 + $0x2e8] sm:$0xff] }
 0x140   : > { %3498 = vmatpush.bf16.msra.mxu3 %v4513_v27  ;;  %v4575_v22 = vld [vmem:[%s5397_s26 + $0x2b8] sm:$0xff]  ;;  %v3913_v26 = vor.u32 %v4474_v18, %v3910_v19  ;;  %v3921_v27 = vor.u32 %v4475_v20, %v3918_v21  ;;  %v4556_v36 = vld [vmem:[%s5397_s26 + $0x220] sm:$0xff]  ;;  %v4605_v14 = vld [vmem:[%s5397_s26 + $0x3a8] sm:$0xff] }
 0x141   : > { %3457 = vmatpush.bf16.msra.mxu0 %v4488_v28  ;;  %v4583_v23 = vld [vmem:[%s5397_s26 + $0x2f8] sm:$0xff]  ;;  %v4558_v28 = vld [vmem:[%s5397_s26 + $0x230] sm:$0xff]  ;;  %v4564_v37 = vld [vmem:[%s5397_s26 + $0x260] sm:$0xff] }
 0x142   : > { %3471 = vmatpush.bf16.msra.mxu1 %v4496_v29  ;;  %v4566_v29 = vld [vmem:[%s5397_s26 + $0x270] sm:$0xff]  ;;  %v4572_v38 = vld [vmem:[%s5397_s26 + $0x2a0] sm:$0xff]  ;;  %v4555_v40 = vld [vmem:[%s5397_s26 + $0x218] sm:$0xff] }
 0x143   : > { %3485 = vmatpush.bf16.msra.mxu2 %v4504_v30  ;;  %v4574_v30 = vld [vmem:[%s5397_s26 + $0x2b0] sm:$0xff]  ;;  %v4580_v39 = vld [vmem:[%s5397_s26 + $0x2e0] sm:$0xff]  ;;  %v4563_v41 = vld [vmem:[%s5397_s26 + $0x258] sm:$0xff] }
 0x144   : > { %3499 = vmatpush.bf16.msra.mxu3 %v4512_v31  ;;  %3458 = vmatmul.bf16.vlgmr.msra.gmra.mxu0 %v3893_v44  ;;  %v4582_v31 = vld [vmem:[%s5397_s26 + $0x2f0] sm:$0xff]  ;;  %v4613_v15 = vld [vmem:[%s5397_s26 + $0x3e8] sm:$0xff]  ;;  %v4588_v16 = vld [vmem:[%s5397_s26 + $0x320] sm:$0xff] }
 0x145   : > { %3506 = vmatpush.bf16.msrb.mxu0 %v4527_v32  ;;  %3472 = vmatmul.bf16.vlgmr.msra.gmra.mxu1 %v3897_v46  ;;  %v4557_v32 = vld [vmem:[%s5397_s26 + $0x228] sm:$0xff]  ;;  %v4554_v44 = vld [vmem:[%s5397_s26 + $0x210] sm:$0xff]  ;;  %v4596_v17 = vld [vmem:[%s5397_s26 + $0x360] sm:$0xff] }
 0x146   : > { %3520 = vmatpush.bf16.msrb.mxu1 %v4535_v33  ;;  %3486 = vmatmul.bf16.vlgmr.msra.gmra.mxu2 %v3901_v45  ;;  %v4565_v33 = vld [vmem:[%s5397_s26 + $0x268] sm:$0xff]  ;;  %v4562_v45 = vld [vmem:[%s5397_s26 + $0x250] sm:$0xff]  ;;  %v4604_v18 = vld [vmem:[%s5397_s26 + $0x3a0] sm:$0xff] }
 0x147   : > { %3534 = vmatpush.bf16.msrb.mxu2 %v4543_v42  ;;  %3500 = vmatmul.bf16.vlgmr.msra.gmra.mxu3 %v3905_v47  ;;  %v4571_v42 = vld [vmem:[%s5397_s26 + $0x298] sm:$0xff]  ;;  %v4570_v46 = vld [vmem:[%s5397_s26 + $0x290] sm:$0xff]  ;;  %v4612_v19 = vld [vmem:[%s5397_s26 + $0x3e0] sm:$0xff] }
 0x148   : > { %3548 = vmatpush.bf16.msrb.mxu3 %v4551_v43  ;;  %v4579_v43 = vld [vmem:[%s5397_s26 + $0x2d8] sm:$0xff]  ;;  %v4578_v47 = vld [vmem:[%s5397_s26 + $0x2d0] sm:$0xff] }
 0x149   : > { %3507 = vmatpush.bf16.msrb.mxu0 %v4526_v48  ;;  %v4553_v48 = vld [vmem:[%s5397_s26 + $0x208] sm:$0xff]  ;;  %v4587_v20 = vld [vmem:[%s5397_s26 + $0x318] sm:$0xff] }
 0x14a   : > { %3521 = vmatpush.bf16.msrb.mxu1 %v4534_v49  ;;  %v4561_v49 = vld [vmem:[%s5397_s26 + $0x248] sm:$0xff]  ;;  %v4595_v21 = vld [vmem:[%s5397_s26 + $0x358] sm:$0xff] }
 0x14b   : > { %3535 = vmatpush.bf16.msrb.mxu2 %v4542_v50  ;;  %v4569_v50 = vld [vmem:[%s5397_s26 + $0x288] sm:$0xff] }
 0x14c   : > { %3549 = vmatpush.bf16.msrb.mxu3 %v4550_v51  ;;  %v4577_v51 = vld [vmem:[%s5397_s26 + $0x2c8] sm:$0xff] }
 0x14d   : > { %3508 = vmatpush.bf16.msrb.mxu0 %v4525_v52  ;;  %v4552_v52 = vld [vmem:[%s5397_s26 + $0x200] sm:$0xff] }
 0x14e   : > { %3522 = vmatpush.bf16.msrb.mxu1 %v4533_v53  ;;  %v4560_v53 = vld [vmem:[%s5397_s26 + $0x240] sm:$0xff] }
 0x14f   : > { %3536 = vmatpush.bf16.msrb.mxu2 %v4541_v54  ;;  %v4568_v54 = vld [vmem:[%s5397_s26 + $0x280] sm:$0xff] }
 0x150   : > { %3550 = vmatpush.bf16.msrb.mxu3 %v4549_v55  ;;  %v4576_v55 = vld [vmem:[%s5397_s26 + $0x2c0] sm:$0xff] }
 0x151   : > { %3509 = vmatpush.bf16.msrb.mxu0 %v4524_v56  ;;  %v4591_v56 = vld [vmem:[%s5397_s26 + $0x338] sm:$0xff] }
 0x152   : > { %3523 = vmatpush.bf16.msrb.mxu1 %v4532_v57  ;;  %v4599_v57 = vld [vmem:[%s5397_s26 + $0x378] sm:$0xff] }
 0x153   : > { %3537 = vmatpush.bf16.msrb.mxu2 %v4540_v58  ;;  %v3924_v58 = vld [vmem:[%s5440_s10 + $0x20] sm:$0xf] }
 0x154   : > { %3551 = vmatpush.bf16.msrb.mxu3 %v4548_v59  ;;  %v4484_v59 = vld [vmem:[%s5440_s10 + $0x5c] sm:$0xf0] }
 0x155   : > { %3510 = vmatpush.bf16.msrb.mxu0 %v4523_v60  ;;  %v3932_v60 = vld [vmem:[%s5440_s10 + $0x28] sm:$0xf] }
 0x156   : > { %3524 = vmatpush.bf16.msrb.mxu1 %v4531_v61  ;;  %v4485_v61 = vld [vmem:[%s5440_s10 + $0x64] sm:$0xf0] }
 0x157   : > { %3538 = vmatpush.bf16.msrb.mxu2 %v4539_v62  ;;  %v4476_v62 = vld [vmem:[%s5440_s10 + $0x24] sm:$0xf] }
 0x158   : > { %3552 = vmatpush.bf16.msrb.mxu3 %v4547_v63  ;;  %v3926_v63 = vld [vmem:[%s5440_s10 + $0x60] sm:$0xf0] }
 0x159   : > { %3511 = vmatpush.bf16.msrb.mxu0 %v4522_v0  ;;  %v4477_v0 = vld [vmem:[%s5440_s10 + $0x2c] sm:$0xf] }
 0x15a   : > { %3525 = vmatpush.bf16.msrb.mxu1 %v4530_v1  ;;  %v3934_v1 = vld [vmem:[%s5440_s10 + $0x68] sm:$0xf0] }
 0x15b   : > { %3539 = vmatpush.bf16.msrb.mxu2 %v4538_v2  ;;  %v4607_v2 = vld [vmem:[%s5397_s26 + $0x3b8] sm:$0xff] }
 0x15c   : > { %3553 = vmatpush.bf16.msrb.mxu3 %v4546_v3  ;;  %v4615_v3 = vld [vmem:[%s5397_s26 + $0x3f8] sm:$0xff] }
 0x15d   : > { %3512 = vmatpush.bf16.msrb.mxu0 %v4521_v4  ;;  %v3925_v4 = vor.u32 %v4484_v59, %v3924_v58 }
 0x15e   : > { %3526 = vmatpush.bf16.msrb.mxu1 %v4529_v5  ;;  %v3933_v5 = vor.u32 %v4485_v61, %v3932_v60 }
 0x15f   : > { %3540 = vmatpush.bf16.msrb.mxu2 %v4537_v6  ;;  %v3929_v6 = vor.u32 %v4476_v62, %v3926_v63 }
 0x160   : > { %3554 = vmatpush.bf16.msrb.mxu3 %v4545_v7  ;;  %v3937_v7 = vor.u32 %v4477_v0, %v3934_v1 }
 0x161   : > { %3513 = vmatpush.bf16.msrb.mxu0 %v4520_v8  ;;  %v4590_v8 = vld [vmem:[%s5397_s26 + $0x330] sm:$0xff] }
 0x162   : > { %3527 = vmatpush.bf16.msrb.mxu1 %v4528_v9  ;;  %v4598_v9 = vld [vmem:[%s5397_s26 + $0x370] sm:$0xff] }
 0x163   : > { %3541 = vmatpush.bf16.msrb.mxu2 %v4536_v10  ;;  %v4606_v10 = vld [vmem:[%s5397_s26 + $0x3b0] sm:$0xff] }
 0x164   : > { %3555 = vmatpush.bf16.msrb.mxu3 %v4544_v11  ;;  %3514 = vmatmul.bf16.vlgmr.msrb.gmra.mxu0 %v3909_v24  ;;  %v4614_v11 = vld [vmem:[%s5397_s26 + $0x3f0] sm:$0xff] }
 0x165   : > { %3562 = vmatpush.bf16.msra.mxu0 %v4559_v12  ;;  %3528 = vmatmul.bf16.vlgmr.msrb.gmra.mxu1 %v3913_v26  ;;  %v4589_v12 = vld [vmem:[%s5397_s26 + $0x328] sm:$0xff]  ;;  %v4586_v24 = vld [vmem:[%s5397_s26 + $0x310] sm:$0xff] }
 0x166   : > { %3576 = vmatpush.bf16.msra.mxu1 %v4567_v13  ;;  %3542 = vmatmul.bf16.vlgmr.msrb.gmra.mxu2 %v3917_v25  ;;  %v4597_v13 = vld [vmem:[%s5397_s26 + $0x368] sm:$0xff]  ;;  %v4594_v25 = vld [vmem:[%s5397_s26 + $0x350] sm:$0xff] }
 0x167   : > { %3590 = vmatpush.bf16.msra.mxu2 %v4575_v22  ;;  %3556 = vmatmul.bf16.vlgmr.msrb.gmra.mxu3 %v3921_v27  ;;  %v4603_v22 = vld [vmem:[%s5397_s26 + $0x398] sm:$0xff]  ;;  %v4602_v26 = vld [vmem:[%s5397_s26 + $0x390] sm:$0xff] }
 0x168   : > { %3604 = vmatpush.bf16.msra.mxu3 %v4583_v23  ;;  %v4611_v23 = vld [vmem:[%s5397_s26 + $0x3d8] sm:$0xff]  ;;  %v4610_v27 = vld [vmem:[%s5397_s26 + $0x3d0] sm:$0xff] }
 0x169   : > { %3563 = vmatpush.bf16.msra.mxu0 %v4558_v28  ;;  %v4585_v28 = vld [vmem:[%s5397_s26 + $0x308] sm:$0xff] }
 0x16a   : > { %3577 = vmatpush.bf16.msra.mxu1 %v4566_v29  ;;  %v4593_v29 = vld [vmem:[%s5397_s26 + $0x348] sm:$0xff] }
 0x16b   : > { %3591 = vmatpush.bf16.msra.mxu2 %v4574_v30  ;;  %v4601_v30 = vld [vmem:[%s5397_s26 + $0x388] sm:$0xff] }
 0x16c   : > { %3605 = vmatpush.bf16.msra.mxu3 %v4582_v31  ;;  %v4609_v31 = vld [vmem:[%s5397_s26 + $0x3c8] sm:$0xff] }
 0x16d   : > { %3564 = vmatpush.bf16.msra.mxu0 %v4557_v32  ;;  %v4584_v32 = vld [vmem:[%s5397_s26 + $0x300] sm:$0xff] }
 0x16e   : > { %3578 = vmatpush.bf16.msra.mxu1 %v4565_v33  ;;  %v4592_v33 = vld [vmem:[%s5397_s26 + $0x340] sm:$0xff] }
 0x16f   : > { %3592 = vmatpush.bf16.msra.mxu2 %v4573_v34  ;;  %v4600_v34 = vld [vmem:[%s5397_s26 + $0x380] sm:$0xff] }
 0x170   : > { %3606 = vmatpush.bf16.msra.mxu3 %v4581_v35  ;;  %v4608_v35 = vld [vmem:[%s5397_s26 + $0x3c0] sm:$0xff]  ;;  %s2317_s26 = scalar_lea.vmem [#allocation3], %s3887_s25 }
 0x171   : > { %3565 = vmatpush.bf16.msra.mxu0 %v4556_v36  ;;  %v3940_v36 = vld [vmem:[%s5440_s10 + $0x30] sm:$0xf] }
 0x172   : > { %3579 = vmatpush.bf16.msra.mxu1 %v4564_v37  ;;  %v4486_v37 = vld [vmem:[%s5440_s10 + $0x6c] sm:$0xf0] }
 0x173   : > { %3593 = vmatpush.bf16.msra.mxu2 %v4572_v38  ;;  %v4478_v38 = vld [vmem:[%s5440_s10 + $0x34] sm:$0xf] }
 0x174   : > { %3607 = vmatpush.bf16.msra.mxu3 %v4580_v39  ;;  %v3942_v39 = vld [vmem:[%s5440_s10 + $0x70] sm:$0xf0] }
 0x175   : > { %3566 = vmatpush.bf16.msra.mxu0 %v4555_v40  ;;  %v3948_v40 = vld [vmem:[%s5440_s10 + $0x38] sm:$0xf] }
 0x176   : > { %3580 = vmatpush.bf16.msra.mxu1 %v4563_v41  ;;  %v4487_v41 = vld [vmem:[%s5440_s10 + $0x74] sm:$0xf0] }
 0x177   : > { %3594 = vmatpush.bf16.msra.mxu2 %v4571_v42  ;;  %v4479_v42 = vld [vmem:[%s5440_s10 + $0x3c] sm:$0xf] }
 0x178   : > { %3608 = vmatpush.bf16.msra.mxu3 %v4579_v43  ;;  %v3950_v43 = vld [vmem:[%s5440_s10 + $0x78] sm:$0xf0] }
 0x179   : > { %3567 = vmatpush.bf16.msra.mxu0 %v4554_v44  ;;  %v3941_v44 = vor.u32 %v4486_v37, %v3940_v36 }
 0x17a   : > { %3581 = vmatpush.bf16.msra.mxu1 %v4562_v45  ;;  %v3945_v45 = vor.u32 %v4478_v38, %v3942_v39 }
 0x17b   : > { %3595 = vmatpush.bf16.msra.mxu2 %v4570_v46  ;;  %v3949_v46 = vor.u32 %v4487_v41, %v3948_v40 }
 0x17c   : > { %3609 = vmatpush.bf16.msra.mxu3 %v4578_v47  ;;  %v3953_v47 = vor.u32 %v4479_v42, %v3950_v43 }
 0x17d   : > { %3568 = vmatpush.bf16.msra.mxu0 %v4553_v48 }
 0x17e   : > { %3582 = vmatpush.bf16.msra.mxu1 %v4561_v49 }
 0x17f   : > { %3596 = vmatpush.bf16.msra.mxu2 %v4569_v50 }
 0x180   : > { %3610 = vmatpush.bf16.msra.mxu3 %v4577_v51 }
 0x181   : > { %3569 = vmatpush.bf16.msra.mxu0 %v4552_v52 }
 0x182   : > { %3583 = vmatpush.bf16.msra.mxu1 %v4560_v53 }
 0x183   : > { %3597 = vmatpush.bf16.msra.mxu2 %v4568_v54 }
 0x184   : > { %3611 = vmatpush.bf16.msra.mxu3 %v4576_v55  ;;  %3570 = vmatmul.bf16.vlgmr.msra.gmra.mxu0 %v3925_v4 }
 0x185   : > { %3618 = vmatpush.bf16.msrb.mxu0 %v4591_v56  ;;  %3584 = vmatmul.bf16.vlgmr.msra.gmra.mxu1 %v3929_v6  ;;  %v4694_v56 = vld [vmem:[%s2325_s7] ss:$0 sm:$0xff] }
 0x186   : > { %3632 = vmatpush.bf16.msrb.mxu1 %v4599_v57  ;;  %3598 = vmatmul.bf16.vlgmr.msra.gmra.mxu2 %v3933_v5 }
 0x187   : > { %3646 = vmatpush.bf16.msrb.mxu2 %v4607_v2  ;;  %3612 = vmatmul.bf16.vlgmr.msra.gmra.mxu3 %v3937_v7 }
 0x188   : > { %3660 = vmatpush.bf16.msrb.mxu3 %v4615_v3 }
 0x189   : > { %3619 = vmatpush.bf16.msrb.mxu0 %v4590_v8 }
 0x18a   : > { %3633 = vmatpush.bf16.msrb.mxu1 %v4598_v9 }
 0x18b   : > { %3647 = vmatpush.bf16.msrb.mxu2 %v4606_v10 }
 0x18c   : > { %3661 = vmatpush.bf16.msrb.mxu3 %v4614_v11 }
 0x18d   : > { %3620 = vmatpush.bf16.msrb.mxu0 %v4589_v12 }
 0x18e   : > { %3634 = vmatpush.bf16.msrb.mxu1 %v4597_v13 }
 0x18f   : > { %3648 = vmatpush.bf16.msrb.mxu2 %v4605_v14 }
 0x190   : > { %3662 = vmatpush.bf16.msrb.mxu3 %v4613_v15 }
 0x191   : > { %3621 = vmatpush.bf16.msrb.mxu0 %v4588_v16 }
 0x192   : > { %3635 = vmatpush.bf16.msrb.mxu1 %v4596_v17 }
 0x193   : > { %3649 = vmatpush.bf16.msrb.mxu2 %v4604_v18 }
 0x194   : > { %3663 = vmatpush.bf16.msrb.mxu3 %v4612_v19 }
 0x195   : > { %3622 = vmatpush.bf16.msrb.mxu0 %v4587_v20 }
 0x196   : > { %3636 = vmatpush.bf16.msrb.mxu1 %v4595_v21 }
 0x197   : > { %3650 = vmatpush.bf16.msrb.mxu2 %v4603_v22 }
 0x198   : > { %3664 = vmatpush.bf16.msrb.mxu3 %v4611_v23 }
 0x199   : > { %3623 = vmatpush.bf16.msrb.mxu0 %v4586_v24 }
 0x19a   : > { %3637 = vmatpush.bf16.msrb.mxu1 %v4594_v25 }
 0x19b   : > { %3651 = vmatpush.bf16.msrb.mxu2 %v4602_v26 }
 0x19c   : > { %3665 = vmatpush.bf16.msrb.mxu3 %v4610_v27 }
 0x19d   : > { %3624 = vmatpush.bf16.msrb.mxu0 %v4585_v28 }
 0x19e   : > { %3638 = vmatpush.bf16.msrb.mxu1 %v4593_v29 }
 0x19f   : > { %3652 = vmatpush.bf16.msrb.mxu2 %v4601_v30 }
 0x1a0   : > { %3666 = vmatpush.bf16.msrb.mxu3 %v4609_v31 }
 0x1a1   : > { %3625 = vmatpush.bf16.msrb.mxu0 %v4584_v32 }
 0x1a2   : > { %3639 = vmatpush.bf16.msrb.mxu1 %v4592_v33 }
 0x1a3   : > { %3653 = vmatpush.bf16.msrb.mxu2 %v4600_v34  ;;  %v4771_v34 = vmov 16.0  }
 0x1a4   : > { %3667 = vmatpush.bf16.msrb.mxu3 %v4608_v35  ;;  %3626 = vmatmul.bf16.vlgmr.msrb.gmra.mxu0 %v3941_v44  ;;  %4695 = vrcp.f32 %v4771_v34 }
 0x1a5   : > { %3640 = vmatmul.bf16.vlgmr.msrb.gmra.mxu1 %v3945_v45 }
 0x1a6   : > { %3654 = vmatmul.bf16.vlgmr.msrb.gmra.mxu2 %v3949_v46 }
 0x1a7   : > { %3668 = vmatmul.bf16.vlgmr.msrb.gmra.mxu3 %v3953_v47 }
 0x1aa   : > { %v4696_v41 = vpop.eup %4695 }
 0x1ab   : > { %v3682_v47 = vmul.f32 16.0, %v4696_v41  ;;  %vm3686_vm0 = vweird.f32 %v4696_v41 }
 0x1c1   : > { %v3459_v48 = vpop.f32.mrf.mxu0 }
 0x1c2   : > { %v3473_v49 = vpop.f32.mrf.mxu1  ;;  %v3460_v58 = vadd.f32 %v4694_v56, %v3459_v48 }
 0x1c4   : > { %v3474_v60 = vadd.f32 %v3473_v49, %v3460_v58 }
 0x1c9   : > { %v3487_v50 = vpop.f32.mrf.mxu2  ;;  %v3461_v52 = vpop.f32.mrf.mxu0 }
 0x1ca   : > { %v3501_v51 = vpop.f32.mrf.mxu3  ;;  %v3475_v53 = vpop.f32.mrf.mxu1  ;;  %v3462_v61 = vadd.f32 %v4694_v56, %v3461_v52  ;;  %v3488_v0 = vadd.f32 %v3487_v50, %v3474_v60  ;;  %v3683_v52 = vsub.f32 1.0, %v3682_v47 }
 0x1cc   : > { %v3476_v1 = vadd.f32 %v3475_v53, %v3462_v61  ;;  %v3502_v4 = vadd.f32 %v3501_v51, %v3488_v0 }
 0x1d1   : > { %v3489_v54 = vpop.f32.mrf.mxu2 }
 0x1d2   : > { %v3503_v55 = vpop.f32.mrf.mxu3  ;;  %v3490_v5 = vadd.f32 %v3489_v54, %v3476_v1 }
 0x1d4   : > { %v3504_v8 = vadd.f32 %v3503_v55, %v3490_v5  ;;  %v3684_v55 = vmul.f32 %v4696_v41, %v3683_v52 }
 0x1d6   : > { %v3685_v58 = vadd.f32 %v4696_v41, %v3684_v55 }
 0x1d8   : > { %v3687_v61 = vsel %vm3686_vm0, %v4696_v41, %v3685_v58 }
 0x1e1   : > { %v3515_v57 = vpop.f32.mrf.mxu0 }
 0x1e2   : > { %v3529_v59 = vpop.f32.mrf.mxu1  ;;  %v3516_v9 = vadd.f32 %v3515_v57, %v3502_v4 }
 0x1e4   : > { %v3530_v12 = vadd.f32 %v3529_v59, %v3516_v9 }
 0x1e9   : > { %v3543_v62 = vpop.f32.mrf.mxu2  ;;  %v3517_v2 = vpop.f32.mrf.mxu0 }
 0x1ea   : > { %v3557_v63 = vpop.f32.mrf.mxu3  ;;  %v3531_v3 = vpop.f32.mrf.mxu1  ;;  %v3518_v13 = vadd.f32 %v3517_v2, %v3504_v8  ;;  %v3544_v16 = vadd.f32 %v3543_v62, %v3530_v12 }
 0x1ec   : > { %v3532_v17 = vadd.f32 %v3531_v3, %v3518_v13  ;;  %v3558_v20 = vadd.f32 %v3557_v63, %v3544_v16 }
 0x1f1   : > { %v3545_v6 = vpop.f32.mrf.mxu2 }
 0x1f2   : > { %v3559_v7 = vpop.f32.mrf.mxu3  ;;  %v3546_v18 = vadd.f32 %v3545_v6, %v3532_v17 }
 0x1f4   : > { %v3560_v22 = vadd.f32 %v3559_v7, %v3546_v18 }
 0x201   : > { %v3571_v10 = vpop.f32.mrf.mxu0 }
 0x202   : > { %v3585_v11 = vpop.f32.mrf.mxu1  ;;  %v3572_v23 = vadd.f32 %v3571_v10, %v3558_v20 }
 0x204   : > { %v3586_v27 = vadd.f32 %v3585_v11, %v3572_v23 }
 0x209   : > { %v3599_v14 = vpop.f32.mrf.mxu2  ;;  %v3573_v19 = vpop.f32.mrf.mxu0 }
 0x20a   : > { %v3613_v15 = vpop.f32.mrf.mxu3  ;;  %v3587_v21 = vpop.f32.mrf.mxu1  ;;  %v3574_v24 = vadd.f32 %v3573_v19, %v3560_v22  ;;  %v3600_v29 = vadd.f32 %v3599_v14, %v3586_v27 }
 0x20c   : > { %v3588_v30 = vadd.f32 %v3587_v21, %v3574_v24  ;;  %v3614_v33 = vadd.f32 %v3613_v15, %v3600_v29 }
 0x211   : > { %v3601_v25 = vpop.f32.mrf.mxu2 }
 0x212   : > { %v3615_v26 = vpop.f32.mrf.mxu3  ;;  %v3602_v32 = vadd.f32 %v3601_v25, %v3588_v30 }
 0x214   : > { %v3616_v37 = vadd.f32 %v3615_v26, %v3602_v32 }
 0x221   : > { %v3627_v28 = vpop.f32.mrf.mxu0 }
 0x222   : > { %v3641_v31 = vpop.f32.mrf.mxu1  ;;  %v3628_v38 = vadd.f32 %v3627_v28, %v3614_v33 }
 0x224   : > { %v3642_v42 = vadd.f32 %v3641_v31, %v3628_v38 }
 0x229   : > { %v3655_v35 = vpop.f32.mrf.mxu2  ;;  %v3629_v39 = vpop.f32.mrf.mxu0 }
 0x22a   : > { %v3669_v36 = vpop.f32.mrf.mxu3  ;;  %v3630_v40 = vadd.f32 %v3629_v39, %v3616_v37  ;;  %v3643_v43 = vpop.f32.mrf.mxu1  ;;  %v3656_v44 = vadd.f32 %v3655_v35, %v3642_v42 }
 0x22c   : > { %v3644_v45 = vadd.f32 %v3643_v43, %v3630_v40  ;;  %v3670_v50 = vadd.f32 %v3669_v36, %v3656_v44 }
 0x231   : > { %v3657_v46 = vpop.f32.mrf.mxu2 }
 0x232   : > { %v3658_v48 = vadd.f32 %v3657_v46, %v3644_v45  ;;  %v3671_v49 = vpop.f32.mrf.mxu3 }
 0x234   : > { %v3672_v51 = vadd.f32 %v3671_v49, %v3658_v48 }
 0x236   : > { %v3674_v53 = vadd.f32 %v3672_v51, %v3670_v50 }
 0x238   : > { %v3675_v54 = vrot.slane %v3674_v53, 4 }
 0x23a   : > { %v3676_v56 = vadd.f32 %v3675_v54, %v3674_v53 }
 0x23c   : > { %v3677_v57 = vrot.slane %v3676_v56, 2 }
 0x23e   : > { %v3678_v59 = vadd.f32 %v3677_v57, %v3676_v56 }
 0x240   : > { %v3679_v60 = vrot.slane %v3678_v59, 1 }
 0x242   : > { %v3680_v62 = vadd.f32 %v3679_v60, %v3678_v59 }
 0x244   : > { %v3688_v63 = vmul.f32 %v3687_v61, %v3680_v62 }
 0x246   : > { %v3689_v0 = vsub.f32 %v3670_v50, %v3688_v63  ;;  %v3690_v1 = vsub.f32 %v3672_v51, %v3688_v63 }
 0x248   : > { %v3691_v2 = vmul.f32 %v3689_v0, %v3689_v0  ;;  %v3692_v3 = vmul.f32 %v3690_v1, %v3690_v1 }
 0x24a   : > { %v3693_v4 = vadd.f32 %v3692_v3, %v3691_v2 }
 0x24c   : > { %v3694_v5 = vrot.slane %v3693_v4, 4 }
 0x24e   : > { %v3695_v6 = vadd.f32 %v3694_v5, %v3693_v4 }
 0x250   : > { %v3696_v7 = vrot.slane %v3695_v6, 2 }
 0x252   : > { %v3697_v8 = vadd.f32 %v3696_v7, %v3695_v6 }
 0x254   : > { %v3698_v9 = vrot.slane %v3697_v8, 1 }
 0x256   : > { %v3699_v10 = vadd.f32 %v3698_v9, %v3697_v8 }
 0x258   : > { %v3700_v11 = vmul.f32 %v3699_v10, %v3687_v61 }
 0x25a   : > { %v3701_v12 = vadd.f32 1e-05, %v3700_v11 }
 0x25c   : > { %4697 = vrsqrt.f32 %v3701_v12  ;;  %vm3708_vm2 = vweird.f32 %v3701_v12 }
 0x262   : > { %v4698_v13 = vpop.eup %4697 }
 0x263   : > { %v3703_v14 = vmul.f32 %v4698_v13, %v3701_v12  ;;  %vm3709_vm1 = vweird.f32 %v4698_v13 }
 0x264   : > { %vm3710_vm3 = vmor %vm3708_vm2, %vm3709_vm1 }
 0x265   : > { %v3704_v15 = vmul.f32 %v4698_v13, %v3703_v14 }
 0x267   : > { %v3705_v16 = vmul.f32 0.5, %v3704_v15 }
 0x269   : > { %v3706_v17 = vsub.f32 1.5, %v3705_v16 }
 0x26b   : > { %v3707_v18 = vmul.f32 %v4698_v13, %v3706_v17 }
 0x26d   : > { %v3711_v19 = vsel %vm3710_vm3, %v4698_v13, %v3707_v18 }
 0x26e   : > { %v3712_v20 = vmul.f32 %v3711_v19, %v3689_v0  ;;  %v3713_v21 = vmul.f32 %v3711_v19, %v3690_v1 }
 0x270   : > { %vm3714_vm4 = vcmp.gt.f32.partialorder %v3712_v20, 0.0  ;;  %vm3715_vm5 = vcmp.gt.f32.partialorder %v3713_v21, 0.0  ;;  %v3716_v22 = vmul.f32 0.2, %v3712_v20  ;;  %v3717_v23 = vmul.f32 0.2, %v3713_v21 }
 0x271   : > { %3730 = sbr.rel (!%p4860_p9) target bundleno = 639 (0x27f), region = 88 }
 0x272   : > { %v3718_v24 = vsel %vm3714_vm4, %v3712_v20, %v3716_v22  ;;  %v3719_v25 = vsel %vm3715_vm5, %v3713_v21, %v3717_v23 }
 0x273   : > { %v4619_v26 = vpack.c.bf16 %v3719_v25, %v3718_v24 }
 0x275   : > { %4620 = vst [vmem:[%s2317_s26] sm:$0xff] %v4619_v26  }
 0x27c   : > { %v3751_v27 = vld [vmem:[%s2317_s26] sm:$0xf]  ;;  %v3753_v28 = vld [vmem:[%s2317_s26 + $0x4] sm:$0xf] }
 0x27d   : > { %3752 = vst [vmem:[%s3734_s6] sm:$0xf] %v3751_v27 }
 0x27e   : > { %3754 = vst [vmem:[%s3734_s6 + $0x8] sm:$0xf] %v3753_v28 }
 0x27f PF: > { %s13_s20 = sadd.s32 1, %s4769_s20   ;;  %s5620_s12 = smov %s4741_s13 }
 0x280   : > { %p10_p2 = scmp.ge.s32.totalorder %s13_s20, 6   ;;  %s5621_s13 = smov %s4868_s5 }
 0x281   : > { %s5622_s14 = smov %s4749_s15  ;;  %s5623_s15 = smov %s4865_s4 }
 0x282   : > { %s5624_s16 = smov %s4761_s18  ;;  %s5625_s17 = smov %s4765_s19 }
 0x283   : > { %s5626_s18 = smov %s5629_s21  ;;  %s5627_s19 = smov %s5633_s22 }
 0x284   :  { %12 = sbr.rel (!%p10_p2) target bundleno = 5 (0x5), region = 170 }

// kernel: discriminator_forward.8
= control target key start
LH: loop header
LB: loop body
LE: loop exit
PB: predicated region body
PF: predicated region fallthrough
CT: control target
= control target key end

     0   :  { %s8907_s12 = smov 0   ;;  %s8909_s13 = smov 0   ;;  %s10411_s0 = inlined_call_operand.vmem [shape: bf16[2,9,4096], index: 0, kind: input, shape index: {}]   ;;  %s10412_s1 = inlined_call_operand.vmem [shape: bf16[4096,512], index: 1, kind: input, shape index: {}]   ;;  %s10413_s2 = inlined_call_operand.vmem [shape: f32[1,512], index: 2, kind: input, shape index: {}]   ;;  %s10414_s3 = inlined_call_operand.vmem [shape: bf16[2,9,512], index: 3, kind: output, shape index: {}]  }
   0x1   :  { %s8911_s14 = smov 0   ;;  %s8913_s15 = smov 0  }
   0x2   :  { %s8915_s16 = smov 0   ;;  %s8917_s17 = smov 0  }
   0x3   :  { %s8919_s18 = smov 0   ;;  %s8921_s19 = smov 0  }
   0x4   :  { %s8923_s20 = smov 0  }
   0x5 LB: > { %s22_s21 = sadd.s32 1, %s8876_s18  ;;  %s25_s22 = sadd.s32 1, %s8880_s19  ;;  %s8884_s20 = sphi %s8923_s20, %s13_s20   ;;  %s8880_s19 = sphi %s8921_s19, %s10424_s19   ;;  %s8876_s18 = sphi %s8919_s18, %s10423_s18   ;;  %s8872_s17 = sphi %s8917_s17, %s10422_s17   ;;  %s8868_s16 = sphi %s8915_s16, %s10421_s16   ;;  %s8864_s15 = sphi %s8913_s15, %s10420_s15   ;;  %s8860_s14 = sphi %s8911_s14, %s10419_s14   ;;  %s8856_s13 = sphi %s8909_s13, %s10418_s13   ;;  %s8852_s12 = sphi %s8907_s12, %s10417_s12  }
   0x6   : > { %p23_p0 = scmp.ge.s32.totalorder %s22_s21, 2  ;;  %p65_p1 = scmp.ne.s32.totalorder %s8864_s15, %s8860_s14 }
   0x7   : > { %s7279_s23 = sadd.s32 4294967295, %s8884_s20   ;;  %p66_p2 = scmp.eq.s32.totalorder %s8884_s20, 0 }
   0x8   : > { %s10426_s21 = smov (%p23_p0, %s22_s21), 0  ;;  %s10428_s22 = smov (!%p23_p0, %s25_s22), %s8880_s19 }
   0x9   : > { %p27_p3 = scmp.ge.s32.totalorder %s10428_s22, 4  ;;  %s107_s24 = ssub.s32 %s8876_s18, %s10426_s21 }
   0xa   : > { %p8963_p4 = por %p66_p2, %p65_p1  ;;  %p122_p5 = scmp.ne.s32.totalorder %s8856_s13, %s8852_s12 }
   0xb   : > { %s10430_s22 = smov (%p27_p3, %s10428_s22), 0  ;;  %s58_s26 = sadd.s32 1, %s8864_s15 }
   0xc   : > { %p123_p6 = scmp.eq.s32.totalorder %s7279_s23, 7  ;;  %s55_s27 = ssub.s32 %s8880_s19, %s10430_s22 }
   0xd   : > { %s112_s28 = sadd.s32 1, %s8856_s13  ;;  %p56_p7 = scmp.eq.s32.totalorder %s55_s27, 0 }
   0xe   : > { %s109_s29 = sor.u32 %s107_s24, %s55_s27  ;;  %p8975_p9 = por %p123_p6, %p122_p5 }
   0xf   : > { %p110_p8 = scmp.eq.s32.totalorder %s109_s29, 0  ;;  %p7282_p10 = scmp.ge.s32.totalorder %s8884_s20, 8 }
  0x10   : > { %s8980_s4 = scalar_select %p56_p7, %s8864_s15, %s58_s26  }
  0x11   : > { %s8983_s5 = scalar_select %p110_p8, %s8856_s13, %s112_s28  }
  0x12   : > { %145 = sbr.rel (%p7282_p10) target bundleno = 539 (0x21b), region = 16 }
  0x17   : > { %156 = sbr.rel (!%p8963_p4) target bundleno = 539 (0x21b), region = 24  ;;  %s158_s6 = sand.u32 (%p8963_p4), 1, %s8864_s15  }
  0x18   : > { %s7284_s7 = sshll.u32 (%p8963_p4), %s8880_s19, 2  ;;  %s7283_s8 = sshll.u32 (%p8963_p4), %s158_s6, 11 }
  0x19   : > { %s8993_s11 = scalar_lea.vmem (%p8963_p4), %s10412_s1, %s7284_s7  ;;  %s8997_s23 = scalar_lea.vmem (%p8963_p4), [#allocation2], %s7283_s8 }
  0x1a   : > { %v179_v0 = vld [vmem:[%s8993_s11] sm:$0xf] (%p8963_p4)  ;;  %v181_v1 = vld [vmem:[%s8993_s11 + $0x10] sm:$0xf] (%p8963_p4) }
  0x1b   : > { %180 = vst [vmem:[%s8997_s23] sm:$0xf] (%p8963_p4), %v179_v0  ;;  %v183_v2 = vld [vmem:[%s8993_s11 + $0x20] sm:$0xf] (%p8963_p4)  ;;  %v185_v3 = vld [vmem:[%s8993_s11 + $0x30] sm:$0xf] (%p8963_p4) }
  0x1c   : > { %182 = vst [vmem:[%s8997_s23 + $0x4] sm:$0xf] %v181_v1  ;;  %v187_v4 = vld [vmem:[%s8993_s11 + $0x40] sm:$0xf]  ;;  %v189_v5 = vld [vmem:[%s8993_s11 + $0x50] sm:$0xf] }
  0x1d   : > { %184 = vst [vmem:[%s8997_s23 + $0x8] sm:$0xf] %v183_v2  ;;  %v191_v6 = vld [vmem:[%s8993_s11 + $0x60] sm:$0xf]  ;;  %v193_v7 = vld [vmem:[%s8993_s11 + $0x70] sm:$0xf] }
  0x1e   : > { %186 = vst [vmem:[%s8997_s23 + $0xc] sm:$0xf] %v185_v3  ;;  %v195_v8 = vld [vmem:[%s8993_s11 + $0x80] sm:$0xf]  ;;  %v197_v9 = vld [vmem:[%s8993_s11 + $0x90] sm:$0xf] }
  0x1f   : > { %188 = vst [vmem:[%s8997_s23 + $0x10] sm:$0xf] %v187_v4  ;;  %v199_v10 = vld [vmem:[%s8993_s11 + $0xa0] sm:$0xf]  ;;  %v201_v11 = vld [vmem:[%s8993_s11 + $0xb0] sm:$0xf] }
  0x20   : > { %190 = vst [vmem:[%s8997_s23 + $0x14] sm:$0xf] %v189_v5  ;;  %v203_v12 = vld [vmem:[%s8993_s11 + $0xc0] sm:$0xf]  ;;  %v205_v13 = vld [vmem:[%s8993_s11 + $0xd0] sm:$0xf] }
  0x21   : > { %192 = vst [vmem:[%s8997_s23 + $0x18] sm:$0xf] %v191_v6  ;;  %v207_v14 = vld [vmem:[%s8993_s11 + $0xe0] sm:$0xf]  ;;  %v209_v15 = vld [vmem:[%s8993_s11 + $0xf0] sm:$0xf] }
  0x22   : > { %194 = vst [vmem:[%s8997_s23 + $0x1c] sm:$0xf] %v193_v7  ;;  %v211_v16 = vld [vmem:[%s8993_s11 + $0x100] sm:$0xf]  ;;  %v213_v17 = vld [vmem:[%s8993_s11 + $0x110] sm:$0xf] }
  0x23   : > { %196 = vst [vmem:[%s8997_s23 + $0x20] sm:$0xf] %v195_v8  ;;  %v215_v18 = vld [vmem:[%s8993_s11 + $0x120] sm:$0xf]  ;;  %v217_v19 = vld [vmem:[%s8993_s11 + $0x130] sm:$0xf] }
  0x24   : > { %198 = vst [vmem:[%s8997_s23 + $0x24] sm:$0xf] %v197_v9  ;;  %v219_v20 = vld [vmem:[%s8993_s11 + $0x140] sm:$0xf]  ;;  %v221_v21 = vld [vmem:[%s8993_s11 + $0x150] sm:$0xf] }
  0x25   : > { %200 = vst [vmem:[%s8997_s23 + $0x28] sm:$0xf] %v199_v10  ;;  %v223_v22 = vld [vmem:[%s8993_s11 + $0x160] sm:$0xf]  ;;  %v225_v23 = vld [vmem:[%s8993_s11 + $0x170] sm:$0xf] }
  0x26   : > { %202 = vst [vmem:[%s8997_s23 + $0x2c] sm:$0xf] %v201_v11  ;;  %v227_v24 = vld [vmem:[%s8993_s11 + $0x180] sm:$0xf]  ;;  %v229_v25 = vld [vmem:[%s8993_s11 + $0x190] sm:$0xf] }
  0x27   : > { %204 = vst [vmem:[%s8997_s23 + $0x30] sm:$0xf] %v203_v12  ;;  %v231_v26 = vld [vmem:[%s8993_s11 + $0x1a0] sm:$0xf]  ;;  %v233_v27 = vld [vmem:[%s8993_s11 + $0x1b0] sm:$0xf] }
  0x28   : > { %206 = vst [vmem:[%s8997_s23 + $0x34] sm:$0xf] %v205_v13  ;;  %v235_v28 = vld [vmem:[%s8993_s11 + $0x1c0] sm:$0xf]  ;;  %v237_v29 = vld [vmem:[%s8993_s11 + $0x1d0] sm:$0xf] }
  0x29   : > { %208 = vst [vmem:[%s8997_s23 + $0x38] sm:$0xf] %v207_v14  ;;  %v239_v30 = vld [vmem:[%s8993_s11 + $0x1e0] sm:$0xf]  ;;  %v241_v31 = vld [vmem:[%s8993_s11 + $0x1f0] sm:$0xf] }
  0x2a   : > { %210 = vst [vmem:[%s8997_s23 + $0x3c] sm:$0xf] %v209_v15  ;;  %v243_v32 = vld [vmem:[%s8993_s11 + $0x200] sm:$0xf]  ;;  %v245_v33 = vld [vmem:[%s8993_s11 + $0x210] sm:$0xf] }
  0x2b   : > { %212 = vst [vmem:[%s8997_s23 + $0x40] sm:$0xf] %v211_v16  ;;  %v247_v34 = vld [vmem:[%s8993_s11 + $0x220] sm:$0xf]  ;;  %v249_v35 = vld [vmem:[%s8993_s11 + $0x230] sm:$0xf] }
  0x2c   : > { %214 = vst [vmem:[%s8997_s23 + $0x44] sm:$0xf] %v213_v17  ;;  %v251_v36 = vld [vmem:[%s8993_s11 + $0x240] sm:$0xf]  ;;  %v253_v37 = vld [vmem:[%s8993_s11 + $0x250] sm:$0xf] }
  0x2d   : > { %216 = vst [vmem:[%s8997_s23 + $0x48] sm:$0xf] %v215_v18  ;;  %v255_v38 = vld [vmem:[%s8993_s11 + $0x260] sm:$0xf]  ;;  %v257_v39 = vld [vmem:[%s8993_s11 + $0x270] sm:$0xf] }
  0x2e   : > { %218 = vst [vmem:[%s8997_s23 + $0x4c] sm:$0xf] %v217_v19  ;;  %v259_v40 = vld [vmem:[%s8993_s11 + $0x280] sm:$0xf]  ;;  %v261_v41 = vld [vmem:[%s8993_s11 + $0x290] sm:$0xf] }
  0x2f   : > { %220 = vst [vmem:[%s8997_s23 + $0x50] sm:$0xf] %v219_v20  ;;  %v263_v42 = vld [vmem:[%s8993_s11 + $0x2a0] sm:$0xf]  ;;  %v265_v43 = vld [vmem:[%s8993_s11 + $0x2b0] sm:$0xf] }
  0x30   : > { %222 = vst [vmem:[%s8997_s23 + $0x54] sm:$0xf] %v221_v21  ;;  %v267_v44 = vld [vmem:[%s8993_s11 + $0x2c0] sm:$0xf]  ;;  %v269_v45 = vld [vmem:[%s8993_s11 + $0x2d0] sm:$0xf] }
  0x31   : > { %224 = vst [vmem:[%s8997_s23 + $0x58] sm:$0xf] %v223_v22  ;;  %v271_v46 = vld [vmem:[%s8993_s11 + $0x2e0] sm:$0xf]  ;;  %v273_v47 = vld [vmem:[%s8993_s11 + $0x2f0] sm:$0xf] }
  0x32   : > { %226 = vst [vmem:[%s8997_s23 + $0x5c] sm:$0xf] %v225_v23  ;;  %v275_v48 = vld [vmem:[%s8993_s11 + $0x300] sm:$0xf]  ;;  %v277_v49 = vld [vmem:[%s8993_s11 + $0x310] sm:$0xf] }
  0x33   : > { %228 = vst [vmem:[%s8997_s23 + $0x60] sm:$0xf] %v227_v24  ;;  %v279_v50 = vld [vmem:[%s8993_s11 + $0x320] sm:$0xf]  ;;  %v281_v51 = vld [vmem:[%s8993_s11 + $0x330] sm:$0xf] }
  0x34   : > { %230 = vst [vmem:[%s8997_s23 + $0x64] sm:$0xf] %v229_v25  ;;  %v283_v52 = vld [vmem:[%s8993_s11 + $0x340] sm:$0xf]  ;;  %v285_v53 = vld [vmem:[%s8993_s11 + $0x350] sm:$0xf] }
  0x35   : > { %232 = vst [vmem:[%s8997_s23 + $0x68] sm:$0xf] %v231_v26  ;;  %v287_v54 = vld [vmem:[%s8993_s11 + $0x360] sm:$0xf]  ;;  %v289_v55 = vld [vmem:[%s8993_s11 + $0x370] sm:$0xf] }
  0x36   : > { %234 = vst [vmem:[%s8997_s23 + $0x6c] sm:$0xf] %v233_v27  ;;  %v291_v56 = vld [vmem:[%s8993_s11 + $0x380] sm:$0xf]  ;;  %v293_v57 = vld [vmem:[%s8993_s11 + $0x390] sm:$0xf] }
  0x37   : > { %236 = vst [vmem:[%s8997_s23 + $0x70] sm:$0xf] %v235_v28  ;;  %v295_v58 = vld [vmem:[%s8993_s11 + $0x3a0] sm:$0xf]  ;;  %v297_v59 = vld [vmem:[%s8993_s11 + $0x3b0] sm:$0xf] }
  0x38   : > { %238 = vst [vmem:[%s8997_s23 + $0x74] sm:$0xf] %v237_v29  ;;  %v299_v60 = vld [vmem:[%s8993_s11 + $0x3c0] sm:$0xf]  ;;  %v301_v61 = vld [vmem:[%s8993_s11 + $0x3d0] sm:$0xf] }
  0x39   : > { %240 = vst [vmem:[%s8997_s23 + $0x78] sm:$0xf] %v239_v30  ;;  %v303_v62 = vld [vmem:[%s8993_s11 + $0x3e0] sm:$0xf]  ;;  %v305_v63 = vld [vmem:[%s8993_s11 + $0x3f0] sm:$0xf] }
  0x3a   : > { %242 = vst [vmem:[%s8997_s23 + $0x7c] sm:$0xf] %v241_v31  ;;  %v307_v0 = vld [vmem:[%s8993_s11 + $0x400] sm:$0xf]  ;;  %v309_v1 = vld [vmem:[%s8993_s11 + $0x410] sm:$0xf] }
  0x3b   : > { %244 = vst [vmem:[%s8997_s23 + $0x80] sm:$0xf] %v243_v32  ;;  %v311_v2 = vld [vmem:[%s8993_s11 + $0x420] sm:$0xf]  ;;  %v313_v3 = vld [vmem:[%s8993_s11 + $0x430] sm:$0xf] }
  0x3c   : > { %246 = vst [vmem:[%s8997_s23 + $0x84] sm:$0xf] %v245_v33  ;;  %v315_v4 = vld [vmem:[%s8993_s11 + $0x440] sm:$0xf]  ;;  %v317_v5 = vld [vmem:[%s8993_s11 + $0x450] sm:$0xf] }
  0x3d   : > { %248 = vst [vmem:[%s8997_s23 + $0x88] sm:$0xf] %v247_v34  ;;  %v319_v6 = vld [vmem:[%s8993_s11 + $0x460] sm:$0xf]  ;;  %v321_v7 = vld [vmem:[%s8993_s11 + $0x470] sm:$0xf] }
  0x3e   : > { %250 = vst [vmem:[%s8997_s23 + $0x8c] sm:$0xf] %v249_v35  ;;  %v323_v8 = vld [vmem:[%s8993_s11 + $0x480] sm:$0xf]  ;;  %v325_v9 = vld [vmem:[%s8993_s11 + $0x490] sm:$0xf] }
  0x3f   : > { %252 = vst [vmem:[%s8997_s23 + $0x90] sm:$0xf] %v251_v36  ;;  %v327_v10 = vld [vmem:[%s8993_s11 + $0x4a0] sm:$0xf]  ;;  %v329_v11 = vld [vmem:[%s8993_s11 + $0x4b0] sm:$0xf] }
  0x40   : > { %254 = vst [vmem:[%s8997_s23 + $0x94] sm:$0xf] %v253_v37  ;;  %v331_v12 = vld [vmem:[%s8993_s11 + $0x4c0] sm:$0xf]  ;;  %v333_v13 = vld [vmem:[%s8993_s11 + $0x4d0] sm:$0xf] }
  0x41   : > { %256 = vst [vmem:[%s8997_s23 + $0x98] sm:$0xf] %v255_v38  ;;  %v335_v14 = vld [vmem:[%s8993_s11 + $0x4e0] sm:$0xf]  ;;  %v337_v15 = vld [vmem:[%s8993_s11 + $0x4f0] sm:$0xf] }
  0x42   : > { %258 = vst [vmem:[%s8997_s23 + $0x9c] sm:$0xf] %v257_v39  ;;  %v339_v16 = vld [vmem:[%s8993_s11 + $0x500] sm:$0xf]  ;;  %v341_v17 = vld [vmem:[%s8993_s11 + $0x510] sm:$0xf] }
  0x43   : > { %260 = vst [vmem:[%s8997_s23 + $0xa0] sm:$0xf] %v259_v40  ;;  %v343_v18 = vld [vmem:[%s8993_s11 + $0x520] sm:$0xf]  ;;  %v345_v19 = vld [vmem:[%s8993_s11 + $0x530] sm:$0xf] }
  0x44   : > { %262 = vst [vmem:[%s8997_s23 + $0xa4] sm:$0xf] %v261_v41  ;;  %v347_v20 = vld [vmem:[%s8993_s11 + $0x540] sm:$0xf]  ;;  %v349_v21 = vld [vmem:[%s8993_s11 + $0x550] sm:$0xf] }
  0x45   : > { %264 = vst [vmem:[%s8997_s23 + $0xa8] sm:$0xf] %v263_v42  ;;  %v351_v22 = vld [vmem:[%s8993_s11 + $0x560] sm:$0xf]  ;;  %v353_v23 = vld [vmem:[%s8993_s11 + $0x570] sm:$0xf] }
  0x46   : > { %266 = vst [vmem:[%s8997_s23 + $0xac] sm:$0xf] %v265_v43  ;;  %v355_v24 = vld [vmem:[%s8993_s11 + $0x580] sm:$0xf]  ;;  %v357_v25 = vld [vmem:[%s8993_s11 + $0x590] sm:$0xf] }
  0x47   : > { %268 = vst [vmem:[%s8997_s23 + $0xb0] sm:$0xf] %v267_v44  ;;  %v359_v26 = vld [vmem:[%s8993_s11 + $0x5a0] sm:$0xf]  ;;  %v361_v27 = vld [vmem:[%s8993_s11 + $0x5b0] sm:$0xf] }
  0x48   : > { %270 = vst [vmem:[%s8997_s23 + $0xb4] sm:$0xf] %v269_v45  ;;  %v363_v28 = vld [vmem:[%s8993_s11 + $0x5c0] sm:$0xf]  ;;  %v365_v29 = vld [vmem:[%s8993_s11 + $0x5d0] sm:$0xf] }
  0x49   : > { %272 = vst [vmem:[%s8997_s23 + $0xb8] sm:$0xf] %v271_v46  ;;  %v367_v30 = vld [vmem:[%s8993_s11 + $0x5e0] sm:$0xf]  ;;  %v369_v31 = vld [vmem:[%s8993_s11 + $0x5f0] sm:$0xf] }
  0x4a   : > { %274 = vst [vmem:[%s8997_s23 + $0xbc] sm:$0xf] %v273_v47  ;;  %v371_v32 = vld [vmem:[%s8993_s11 + $0x600] sm:$0xf]  ;;  %v373_v33 = vld [vmem:[%s8993_s11 + $0x610] sm:$0xf] }
  0x4b   : > { %276 = vst [vmem:[%s8997_s23 + $0xc0] sm:$0xf] %v275_v48  ;;  %v375_v34 = vld [vmem:[%s8993_s11 + $0x620] sm:$0xf]  ;;  %v377_v35 = vld [vmem:[%s8993_s11 + $0x630] sm:$0xf] }
  0x4c   : > { %278 = vst [vmem:[%s8997_s23 + $0xc4] sm:$0xf] %v277_v49  ;;  %v379_v36 = vld [vmem:[%s8993_s11 + $0x640] sm:$0xf]  ;;  %v381_v37 = vld [vmem:[%s8993_s11 + $0x650] sm:$0xf] }
  0x4d   : > { %280 = vst [vmem:[%s8997_s23 + $0xc8] sm:$0xf] %v279_v50  ;;  %v383_v38 = vld [vmem:[%s8993_s11 + $0x660] sm:$0xf]  ;;  %v385_v39 = vld [vmem:[%s8993_s11 + $0x670] sm:$0xf] }
  0x4e   : > { %282 = vst [vmem:[%s8997_s23 + $0xcc] sm:$0xf] %v281_v51  ;;  %v387_v40 = vld [vmem:[%s8993_s11 + $0x680] sm:$0xf]  ;;  %v389_v41 = vld [vmem:[%s8993_s11 + $0x690] sm:$0xf] }
  0x4f   : > { %284 = vst [vmem:[%s8997_s23 + $0xd0] sm:$0xf] %v283_v52  ;;  %v391_v42 = vld [vmem:[%s8993_s11 + $0x6a0] sm:$0xf]  ;;  %v393_v43 = vld [vmem:[%s8993_s11 + $0x6b0] sm:$0xf] }
  0x50   : > { %286 = vst [vmem:[%s8997_s23 + $0xd4] sm:$0xf] %v285_v53  ;;  %v395_v44 = vld [vmem:[%s8993_s11 + $0x6c0] sm:$0xf]  ;;  %v397_v45 = vld [vmem:[%s8993_s11 + $0x6d0] sm:$0xf] }
  0x51   : > { %288 = vst [vmem:[%s8997_s23 + $0xd8] sm:$0xf] %v287_v54  ;;  %v399_v46 = vld [vmem:[%s8993_s11 + $0x6e0] sm:$0xf]  ;;  %v401_v47 = vld [vmem:[%s8993_s11 + $0x6f0] sm:$0xf] }
  0x52   : > { %290 = vst [vmem:[%s8997_s23 + $0xdc] sm:$0xf] %v289_v55  ;;  %v403_v48 = vld [vmem:[%s8993_s11 + $0x700] sm:$0xf]  ;;  %v405_v49 = vld [vmem:[%s8993_s11 + $0x710] sm:$0xf] }
  0x53   : > { %292 = vst [vmem:[%s8997_s23 + $0xe0] sm:$0xf] %v291_v56  ;;  %v407_v50 = vld [vmem:[%s8993_s11 + $0x720] sm:$0xf]  ;;  %v409_v51 = vld [vmem:[%s8993_s11 + $0x730] sm:$0xf] }
  0x54   : > { %294 = vst [vmem:[%s8997_s23 + $0xe4] sm:$0xf] %v293_v57  ;;  %v411_v52 = vld [vmem:[%s8993_s11 + $0x740] sm:$0xf]  ;;  %v413_v53 = vld [vmem:[%s8993_s11 + $0x750] sm:$0xf] }
  0x55   : > { %296 = vst [vmem:[%s8997_s23 + $0xe8] sm:$0xf] %v295_v58  ;;  %v415_v54 = vld [vmem:[%s8993_s11 + $0x760] sm:$0xf]  ;;  %v417_v55 = vld [vmem:[%s8993_s11 + $0x770] sm:$0xf] }
  0x56   : > { %298 = vst [vmem:[%s8997_s23 + $0xec] sm:$0xf] %v297_v59  ;;  %v419_v56 = vld [vmem:[%s8993_s11 + $0x780] sm:$0xf]  ;;  %v421_v57 = vld [vmem:[%s8993_s11 + $0x790] sm:$0xf] }
  0x57   : > { %300 = vst [vmem:[%s8997_s23 + $0xf0] sm:$0xf] %v299_v60  ;;  %v423_v58 = vld [vmem:[%s8993_s11 + $0x7a0] sm:$0xf]  ;;  %v425_v59 = vld [vmem:[%s8993_s11 + $0x7b0] sm:$0xf] }
  0x58   : > { %302 = vst [vmem:[%s8997_s23 + $0xf4] sm:$0xf] %v301_v61  ;;  %v427_v60 = vld [vmem:[%s8993_s11 + $0x7c0] sm:$0xf]  ;;  %v429_v61 = vld [vmem:[%s8993_s11 + $0x7d0] sm:$0xf] }
  0x59   : > { %304 = vst [vmem:[%s8997_s23 + $0xf8] sm:$0xf] %v303_v62  ;;  %v431_v62 = vld [vmem:[%s8993_s11 + $0x7e0] sm:$0xf] }
  0x5a   : > { %306 = vst [vmem:[%s8997_s23 + $0xfc] sm:$0xf] %v305_v63  ;;  %v433_v63 = vld [vmem:[%s8993_s11 + $0x7f0] sm:$0xf] }
  0x5b   : > { %308 = vst [vmem:[%s8997_s23 + $0x100] sm:$0xf] %v307_v0  ;;  %v435_v0 = vld [vmem:[%s8993_s11 + $0x800] sm:$0xf] }
  0x5c   : > { %310 = vst [vmem:[%s8997_s23 + $0x104] sm:$0xf] %v309_v1  ;;  %v437_v1 = vld [vmem:[%s8993_s11 + $0x810] sm:$0xf] }
  0x5d   : > { %312 = vst [vmem:[%s8997_s23 + $0x108] sm:$0xf] %v311_v2  ;;  %v439_v2 = vld [vmem:[%s8993_s11 + $0x820] sm:$0xf] }
  0x5e   : > { %314 = vst [vmem:[%s8997_s23 + $0x10c] sm:$0xf] %v313_v3  ;;  %v441_v3 = vld [vmem:[%s8993_s11 + $0x830] sm:$0xf] }
  0x5f   : > { %316 = vst [vmem:[%s8997_s23 + $0x110] sm:$0xf] %v315_v4  ;;  %v443_v4 = vld [vmem:[%s8993_s11 + $0x840] sm:$0xf] }
  0x60   : > { %318 = vst [vmem:[%s8997_s23 + $0x114] sm:$0xf] %v317_v5  ;;  %v445_v5 = vld [vmem:[%s8993_s11 + $0x850] sm:$0xf] }
  0x61   : > { %320 = vst [vmem:[%s8997_s23 + $0x118] sm:$0xf] %v319_v6  ;;  %v447_v6 = vld [vmem:[%s8993_s11 + $0x860] sm:$0xf] }
  0x62   : > { %322 = vst [vmem:[%s8997_s23 + $0x11c] sm:$0xf] %v321_v7  ;;  %v449_v7 = vld [vmem:[%s8993_s11 + $0x870] sm:$0xf] }
  0x63   : > { %324 = vst [vmem:[%s8997_s23 + $0x120] sm:$0xf] %v323_v8  ;;  %v451_v8 = vld [vmem:[%s8993_s11 + $0x880] sm:$0xf] }
  0x64   : > { %326 = vst [vmem:[%s8997_s23 + $0x124] sm:$0xf] %v325_v9  ;;  %v453_v9 = vld [vmem:[%s8993_s11 + $0x890] sm:$0xf] }
  0x65   : > { %328 = vst [vmem:[%s8997_s23 + $0x128] sm:$0xf] %v327_v10  ;;  %v455_v10 = vld [vmem:[%s8993_s11 + $0x8a0] sm:$0xf] }
  0x66   : > { %330 = vst [vmem:[%s8997_s23 + $0x12c] sm:$0xf] %v329_v11  ;;  %v457_v11 = vld [vmem:[%s8993_s11 + $0x8b0] sm:$0xf] }
  0x67   : > { %332 = vst [vmem:[%s8997_s23 + $0x130] sm:$0xf] %v331_v12  ;;  %v459_v12 = vld [vmem:[%s8993_s11 + $0x8c0] sm:$0xf] }
  0x68   : > { %334 = vst [vmem:[%s8997_s23 + $0x134] sm:$0xf] %v333_v13  ;;  %v461_v13 = vld [vmem:[%s8993_s11 + $0x8d0] sm:$0xf] }
  0x69   : > { %336 = vst [vmem:[%s8997_s23 + $0x138] sm:$0xf] %v335_v14  ;;  %v463_v14 = vld [vmem:[%s8993_s11 + $0x8e0] sm:$0xf] }
  0x6a   : > { %338 = vst [vmem:[%s8997_s23 + $0x13c] sm:$0xf] %v337_v15  ;;  %v465_v15 = vld [vmem:[%s8993_s11 + $0x8f0] sm:$0xf] }
  0x6b   : > { %340 = vst [vmem:[%s8997_s23 + $0x140] sm:$0xf] %v339_v16  ;;  %v467_v16 = vld [vmem:[%s8993_s11 + $0x900] sm:$0xf] }
  0x6c   : > { %342 = vst [vmem:[%s8997_s23 + $0x144] sm:$0xf] %v341_v17  ;;  %v469_v17 = vld [vmem:[%s8993_s11 + $0x910] sm:$0xf] }
  0x6d   : > { %344 = vst [vmem:[%s8997_s23 + $0x148] sm:$0xf] %v343_v18  ;;  %v471_v18 = vld [vmem:[%s8993_s11 + $0x920] sm:$0xf] }
  0x6e   : > { %346 = vst [vmem:[%s8997_s23 + $0x14c] sm:$0xf] %v345_v19  ;;  %v473_v19 = vld [vmem:[%s8993_s11 + $0x930] sm:$0xf] }
  0x6f   : > { %348 = vst [vmem:[%s8997_s23 + $0x150] sm:$0xf] %v347_v20  ;;  %v475_v20 = vld [vmem:[%s8993_s11 + $0x940] sm:$0xf] }
  0x70   : > { %350 = vst [vmem:[%s8997_s23 + $0x154] sm:$0xf] %v349_v21  ;;  %v477_v21 = vld [vmem:[%s8993_s11 + $0x950] sm:$0xf] }
  0x71   : > { %352 = vst [vmem:[%s8997_s23 + $0x158] sm:$0xf] %v351_v22  ;;  %v479_v22 = vld [vmem:[%s8993_s11 + $0x960] sm:$0xf] }
  0x72   : > { %354 = vst [vmem:[%s8997_s23 + $0x15c] sm:$0xf] %v353_v23  ;;  %v481_v23 = vld [vmem:[%s8993_s11 + $0x970] sm:$0xf] }
  0x73   : > { %356 = vst [vmem:[%s8997_s23 + $0x160] sm:$0xf] %v355_v24  ;;  %v483_v24 = vld [vmem:[%s8993_s11 + $0x980] sm:$0xf] }
  0x74   : > { %358 = vst [vmem:[%s8997_s23 + $0x164] sm:$0xf] %v357_v25  ;;  %v485_v25 = vld [vmem:[%s8993_s11 + $0x990] sm:$0xf] }
  0x75   : > { %360 = vst [vmem:[%s8997_s23 + $0x168] sm:$0xf] %v359_v26  ;;  %v487_v26 = vld [vmem:[%s8993_s11 + $0x9a0] sm:$0xf] }
  0x76   : > { %362 = vst [vmem:[%s8997_s23 + $0x16c] sm:$0xf] %v361_v27  ;;  %v489_v27 = vld [vmem:[%s8993_s11 + $0x9b0] sm:$0xf] }
  0x77   : > { %364 = vst [vmem:[%s8997_s23 + $0x170] sm:$0xf] %v363_v28  ;;  %v491_v28 = vld [vmem:[%s8993_s11 + $0x9c0] sm:$0xf] }
  0x78   : > { %366 = vst [vmem:[%s8997_s23 + $0x174] sm:$0xf] %v365_v29  ;;  %v493_v29 = vld [vmem:[%s8993_s11 + $0x9d0] sm:$0xf] }
  0x79   : > { %368 = vst [vmem:[%s8997_s23 + $0x178] sm:$0xf] %v367_v30  ;;  %v495_v30 = vld [vmem:[%s8993_s11 + $0x9e0] sm:$0xf] }
  0x7a   : > { %370 = vst [vmem:[%s8997_s23 + $0x17c] sm:$0xf] %v369_v31  ;;  %v497_v31 = vld [vmem:[%s8993_s11 + $0x9f0] sm:$0xf] }
  0x7b   : > { %372 = vst [vmem:[%s8997_s23 + $0x180] sm:$0xf] %v371_v32  ;;  %v499_v32 = vld [vmem:[%s8993_s11 + $0xa00] sm:$0xf] }
  0x7c   : > { %374 = vst [vmem:[%s8997_s23 + $0x184] sm:$0xf] %v373_v33  ;;  %v501_v33 = vld [vmem:[%s8993_s11 + $0xa10] sm:$0xf] }
  0x7d   : > { %376 = vst [vmem:[%s8997_s23 + $0x188] sm:$0xf] %v375_v34  ;;  %v503_v34 = vld [vmem:[%s8993_s11 + $0xa20] sm:$0xf] }
  0x7e   : > { %378 = vst [vmem:[%s8997_s23 + $0x18c] sm:$0xf] %v377_v35  ;;  %v505_v35 = vld [vmem:[%s8993_s11 + $0xa30] sm:$0xf] }
  0x7f   : > { %380 = vst [vmem:[%s8997_s23 + $0x190] sm:$0xf] %v379_v36  ;;  %v507_v36 = vld [vmem:[%s8993_s11 + $0xa40] sm:$0xf] }
  0x80   : > { %382 = vst [vmem:[%s8997_s23 + $0x194] sm:$0xf] %v381_v37  ;;  %v509_v37 = vld [vmem:[%s8993_s11 + $0xa50] sm:$0xf] }
  0x81   : > { %384 = vst [vmem:[%s8997_s23 + $0x198] sm:$0xf] %v383_v38  ;;  %v511_v38 = vld [vmem:[%s8993_s11 + $0xa60] sm:$0xf] }
  0x82   : > { %386 = vst [vmem:[%s8997_s23 + $0x19c] sm:$0xf] %v385_v39  ;;  %v513_v39 = vld [vmem:[%s8993_s11 + $0xa70] sm:$0xf] }
  0x83   : > { %388 = vst [vmem:[%s8997_s23 + $0x1a0] sm:$0xf] %v387_v40  ;;  %v515_v40 = vld [vmem:[%s8993_s11 + $0xa80] sm:$0xf] }
  0x84   : > { %390 = vst [vmem:[%s8997_s23 + $0x1a4] sm:$0xf] %v389_v41  ;;  %v517_v41 = vld [vmem:[%s8993_s11 + $0xa90] sm:$0xf] }
  0x85   : > { %392 = vst [vmem:[%s8997_s23 + $0x1a8] sm:$0xf] %v391_v42  ;;  %v519_v42 = vld [vmem:[%s8993_s11 + $0xaa0] sm:$0xf] }
  0x86   : > { %394 = vst [vmem:[%s8997_s23 + $0x1ac] sm:$0xf] %v393_v43  ;;  %v521_v43 = vld [vmem:[%s8993_s11 + $0xab0] sm:$0xf] }
  0x87   : > { %396 = vst [vmem:[%s8997_s23 + $0x1b0] sm:$0xf] %v395_v44  ;;  %v523_v44 = vld [vmem:[%s8993_s11 + $0xac0] sm:$0xf] }
  0x88   : > { %398 = vst [vmem:[%s8997_s23 + $0x1b4] sm:$0xf] %v397_v45  ;;  %v525_v45 = vld [vmem:[%s8993_s11 + $0xad0] sm:$0xf] }
  0x89   : > { %400 = vst [vmem:[%s8997_s23 + $0x1b8] sm:$0xf] %v399_v46  ;;  %v527_v46 = vld [vmem:[%s8993_s11 + $0xae0] sm:$0xf] }
  0x8a   : > { %402 = vst [vmem:[%s8997_s23 + $0x1bc] sm:$0xf] %v401_v47  ;;  %v529_v47 = vld [vmem:[%s8993_s11 + $0xaf0] sm:$0xf] }
  0x8b   : > { %404 = vst [vmem:[%s8997_s23 + $0x1c0] sm:$0xf] %v403_v48  ;;  %v531_v48 = vld [vmem:[%s8993_s11 + $0xb00] sm:$0xf] }
  0x8c   : > { %406 = vst [vmem:[%s8997_s23 + $0x1c4] sm:$0xf] %v405_v49  ;;  %v533_v49 = vld [vmem:[%s8993_s11 + $0xb10] sm:$0xf] }
  0x8d   : > { %408 = vst [vmem:[%s8997_s23 + $0x1c8] sm:$0xf] %v407_v50  ;;  %v535_v50 = vld [vmem:[%s8993_s11 + $0xb20] sm:$0xf] }
  0x8e   : > { %410 = vst [vmem:[%s8997_s23 + $0x1cc] sm:$0xf] %v409_v51  ;;  %v537_v51 = vld [vmem:[%s8993_s11 + $0xb30] sm:$0xf] }
  0x8f   : > { %412 = vst [vmem:[%s8997_s23 + $0x1d0] sm:$0xf] %v411_v52  ;;  %v539_v52 = vld [vmem:[%s8993_s11 + $0xb40] sm:$0xf] }
  0x90   : > { %414 = vst [vmem:[%s8997_s23 + $0x1d4] sm:$0xf] %v413_v53  ;;  %v541_v53 = vld [vmem:[%s8993_s11 + $0xb50] sm:$0xf] }
  0x91   : > { %416 = vst [vmem:[%s8997_s23 + $0x1d8] sm:$0xf] %v415_v54  ;;  %v543_v54 = vld [vmem:[%s8993_s11 + $0xb60] sm:$0xf] }
  0x92   : > { %418 = vst [vmem:[%s8997_s23 + $0x1dc] sm:$0xf] %v417_v55  ;;  %v545_v55 = vld [vmem:[%s8993_s11 + $0xb70] sm:$0xf] }
  0x93   : > { %420 = vst [vmem:[%s8997_s23 + $0x1e0] sm:$0xf] %v419_v56  ;;  %v547_v56 = vld [vmem:[%s8993_s11 + $0xb80] sm:$0xf] }
  0x94   : > { %422 = vst [vmem:[%s8997_s23 + $0x1e4] sm:$0xf] %v421_v57  ;;  %v549_v57 = vld [vmem:[%s8993_s11 + $0xb90] sm:$0xf] }
  0x95   : > { %424 = vst [vmem:[%s8997_s23 + $0x1e8] sm:$0xf] %v423_v58  ;;  %v551_v58 = vld [vmem:[%s8993_s11 + $0xba0] sm:$0xf] }
  0x96   : > { %426 = vst [vmem:[%s8997_s23 + $0x1ec] sm:$0xf] %v425_v59  ;;  %v553_v59 = vld [vmem:[%s8993_s11 + $0xbb0] sm:$0xf] }
  0x97   : > { %428 = vst [vmem:[%s8997_s23 + $0x1f0] sm:$0xf] %v427_v60  ;;  %v555_v60 = vld [vmem:[%s8993_s11 + $0xbc0] sm:$0xf] }
  0x98   : > { %430 = vst [vmem:[%s8997_s23 + $0x1f4] sm:$0xf] %v429_v61  ;;  %v557_v61 = vld [vmem:[%s8993_s11 + $0xbd0] sm:$0xf] }
  0x99   : > { %432 = vst [vmem:[%s8997_s23 + $0x1f8] sm:$0xf] %v431_v62  ;;  %v559_v62 = vld [vmem:[%s8993_s11 + $0xbe0] sm:$0xf] }
  0x9a   : > { %434 = vst [vmem:[%s8997_s23 + $0x1fc] sm:$0xf] %v433_v63  ;;  %v561_v63 = vld [vmem:[%s8993_s11 + $0xbf0] sm:$0xf] }
  0x9b   : > { %436 = vst [vmem:[%s8997_s23 + $0x200] sm:$0xf] %v435_v0  ;;  %v563_v0 = vld [vmem:[%s8993_s11 + $0xc00] sm:$0xf] }
  0x9c   : > { %438 = vst [vmem:[%s8997_s23 + $0x204] sm:$0xf] %v437_v1  ;;  %v565_v1 = vld [vmem:[%s8993_s11 + $0xc10] sm:$0xf] }
  0x9d   : > { %440 = vst [vmem:[%s8997_s23 + $0x208] sm:$0xf] %v439_v2  ;;  %v567_v2 = vld [vmem:[%s8993_s11 + $0xc20] sm:$0xf] }
  0x9e   : > { %442 = vst [vmem:[%s8997_s23 + $0x20c] sm:$0xf] %v441_v3  ;;  %v569_v3 = vld [vmem:[%s8993_s11 + $0xc30] sm:$0xf] }
  0x9f   : > { %444 = vst [vmem:[%s8997_s23 + $0x210] sm:$0xf] %v443_v4  ;;  %v571_v4 = vld [vmem:[%s8993_s11 + $0xc40] sm:$0xf] }
  0xa0   : > { %446 = vst [vmem:[%s8997_s23 + $0x214] sm:$0xf] %v445_v5  ;;  %v573_v5 = vld [vmem:[%s8993_s11 + $0xc50] sm:$0xf] }
  0xa1   : > { %448 = vst [vmem:[%s8997_s23 + $0x218] sm:$0xf] %v447_v6  ;;  %v575_v6 = vld [vmem:[%s8993_s11 + $0xc60] sm:$0xf] }
  0xa2   : > { %450 = vst [vmem:[%s8997_s23 + $0x21c] sm:$0xf] %v449_v7  ;;  %v577_v7 = vld [vmem:[%s8993_s11 + $0xc70] sm:$0xf] }
  0xa3   : > { %452 = vst [vmem:[%s8997_s23 + $0x220] sm:$0xf] %v451_v8  ;;  %v579_v8 = vld [vmem:[%s8993_s11 + $0xc80] sm:$0xf] }
  0xa4   : > { %454 = vst [vmem:[%s8997_s23 + $0x224] sm:$0xf] %v453_v9  ;;  %v581_v9 = vld [vmem:[%s8993_s11 + $0xc90] sm:$0xf] }
  0xa5   : > { %456 = vst [vmem:[%s8997_s23 + $0x228] sm:$0xf] %v455_v10  ;;  %v583_v10 = vld [vmem:[%s8993_s11 + $0xca0] sm:$0xf] }
  0xa6   : > { %458 = vst [vmem:[%s8997_s23 + $0x22c] sm:$0xf] %v457_v11  ;;  %v585_v11 = vld [vmem:[%s8993_s11 + $0xcb0] sm:$0xf] }
  0xa7   : > { %460 = vst [vmem:[%s8997_s23 + $0x230] sm:$0xf] %v459_v12  ;;  %v587_v12 = vld [vmem:[%s8993_s11 + $0xcc0] sm:$0xf] }
  0xa8   : > { %462 = vst [vmem:[%s8997_s23 + $0x234] sm:$0xf] %v461_v13  ;;  %v589_v13 = vld [vmem:[%s8993_s11 + $0xcd0] sm:$0xf] }
  0xa9   : > { %464 = vst [vmem:[%s8997_s23 + $0x238] sm:$0xf] %v463_v14  ;;  %v591_v14 = vld [vmem:[%s8993_s11 + $0xce0] sm:$0xf] }
  0xaa   : > { %466 = vst [vmem:[%s8997_s23 + $0x23c] sm:$0xf] %v465_v15  ;;  %v593_v15 = vld [vmem:[%s8993_s11 + $0xcf0] sm:$0xf] }
  0xab   : > { %468 = vst [vmem:[%s8997_s23 + $0x240] sm:$0xf] %v467_v16  ;;  %v595_v16 = vld [vmem:[%s8993_s11 + $0xd00] sm:$0xf] }
  0xac   : > { %470 = vst [vmem:[%s8997_s23 + $0x244] sm:$0xf] %v469_v17  ;;  %v597_v17 = vld [vmem:[%s8993_s11 + $0xd10] sm:$0xf] }
  0xad   : > { %472 = vst [vmem:[%s8997_s23 + $0x248] sm:$0xf] %v471_v18  ;;  %v599_v18 = vld [vmem:[%s8993_s11 + $0xd20] sm:$0xf] }
  0xae   : > { %474 = vst [vmem:[%s8997_s23 + $0x24c] sm:$0xf] %v473_v19  ;;  %v601_v19 = vld [vmem:[%s8993_s11 + $0xd30] sm:$0xf] }
  0xaf   : > { %476 = vst [vmem:[%s8997_s23 + $0x250] sm:$0xf] %v475_v20  ;;  %v603_v20 = vld [vmem:[%s8993_s11 + $0xd40] sm:$0xf] }
  0xb0   : > { %478 = vst [vmem:[%s8997_s23 + $0x254] sm:$0xf] %v477_v21  ;;  %v605_v21 = vld [vmem:[%s8993_s11 + $0xd50] sm:$0xf] }
  0xb1   : > { %480 = vst [vmem:[%s8997_s23 + $0x258] sm:$0xf] %v479_v22  ;;  %v607_v22 = vld [vmem:[%s8993_s11 + $0xd60] sm:$0xf] }
  0xb2   : > { %482 = vst [vmem:[%s8997_s23 + $0x25c] sm:$0xf] %v481_v23  ;;  %v609_v23 = vld [vmem:[%s8993_s11 + $0xd70] sm:$0xf] }
  0xb3   : > { %484 = vst [vmem:[%s8997_s23 + $0x260] sm:$0xf] %v483_v24  ;;  %v611_v24 = vld [vmem:[%s8993_s11 + $0xd80] sm:$0xf] }
  0xb4   : > { %486 = vst [vmem:[%s8997_s23 + $0x264] sm:$0xf] %v485_v25  ;;  %v613_v25 = vld [vmem:[%s8993_s11 + $0xd90] sm:$0xf] }
  0xb5   : > { %488 = vst [vmem:[%s8997_s23 + $0x268] sm:$0xf] %v487_v26  ;;  %v615_v26 = vld [vmem:[%s8993_s11 + $0xda0] sm:$0xf] }
  0xb6   : > { %490 = vst [vmem:[%s8997_s23 + $0x26c] sm:$0xf] %v489_v27  ;;  %v617_v27 = vld [vmem:[%s8993_s11 + $0xdb0] sm:$0xf] }
  0xb7   : > { %492 = vst [vmem:[%s8997_s23 + $0x270] sm:$0xf] %v491_v28  ;;  %v619_v28 = vld [vmem:[%s8993_s11 + $0xdc0] sm:$0xf] }
  0xb8   : > { %494 = vst [vmem:[%s8997_s23 + $0x274] sm:$0xf] %v493_v29  ;;  %v621_v29 = vld [vmem:[%s8993_s11 + $0xdd0] sm:$0xf] }
  0xb9   : > { %496 = vst [vmem:[%s8997_s23 + $0x278] sm:$0xf] %v495_v30  ;;  %v623_v30 = vld [vmem:[%s8993_s11 + $0xde0] sm:$0xf] }
  0xba   : > { %498 = vst [vmem:[%s8997_s23 + $0x27c] sm:$0xf] %v497_v31  ;;  %v625_v31 = vld [vmem:[%s8993_s11 + $0xdf0] sm:$0xf] }
  0xbb   : > { %500 = vst [vmem:[%s8997_s23 + $0x280] sm:$0xf] %v499_v32  ;;  %v627_v32 = vld [vmem:[%s8993_s11 + $0xe00] sm:$0xf] }
  0xbc   : > { %502 = vst [vmem:[%s8997_s23 + $0x284] sm:$0xf] %v501_v33  ;;  %v629_v33 = vld [vmem:[%s8993_s11 + $0xe10] sm:$0xf] }
  0xbd   : > { %504 = vst [vmem:[%s8997_s23 + $0x288] sm:$0xf] %v503_v34  ;;  %v631_v34 = vld [vmem:[%s8993_s11 + $0xe20] sm:$0xf] }
  0xbe   : > { %506 = vst [vmem:[%s8997_s23 + $0x28c] sm:$0xf] %v505_v35  ;;  %v633_v35 = vld [vmem:[%s8993_s11 + $0xe30] sm:$0xf] }
  0xbf   : > { %508 = vst [vmem:[%s8997_s23 + $0x290] sm:$0xf] %v507_v36  ;;  %v635_v36 = vld [vmem:[%s8993_s11 + $0xe40] sm:$0xf] }
  0xc0   : > { %510 = vst [vmem:[%s8997_s23 + $0x294] sm:$0xf] %v509_v37  ;;  %v637_v37 = vld [vmem:[%s8993_s11 + $0xe50] sm:$0xf] }
  0xc1   : > { %512 = vst [vmem:[%s8997_s23 + $0x298] sm:$0xf] %v511_v38  ;;  %v639_v38 = vld [vmem:[%s8993_s11 + $0xe60] sm:$0xf] }
  0xc2   : > { %514 = vst [vmem:[%s8997_s23 + $0x29c] sm:$0xf] %v513_v39  ;;  %v641_v39 = vld [vmem:[%s8993_s11 + $0xe70] sm:$0xf] }
  0xc3   : > { %516 = vst [vmem:[%s8997_s23 + $0x2a0] sm:$0xf] %v515_v40  ;;  %v643_v40 = vld [vmem:[%s8993_s11 + $0xe80] sm:$0xf] }
  0xc4   : > { %518 = vst [vmem:[%s8997_s23 + $0x2a4] sm:$0xf] %v517_v41  ;;  %v645_v41 = vld [vmem:[%s8993_s11 + $0xe90] sm:$0xf] }
  0xc5   : > { %520 = vst [vmem:[%s8997_s23 + $0x2a8] sm:$0xf] %v519_v42  ;;  %v647_v42 = vld [vmem:[%s8993_s11 + $0xea0] sm:$0xf] }
  0xc6   : > { %522 = vst [vmem:[%s8997_s23 + $0x2ac] sm:$0xf] %v521_v43  ;;  %v649_v43 = vld [vmem:[%s8993_s11 + $0xeb0] sm:$0xf] }
  0xc7   : > { %524 = vst [vmem:[%s8997_s23 + $0x2b0] sm:$0xf] %v523_v44  ;;  %v651_v44 = vld [vmem:[%s8993_s11 + $0xec0] sm:$0xf] }
  0xc8   : > { %526 = vst [vmem:[%s8997_s23 + $0x2b4] sm:$0xf] %v525_v45  ;;  %v653_v45 = vld [vmem:[%s8993_s11 + $0xed0] sm:$0xf] }
  0xc9   : > { %528 = vst [vmem:[%s8997_s23 + $0x2b8] sm:$0xf] %v527_v46  ;;  %v655_v46 = vld [vmem:[%s8993_s11 + $0xee0] sm:$0xf] }
  0xca   : > { %530 = vst [vmem:[%s8997_s23 + $0x2bc] sm:$0xf] %v529_v47  ;;  %v657_v47 = vld [vmem:[%s8993_s11 + $0xef0] sm:$0xf] }
  0xcb   : > { %532 = vst [vmem:[%s8997_s23 + $0x2c0] sm:$0xf] %v531_v48  ;;  %v659_v48 = vld [vmem:[%s8993_s11 + $0xf00] sm:$0xf] }
  0xcc   : > { %534 = vst [vmem:[%s8997_s23 + $0x2c4] sm:$0xf] %v533_v49  ;;  %v661_v49 = vld [vmem:[%s8993_s11 + $0xf10] sm:$0xf] }
  0xcd   : > { %536 = vst [vmem:[%s8997_s23 + $0x2c8] sm:$0xf] %v535_v50  ;;  %v663_v50 = vld [vmem:[%s8993_s11 + $0xf20] sm:$0xf] }
  0xce   : > { %538 = vst [vmem:[%s8997_s23 + $0x2cc] sm:$0xf] %v537_v51  ;;  %v665_v51 = vld [vmem:[%s8993_s11 + $0xf30] sm:$0xf] }
  0xcf   : > { %540 = vst [vmem:[%s8997_s23 + $0x2d0] sm:$0xf] %v539_v52  ;;  %v667_v52 = vld [vmem:[%s8993_s11 + $0xf40] sm:$0xf] }
  0xd0   : > { %542 = vst [vmem:[%s8997_s23 + $0x2d4] sm:$0xf] %v541_v53  ;;  %v669_v53 = vld [vmem:[%s8993_s11 + $0xf50] sm:$0xf] }
  0xd1   : > { %544 = vst [vmem:[%s8997_s23 + $0x2d8] sm:$0xf] %v543_v54  ;;  %v671_v54 = vld [vmem:[%s8993_s11 + $0xf60] sm:$0xf] }
  0xd2   : > { %546 = vst [vmem:[%s8997_s23 + $0x2dc] sm:$0xf] %v545_v55  ;;  %v673_v55 = vld [vmem:[%s8993_s11 + $0xf70] sm:$0xf] }
  0xd3   : > { %548 = vst [vmem:[%s8997_s23 + $0x2e0] sm:$0xf] %v547_v56  ;;  %v675_v56 = vld [vmem:[%s8993_s11 + $0xf80] sm:$0xf] }
  0xd4   : > { %550 = vst [vmem:[%s8997_s23 + $0x2e4] sm:$0xf] %v549_v57  ;;  %v677_v57 = vld [vmem:[%s8993_s11 + $0xf90] sm:$0xf] }
  0xd5   : > { %552 = vst [vmem:[%s8997_s23 + $0x2e8] sm:$0xf] %v551_v58  ;;  %v679_v58 = vld [vmem:[%s8993_s11 + $0xfa0] sm:$0xf] }
  0xd6   : > { %554 = vst [vmem:[%s8997_s23 + $0x2ec] sm:$0xf] %v553_v59  ;;  %v681_v59 = vld [vmem:[%s8993_s11 + $0xfb0] sm:$0xf] }
  0xd7   : > { %556 = vst [vmem:[%s8997_s23 + $0x2f0] sm:$0xf] %v555_v60  ;;  %v683_v60 = vld [vmem:[%s8993_s11 + $0xfc0] sm:$0xf] }
  0xd8   : > { %558 = vst [vmem:[%s8997_s23 + $0x2f4] sm:$0xf] %v557_v61  ;;  %v685_v61 = vld [vmem:[%s8993_s11 + $0xfd0] sm:$0xf] }
  0xd9   : > { %560 = vst [vmem:[%s8997_s23 + $0x2f8] sm:$0xf] %v559_v62  ;;  %v687_v62 = vld [vmem:[%s8993_s11 + $0xfe0] sm:$0xf] }
  0xda   : > { %562 = vst [vmem:[%s8997_s23 + $0x2fc] sm:$0xf] %v561_v63  ;;  %v689_v63 = vld [vmem:[%s8993_s11 + $0xff0] sm:$0xf] }
  0xdb   : > { %564 = vst [vmem:[%s8997_s23 + $0x300] sm:$0xf] %v563_v0  ;;  %v691_v0 = vld [vmem:[%s8993_s11 + $0x1000] sm:$0xf] }
  0xdc   : > { %566 = vst [vmem:[%s8997_s23 + $0x304] sm:$0xf] %v565_v1  ;;  %v693_v1 = vld [vmem:[%s8993_s11 + $0x1010] sm:$0xf] }
  0xdd   : > { %568 = vst [vmem:[%s8997_s23 + $0x308] sm:$0xf] %v567_v2  ;;  %v695_v2 = vld [vmem:[%s8993_s11 + $0x1020] sm:$0xf] }
  0xde   : > { %570 = vst [vmem:[%s8997_s23 + $0x30c] sm:$0xf] %v569_v3  ;;  %v697_v3 = vld [vmem:[%s8993_s11 + $0x1030] sm:$0xf] }
  0xdf   : > { %572 = vst [vmem:[%s8997_s23 + $0x310] sm:$0xf] %v571_v4  ;;  %v699_v4 = vld [vmem:[%s8993_s11 + $0x1040] sm:$0xf] }
  0xe0   : > { %574 = vst [vmem:[%s8997_s23 + $0x314] sm:$0xf] %v573_v5  ;;  %v701_v5 = vld [vmem:[%s8993_s11 + $0x1050] sm:$0xf] }
  0xe1   : > { %576 = vst [vmem:[%s8997_s23 + $0x318] sm:$0xf] %v575_v6  ;;  %v703_v6 = vld [vmem:[%s8993_s11 + $0x1060] sm:$0xf] }
  0xe2   : > { %578 = vst [vmem:[%s8997_s23 + $0x31c] sm:$0xf] %v577_v7  ;;  %v705_v7 = vld [vmem:[%s8993_s11 + $0x1070] sm:$0xf] }
  0xe3   : > { %580 = vst [vmem:[%s8997_s23 + $0x320] sm:$0xf] %v579_v8  ;;  %v707_v8 = vld [vmem:[%s8993_s11 + $0x1080] sm:$0xf] }
  0xe4   : > { %582 = vst [vmem:[%s8997_s23 + $0x324] sm:$0xf] %v581_v9  ;;  %v709_v9 = vld [vmem:[%s8993_s11 + $0x1090] sm:$0xf] }
  0xe5   : > { %584 = vst [vmem:[%s8997_s23 + $0x328] sm:$0xf] %v583_v10  ;;  %v711_v10 = vld [vmem:[%s8993_s11 + $0x10a0] sm:$0xf] }
  0xe6   : > { %586 = vst [vmem:[%s8997_s23 + $0x32c] sm:$0xf] %v585_v11  ;;  %v713_v11 = vld [vmem:[%s8993_s11 + $0x10b0] sm:$0xf] }
  0xe7   : > { %588 = vst [vmem:[%s8997_s23 + $0x330] sm:$0xf] %v587_v12  ;;  %v715_v12 = vld [vmem:[%s8993_s11 + $0x10c0] sm:$0xf] }
  0xe8   : > { %590 = vst [vmem:[%s8997_s23 + $0x334] sm:$0xf] %v589_v13  ;;  %v717_v13 = vld [vmem:[%s8993_s11 + $0x10d0] sm:$0xf] }
  0xe9   : > { %592 = vst [vmem:[%s8997_s23 + $0x338] sm:$0xf] %v591_v14  ;;  %v719_v14 = vld [vmem:[%s8993_s11 + $0x10e0] sm:$0xf] }
  0xea   : > { %594 = vst [vmem:[%s8997_s23 + $0x33c] sm:$0xf] %v593_v15  ;;  %v721_v15 = vld [vmem:[%s8993_s11 + $0x10f0] sm:$0xf] }
  0xeb   : > { %596 = vst [vmem:[%s8997_s23 + $0x340] sm:$0xf] %v595_v16  ;;  %v723_v16 = vld [vmem:[%s8993_s11 + $0x1100] sm:$0xf] }
  0xec   : > { %598 = vst [vmem:[%s8997_s23 + $0x344] sm:$0xf] %v597_v17  ;;  %v725_v17 = vld [vmem:[%s8993_s11 + $0x1110] sm:$0xf] }
  0xed   : > { %600 = vst [vmem:[%s8997_s23 + $0x348] sm:$0xf] %v599_v18  ;;  %v727_v18 = vld [vmem:[%s8993_s11 + $0x1120] sm:$0xf] }
  0xee   : > { %602 = vst [vmem:[%s8997_s23 + $0x34c] sm:$0xf] %v601_v19  ;;  %v729_v19 = vld [vmem:[%s8993_s11 + $0x1130] sm:$0xf] }
  0xef   : > { %604 = vst [vmem:[%s8997_s23 + $0x350] sm:$0xf] %v603_v20  ;;  %v731_v20 = vld [vmem:[%s8993_s11 + $0x1140] sm:$0xf] }
  0xf0   : > { %606 = vst [vmem:[%s8997_s23 + $0x354] sm:$0xf] %v605_v21  ;;  %v733_v21 = vld [vmem:[%s8993_s11 + $0x1150] sm:$0xf] }
  0xf1   : > { %608 = vst [vmem:[%s8997_s23 + $0x358] sm:$0xf] %v607_v22  ;;  %v735_v22 = vld [vmem:[%s8993_s11 + $0x1160] sm:$0xf] }
  0xf2   : > { %610 = vst [vmem:[%s8997_s23 + $0x35c] sm:$0xf] %v609_v23  ;;  %v737_v23 = vld [vmem:[%s8993_s11 + $0x1170] sm:$0xf] }
  0xf3   : > { %612 = vst [vmem:[%s8997_s23 + $0x360] sm:$0xf] %v611_v24  ;;  %v739_v24 = vld [vmem:[%s8993_s11 + $0x1180] sm:$0xf] }
  0xf4   : > { %614 = vst [vmem:[%s8997_s23 + $0x364] sm:$0xf] %v613_v25  ;;  %v741_v25 = vld [vmem:[%s8993_s11 + $0x1190] sm:$0xf] }
  0xf5   : > { %616 = vst [vmem:[%s8997_s23 + $0x368] sm:$0xf] %v615_v26  ;;  %v743_v26 = vld [vmem:[%s8993_s11 + $0x11a0] sm:$0xf] }
  0xf6   : > { %618 = vst [vmem:[%s8997_s23 + $0x36c] sm:$0xf] %v617_v27  ;;  %v745_v27 = vld [vmem:[%s8993_s11 + $0x11b0] sm:$0xf] }
  0xf7   : > { %620 = vst [vmem:[%s8997_s23 + $0x370] sm:$0xf] %v619_v28  ;;  %v747_v28 = vld [vmem:[%s8993_s11 + $0x11c0] sm:$0xf] }
  0xf8   : > { %622 = vst [vmem:[%s8997_s23 + $0x374] sm:$0xf] %v621_v29  ;;  %v749_v29 = vld [vmem:[%s8993_s11 + $0x11d0] sm:$0xf] }
  0xf9   : > { %624 = vst [vmem:[%s8997_s23 + $0x378] sm:$0xf] %v623_v30  ;;  %v751_v30 = vld [vmem:[%s8993_s11 + $0x11e0] sm:$0xf] }
  0xfa   : > { %626 = vst [vmem:[%s8997_s23 + $0x37c] sm:$0xf] %v625_v31  ;;  %v753_v31 = vld [vmem:[%s8993_s11 + $0x11f0] sm:$0xf] }
  0xfb   : > { %628 = vst [vmem:[%s8997_s23 + $0x380] sm:$0xf] %v627_v32  ;;  %v755_v32 = vld [vmem:[%s8993_s11 + $0x1200] sm:$0xf] }
  0xfc   : > { %630 = vst [vmem:[%s8997_s23 + $0x384] sm:$0xf] %v629_v33  ;;  %v757_v33 = vld [vmem:[%s8993_s11 + $0x1210] sm:$0xf] }
  0xfd   : > { %632 = vst [vmem:[%s8997_s23 + $0x388] sm:$0xf] %v631_v34  ;;  %v759_v34 = vld [vmem:[%s8993_s11 + $0x1220] sm:$0xf] }
  0xfe   : > { %634 = vst [vmem:[%s8997_s23 + $0x38c] sm:$0xf] %v633_v35  ;;  %v761_v35 = vld [vmem:[%s8993_s11 + $0x1230] sm:$0xf] }
  0xff   : > { %636 = vst [vmem:[%s8997_s23 + $0x390] sm:$0xf] %v635_v36  ;;  %v763_v36 = vld [vmem:[%s8993_s11 + $0x1240] sm:$0xf] }
 0x100   : > { %638 = vst [vmem:[%s8997_s23 + $0x394] sm:$0xf] %v637_v37  ;;  %v765_v37 = vld [vmem:[%s8993_s11 + $0x1250] sm:$0xf] }
 0x101   : > { %640 = vst [vmem:[%s8997_s23 + $0x398] sm:$0xf] %v639_v38  ;;  %v767_v38 = vld [vmem:[%s8993_s11 + $0x1260] sm:$0xf] }
 0x102   : > { %642 = vst [vmem:[%s8997_s23 + $0x39c] sm:$0xf] %v641_v39  ;;  %v769_v39 = vld [vmem:[%s8993_s11 + $0x1270] sm:$0xf] }
 0x103   : > { %644 = vst [vmem:[%s8997_s23 + $0x3a0] sm:$0xf] %v643_v40  ;;  %v771_v40 = vld [vmem:[%s8993_s11 + $0x1280] sm:$0xf] }
 0x104   : > { %646 = vst [vmem:[%s8997_s23 + $0x3a4] sm:$0xf] %v645_v41  ;;  %v773_v41 = vld [vmem:[%s8993_s11 + $0x1290] sm:$0xf] }
 0x105   : > { %648 = vst [vmem:[%s8997_s23 + $0x3a8] sm:$0xf] %v647_v42  ;;  %v775_v42 = vld [vmem:[%s8993_s11 + $0x12a0] sm:$0xf] }
 0x106   : > { %650 = vst [vmem:[%s8997_s23 + $0x3ac] sm:$0xf] %v649_v43  ;;  %v777_v43 = vld [vmem:[%s8993_s11 + $0x12b0] sm:$0xf] }
 0x107   : > { %652 = vst [vmem:[%s8997_s23 + $0x3b0] sm:$0xf] %v651_v44  ;;  %v779_v44 = vld [vmem:[%s8993_s11 + $0x12c0] sm:$0xf] }
 0x108   : > { %654 = vst [vmem:[%s8997_s23 + $0x3b4] sm:$0xf] %v653_v45  ;;  %v781_v45 = vld [vmem:[%s8993_s11 + $0x12d0] sm:$0xf] }
 0x109   : > { %656 = vst [vmem:[%s8997_s23 + $0x3b8] sm:$0xf] %v655_v46  ;;  %v783_v46 = vld [vmem:[%s8993_s11 + $0x12e0] sm:$0xf] }
 0x10a   : > { %658 = vst [vmem:[%s8997_s23 + $0x3bc] sm:$0xf] %v657_v47  ;;  %v785_v47 = vld [vmem:[%s8993_s11 + $0x12f0] sm:$0xf] }
 0x10b   : > { %660 = vst [vmem:[%s8997_s23 + $0x3c0] sm:$0xf] %v659_v48  ;;  %v787_v48 = vld [vmem:[%s8993_s11 + $0x1300] sm:$0xf] }
 0x10c   : > { %662 = vst [vmem:[%s8997_s23 + $0x3c4] sm:$0xf] %v661_v49  ;;  %v789_v49 = vld [vmem:[%s8993_s11 + $0x1310] sm:$0xf] }
 0x10d   : > { %664 = vst [vmem:[%s8997_s23 + $0x3c8] sm:$0xf] %v663_v50  ;;  %v791_v50 = vld [vmem:[%s8993_s11 + $0x1320] sm:$0xf] }
 0x10e   : > { %666 = vst [vmem:[%s8997_s23 + $0x3cc] sm:$0xf] %v665_v51  ;;  %v793_v51 = vld [vmem:[%s8993_s11 + $0x1330] sm:$0xf] }
 0x10f   : > { %668 = vst [vmem:[%s8997_s23 + $0x3d0] sm:$0xf] %v667_v52  ;;  %v795_v52 = vld [vmem:[%s8993_s11 + $0x1340] sm:$0xf] }
 0x110   : > { %670 = vst [vmem:[%s8997_s23 + $0x3d4] sm:$0xf] %v669_v53  ;;  %v797_v53 = vld [vmem:[%s8993_s11 + $0x1350] sm:$0xf] }
 0x111   : > { %672 = vst [vmem:[%s8997_s23 + $0x3d8] sm:$0xf] %v671_v54  ;;  %v799_v54 = vld [vmem:[%s8993_s11 + $0x1360] sm:$0xf] }
 0x112   : > { %674 = vst [vmem:[%s8997_s23 + $0x3dc] sm:$0xf] %v673_v55  ;;  %v801_v55 = vld [vmem:[%s8993_s11 + $0x1370] sm:$0xf] }
 0x113   : > { %676 = vst [vmem:[%s8997_s23 + $0x3e0] sm:$0xf] %v675_v56  ;;  %v803_v56 = vld [vmem:[%s8993_s11 + $0x1380] sm:$0xf] }
 0x114   : > { %678 = vst [vmem:[%s8997_s23 + $0x3e4] sm:$0xf] %v677_v57  ;;  %v805_v57 = vld [vmem:[%s8993_s11 + $0x1390] sm:$0xf] }
 0x115   : > { %680 = vst [vmem:[%s8997_s23 + $0x3e8] sm:$0xf] %v679_v58  ;;  %v807_v58 = vld [vmem:[%s8993_s11 + $0x13a0] sm:$0xf] }
 0x116   : > { %682 = vst [vmem:[%s8997_s23 + $0x3ec] sm:$0xf] %v681_v59  ;;  %v809_v59 = vld [vmem:[%s8993_s11 + $0x13b0] sm:$0xf] }
 0x117   : > { %684 = vst [vmem:[%s8997_s23 + $0x3f0] sm:$0xf] %v683_v60  ;;  %v811_v60 = vld [vmem:[%s8993_s11 + $0x13c0] sm:$0xf] }
 0x118   : > { %686 = vst [vmem:[%s8997_s23 + $0x3f4] sm:$0xf] %v685_v61  ;;  %v813_v61 = vld [vmem:[%s8993_s11 + $0x13d0] sm:$0xf] }
 0x119   : > { %688 = vst [vmem:[%s8997_s23 + $0x3f8] sm:$0xf] %v687_v62  ;;  %v815_v62 = vld [vmem:[%s8993_s11 + $0x13e0] sm:$0xf] }
 0x11a   : > { %690 = vst [vmem:[%s8997_s23 + $0x3fc] sm:$0xf] %v689_v63  ;;  %v817_v63 = vld [vmem:[%s8993_s11 + $0x13f0] sm:$0xf] }
 0x11b   : > { %692 = vst [vmem:[%s8997_s23 + $0x400] sm:$0xf] %v691_v0  ;;  %v819_v0 = vld [vmem:[%s8993_s11 + $0x1400] sm:$0xf] }
 0x11c   : > { %694 = vst [vmem:[%s8997_s23 + $0x404] sm:$0xf] %v693_v1  ;;  %v821_v1 = vld [vmem:[%s8993_s11 + $0x1410] sm:$0xf] }
 0x11d   : > { %696 = vst [vmem:[%s8997_s23 + $0x408] sm:$0xf] %v695_v2  ;;  %v823_v2 = vld [vmem:[%s8993_s11 + $0x1420] sm:$0xf] }
 0x11e   : > { %698 = vst [vmem:[%s8997_s23 + $0x40c] sm:$0xf] %v697_v3  ;;  %v825_v3 = vld [vmem:[%s8993_s11 + $0x1430] sm:$0xf] }
 0x11f   : > { %700 = vst [vmem:[%s8997_s23 + $0x410] sm:$0xf] %v699_v4  ;;  %v827_v4 = vld [vmem:[%s8993_s11 + $0x1440] sm:$0xf] }
 0x120   : > { %702 = vst [vmem:[%s8997_s23 + $0x414] sm:$0xf] %v701_v5  ;;  %v829_v5 = vld [vmem:[%s8993_s11 + $0x1450] sm:$0xf] }
 0x121   : > { %704 = vst [vmem:[%s8997_s23 + $0x418] sm:$0xf] %v703_v6  ;;  %v831_v6 = vld [vmem:[%s8993_s11 + $0x1460] sm:$0xf] }
 0x122   : > { %706 = vst [vmem:[%s8997_s23 + $0x41c] sm:$0xf] %v705_v7  ;;  %v833_v7 = vld [vmem:[%s8993_s11 + $0x1470] sm:$0xf] }
 0x123   : > { %708 = vst [vmem:[%s8997_s23 + $0x420] sm:$0xf] %v707_v8  ;;  %v835_v8 = vld [vmem:[%s8993_s11 + $0x1480] sm:$0xf] }
 0x124   : > { %710 = vst [vmem:[%s8997_s23 + $0x424] sm:$0xf] %v709_v9  ;;  %v837_v9 = vld [vmem:[%s8993_s11 + $0x1490] sm:$0xf] }
 0x125   : > { %712 = vst [vmem:[%s8997_s23 + $0x428] sm:$0xf] %v711_v10  ;;  %v839_v10 = vld [vmem:[%s8993_s11 + $0x14a0] sm:$0xf] }
 0x126   : > { %714 = vst [vmem:[%s8997_s23 + $0x42c] sm:$0xf] %v713_v11  ;;  %v841_v11 = vld [vmem:[%s8993_s11 + $0x14b0] sm:$0xf] }
 0x127   : > { %716 = vst [vmem:[%s8997_s23 + $0x430] sm:$0xf] %v715_v12  ;;  %v843_v12 = vld [vmem:[%s8993_s11 + $0x14c0] sm:$0xf] }
 0x128   : > { %718 = vst [vmem:[%s8997_s23 + $0x434] sm:$0xf] %v717_v13  ;;  %v845_v13 = vld [vmem:[%s8993_s11 + $0x14d0] sm:$0xf] }
 0x129   : > { %720 = vst [vmem:[%s8997_s23 + $0x438] sm:$0xf] %v719_v14  ;;  %v847_v14 = vld [vmem:[%s8993_s11 + $0x14e0] sm:$0xf] }
 0x12a   : > { %722 = vst [vmem:[%s8997_s23 + $0x43c] sm:$0xf] %v721_v15  ;;  %v849_v15 = vld [vmem:[%s8993_s11 + $0x14f0] sm:$0xf] }
 0x12b   : > { %724 = vst [vmem:[%s8997_s23 + $0x440] sm:$0xf] %v723_v16  ;;  %v851_v16 = vld [vmem:[%s8993_s11 + $0x1500] sm:$0xf] }
 0x12c   : > { %726 = vst [vmem:[%s8997_s23 + $0x444] sm:$0xf] %v725_v17  ;;  %v853_v17 = vld [vmem:[%s8993_s11 + $0x1510] sm:$0xf] }
 0x12d   : > { %728 = vst [vmem:[%s8997_s23 + $0x448] sm:$0xf] %v727_v18  ;;  %v855_v18 = vld [vmem:[%s8993_s11 + $0x1520] sm:$0xf] }
 0x12e   : > { %730 = vst [vmem:[%s8997_s23 + $0x44c] sm:$0xf] %v729_v19  ;;  %v857_v19 = vld [vmem:[%s8993_s11 + $0x1530] sm:$0xf] }
 0x12f   : > { %732 = vst [vmem:[%s8997_s23 + $0x450] sm:$0xf] %v731_v20  ;;  %v859_v20 = vld [vmem:[%s8993_s11 + $0x1540] sm:$0xf] }
 0x130   : > { %734 = vst [vmem:[%s8997_s23 + $0x454] sm:$0xf] %v733_v21  ;;  %v861_v21 = vld [vmem:[%s8993_s11 + $0x1550] sm:$0xf] }
 0x131   : > { %736 = vst [vmem:[%s8997_s23 + $0x458] sm:$0xf] %v735_v22  ;;  %v863_v22 = vld [vmem:[%s8993_s11 + $0x1560] sm:$0xf] }
 0x132   : > { %738 = vst [vmem:[%s8997_s23 + $0x45c] sm:$0xf] %v737_v23  ;;  %v865_v23 = vld [vmem:[%s8993_s11 + $0x1570] sm:$0xf] }
 0x133   : > { %740 = vst [vmem:[%s8997_s23 + $0x460] sm:$0xf] %v739_v24  ;;  %v867_v24 = vld [vmem:[%s8993_s11 + $0x1580] sm:$0xf] }
 0x134   : > { %742 = vst [vmem:[%s8997_s23 + $0x464] sm:$0xf] %v741_v25  ;;  %v869_v25 = vld [vmem:[%s8993_s11 + $0x1590] sm:$0xf] }
 0x135   : > { %744 = vst [vmem:[%s8997_s23 + $0x468] sm:$0xf] %v743_v26  ;;  %v871_v26 = vld [vmem:[%s8993_s11 + $0x15a0] sm:$0xf] }
 0x136   : > { %746 = vst [vmem:[%s8997_s23 + $0x46c] sm:$0xf] %v745_v27  ;;  %v873_v27 = vld [vmem:[%s8993_s11 + $0x15b0] sm:$0xf] }
 0x137   : > { %748 = vst [vmem:[%s8997_s23 + $0x470] sm:$0xf] %v747_v28  ;;  %v875_v28 = vld [vmem:[%s8993_s11 + $0x15c0] sm:$0xf] }
 0x138   : > { %750 = vst [vmem:[%s8997_s23 + $0x474] sm:$0xf] %v749_v29  ;;  %v877_v29 = vld [vmem:[%s8993_s11 + $0x15d0] sm:$0xf] }
 0x139   : > { %752 = vst [vmem:[%s8997_s23 + $0x478] sm:$0xf] %v751_v30  ;;  %v879_v30 = vld [vmem:[%s8993_s11 + $0x15e0] sm:$0xf] }
 0x13a   : > { %754 = vst [vmem:[%s8997_s23 + $0x47c] sm:$0xf] %v753_v31  ;;  %v881_v31 = vld [vmem:[%s8993_s11 + $0x15f0] sm:$0xf] }
 0x13b   : > { %756 = vst [vmem:[%s8997_s23 + $0x480] sm:$0xf] %v755_v32  ;;  %v883_v32 = vld [vmem:[%s8993_s11 + $0x1600] sm:$0xf] }
 0x13c   : > { %758 = vst [vmem:[%s8997_s23 + $0x484] sm:$0xf] %v757_v33  ;;  %v885_v33 = vld [vmem:[%s8993_s11 + $0x1610] sm:$0xf] }
 0x13d   : > { %760 = vst [vmem:[%s8997_s23 + $0x488] sm:$0xf] %v759_v34  ;;  %v887_v34 = vld [vmem:[%s8993_s11 + $0x1620] sm:$0xf] }
 0x13e   : > { %762 = vst [vmem:[%s8997_s23 + $0x48c] sm:$0xf] %v761_v35  ;;  %v889_v35 = vld [vmem:[%s8993_s11 + $0x1630] sm:$0xf] }
 0x13f   : > { %764 = vst [vmem:[%s8997_s23 + $0x490] sm:$0xf] %v763_v36  ;;  %v891_v36 = vld [vmem:[%s8993_s11 + $0x1640] sm:$0xf] }
 0x140   : > { %766 = vst [vmem:[%s8997_s23 + $0x494] sm:$0xf] %v765_v37  ;;  %v893_v37 = vld [vmem:[%s8993_s11 + $0x1650] sm:$0xf] }
 0x141   : > { %768 = vst [vmem:[%s8997_s23 + $0x498] sm:$0xf] %v767_v38  ;;  %v895_v38 = vld [vmem:[%s8993_s11 + $0x1660] sm:$0xf] }
 0x142   : > { %770 = vst [vmem:[%s8997_s23 + $0x49c] sm:$0xf] %v769_v39  ;;  %v897_v39 = vld [vmem:[%s8993_s11 + $0x1670] sm:$0xf] }
 0x143   : > { %772 = vst [vmem:[%s8997_s23 + $0x4a0] sm:$0xf] %v771_v40  ;;  %v899_v40 = vld [vmem:[%s8993_s11 + $0x1680] sm:$0xf] }
 0x144   : > { %774 = vst [vmem:[%s8997_s23 + $0x4a4] sm:$0xf] %v773_v41  ;;  %v901_v41 = vld [vmem:[%s8993_s11 + $0x1690] sm:$0xf] }
 0x145   : > { %776 = vst [vmem:[%s8997_s23 + $0x4a8] sm:$0xf] %v775_v42  ;;  %v903_v42 = vld [vmem:[%s8993_s11 + $0x16a0] sm:$0xf] }
 0x146   : > { %778 = vst [vmem:[%s8997_s23 + $0x4ac] sm:$0xf] %v777_v43  ;;  %v905_v43 = vld [vmem:[%s8993_s11 + $0x16b0] sm:$0xf] }
 0x147   : > { %780 = vst [vmem:[%s8997_s23 + $0x4b0] sm:$0xf] %v779_v44  ;;  %v907_v44 = vld [vmem:[%s8993_s11 + $0x16c0] sm:$0xf] }
 0x148   : > { %782 = vst [vmem:[%s8997_s23 + $0x4b4] sm:$0xf] %v781_v45  ;;  %v909_v45 = vld [vmem:[%s8993_s11 + $0x16d0] sm:$0xf] }
 0x149   : > { %784 = vst [vmem:[%s8997_s23 + $0x4b8] sm:$0xf] %v783_v46  ;;  %v911_v46 = vld [vmem:[%s8993_s11 + $0x16e0] sm:$0xf] }
 0x14a   : > { %786 = vst [vmem:[%s8997_s23 + $0x4bc] sm:$0xf] %v785_v47  ;;  %v913_v47 = vld [vmem:[%s8993_s11 + $0x16f0] sm:$0xf] }
 0x14b   : > { %788 = vst [vmem:[%s8997_s23 + $0x4c0] sm:$0xf] %v787_v48  ;;  %v915_v48 = vld [vmem:[%s8993_s11 + $0x1700] sm:$0xf] }
 0x14c   : > { %790 = vst [vmem:[%s8997_s23 + $0x4c4] sm:$0xf] %v789_v49  ;;  %v917_v49 = vld [vmem:[%s8993_s11 + $0x1710] sm:$0xf] }
 0x14d   : > { %792 = vst [vmem:[%s8997_s23 + $0x4c8] sm:$0xf] %v791_v50  ;;  %v919_v50 = vld [vmem:[%s8993_s11 + $0x1720] sm:$0xf] }
 0x14e   : > { %794 = vst [vmem:[%s8997_s23 + $0x4cc] sm:$0xf] %v793_v51  ;;  %v921_v51 = vld [vmem:[%s8993_s11 + $0x1730] sm:$0xf] }
 0x14f   : > { %796 = vst [vmem:[%s8997_s23 + $0x4d0] sm:$0xf] %v795_v52  ;;  %v923_v52 = vld [vmem:[%s8993_s11 + $0x1740] sm:$0xf] }
 0x150   : > { %798 = vst [vmem:[%s8997_s23 + $0x4d4] sm:$0xf] %v797_v53  ;;  %v925_v53 = vld [vmem:[%s8993_s11 + $0x1750] sm:$0xf] }
 0x151   : > { %800 = vst [vmem:[%s8997_s23 + $0x4d8] sm:$0xf] %v799_v54  ;;  %v927_v54 = vld [vmem:[%s8993_s11 + $0x1760] sm:$0xf] }
 0x152   : > { %802 = vst [vmem:[%s8997_s23 + $0x4dc] sm:$0xf] %v801_v55  ;;  %v929_v55 = vld [vmem:[%s8993_s11 + $0x1770] sm:$0xf] }
 0x153   : > { %804 = vst [vmem:[%s8997_s23 + $0x4e0] sm:$0xf] %v803_v56  ;;  %v931_v56 = vld [vmem:[%s8993_s11 + $0x1780] sm:$0xf] }
 0x154   : > { %806 = vst [vmem:[%s8997_s23 + $0x4e4] sm:$0xf] %v805_v57  ;;  %v933_v57 = vld [vmem:[%s8993_s11 + $0x1790] sm:$0xf] }
 0x155   : > { %808 = vst [vmem:[%s8997_s23 + $0x4e8] sm:$0xf] %v807_v58  ;;  %v935_v58 = vld [vmem:[%s8993_s11 + $0x17a0] sm:$0xf] }
 0x156   : > { %810 = vst [vmem:[%s8997_s23 + $0x4ec] sm:$0xf] %v809_v59  ;;  %v937_v59 = vld [vmem:[%s8993_s11 + $0x17b0] sm:$0xf] }
 0x157   : > { %812 = vst [vmem:[%s8997_s23 + $0x4f0] sm:$0xf] %v811_v60  ;;  %v939_v60 = vld [vmem:[%s8993_s11 + $0x17c0] sm:$0xf] }
 0x158   : > { %814 = vst [vmem:[%s8997_s23 + $0x4f4] sm:$0xf] %v813_v61  ;;  %v941_v61 = vld [vmem:[%s8993_s11 + $0x17d0] sm:$0xf] }
 0x159   : > { %816 = vst [vmem:[%s8997_s23 + $0x4f8] sm:$0xf] %v815_v62  ;;  %v943_v62 = vld [vmem:[%s8993_s11 + $0x17e0] sm:$0xf] }
 0x15a   : > { %818 = vst [vmem:[%s8997_s23 + $0x4fc] sm:$0xf] %v817_v63  ;;  %v945_v63 = vld [vmem:[%s8993_s11 + $0x17f0] sm:$0xf] }
 0x15b   : > { %820 = vst [vmem:[%s8997_s23 + $0x500] sm:$0xf] %v819_v0  ;;  %v947_v0 = vld [vmem:[%s8993_s11 + $0x1800] sm:$0xf] }
 0x15c   : > { %822 = vst [vmem:[%s8997_s23 + $0x504] sm:$0xf] %v821_v1  ;;  %v949_v1 = vld [vmem:[%s8993_s11 + $0x1810] sm:$0xf] }
 0x15d   : > { %824 = vst [vmem:[%s8997_s23 + $0x508] sm:$0xf] %v823_v2  ;;  %v951_v2 = vld [vmem:[%s8993_s11 + $0x1820] sm:$0xf] }
 0x15e   : > { %826 = vst [vmem:[%s8997_s23 + $0x50c] sm:$0xf] %v825_v3  ;;  %v953_v3 = vld [vmem:[%s8993_s11 + $0x1830] sm:$0xf] }
 0x15f   : > { %828 = vst [vmem:[%s8997_s23 + $0x510] sm:$0xf] %v827_v4  ;;  %v955_v4 = vld [vmem:[%s8993_s11 + $0x1840] sm:$0xf] }
 0x160   : > { %830 = vst [vmem:[%s8997_s23 + $0x514] sm:$0xf] %v829_v5  ;;  %v957_v5 = vld [vmem:[%s8993_s11 + $0x1850] sm:$0xf] }
 0x161   : > { %832 = vst [vmem:[%s8997_s23 + $0x518] sm:$0xf] %v831_v6  ;;  %v959_v6 = vld [vmem:[%s8993_s11 + $0x1860] sm:$0xf] }
 0x162   : > { %834 = vst [vmem:[%s8997_s23 + $0x51c] sm:$0xf] %v833_v7  ;;  %v961_v7 = vld [vmem:[%s8993_s11 + $0x1870] sm:$0xf] }
 0x163   : > { %836 = vst [vmem:[%s8997_s23 + $0x520] sm:$0xf] %v835_v8  ;;  %v963_v8 = vld [vmem:[%s8993_s11 + $0x1880] sm:$0xf] }
 0x164   : > { %838 = vst [vmem:[%s8997_s23 + $0x524] sm:$0xf] %v837_v9  ;;  %v965_v9 = vld [vmem:[%s8993_s11 + $0x1890] sm:$0xf] }
 0x165   : > { %840 = vst [vmem:[%s8997_s23 + $0x528] sm:$0xf] %v839_v10  ;;  %v967_v10 = vld [vmem:[%s8993_s11 + $0x18a0] sm:$0xf] }
 0x166   : > { %842 = vst [vmem:[%s8997_s23 + $0x52c] sm:$0xf] %v841_v11  ;;  %v969_v11 = vld [vmem:[%s8993_s11 + $0x18b0] sm:$0xf] }
 0x167   : > { %844 = vst [vmem:[%s8997_s23 + $0x530] sm:$0xf] %v843_v12  ;;  %v971_v12 = vld [vmem:[%s8993_s11 + $0x18c0] sm:$0xf] }
 0x168   : > { %846 = vst [vmem:[%s8997_s23 + $0x534] sm:$0xf] %v845_v13  ;;  %v973_v13 = vld [vmem:[%s8993_s11 + $0x18d0] sm:$0xf] }
 0x169   : > { %848 = vst [vmem:[%s8997_s23 + $0x538] sm:$0xf] %v847_v14  ;;  %v975_v14 = vld [vmem:[%s8993_s11 + $0x18e0] sm:$0xf] }
 0x16a   : > { %850 = vst [vmem:[%s8997_s23 + $0x53c] sm:$0xf] %v849_v15  ;;  %v977_v15 = vld [vmem:[%s8993_s11 + $0x18f0] sm:$0xf] }
 0x16b   : > { %852 = vst [vmem:[%s8997_s23 + $0x540] sm:$0xf] %v851_v16  ;;  %v979_v16 = vld [vmem:[%s8993_s11 + $0x1900] sm:$0xf] }
 0x16c   : > { %854 = vst [vmem:[%s8997_s23 + $0x544] sm:$0xf] %v853_v17  ;;  %v981_v17 = vld [vmem:[%s8993_s11 + $0x1910] sm:$0xf] }
 0x16d   : > { %856 = vst [vmem:[%s8997_s23 + $0x548] sm:$0xf] %v855_v18  ;;  %v983_v18 = vld [vmem:[%s8993_s11 + $0x1920] sm:$0xf] }
 0x16e   : > { %858 = vst [vmem:[%s8997_s23 + $0x54c] sm:$0xf] %v857_v19  ;;  %v985_v19 = vld [vmem:[%s8993_s11 + $0x1930] sm:$0xf] }
 0x16f   : > { %860 = vst [vmem:[%s8997_s23 + $0x550] sm:$0xf] %v859_v20  ;;  %v987_v20 = vld [vmem:[%s8993_s11 + $0x1940] sm:$0xf] }
 0x170   : > { %862 = vst [vmem:[%s8997_s23 + $0x554] sm:$0xf] %v861_v21  ;;  %v989_v21 = vld [vmem:[%s8993_s11 + $0x1950] sm:$0xf] }
 0x171   : > { %864 = vst [vmem:[%s8997_s23 + $0x558] sm:$0xf] %v863_v22  ;;  %v991_v22 = vld [vmem:[%s8993_s11 + $0x1960] sm:$0xf] }
 0x172   : > { %866 = vst [vmem:[%s8997_s23 + $0x55c] sm:$0xf] %v865_v23  ;;  %v993_v23 = vld [vmem:[%s8993_s11 + $0x1970] sm:$0xf] }
 0x173   : > { %868 = vst [vmem:[%s8997_s23 + $0x560] sm:$0xf] %v867_v24  ;;  %v995_v24 = vld [vmem:[%s8993_s11 + $0x1980] sm:$0xf] }
 0x174   : > { %870 = vst [vmem:[%s8997_s23 + $0x564] sm:$0xf] %v869_v25  ;;  %v997_v25 = vld [vmem:[%s8993_s11 + $0x1990] sm:$0xf] }
 0x175   : > { %872 = vst [vmem:[%s8997_s23 + $0x568] sm:$0xf] %v871_v26  ;;  %v999_v26 = vld [vmem:[%s8993_s11 + $0x19a0] sm:$0xf] }
 0x176   : > { %874 = vst [vmem:[%s8997_s23 + $0x56c] sm:$0xf] %v873_v27  ;;  %v1001_v27 = vld [vmem:[%s8993_s11 + $0x19b0] sm:$0xf] }
 0x177   : > { %876 = vst [vmem:[%s8997_s23 + $0x570] sm:$0xf] %v875_v28  ;;  %v1003_v28 = vld [vmem:[%s8993_s11 + $0x19c0] sm:$0xf] }
 0x178   : > { %878 = vst [vmem:[%s8997_s23 + $0x574] sm:$0xf] %v877_v29  ;;  %v1005_v29 = vld [vmem:[%s8993_s11 + $0x19d0] sm:$0xf] }
 0x179   : > { %880 = vst [vmem:[%s8997_s23 + $0x578] sm:$0xf] %v879_v30  ;;  %v1007_v30 = vld [vmem:[%s8993_s11 + $0x19e0] sm:$0xf] }
 0x17a   : > { %882 = vst [vmem:[%s8997_s23 + $0x57c] sm:$0xf] %v881_v31  ;;  %v1009_v31 = vld [vmem:[%s8993_s11 + $0x19f0] sm:$0xf] }
 0x17b   : > { %884 = vst [vmem:[%s8997_s23 + $0x580] sm:$0xf] %v883_v32  ;;  %v1011_v32 = vld [vmem:[%s8993_s11 + $0x1a00] sm:$0xf] }
 0x17c   : > { %886 = vst [vmem:[%s8997_s23 + $0x584] sm:$0xf] %v885_v33  ;;  %v1013_v33 = vld [vmem:[%s8993_s11 + $0x1a10] sm:$0xf] }
 0x17d   : > { %888 = vst [vmem:[%s8997_s23 + $0x588] sm:$0xf] %v887_v34  ;;  %v1015_v34 = vld [vmem:[%s8993_s11 + $0x1a20] sm:$0xf] }
 0x17e   : > { %890 = vst [vmem:[%s8997_s23 + $0x58c] sm:$0xf] %v889_v35  ;;  %v1017_v35 = vld [vmem:[%s8993_s11 + $0x1a30] sm:$0xf] }
 0x17f   : > { %892 = vst [vmem:[%s8997_s23 + $0x590] sm:$0xf] %v891_v36  ;;  %v1019_v36 = vld [vmem:[%s8993_s11 + $0x1a40] sm:$0xf] }
 0x180   : > { %894 = vst [vmem:[%s8997_s23 + $0x594] sm:$0xf] %v893_v37  ;;  %v1021_v37 = vld [vmem:[%s8993_s11 + $0x1a50] sm:$0xf] }
 0x181   : > { %896 = vst [vmem:[%s8997_s23 + $0x598] sm:$0xf] %v895_v38  ;;  %v1023_v38 = vld [vmem:[%s8993_s11 + $0x1a60] sm:$0xf] }
 0x182   : > { %898 = vst [vmem:[%s8997_s23 + $0x59c] sm:$0xf] %v897_v39  ;;  %v1025_v39 = vld [vmem:[%s8993_s11 + $0x1a70] sm:$0xf] }
 0x183   : > { %900 = vst [vmem:[%s8997_s23 + $0x5a0] sm:$0xf] %v899_v40  ;;  %v1027_v40 = vld [vmem:[%s8993_s11 + $0x1a80] sm:$0xf] }
 0x184   : > { %902 = vst [vmem:[%s8997_s23 + $0x5a4] sm:$0xf] %v901_v41  ;;  %v1029_v41 = vld [vmem:[%s8993_s11 + $0x1a90] sm:$0xf] }
 0x185   : > { %904 = vst [vmem:[%s8997_s23 + $0x5a8] sm:$0xf] %v903_v42  ;;  %v1031_v42 = vld [vmem:[%s8993_s11 + $0x1aa0] sm:$0xf] }
 0x186   : > { %906 = vst [vmem:[%s8997_s23 + $0x5ac] sm:$0xf] %v905_v43  ;;  %v1033_v43 = vld [vmem:[%s8993_s11 + $0x1ab0] sm:$0xf] }
 0x187   : > { %908 = vst [vmem:[%s8997_s23 + $0x5b0] sm:$0xf] %v907_v44  ;;  %v1035_v44 = vld [vmem:[%s8993_s11 + $0x1ac0] sm:$0xf] }
 0x188   : > { %910 = vst [vmem:[%s8997_s23 + $0x5b4] sm:$0xf] %v909_v45  ;;  %v1037_v45 = vld [vmem:[%s8993_s11 + $0x1ad0] sm:$0xf] }
 0x189   : > { %912 = vst [vmem:[%s8997_s23 + $0x5b8] sm:$0xf] %v911_v46  ;;  %v1039_v46 = vld [vmem:[%s8993_s11 + $0x1ae0] sm:$0xf] }
 0x18a   : > { %914 = vst [vmem:[%s8997_s23 + $0x5bc] sm:$0xf] %v913_v47  ;;  %v1041_v47 = vld [vmem:[%s8993_s11 + $0x1af0] sm:$0xf] }
 0x18b   : > { %916 = vst [vmem:[%s8997_s23 + $0x5c0] sm:$0xf] %v915_v48  ;;  %v1043_v48 = vld [vmem:[%s8993_s11 + $0x1b00] sm:$0xf] }
 0x18c   : > { %918 = vst [vmem:[%s8997_s23 + $0x5c4] sm:$0xf] %v917_v49  ;;  %v1045_v49 = vld [vmem:[%s8993_s11 + $0x1b10] sm:$0xf] }
 0x18d   : > { %920 = vst [vmem:[%s8997_s23 + $0x5c8] sm:$0xf] %v919_v50  ;;  %v1047_v50 = vld [vmem:[%s8993_s11 + $0x1b20] sm:$0xf] }
 0x18e   : > { %922 = vst [vmem:[%s8997_s23 + $0x5cc] sm:$0xf] %v921_v51  ;;  %v1049_v51 = vld [vmem:[%s8993_s11 + $0x1b30] sm:$0xf] }
 0x18f   : > { %924 = vst [vmem:[%s8997_s23 + $0x5d0] sm:$0xf] %v923_v52  ;;  %v1051_v52 = vld [vmem:[%s8993_s11 + $0x1b40] sm:$0xf] }
 0x190   : > { %926 = vst [vmem:[%s8997_s23 + $0x5d4] sm:$0xf] %v925_v53  ;;  %v1053_v53 = vld [vmem:[%s8993_s11 + $0x1b50] sm:$0xf] }
 0x191   : > { %928 = vst [vmem:[%s8997_s23 + $0x5d8] sm:$0xf] %v927_v54  ;;  %v1055_v54 = vld [vmem:[%s8993_s11 + $0x1b60] sm:$0xf] }
 0x192   : > { %930 = vst [vmem:[%s8997_s23 + $0x5dc] sm:$0xf] %v929_v55  ;;  %v1057_v55 = vld [vmem:[%s8993_s11 + $0x1b70] sm:$0xf] }
 0x193   : > { %932 = vst [vmem:[%s8997_s23 + $0x5e0] sm:$0xf] %v931_v56  ;;  %v1059_v56 = vld [vmem:[%s8993_s11 + $0x1b80] sm:$0xf] }
 0x194   : > { %934 = vst [vmem:[%s8997_s23 + $0x5e4] sm:$0xf] %v933_v57  ;;  %v1061_v57 = vld [vmem:[%s8993_s11 + $0x1b90] sm:$0xf] }
 0x195   : > { %936 = vst [vmem:[%s8997_s23 + $0x5e8] sm:$0xf] %v935_v58  ;;  %v1063_v58 = vld [vmem:[%s8993_s11 + $0x1ba0] sm:$0xf] }
 0x196   : > { %938 = vst [vmem:[%s8997_s23 + $0x5ec] sm:$0xf] %v937_v59  ;;  %v1065_v59 = vld [vmem:[%s8993_s11 + $0x1bb0] sm:$0xf] }
 0x197   : > { %940 = vst [vmem:[%s8997_s23 + $0x5f0] sm:$0xf] %v939_v60  ;;  %v1067_v60 = vld [vmem:[%s8993_s11 + $0x1bc0] sm:$0xf] }
 0x198   : > { %942 = vst [vmem:[%s8997_s23 + $0x5f4] sm:$0xf] %v941_v61  ;;  %v1069_v61 = vld [vmem:[%s8993_s11 + $0x1bd0] sm:$0xf] }
 0x199   : > { %944 = vst [vmem:[%s8997_s23 + $0x5f8] sm:$0xf] %v943_v62  ;;  %v1071_v62 = vld [vmem:[%s8993_s11 + $0x1be0] sm:$0xf] }
 0x19a   : > { %946 = vst [vmem:[%s8997_s23 + $0x5fc] sm:$0xf] %v945_v63  ;;  %v1073_v63 = vld [vmem:[%s8993_s11 + $0x1bf0] sm:$0xf] }
 0x19b   : > { %948 = vst [vmem:[%s8997_s23 + $0x600] sm:$0xf] %v947_v0  ;;  %v1075_v0 = vld [vmem:[%s8993_s11 + $0x1c00] sm:$0xf] }
 0x19c   : > { %950 = vst [vmem:[%s8997_s23 + $0x604] sm:$0xf] %v949_v1  ;;  %v1077_v1 = vld [vmem:[%s8993_s11 + $0x1c10] sm:$0xf] }
 0x19d   : > { %952 = vst [vmem:[%s8997_s23 + $0x608] sm:$0xf] %v951_v2  ;;  %v1079_v2 = vld [vmem:[%s8993_s11 + $0x1c20] sm:$0xf] }
 0x19e   : > { %954 = vst [vmem:[%s8997_s23 + $0x60c] sm:$0xf] %v953_v3  ;;  %v1081_v3 = vld [vmem:[%s8993_s11 + $0x1c30] sm:$0xf] }
 0x19f   : > { %956 = vst [vmem:[%s8997_s23 + $0x610] sm:$0xf] %v955_v4  ;;  %v1083_v4 = vld [vmem:[%s8993_s11 + $0x1c40] sm:$0xf] }
 0x1a0   : > { %958 = vst [vmem:[%s8997_s23 + $0x614] sm:$0xf] %v957_v5  ;;  %v1085_v5 = vld [vmem:[%s8993_s11 + $0x1c50] sm:$0xf] }
 0x1a1   : > { %960 = vst [vmem:[%s8997_s23 + $0x618] sm:$0xf] %v959_v6  ;;  %v1087_v6 = vld [vmem:[%s8993_s11 + $0x1c60] sm:$0xf] }
 0x1a2   : > { %962 = vst [vmem:[%s8997_s23 + $0x61c] sm:$0xf] %v961_v7  ;;  %v1089_v7 = vld [vmem:[%s8993_s11 + $0x1c70] sm:$0xf] }
 0x1a3   : > { %964 = vst [vmem:[%s8997_s23 + $0x620] sm:$0xf] %v963_v8  ;;  %v1091_v8 = vld [vmem:[%s8993_s11 + $0x1c80] sm:$0xf] }
 0x1a4   : > { %966 = vst [vmem:[%s8997_s23 + $0x624] sm:$0xf] %v965_v9  ;;  %v1093_v9 = vld [vmem:[%s8993_s11 + $0x1c90] sm:$0xf] }
 0x1a5   : > { %968 = vst [vmem:[%s8997_s23 + $0x628] sm:$0xf] %v967_v10  ;;  %v1095_v10 = vld [vmem:[%s8993_s11 + $0x1ca0] sm:$0xf] }
 0x1a6   : > { %970 = vst [vmem:[%s8997_s23 + $0x62c] sm:$0xf] %v969_v11  ;;  %v1097_v11 = vld [vmem:[%s8993_s11 + $0x1cb0] sm:$0xf] }
 0x1a7   : > { %972 = vst [vmem:[%s8997_s23 + $0x630] sm:$0xf] %v971_v12  ;;  %v1099_v12 = vld [vmem:[%s8993_s11 + $0x1cc0] sm:$0xf] }
 0x1a8   : > { %974 = vst [vmem:[%s8997_s23 + $0x634] sm:$0xf] %v973_v13  ;;  %v1101_v13 = vld [vmem:[%s8993_s11 + $0x1cd0] sm:$0xf] }
 0x1a9   : > { %976 = vst [vmem:[%s8997_s23 + $0x638] sm:$0xf] %v975_v14  ;;  %v1103_v14 = vld [vmem:[%s8993_s11 + $0x1ce0] sm:$0xf] }
 0x1aa   : > { %978 = vst [vmem:[%s8997_s23 + $0x63c] sm:$0xf] %v977_v15  ;;  %v1105_v15 = vld [vmem:[%s8993_s11 + $0x1cf0] sm:$0xf] }
 0x1ab   : > { %980 = vst [vmem:[%s8997_s23 + $0x640] sm:$0xf] %v979_v16  ;;  %v1107_v16 = vld [vmem:[%s8993_s11 + $0x1d00] sm:$0xf] }
 0x1ac   : > { %982 = vst [vmem:[%s8997_s23 + $0x644] sm:$0xf] %v981_v17  ;;  %v1109_v17 = vld [vmem:[%s8993_s11 + $0x1d10] sm:$0xf] }
 0x1ad   : > { %984 = vst [vmem:[%s8997_s23 + $0x648] sm:$0xf] %v983_v18  ;;  %v1111_v18 = vld [vmem:[%s8993_s11 + $0x1d20] sm:$0xf] }
 0x1ae   : > { %986 = vst [vmem:[%s8997_s23 + $0x64c] sm:$0xf] %v985_v19  ;;  %v1113_v19 = vld [vmem:[%s8993_s11 + $0x1d30] sm:$0xf] }
 0x1af   : > { %988 = vst [vmem:[%s8997_s23 + $0x650] sm:$0xf] %v987_v20  ;;  %v1115_v20 = vld [vmem:[%s8993_s11 + $0x1d40] sm:$0xf] }
 0x1b0   : > { %990 = vst [vmem:[%s8997_s23 + $0x654] sm:$0xf] %v989_v21  ;;  %v1117_v21 = vld [vmem:[%s8993_s11 + $0x1d50] sm:$0xf] }
 0x1b1   : > { %992 = vst [vmem:[%s8997_s23 + $0x658] sm:$0xf] %v991_v22  ;;  %v1119_v22 = vld [vmem:[%s8993_s11 + $0x1d60] sm:$0xf] }
 0x1b2   : > { %994 = vst [vmem:[%s8997_s23 + $0x65c] sm:$0xf] %v993_v23  ;;  %v1121_v23 = vld [vmem:[%s8993_s11 + $0x1d70] sm:$0xf] }
 0x1b3   : > { %996 = vst [vmem:[%s8997_s23 + $0x660] sm:$0xf] %v995_v24  ;;  %v1123_v24 = vld [vmem:[%s8993_s11 + $0x1d80] sm:$0xf] }
 0x1b4   : > { %998 = vst [vmem:[%s8997_s23 + $0x664] sm:$0xf] %v997_v25  ;;  %v1125_v25 = vld [vmem:[%s8993_s11 + $0x1d90] sm:$0xf] }
 0x1b5   : > { %1000 = vst [vmem:[%s8997_s23 + $0x668] sm:$0xf] %v999_v26  ;;  %v1127_v26 = vld [vmem:[%s8993_s11 + $0x1da0] sm:$0xf] }
 0x1b6   : > { %1002 = vst [vmem:[%s8997_s23 + $0x66c] sm:$0xf] %v1001_v27  ;;  %v1129_v27 = vld [vmem:[%s8993_s11 + $0x1db0] sm:$0xf] }
 0x1b7   : > { %1004 = vst [vmem:[%s8997_s23 + $0x670] sm:$0xf] %v1003_v28  ;;  %v1131_v28 = vld [vmem:[%s8993_s11 + $0x1dc0] sm:$0xf] }
 0x1b8   : > { %1006 = vst [vmem:[%s8997_s23 + $0x674] sm:$0xf] %v1005_v29  ;;  %v1133_v29 = vld [vmem:[%s8993_s11 + $0x1dd0] sm:$0xf] }
 0x1b9   : > { %1008 = vst [vmem:[%s8997_s23 + $0x678] sm:$0xf] %v1007_v30  ;;  %v1135_v30 = vld [vmem:[%s8993_s11 + $0x1de0] sm:$0xf] }
 0x1ba   : > { %1010 = vst [vmem:[%s8997_s23 + $0x67c] sm:$0xf] %v1009_v31  ;;  %v1137_v31 = vld [vmem:[%s8993_s11 + $0x1df0] sm:$0xf] }
 0x1bb   : > { %1012 = vst [vmem:[%s8997_s23 + $0x680] sm:$0xf] %v1011_v32  ;;  %v1139_v32 = vld [vmem:[%s8993_s11 + $0x1e00] sm:$0xf] }
 0x1bc   : > { %1014 = vst [vmem:[%s8997_s23 + $0x684] sm:$0xf] %v1013_v33  ;;  %v1141_v33 = vld [vmem:[%s8993_s11 + $0x1e10] sm:$0xf] }
 0x1bd   : > { %1016 = vst [vmem:[%s8997_s23 + $0x688] sm:$0xf] %v1015_v34  ;;  %v1143_v34 = vld [vmem:[%s8993_s11 + $0x1e20] sm:$0xf] }
 0x1be   : > { %1018 = vst [vmem:[%s8997_s23 + $0x68c] sm:$0xf] %v1017_v35  ;;  %v1145_v35 = vld [vmem:[%s8993_s11 + $0x1e30] sm:$0xf] }
 0x1bf   : > { %1020 = vst [vmem:[%s8997_s23 + $0x690] sm:$0xf] %v1019_v36  ;;  %v1147_v36 = vld [vmem:[%s8993_s11 + $0x1e40] sm:$0xf] }
 0x1c0   : > { %1022 = vst [vmem:[%s8997_s23 + $0x694] sm:$0xf] %v1021_v37  ;;  %v1149_v37 = vld [vmem:[%s8993_s11 + $0x1e50] sm:$0xf] }
 0x1c1   : > { %1024 = vst [vmem:[%s8997_s23 + $0x698] sm:$0xf] %v1023_v38  ;;  %v1151_v38 = vld [vmem:[%s8993_s11 + $0x1e60] sm:$0xf] }
 0x1c2   : > { %1026 = vst [vmem:[%s8997_s23 + $0x69c] sm:$0xf] %v1025_v39  ;;  %v1153_v39 = vld [vmem:[%s8993_s11 + $0x1e70] sm:$0xf] }
 0x1c3   : > { %1028 = vst [vmem:[%s8997_s23 + $0x6a0] sm:$0xf] %v1027_v40  ;;  %v1155_v40 = vld [vmem:[%s8993_s11 + $0x1e80] sm:$0xf] }
 0x1c4   : > { %1030 = vst [vmem:[%s8997_s23 + $0x6a4] sm:$0xf] %v1029_v41  ;;  %v1157_v41 = vld [vmem:[%s8993_s11 + $0x1e90] sm:$0xf] }
 0x1c5   : > { %1032 = vst [vmem:[%s8997_s23 + $0x6a8] sm:$0xf] %v1031_v42  ;;  %v1159_v42 = vld [vmem:[%s8993_s11 + $0x1ea0] sm:$0xf] }
 0x1c6   : > { %1034 = vst [vmem:[%s8997_s23 + $0x6ac] sm:$0xf] %v1033_v43  ;;  %v1161_v43 = vld [vmem:[%s8993_s11 + $0x1eb0] sm:$0xf] }
 0x1c7   : > { %1036 = vst [vmem:[%s8997_s23 + $0x6b0] sm:$0xf] %v1035_v44  ;;  %v1163_v44 = vld [vmem:[%s8993_s11 + $0x1ec0] sm:$0xf] }
 0x1c8   : > { %1038 = vst [vmem:[%s8997_s23 + $0x6b4] sm:$0xf] %v1037_v45  ;;  %v1165_v45 = vld [vmem:[%s8993_s11 + $0x1ed0] sm:$0xf] }
 0x1c9   : > { %1040 = vst [vmem:[%s8997_s23 + $0x6b8] sm:$0xf] %v1039_v46  ;;  %v1167_v46 = vld [vmem:[%s8993_s11 + $0x1ee0] sm:$0xf] }
 0x1ca   : > { %1042 = vst [vmem:[%s8997_s23 + $0x6bc] sm:$0xf] %v1041_v47  ;;  %v1169_v47 = vld [vmem:[%s8993_s11 + $0x1ef0] sm:$0xf] }
 0x1cb   : > { %1044 = vst [vmem:[%s8997_s23 + $0x6c0] sm:$0xf] %v1043_v48  ;;  %v1171_v48 = vld [vmem:[%s8993_s11 + $0x1f00] sm:$0xf] }
 0x1cc   : > { %1046 = vst [vmem:[%s8997_s23 + $0x6c4] sm:$0xf] %v1045_v49  ;;  %v1173_v49 = vld [vmem:[%s8993_s11 + $0x1f10] sm:$0xf] }
 0x1cd   : > { %1048 = vst [vmem:[%s8997_s23 + $0x6c8] sm:$0xf] %v1047_v50  ;;  %v1175_v50 = vld [vmem:[%s8993_s11 + $0x1f20] sm:$0xf] }
 0x1ce   : > { %1050 = vst [vmem:[%s8997_s23 + $0x6cc] sm:$0xf] %v1049_v51  ;;  %v1177_v51 = vld [vmem:[%s8993_s11 + $0x1f30] sm:$0xf] }
 0x1cf   : > { %1052 = vst [vmem:[%s8997_s23 + $0x6d0] sm:$0xf] %v1051_v52  ;;  %v1179_v52 = vld [vmem:[%s8993_s11 + $0x1f40] sm:$0xf] }
 0x1d0   : > { %1054 = vst [vmem:[%s8997_s23 + $0x6d4] sm:$0xf] %v1053_v53  ;;  %v1181_v53 = vld [vmem:[%s8993_s11 + $0x1f50] sm:$0xf] }
 0x1d1   : > { %1056 = vst [vmem:[%s8997_s23 + $0x6d8] sm:$0xf] %v1055_v54  ;;  %v1183_v54 = vld [vmem:[%s8993_s11 + $0x1f60] sm:$0xf] }
 0x1d2   : > { %1058 = vst [vmem:[%s8997_s23 + $0x6dc] sm:$0xf] %v1057_v55  ;;  %v1185_v55 = vld [vmem:[%s8993_s11 + $0x1f70] sm:$0xf] }
 0x1d3   : > { %1060 = vst [vmem:[%s8997_s23 + $0x6e0] sm:$0xf] %v1059_v56  ;;  %v1187_v56 = vld [vmem:[%s8993_s11 + $0x1f80] sm:$0xf] }
 0x1d4   : > { %1062 = vst [vmem:[%s8997_s23 + $0x6e4] sm:$0xf] %v1061_v57  ;;  %v1189_v57 = vld [vmem:[%s8993_s11 + $0x1f90] sm:$0xf] }
 0x1d5   : > { %1064 = vst [vmem:[%s8997_s23 + $0x6e8] sm:$0xf] %v1063_v58  ;;  %v1191_v58 = vld [vmem:[%s8993_s11 + $0x1fa0] sm:$0xf] }
 0x1d6   : > { %1066 = vst [vmem:[%s8997_s23 + $0x6ec] sm:$0xf] %v1065_v59  ;;  %v1193_v59 = vld [vmem:[%s8993_s11 + $0x1fb0] sm:$0xf] }
 0x1d7   : > { %1068 = vst [vmem:[%s8997_s23 + $0x6f0] sm:$0xf] %v1067_v60  ;;  %v1195_v60 = vld [vmem:[%s8993_s11 + $0x1fc0] sm:$0xf] }
 0x1d8   : > { %1070 = vst [vmem:[%s8997_s23 + $0x6f4] sm:$0xf] %v1069_v61  ;;  %v1197_v61 = vld [vmem:[%s8993_s11 + $0x1fd0] sm:$0xf] }
 0x1d9   : > { %1072 = vst [vmem:[%s8997_s23 + $0x6f8] sm:$0xf] %v1071_v62  ;;  %v1199_v62 = vld [vmem:[%s8993_s11 + $0x1fe0] sm:$0xf] }
 0x1da   : > { %1074 = vst [vmem:[%s8997_s23 + $0x6fc] sm:$0xf] %v1073_v63  ;;  %v1201_v63 = vld [vmem:[%s8993_s11 + $0x1ff0] sm:$0xf] }
 0x1db   : > { %1076 = vst [vmem:[%s8997_s23 + $0x700] sm:$0xf] %v1075_v0 }
 0x1dc   : > { %1078 = vst [vmem:[%s8997_s23 + $0x704] sm:$0xf] %v1077_v1 }
 0x1dd   : > { %1080 = vst [vmem:[%s8997_s23 + $0x708] sm:$0xf] %v1079_v2 }
 0x1de   : > { %1082 = vst [vmem:[%s8997_s23 + $0x70c] sm:$0xf] %v1081_v3 }
 0x1df   : > { %1084 = vst [vmem:[%s8997_s23 + $0x710] sm:$0xf] %v1083_v4 }
 0x1e0   : > { %1086 = vst [vmem:[%s8997_s23 + $0x714] sm:$0xf] %v1085_v5 }
 0x1e1   : > { %1088 = vst [vmem:[%s8997_s23 + $0x718] sm:$0xf] %v1087_v6 }
 0x1e2   : > { %1090 = vst [vmem:[%s8997_s23 + $0x71c] sm:$0xf] %v1089_v7 }
 0x1e3   : > { %1092 = vst [vmem:[%s8997_s23 + $0x720] sm:$0xf] %v1091_v8 }
 0x1e4   : > { %1094 = vst [vmem:[%s8997_s23 + $0x724] sm:$0xf] %v1093_v9 }
 0x1e5   : > { %1096 = vst [vmem:[%s8997_s23 + $0x728] sm:$0xf] %v1095_v10 }
 0x1e6   : > { %1098 = vst [vmem:[%s8997_s23 + $0x72c] sm:$0xf] %v1097_v11 }
 0x1e7   : > { %1100 = vst [vmem:[%s8997_s23 + $0x730] sm:$0xf] %v1099_v12 }
 0x1e8   : > { %1102 = vst [vmem:[%s8997_s23 + $0x734] sm:$0xf] %v1101_v13 }
 0x1e9   : > { %1104 = vst [vmem:[%s8997_s23 + $0x738] sm:$0xf] %v1103_v14 }
 0x1ea   : > { %1106 = vst [vmem:[%s8997_s23 + $0x73c] sm:$0xf] %v1105_v15 }
 0x1eb   : > { %1108 = vst [vmem:[%s8997_s23 + $0x740] sm:$0xf] %v1107_v16 }
 0x1ec   : > { %1110 = vst [vmem:[%s8997_s23 + $0x744] sm:$0xf] %v1109_v17 }
 0x1ed   : > { %1112 = vst [vmem:[%s8997_s23 + $0x748] sm:$0xf] %v1111_v18 }
 0x1ee   : > { %1114 = vst [vmem:[%s8997_s23 + $0x74c] sm:$0xf] %v1113_v19 }
 0x1ef   : > { %1116 = vst [vmem:[%s8997_s23 + $0x750] sm:$0xf] %v1115_v20 }
 0x1f0   : > { %1118 = vst [vmem:[%s8997_s23 + $0x754] sm:$0xf] %v1117_v21 }
 0x1f1   : > { %1120 = vst [vmem:[%s8997_s23 + $0x758] sm:$0xf] %v1119_v22 }
 0x1f2   : > { %1122 = vst [vmem:[%s8997_s23 + $0x75c] sm:$0xf] %v1121_v23 }
 0x1f3   : > { %1124 = vst [vmem:[%s8997_s23 + $0x760] sm:$0xf] %v1123_v24 }
 0x1f4   : > { %1126 = vst [vmem:[%s8997_s23 + $0x764] sm:$0xf] %v1125_v25 }
 0x1f5   : > { %1128 = vst [vmem:[%s8997_s23 + $0x768] sm:$0xf] %v1127_v26 }
 0x1f6   : > { %1130 = vst [vmem:[%s8997_s23 + $0x76c] sm:$0xf] %v1129_v27 }
 0x1f7   : > { %1132 = vst [vmem:[%s8997_s23 + $0x770] sm:$0xf] %v1131_v28 }
 0x1f8   : > { %1134 = vst [vmem:[%s8997_s23 + $0x774] sm:$0xf] %v1133_v29 }
 0x1f9   : > { %1136 = vst [vmem:[%s8997_s23 + $0x778] sm:$0xf] %v1135_v30 }
 0x1fa   : > { %1138 = vst [vmem:[%s8997_s23 + $0x77c] sm:$0xf] %v1137_v31 }
 0x1fb   : > { %1140 = vst [vmem:[%s8997_s23 + $0x780] sm:$0xf] %v1139_v32 }
 0x1fc   : > { %1142 = vst [vmem:[%s8997_s23 + $0x784] sm:$0xf] %v1141_v33 }
 0x1fd   : > { %1144 = vst [vmem:[%s8997_s23 + $0x788] sm:$0xf] %v1143_v34 }
 0x1fe   : > { %1146 = vst [vmem:[%s8997_s23 + $0x78c] sm:$0xf] %v1145_v35 }
 0x1ff   : > { %1148 = vst [vmem:[%s8997_s23 + $0x790] sm:$0xf] %v1147_v36 }
 0x200   : > { %1150 = vst [vmem:[%s8997_s23 + $0x794] sm:$0xf] %v1149_v37 }
 0x201   : > { %1152 = vst [vmem:[%s8997_s23 + $0x798] sm:$0xf] %v1151_v38 }
 0x202   : > { %1154 = vst [vmem:[%s8997_s23 + $0x79c] sm:$0xf] %v1153_v39 }
 0x203   : > { %1156 = vst [vmem:[%s8997_s23 + $0x7a0] sm:$0xf] %v1155_v40 }
 0x204   : > { %1158 = vst [vmem:[%s8997_s23 + $0x7a4] sm:$0xf] %v1157_v41 }
 0x205   : > { %1160 = vst [vmem:[%s8997_s23 + $0x7a8] sm:$0xf] %v1159_v42 }
 0x206   : > { %1162 = vst [vmem:[%s8997_s23 + $0x7ac] sm:$0xf] %v1161_v43 }
 0x207   : > { %1164 = vst [vmem:[%s8997_s23 + $0x7b0] sm:$0xf] %v1163_v44 }
 0x208   : > { %1166 = vst [vmem:[%s8997_s23 + $0x7b4] sm:$0xf] %v1165_v45 }
 0x209   : > { %1168 = vst [vmem:[%s8997_s23 + $0x7b8] sm:$0xf] %v1167_v46 }
 0x20a   : > { %1170 = vst [vmem:[%s8997_s23 + $0x7bc] sm:$0xf] %v1169_v47 }
 0x20b   : > { %1172 = vst [vmem:[%s8997_s23 + $0x7c0] sm:$0xf] %v1171_v48 }
 0x20c   : > { %1174 = vst [vmem:[%s8997_s23 + $0x7c4] sm:$0xf] %v1173_v49 }
 0x20d   : > { %1176 = vst [vmem:[%s8997_s23 + $0x7c8] sm:$0xf] %v1175_v50 }
 0x20e   : > { %1178 = vst [vmem:[%s8997_s23 + $0x7cc] sm:$0xf] %v1177_v51 }
 0x20f   : > { %1180 = vst [vmem:[%s8997_s23 + $0x7d0] sm:$0xf] %v1179_v52 }
 0x210   : > { %1182 = vst [vmem:[%s8997_s23 + $0x7d4] sm:$0xf] %v1181_v53 }
 0x211   : > { %1184 = vst [vmem:[%s8997_s23 + $0x7d8] sm:$0xf] %v1183_v54 }
 0x212   : > { %1186 = vst [vmem:[%s8997_s23 + $0x7dc] sm:$0xf] %v1185_v55 }
 0x213   : > { %1188 = vst [vmem:[%s8997_s23 + $0x7e0] sm:$0xf] %v1187_v56 }
 0x214   : > { %1190 = vst [vmem:[%s8997_s23 + $0x7e4] sm:$0xf] %v1189_v57 }
 0x215   : > { %1192 = vst [vmem:[%s8997_s23 + $0x7e8] sm:$0xf] %v1191_v58 }
 0x216   : > { %1194 = vst [vmem:[%s8997_s23 + $0x7ec] sm:$0xf] %v1193_v59 }
 0x217   : > { %1196 = vst [vmem:[%s8997_s23 + $0x7f0] sm:$0xf] %v1195_v60 }
 0x218   : > { %1198 = vst [vmem:[%s8997_s23 + $0x7f4] sm:$0xf] %v1197_v61 }
 0x219   : > { %1200 = vst [vmem:[%s8997_s23 + $0x7f8] sm:$0xf] %v1199_v62 }
 0x21a   : > { %1202 = vst [vmem:[%s8997_s23 + $0x7fc] sm:$0xf] %v1201_v63 }
 0x21b PF: > { %p7285_p11 = scmp.ge.s32.totalorder %s8884_s20, 1  ;;  %p4329_p12 = scmp.lt.s32.totalorder %s8884_s20, 9 }
 0x21d   : > { %p4330_p13 = pnand %p7285_p11, %p4329_p12 }
 0x21e   : > { %s4336_s24 = sand.u32 (!%p4330_p13), 1, %s8860_s14   ;;  %p4366_p0 = scmp.lt.s32.totalorder (!%p4330_p13), %s8868_s16, 1 }
 0x21f   : > { %4333 = sbr.rel (%p4330_p13) target bundleno = 1025 (0x401), region = 80  ;;  %s7286_s25 = sshll.u32 (!%p4330_p13), %s4336_s24, 11 }
 0x220   : > { %s10024_s26 = scalar_lea.vmem (!%p4330_p13), [#allocation2], %s7286_s25  ;;  %p4371_p1 = scmp.lt.s32.totalorder (!%p4330_p13), %s8872_s17, 3 }
 0x221   : > { %s4363_s24 = sand.u32 (!%p4330_p13), 1, %s8852_s12  }
 0x222   : > { %s7287_s25 = sshll.u32 (!%p4330_p13), %s4363_s24, 3 }
 0x224   : > { %v8487_v0 = vld [vmem:[%s10024_s26 + $0x38] sm:$0xff]  ;;  %v8486_v4 = vld [vmem:[%s10024_s26 + $0x30] sm:$0xff]  ;;  %v8485_v8 = vld [vmem:[%s10024_s26 + $0x28] sm:$0xff]  ;;  %s4367_s14 = scalar_select %p4366_p0, %s8868_s16, 1  ;;  %vm7066_vm0 = vcmask 1040384  }
 0x225   : > { %v8495_v1 = vld [vmem:[%s10024_s26 + $0x78] sm:$0xff]  ;;  %6618 = vmatpush.bf16.msra.mxu0 %v8487_v0  ;;  %v8494_v5 = vld [vmem:[%s10024_s26 + $0x70] sm:$0xff]  ;;  %v8493_v9 = vld [vmem:[%s10024_s26 + $0x68] sm:$0xff]  ;;  %s10095_s7 = scalar_select %p4371_p1, %s8872_s17, 3  ;;  %vm7119_vm5 = vsmask.f32 256 }
 0x226   : > { %v8503_v2 = vld [vmem:[%s10024_s26 + $0xb8] sm:$0xff]  ;;  %6632 = vmatpush.bf16.msra.mxu1 %v8495_v1  ;;  %v8502_v6 = vld [vmem:[%s10024_s26 + $0xb0] sm:$0xff]  ;;  %v8501_v10 = vld [vmem:[%s10024_s26 + $0xa8] sm:$0xff]  ;;  %s8447_s27 = sshll.u32 %s4367_s14, 8  ;;  %s8443_s12 = sshll.u32 (%p8975_p9), %s8868_s16, 3 }
 0x227   : > { %v8511_v3 = vld [vmem:[%s10024_s26 + $0xf8] sm:$0xff]  ;;  %6646 = vmatpush.bf16.msra.mxu2 %v8503_v2  ;;  %v8510_v7 = vld [vmem:[%s10024_s26 + $0xf0] sm:$0xff]  ;;  %v8509_v11 = vld [vmem:[%s10024_s26 + $0xe8] sm:$0xff]  ;;  %s10059_s6 = scalar_lea.vmem %s10411_s0, %s8447_s27  ;;  %s4373_s10 = scalar_lea.vmem %s10413_s2, %s10095_s7 }
 0x228   : > { %6660 = vmatpush.bf16.msra.mxu3 %v8511_v3  ;;  %v8484_v12 = vld [vmem:[%s10024_s26 + $0x20] sm:$0xff]  ;;  %v8483_v16 = vld [vmem:[%s10024_s26 + $0x18] sm:$0xff]  ;;  %v8482_v20 = vld [vmem:[%s10024_s26 + $0x10] sm:$0xff]  ;;  %s7132_s14 = sadd.s32 (%p8975_p9), %s8872_s17, %s8443_s12 }
 0x229   : > { %6619 = vmatpush.bf16.msra.mxu0 %v8486_v4  ;;  %v8492_v13 = vld [vmem:[%s10024_s26 + $0x60] sm:$0xff]  ;;  %v8491_v17 = vld [vmem:[%s10024_s26 + $0x58] sm:$0xff]  ;;  %v8490_v21 = vld [vmem:[%s10024_s26 + $0x50] sm:$0xff]  ;;  %s8444_s27 = sshll.u32 (%p8975_p9), %s7132_s14, 2 }
 0x22a   : > { %6633 = vmatpush.bf16.msra.mxu1 %v8494_v5  ;;  %v8500_v14 = vld [vmem:[%s10024_s26 + $0xa0] sm:$0xff]  ;;  %v8499_v18 = vld [vmem:[%s10024_s26 + $0x98] sm:$0xff]  ;;  %v8498_v22 = vld [vmem:[%s10024_s26 + $0x90] sm:$0xff] }
 0x22b   : > { %6647 = vmatpush.bf16.msra.mxu2 %v8502_v6  ;;  %v8508_v15 = vld [vmem:[%s10024_s26 + $0xe0] sm:$0xff]  ;;  %v8507_v19 = vld [vmem:[%s10024_s26 + $0xd8] sm:$0xff]  ;;  %v8506_v23 = vld [vmem:[%s10024_s26 + $0xd0] sm:$0xff] }
 0x22c   : > { %6661 = vmatpush.bf16.msra.mxu3 %v8510_v7  ;;  %v8481_v24 = vld [vmem:[%s10024_s26 + $0x8] sm:$0xff]  ;;  %v8480_v28 = vld [vmem:[%s10024_s26] sm:$0xff]  ;;  %v8519_v32 = vld [vmem:[%s10024_s26 + $0x138] sm:$0xff] }
 0x22d   : > { %6620 = vmatpush.bf16.msra.mxu0 %v8485_v8  ;;  %v8489_v25 = vld [vmem:[%s10024_s26 + $0x48] sm:$0xff]  ;;  %v8488_v29 = vld [vmem:[%s10024_s26 + $0x40] sm:$0xff]  ;;  %v8527_v33 = vld [vmem:[%s10024_s26 + $0x178] sm:$0xff] }
 0x22e   : > { %6634 = vmatpush.bf16.msra.mxu1 %v8493_v9  ;;  %v8497_v26 = vld [vmem:[%s10024_s26 + $0x88] sm:$0xff]  ;;  %v8496_v30 = vld [vmem:[%s10024_s26 + $0x80] sm:$0xff]  ;;  %v8535_v42 = vld [vmem:[%s10024_s26 + $0x1b8] sm:$0xff] }
 0x22f   : > { %6648 = vmatpush.bf16.msra.mxu2 %v8501_v10  ;;  %v8505_v27 = vld [vmem:[%s10024_s26 + $0xc8] sm:$0xff]  ;;  %v8504_v31 = vld [vmem:[%s10024_s26 + $0xc0] sm:$0xff]  ;;  %v8543_v43 = vld [vmem:[%s10024_s26 + $0x1f8] sm:$0xff] }
 0x230   : > { %6662 = vmatpush.bf16.msra.mxu3 %v8509_v11  ;;  %v7292_v34 = vld [vmem:[%s10059_s6] sm:$0xf]  ;;  %v7300_v36 = vld [vmem:[%s10059_s6 + $0x8] sm:$0xf]  ;;  %v8448_v38 = vld [vmem:[%s10059_s6 + $0x4] sm:$0xf] }
 0x231   : > { %6621 = vmatpush.bf16.msra.mxu0 %v8484_v12  ;;  %v8464_v35 = vld [vmem:[%s10059_s6 + $0x7c] sm:$0x10]  ;;  %v8465_v37 = vld [vmem:[%s10059_s6 + $0x84] sm:$0x10]  ;;  %v7294_v39 = vld [vmem:[%s10059_s6 + $0x80] sm:$0x10] }
 0x232   : > { %6635 = vmatpush.bf16.msra.mxu1 %v8492_v13  ;;  %v8449_v40 = vld [vmem:[%s10059_s6 + $0xc] sm:$0xf]  ;;  %v7293_v44 = vor.u32 %v8464_v35, %v7292_v34  ;;  %v7301_v45 = vor.u32 %v8465_v37, %v7300_v36  ;;  %v7297_v46 = vor.u32 %v8448_v38, %v7294_v39  ;;  %v8518_v48 = vld [vmem:[%s10024_s26 + $0x130] sm:$0xff]  ;;  %v8516_v56 = vld [vmem:[%s10024_s26 + $0x120] sm:$0xff] }
 0x233   : > { %6649 = vmatpush.bf16.msra.mxu2 %v8500_v14  ;;  %v7302_v41 = vld [vmem:[%s10059_s6 + $0x88] sm:$0x10]  ;;  %v8526_v49 = vld [vmem:[%s10024_s26 + $0x170] sm:$0xff]  ;;  %v8524_v57 = vld [vmem:[%s10024_s26 + $0x160] sm:$0xff] }
 0x234   : > { %6663 = vmatpush.bf16.msra.mxu3 %v8508_v15  ;;  %v7305_v47 = vor.u32 %v8449_v40, %v7302_v41  ;;  %v8534_v50 = vld [vmem:[%s10024_s26 + $0x1b0] sm:$0xff]  ;;  %v8517_v52 = vld [vmem:[%s10024_s26 + $0x128] sm:$0xff]  ;;  %v8532_v58 = vld [vmem:[%s10024_s26 + $0x1a0] sm:$0xff] }
 0x235   : > { %6622 = vmatpush.bf16.msra.mxu0 %v8483_v16  ;;  %v8542_v51 = vld [vmem:[%s10024_s26 + $0x1f0] sm:$0xff]  ;;  %v8525_v53 = vld [vmem:[%s10024_s26 + $0x168] sm:$0xff]  ;;  %v8540_v59 = vld [vmem:[%s10024_s26 + $0x1e0] sm:$0xff] }
 0x236   : > { %6636 = vmatpush.bf16.msra.mxu1 %v8491_v17  ;;  %v8533_v54 = vld [vmem:[%s10024_s26 + $0x1a8] sm:$0xff]  ;;  %v8515_v60 = vld [vmem:[%s10024_s26 + $0x118] sm:$0xff]  ;;  %v8514_v0 = vld [vmem:[%s10024_s26 + $0x110] sm:$0xff] }
 0x237   : > { %6650 = vmatpush.bf16.msra.mxu2 %v8499_v18  ;;  %v8541_v55 = vld [vmem:[%s10024_s26 + $0x1e8] sm:$0xff]  ;;  %v8523_v61 = vld [vmem:[%s10024_s26 + $0x158] sm:$0xff]  ;;  %v8522_v1 = vld [vmem:[%s10024_s26 + $0x150] sm:$0xff] }
 0x238   : > { %6664 = vmatpush.bf16.msra.mxu3 %v8507_v19  ;;  %v8531_v62 = vld [vmem:[%s10024_s26 + $0x198] sm:$0xff]  ;;  %v8530_v2 = vld [vmem:[%s10024_s26 + $0x190] sm:$0xff]  ;;  %v8513_v4 = vld [vmem:[%s10024_s26 + $0x108] sm:$0xff] }
 0x239   : > { %6623 = vmatpush.bf16.msra.mxu0 %v8482_v20  ;;  %v8539_v63 = vld [vmem:[%s10024_s26 + $0x1d8] sm:$0xff]  ;;  %v8538_v3 = vld [vmem:[%s10024_s26 + $0x1d0] sm:$0xff]  ;;  %v8521_v5 = vld [vmem:[%s10024_s26 + $0x148] sm:$0xff] }
 0x23a   : > { %6637 = vmatpush.bf16.msra.mxu1 %v8490_v21  ;;  %v8529_v6 = vld [vmem:[%s10024_s26 + $0x188] sm:$0xff]  ;;  %v8512_v8 = vld [vmem:[%s10024_s26 + $0x100] sm:$0xff]  ;;  %v8551_v12 = vld [vmem:[%s10024_s26 + $0x238] sm:$0xff] }
 0x23b   : > { %6651 = vmatpush.bf16.msra.mxu2 %v8498_v22  ;;  %v8537_v7 = vld [vmem:[%s10024_s26 + $0x1c8] sm:$0xff]  ;;  %v8520_v9 = vld [vmem:[%s10024_s26 + $0x140] sm:$0xff]  ;;  %v8559_v13 = vld [vmem:[%s10024_s26 + $0x278] sm:$0xff] }
 0x23c   : > { %6665 = vmatpush.bf16.msra.mxu3 %v8506_v23  ;;  %v8528_v10 = vld [vmem:[%s10024_s26 + $0x180] sm:$0xff]  ;;  %v7308_v14 = vld [vmem:[%s10059_s6 + $0x10] sm:$0xf]  ;;  %v7316_v16 = vld [vmem:[%s10059_s6 + $0x18] sm:$0xf] }
 0x23d   : > { %6624 = vmatpush.bf16.msra.mxu0 %v8481_v24  ;;  %v8536_v11 = vld [vmem:[%s10024_s26 + $0x1c0] sm:$0xff]  ;;  %v8466_v15 = vld [vmem:[%s10059_s6 + $0x8c] sm:$0x10]  ;;  %v8467_v17 = vld [vmem:[%s10059_s6 + $0x94] sm:$0x10] }
 0x23e   : > { %6638 = vmatpush.bf16.msra.mxu1 %v8489_v25  ;;  %v8450_v18 = vld [vmem:[%s10059_s6 + $0x14] sm:$0xf]  ;;  %v8451_v20 = vld [vmem:[%s10059_s6 + $0x1c] sm:$0xf]  ;;  %v7309_v24 = vor.u32 %v8466_v15, %v7308_v14  ;;  %v7317_v25 = vor.u32 %v8467_v17, %v7316_v16  ;;  %v8565_v34 = vld [vmem:[%s10024_s26 + $0x2a8] sm:$0xff] }
 0x23f   : > { %6652 = vmatpush.bf16.msra.mxu2 %v8497_v26  ;;  %v7310_v19 = vld [vmem:[%s10059_s6 + $0x90] sm:$0x10]  ;;  %v7318_v21 = vld [vmem:[%s10059_s6 + $0x98] sm:$0x10]  ;;  %v8573_v35 = vld [vmem:[%s10024_s26 + $0x2e8] sm:$0xff] }
 0x240   : > { %6666 = vmatpush.bf16.msra.mxu3 %v8505_v27  ;;  %v8567_v22 = vld [vmem:[%s10024_s26 + $0x2b8] sm:$0xff]  ;;  %v7313_v26 = vor.u32 %v8450_v18, %v7310_v19  ;;  %v7321_v27 = vor.u32 %v8451_v20, %v7318_v21  ;;  %v8548_v36 = vld [vmem:[%s10024_s26 + $0x220] sm:$0xff]  ;;  %v8597_v14 = vld [vmem:[%s10024_s26 + $0x3a8] sm:$0xff] }
 0x241   : > { %6625 = vmatpush.bf16.msra.mxu0 %v8480_v28  ;;  %v8575_v23 = vld [vmem:[%s10024_s26 + $0x2f8] sm:$0xff]  ;;  %v8550_v28 = vld [vmem:[%s10024_s26 + $0x230] sm:$0xff]  ;;  %v8556_v37 = vld [vmem:[%s10024_s26 + $0x260] sm:$0xff] }
 0x242   : > { %6639 = vmatpush.bf16.msra.mxu1 %v8488_v29  ;;  %v8558_v29 = vld [vmem:[%s10024_s26 + $0x270] sm:$0xff]  ;;  %v8564_v38 = vld [vmem:[%s10024_s26 + $0x2a0] sm:$0xff]  ;;  %v8547_v40 = vld [vmem:[%s10024_s26 + $0x218] sm:$0xff] }
 0x243   : > { %6653 = vmatpush.bf16.msra.mxu2 %v8496_v30  ;;  %v8566_v30 = vld [vmem:[%s10024_s26 + $0x2b0] sm:$0xff]  ;;  %v8572_v39 = vld [vmem:[%s10024_s26 + $0x2e0] sm:$0xff]  ;;  %v8555_v41 = vld [vmem:[%s10024_s26 + $0x258] sm:$0xff] }
 0x244   : > { %6667 = vmatpush.bf16.msra.mxu3 %v8504_v31  ;;  %6626 = vmatmul.bf16.vlgmr.msra.gmra.mxu0 %v7293_v44  ;;  %v8574_v31 = vld [vmem:[%s10024_s26 + $0x2f0] sm:$0xff]  ;;  %v8605_v15 = vld [vmem:[%s10024_s26 + $0x3e8] sm:$0xff]  ;;  %v8580_v16 = vld [vmem:[%s10024_s26 + $0x320] sm:$0xff] }
 0x245   : > { %6674 = vmatpush.bf16.msrb.mxu0 %v8519_v32  ;;  %6640 = vmatmul.bf16.vlgmr.msra.gmra.mxu1 %v7297_v46  ;;  %v8549_v32 = vld [vmem:[%s10024_s26 + $0x228] sm:$0xff]  ;;  %v8546_v44 = vld [vmem:[%s10024_s26 + $0x210] sm:$0xff]  ;;  %v8588_v17 = vld [vmem:[%s10024_s26 + $0x360] sm:$0xff] }
 0x246   : > { %6688 = vmatpush.bf16.msrb.mxu1 %v8527_v33  ;;  %6654 = vmatmul.bf16.vlgmr.msra.gmra.mxu2 %v7301_v45  ;;  %v8557_v33 = vld [vmem:[%s10024_s26 + $0x268] sm:$0xff]  ;;  %v8554_v45 = vld [vmem:[%s10024_s26 + $0x250] sm:$0xff]  ;;  %v8596_v18 = vld [vmem:[%s10024_s26 + $0x3a0] sm:$0xff] }
 0x247   : > { %6702 = vmatpush.bf16.msrb.mxu2 %v8535_v42  ;;  %6668 = vmatmul.bf16.vlgmr.msra.gmra.mxu3 %v7305_v47  ;;  %v8563_v42 = vld [vmem:[%s10024_s26 + $0x298] sm:$0xff]  ;;  %v8562_v46 = vld [vmem:[%s10024_s26 + $0x290] sm:$0xff]  ;;  %v8604_v19 = vld [vmem:[%s10024_s26 + $0x3e0] sm:$0xff] }
 0x248   : > { %6716 = vmatpush.bf16.msrb.mxu3 %v8543_v43  ;;  %v8571_v43 = vld [vmem:[%s10024_s26 + $0x2d8] sm:$0xff]  ;;  %v8570_v47 = vld [vmem:[%s10024_s26 + $0x2d0] sm:$0xff]  ;;  %vm7120_vm8 = vmand %vm7066_vm0, %vm7119_vm5 }
 0x249   : > { %6675 = vmatpush.bf16.msrb.mxu0 %v8518_v48  ;;  %v8545_v48 = vld [vmem:[%s10024_s26 + $0x208] sm:$0xff]  ;;  %v8579_v20 = vld [vmem:[%s10024_s26 + $0x318] sm:$0xff] }
 0x24a   : > { %6689 = vmatpush.bf16.msrb.mxu1 %v8526_v49  ;;  %v8553_v49 = vld [vmem:[%s10024_s26 + $0x248] sm:$0xff]  ;;  %v8587_v21 = vld [vmem:[%s10024_s26 + $0x358] sm:$0xff] }
 0x24b   : > { %6703 = vmatpush.bf16.msrb.mxu2 %v8534_v50  ;;  %v8561_v50 = vld [vmem:[%s10024_s26 + $0x288] sm:$0xff] }
 0x24c   : > { %6717 = vmatpush.bf16.msrb.mxu3 %v8542_v51  ;;  %v8569_v51 = vld [vmem:[%s10024_s26 + $0x2c8] sm:$0xff] }
 0x24d   : > { %6676 = vmatpush.bf16.msrb.mxu0 %v8517_v52  ;;  %v8544_v52 = vld [vmem:[%s10024_s26 + $0x200] sm:$0xff] }
 0x24e   : > { %6690 = vmatpush.bf16.msrb.mxu1 %v8525_v53  ;;  %v8552_v53 = vld [vmem:[%s10024_s26 + $0x240] sm:$0xff] }
 0x24f   : > { %6704 = vmatpush.bf16.msrb.mxu2 %v8533_v54  ;;  %v8560_v54 = vld [vmem:[%s10024_s26 + $0x280] sm:$0xff] }
 0x250   : > { %6718 = vmatpush.bf16.msrb.mxu3 %v8541_v55  ;;  %v8568_v55 = vld [vmem:[%s10024_s26 + $0x2c0] sm:$0xff] }
 0x251   : > { %6677 = vmatpush.bf16.msrb.mxu0 %v8516_v56  ;;  %v8583_v56 = vld [vmem:[%s10024_s26 + $0x338] sm:$0xff] }
 0x252   : > { %6691 = vmatpush.bf16.msrb.mxu1 %v8524_v57  ;;  %v8591_v57 = vld [vmem:[%s10024_s26 + $0x378] sm:$0xff] }
 0x253   : > { %6705 = vmatpush.bf16.msrb.mxu2 %v8532_v58  ;;  %v7324_v58 = vld [vmem:[%s10059_s6 + $0x20] sm:$0xf] }
 0x254   : > { %6719 = vmatpush.bf16.msrb.mxu3 %v8540_v59  ;;  %v8468_v59 = vld [vmem:[%s10059_s6 + $0x9c] sm:$0x10] }
 0x255   : > { %6678 = vmatpush.bf16.msrb.mxu0 %v8515_v60  ;;  %v7332_v60 = vld [vmem:[%s10059_s6 + $0x28] sm:$0xf] }
 0x256   : > { %6692 = vmatpush.bf16.msrb.mxu1 %v8523_v61  ;;  %v8469_v61 = vld [vmem:[%s10059_s6 + $0xa4] sm:$0x10] }
 0x257   : > { %6706 = vmatpush.bf16.msrb.mxu2 %v8531_v62  ;;  %v8452_v62 = vld [vmem:[%s10059_s6 + $0x24] sm:$0xf] }
 0x258   : > { %6720 = vmatpush.bf16.msrb.mxu3 %v8539_v63  ;;  %v7326_v63 = vld [vmem:[%s10059_s6 + $0xa0] sm:$0x10] }
 0x259   : > { %6679 = vmatpush.bf16.msrb.mxu0 %v8514_v0  ;;  %v8453_v0 = vld [vmem:[%s10059_s6 + $0x2c] sm:$0xf] }
 0x25a   : > { %6693 = vmatpush.bf16.msrb.mxu1 %v8522_v1  ;;  %v7334_v1 = vld [vmem:[%s10059_s6 + $0xa8] sm:$0x10] }
 0x25b   : > { %6707 = vmatpush.bf16.msrb.mxu2 %v8530_v2  ;;  %v8599_v2 = vld [vmem:[%s10024_s26 + $0x3b8] sm:$0xff] }
 0x25c   : > { %6721 = vmatpush.bf16.msrb.mxu3 %v8538_v3  ;;  %v8607_v3 = vld [vmem:[%s10024_s26 + $0x3f8] sm:$0xff] }
 0x25d   : > { %6680 = vmatpush.bf16.msrb.mxu0 %v8513_v4  ;;  %v7325_v4 = vor.u32 %v8468_v59, %v7324_v58  ;;  %v8629_v58 = vld [vmem:[%s10024_s26 + $0x4a8] sm:$0xff] }
 0x25e   : > { %6694 = vmatpush.bf16.msrb.mxu1 %v8521_v5  ;;  %v7333_v5 = vor.u32 %v8469_v61, %v7332_v60  ;;  %v8637_v59 = vld [vmem:[%s10024_s26 + $0x4e8] sm:$0xff]  ;;  %v8612_v60 = vld [vmem:[%s10024_s26 + $0x420] sm:$0xff] }
 0x25f   : > { %6708 = vmatpush.bf16.msrb.mxu2 %v8529_v6  ;;  %v7329_v6 = vor.u32 %v8452_v62, %v7326_v63  ;;  %v8620_v61 = vld [vmem:[%s10024_s26 + $0x460] sm:$0xff] }
 0x260   : > { %6722 = vmatpush.bf16.msrb.mxu3 %v8537_v7  ;;  %v7337_v7 = vor.u32 %v8453_v0, %v7334_v1  ;;  %v8628_v62 = vld [vmem:[%s10024_s26 + $0x4a0] sm:$0xff]  ;;  %v8611_v0 = vld [vmem:[%s10024_s26 + $0x418] sm:$0xff] }
 0x261   : > { %6681 = vmatpush.bf16.msrb.mxu0 %v8512_v8  ;;  %v8582_v8 = vld [vmem:[%s10024_s26 + $0x330] sm:$0xff]  ;;  %v8636_v63 = vld [vmem:[%s10024_s26 + $0x4e0] sm:$0xff]  ;;  %v8619_v1 = vld [vmem:[%s10024_s26 + $0x458] sm:$0xff] }
 0x262   : > { %6695 = vmatpush.bf16.msrb.mxu1 %v8520_v9  ;;  %v8590_v9 = vld [vmem:[%s10024_s26 + $0x370] sm:$0xff] }
 0x263   : > { %6709 = vmatpush.bf16.msrb.mxu2 %v8528_v10  ;;  %v8598_v10 = vld [vmem:[%s10024_s26 + $0x3b0] sm:$0xff] }
 0x264   : > { %6723 = vmatpush.bf16.msrb.mxu3 %v8536_v11  ;;  %6682 = vmatmul.bf16.vlgmr.msrb.gmra.mxu0 %v7309_v24  ;;  %v8606_v11 = vld [vmem:[%s10024_s26 + $0x3f0] sm:$0xff] }
 0x265   : > { %6730 = vmatpush.bf16.msra.mxu0 %v8551_v12  ;;  %6696 = vmatmul.bf16.vlgmr.msrb.gmra.mxu1 %v7313_v26  ;;  %v8581_v12 = vld [vmem:[%s10024_s26 + $0x328] sm:$0xff]  ;;  %v8578_v24 = vld [vmem:[%s10024_s26 + $0x310] sm:$0xff] }
 0x266   : > { %6744 = vmatpush.bf16.msra.mxu1 %v8559_v13  ;;  %6710 = vmatmul.bf16.vlgmr.msrb.gmra.mxu2 %v7317_v25  ;;  %v8589_v13 = vld [vmem:[%s10024_s26 + $0x368] sm:$0xff]  ;;  %v8586_v25 = vld [vmem:[%s10024_s26 + $0x350] sm:$0xff] }
 0x267   : > { %6758 = vmatpush.bf16.msra.mxu2 %v8567_v22  ;;  %6724 = vmatmul.bf16.vlgmr.msrb.gmra.mxu3 %v7321_v27  ;;  %v8595_v22 = vld [vmem:[%s10024_s26 + $0x398] sm:$0xff]  ;;  %v8594_v26 = vld [vmem:[%s10024_s26 + $0x390] sm:$0xff] }
 0x268   : > { %6772 = vmatpush.bf16.msra.mxu3 %v8575_v23  ;;  %v8603_v23 = vld [vmem:[%s10024_s26 + $0x3d8] sm:$0xff]  ;;  %v8602_v27 = vld [vmem:[%s10024_s26 + $0x3d0] sm:$0xff] }
 0x269   : > { %6731 = vmatpush.bf16.msra.mxu0 %v8550_v28  ;;  %v8577_v28 = vld [vmem:[%s10024_s26 + $0x308] sm:$0xff] }
 0x26a   : > { %6745 = vmatpush.bf16.msra.mxu1 %v8558_v29  ;;  %v8585_v29 = vld [vmem:[%s10024_s26 + $0x348] sm:$0xff] }
 0x26b   : > { %6759 = vmatpush.bf16.msra.mxu2 %v8566_v30  ;;  %v8593_v30 = vld [vmem:[%s10024_s26 + $0x388] sm:$0xff] }
 0x26c   : > { %6773 = vmatpush.bf16.msra.mxu3 %v8574_v31  ;;  %v8601_v31 = vld [vmem:[%s10024_s26 + $0x3c8] sm:$0xff] }
 0x26d   : > { %6732 = vmatpush.bf16.msra.mxu0 %v8549_v32  ;;  %v8576_v32 = vld [vmem:[%s10024_s26 + $0x300] sm:$0xff] }
 0x26e   : > { %6746 = vmatpush.bf16.msra.mxu1 %v8557_v33  ;;  %v8584_v33 = vld [vmem:[%s10024_s26 + $0x340] sm:$0xff] }
 0x26f   : > { %6760 = vmatpush.bf16.msra.mxu2 %v8565_v34  ;;  %v8592_v34 = vld [vmem:[%s10024_s26 + $0x380] sm:$0xff] }
 0x270   : > { %6774 = vmatpush.bf16.msra.mxu3 %v8573_v35  ;;  %v8600_v35 = vld [vmem:[%s10024_s26 + $0x3c0] sm:$0xff] }
 0x271   : > { %6733 = vmatpush.bf16.msra.mxu0 %v8548_v36  ;;  %v8615_v36 = vld [vmem:[%s10024_s26 + $0x438] sm:$0xff] }
 0x272   : > { %6747 = vmatpush.bf16.msra.mxu1 %v8556_v37  ;;  %v8623_v37 = vld [vmem:[%s10024_s26 + $0x478] sm:$0xff] }
 0x273   : > { %6761 = vmatpush.bf16.msra.mxu2 %v8564_v38  ;;  %v7340_v38 = vld [vmem:[%s10059_s6 + $0x30] sm:$0xf] }
 0x274   : > { %6775 = vmatpush.bf16.msra.mxu3 %v8572_v39  ;;  %v8470_v39 = vld [vmem:[%s10059_s6 + $0xac] sm:$0x10] }
 0x275   : > { %6734 = vmatpush.bf16.msra.mxu0 %v8547_v40  ;;  %v7348_v40 = vld [vmem:[%s10059_s6 + $0x38] sm:$0xf] }
 0x276   : > { %6748 = vmatpush.bf16.msra.mxu1 %v8555_v41  ;;  %v8471_v41 = vld [vmem:[%s10059_s6 + $0xb4] sm:$0x10] }
 0x277   : > { %6762 = vmatpush.bf16.msra.mxu2 %v8563_v42  ;;  %v8454_v42 = vld [vmem:[%s10059_s6 + $0x34] sm:$0xf] }
 0x278   : > { %6776 = vmatpush.bf16.msra.mxu3 %v8571_v43  ;;  %v7342_v43 = vld [vmem:[%s10059_s6 + $0xb0] sm:$0x10] }
 0x279   : > { %6735 = vmatpush.bf16.msra.mxu0 %v8546_v44  ;;  %v8455_v44 = vld [vmem:[%s10059_s6 + $0x3c] sm:$0xf] }
 0x27a   : > { %6749 = vmatpush.bf16.msra.mxu1 %v8554_v45  ;;  %v7350_v45 = vld [vmem:[%s10059_s6 + $0xb8] sm:$0x10] }
 0x27b   : > { %6763 = vmatpush.bf16.msra.mxu2 %v8562_v46  ;;  %v8631_v46 = vld [vmem:[%s10024_s26 + $0x4b8] sm:$0xff] }
 0x27c   : > { %6777 = vmatpush.bf16.msra.mxu3 %v8570_v47  ;;  %v8639_v47 = vld [vmem:[%s10024_s26 + $0x4f8] sm:$0xff] }
 0x27d   : > { %6736 = vmatpush.bf16.msra.mxu0 %v8545_v48  ;;  %v7341_v48 = vor.u32 %v8470_v39, %v7340_v38  ;;  %v10256_v38 = vld [vmem:[%s4373_s10] ss:$0 sm:$0xff]  ;;  %v8661_v39 = vld [vmem:[%s10024_s26 + $0x5a8] sm:$0xff] }
 0x27e   : > { %6750 = vmatpush.bf16.msra.mxu1 %v8553_v49  ;;  %v7349_v49 = vor.u32 %v8471_v41, %v7348_v40  ;;  %v8669_v40 = vld [vmem:[%s10024_s26 + $0x5e8] sm:$0xff] }
 0x27f   : > { %6764 = vmatpush.bf16.msra.mxu2 %v8561_v50  ;;  %v7345_v50 = vor.u32 %v8454_v42, %v7342_v43  ;;  %v8644_v42 = vld [vmem:[%s10024_s26 + $0x520] sm:$0xff] }
 0x280   : > { %6778 = vmatpush.bf16.msra.mxu3 %v8569_v51  ;;  %v7353_v51 = vor.u32 %v8455_v44, %v7350_v45  ;;  %v8652_v43 = vld [vmem:[%s10024_s26 + $0x560] sm:$0xff] }
 0x281   : > { %6737 = vmatpush.bf16.msra.mxu0 %v8544_v52  ;;  %v8614_v52 = vld [vmem:[%s10024_s26 + $0x430] sm:$0xff]  ;;  %v8660_v45 = vld [vmem:[%s10024_s26 + $0x5a0] sm:$0xff] }
 0x282   : > { %6751 = vmatpush.bf16.msra.mxu1 %v8552_v53  ;;  %v8622_v53 = vld [vmem:[%s10024_s26 + $0x470] sm:$0xff] }
 0x283   : > { %6765 = vmatpush.bf16.msra.mxu2 %v8560_v54  ;;  %v8630_v54 = vld [vmem:[%s10024_s26 + $0x4b0] sm:$0xff] }
 0x284   : > { %6779 = vmatpush.bf16.msra.mxu3 %v8568_v55  ;;  %6738 = vmatmul.bf16.vlgmr.msra.gmra.mxu0 %v7325_v4  ;;  %v8638_v55 = vld [vmem:[%s10024_s26 + $0x4f0] sm:$0xff] }
 0x285   : > { %6786 = vmatpush.bf16.msrb.mxu0 %v8583_v56  ;;  %6752 = vmatmul.bf16.vlgmr.msra.gmra.mxu1 %v7329_v6  ;;  %v8613_v56 = vld [vmem:[%s10024_s26 + $0x428] sm:$0xff]  ;;  %v8610_v4 = vld [vmem:[%s10024_s26 + $0x410] sm:$0xff] }
 0x286   : > { %6800 = vmatpush.bf16.msrb.mxu1 %v8591_v57  ;;  %6766 = vmatmul.bf16.vlgmr.msra.gmra.mxu2 %v7333_v5  ;;  %v8621_v57 = vld [vmem:[%s10024_s26 + $0x468] sm:$0xff]  ;;  %v8618_v5 = vld [vmem:[%s10024_s26 + $0x450] sm:$0xff] }
 0x287   : > { %6814 = vmatpush.bf16.msrb.mxu2 %v8599_v2  ;;  %6780 = vmatmul.bf16.vlgmr.msra.gmra.mxu3 %v7337_v7  ;;  %v8627_v2 = vld [vmem:[%s10024_s26 + $0x498] sm:$0xff]  ;;  %v8626_v6 = vld [vmem:[%s10024_s26 + $0x490] sm:$0xff] }
 0x288   : > { %6828 = vmatpush.bf16.msrb.mxu3 %v8607_v3  ;;  %v8635_v3 = vld [vmem:[%s10024_s26 + $0x4d8] sm:$0xff]  ;;  %v8634_v7 = vld [vmem:[%s10024_s26 + $0x4d0] sm:$0xff] }
 0x289   : > { %6787 = vmatpush.bf16.msrb.mxu0 %v8582_v8  ;;  %v8609_v8 = vld [vmem:[%s10024_s26 + $0x408] sm:$0xff] }
 0x28a   : > { %6801 = vmatpush.bf16.msrb.mxu1 %v8590_v9  ;;  %v8617_v9 = vld [vmem:[%s10024_s26 + $0x448] sm:$0xff] }
 0x28b   : > { %6815 = vmatpush.bf16.msrb.mxu2 %v8598_v10  ;;  %v8625_v10 = vld [vmem:[%s10024_s26 + $0x488] sm:$0xff] }
 0x28c   : > { %6829 = vmatpush.bf16.msrb.mxu3 %v8606_v11  ;;  %v8633_v11 = vld [vmem:[%s10024_s26 + $0x4c8] sm:$0xff] }
 0x28d   : > { %6788 = vmatpush.bf16.msrb.mxu0 %v8581_v12  ;;  %v8608_v12 = vld [vmem:[%s10024_s26 + $0x400] sm:$0xff] }
 0x28e   : > { %6802 = vmatpush.bf16.msrb.mxu1 %v8589_v13  ;;  %v8616_v13 = vld [vmem:[%s10024_s26 + $0x440] sm:$0xff] }
 0x28f   : > { %6816 = vmatpush.bf16.msrb.mxu2 %v8597_v14  ;;  %v8624_v14 = vld [vmem:[%s10024_s26 + $0x480] sm:$0xff] }
 0x290   : > { %6830 = vmatpush.bf16.msrb.mxu3 %v8605_v15  ;;  %v8632_v15 = vld [vmem:[%s10024_s26 + $0x4c0] sm:$0xff] }
 0x291   : > { %6789 = vmatpush.bf16.msrb.mxu0 %v8580_v16  ;;  %v8647_v16 = vld [vmem:[%s10024_s26 + $0x538] sm:$0xff] }
 0x292   : > { %6803 = vmatpush.bf16.msrb.mxu1 %v8588_v17  ;;  %v8655_v17 = vld [vmem:[%s10024_s26 + $0x578] sm:$0xff] }
 0x293   : > { %6817 = vmatpush.bf16.msrb.mxu2 %v8596_v18  ;;  %v7356_v18 = vld [vmem:[%s10059_s6 + $0x40] sm:$0xf] }
 0x294   : > { %6831 = vmatpush.bf16.msrb.mxu3 %v8604_v19  ;;  %v8472_v19 = vld [vmem:[%s10059_s6 + $0xbc] sm:$0x10] }
 0x295   : > { %6790 = vmatpush.bf16.msrb.mxu0 %v8579_v20  ;;  %v7364_v20 = vld [vmem:[%s10059_s6 + $0x48] sm:$0xf] }
 0x296   : > { %6804 = vmatpush.bf16.msrb.mxu1 %v8587_v21  ;;  %v8473_v21 = vld [vmem:[%s10059_s6 + $0xc4] sm:$0x10] }
 0x297   : > { %6818 = vmatpush.bf16.msrb.mxu2 %v8595_v22  ;;  %v8456_v22 = vld [vmem:[%s10059_s6 + $0x44] sm:$0xf] }
 0x298   : > { %6832 = vmatpush.bf16.msrb.mxu3 %v8603_v23  ;;  %v7358_v23 = vld [vmem:[%s10059_s6 + $0xc0] sm:$0x10] }
 0x299   : > { %6791 = vmatpush.bf16.msrb.mxu0 %v8578_v24  ;;  %v8457_v24 = vld [vmem:[%s10059_s6 + $0x4c] sm:$0xf] }
 0x29a   : > { %6805 = vmatpush.bf16.msrb.mxu1 %v8586_v25  ;;  %v7366_v25 = vld [vmem:[%s10059_s6 + $0xc8] sm:$0x10] }
 0x29b   : > { %6819 = vmatpush.bf16.msrb.mxu2 %v8594_v26  ;;  %v8663_v26 = vld [vmem:[%s10024_s26 + $0x5b8] sm:$0xff] }
 0x29c   : > { %6833 = vmatpush.bf16.msrb.mxu3 %v8602_v27  ;;  %v8671_v27 = vld [vmem:[%s10024_s26 + $0x5f8] sm:$0xff] }
 0x29d   : > { %6792 = vmatpush.bf16.msrb.mxu0 %v8577_v28  ;;  %v7357_v28 = vor.u32 %v8472_v19, %v7356_v18 }
 0x29e   : > { %6806 = vmatpush.bf16.msrb.mxu1 %v8585_v29  ;;  %v7365_v29 = vor.u32 %v8473_v21, %v7364_v20  ;;  %v8678_v21 = vld [vmem:[%s10024_s26 + $0x630] sm:$0xff] }
 0x29f   : > { %6820 = vmatpush.bf16.msrb.mxu2 %v8593_v30  ;;  %v7361_v30 = vor.u32 %v8456_v22, %v7358_v23  ;;  %v8686_v22 = vld [vmem:[%s10024_s26 + $0x670] sm:$0xff] }
 0x2a0   : > { %6834 = vmatpush.bf16.msrb.mxu3 %v8601_v31  ;;  %v7369_v31 = vor.u32 %v8457_v24, %v7366_v25  ;;  %v8694_v23 = vld [vmem:[%s10024_s26 + $0x6b0] sm:$0xff]  ;;  %v8677_v25 = vld [vmem:[%s10024_s26 + $0x628] sm:$0xff] }
 0x2a1   : > { %6793 = vmatpush.bf16.msrb.mxu0 %v8576_v32  ;;  %v8646_v32 = vld [vmem:[%s10024_s26 + $0x530] sm:$0xff] }
 0x2a2   : > { %6807 = vmatpush.bf16.msrb.mxu1 %v8584_v33  ;;  %v8654_v33 = vld [vmem:[%s10024_s26 + $0x570] sm:$0xff] }
 0x2a3   : > { %6821 = vmatpush.bf16.msrb.mxu2 %v8592_v34  ;;  %v8662_v34 = vld [vmem:[%s10024_s26 + $0x5b0] sm:$0xff] }
 0x2a4   : > { %6835 = vmatpush.bf16.msrb.mxu3 %v8600_v35  ;;  %6794 = vmatmul.bf16.vlgmr.msrb.gmra.mxu0 %v7341_v48  ;;  %v8670_v35 = vld [vmem:[%s10024_s26 + $0x5f0] sm:$0xff] }
 0x2a5   : > { %6842 = vmatpush.bf16.msra.mxu0 %v8615_v36  ;;  %6808 = vmatmul.bf16.vlgmr.msrb.gmra.mxu1 %v7345_v50  ;;  %v8645_v36 = vld [vmem:[%s10024_s26 + $0x528] sm:$0xff]  ;;  %v8651_v50 = vld [vmem:[%s10024_s26 + $0x558] sm:$0xff]  ;;  %v8702_v24 = vld [vmem:[%s10024_s26 + $0x6f0] sm:$0xff] }
 0x2a6   : > { %6856 = vmatpush.bf16.msra.mxu1 %v8623_v37  ;;  %6822 = vmatmul.bf16.vlgmr.msrb.gmra.mxu2 %v7349_v49  ;;  %v8653_v37 = vld [vmem:[%s10024_s26 + $0x568] sm:$0xff]  ;;  %v8643_v49 = vld [vmem:[%s10024_s26 + $0x518] sm:$0xff] }
 0x2a7   : > { %6870 = vmatpush.bf16.msra.mxu2 %v8631_v46  ;;  %6836 = vmatmul.bf16.vlgmr.msrb.gmra.mxu3 %v7353_v51  ;;  %v8668_v46 = vld [vmem:[%s10024_s26 + $0x5e0] sm:$0xff]  ;;  %v8659_v51 = vld [vmem:[%s10024_s26 + $0x598] sm:$0xff] }
 0x2a8   : > { %6884 = vmatpush.bf16.msra.mxu3 %v8639_v47 }
 0x2a9   : > { %6843 = vmatpush.bf16.msra.mxu0 %v8614_v52  ;;  %v8667_v52 = vld [vmem:[%s10024_s26 + $0x5d8] sm:$0xff] }
 0x2aa   : > { %6857 = vmatpush.bf16.msra.mxu1 %v8622_v53 }
 0x2ab   : > { %6871 = vmatpush.bf16.msra.mxu2 %v8630_v54 }
 0x2ac   : > { %6885 = vmatpush.bf16.msra.mxu3 %v8638_v55 }
 0x2ad   : > { %6844 = vmatpush.bf16.msra.mxu0 %v8613_v56  ;;  %v8642_v56 = vld [vmem:[%s10024_s26 + $0x510] sm:$0xff] }
 0x2ae   : > { %6858 = vmatpush.bf16.msra.mxu1 %v8621_v57  ;;  %v8650_v57 = vld [vmem:[%s10024_s26 + $0x550] sm:$0xff] }
 0x2af   : > { %6872 = vmatpush.bf16.msra.mxu2 %v8629_v58 }
 0x2b0   : > { %6886 = vmatpush.bf16.msra.mxu3 %v8637_v59  ;;  %v8658_v59 = vld [vmem:[%s10024_s26 + $0x590] sm:$0xff] }
 0x2b1   : > { %6845 = vmatpush.bf16.msra.mxu0 %v8612_v60  ;;  %v8666_v60 = vld [vmem:[%s10024_s26 + $0x5d0] sm:$0xff] }
 0x2b2   : > { %6859 = vmatpush.bf16.msra.mxu1 %v8620_v61  ;;  %v8641_v61 = vld [vmem:[%s10024_s26 + $0x508] sm:$0xff] }
 0x2b3   : > { %6873 = vmatpush.bf16.msra.mxu2 %v8628_v62  ;;  %v8649_v62 = vld [vmem:[%s10024_s26 + $0x548] sm:$0xff] }
 0x2b4   : > { %6887 = vmatpush.bf16.msra.mxu3 %v8636_v63  ;;  %v8657_v63 = vld [vmem:[%s10024_s26 + $0x588] sm:$0xff] }
 0x2b5   : > { %6846 = vmatpush.bf16.msra.mxu0 %v8611_v0  ;;  %v8665_v0 = vld [vmem:[%s10024_s26 + $0x5c8] sm:$0xff] }
 0x2b6   : > { %6860 = vmatpush.bf16.msra.mxu1 %v8619_v1  ;;  %v8640_v1 = vld [vmem:[%s10024_s26 + $0x500] sm:$0xff] }
 0x2b7   : > { %6874 = vmatpush.bf16.msra.mxu2 %v8627_v2  ;;  %v8648_v2 = vld [vmem:[%s10024_s26 + $0x540] sm:$0xff] }
 0x2b8   : > { %6888 = vmatpush.bf16.msra.mxu3 %v8635_v3  ;;  %v8656_v3 = vld [vmem:[%s10024_s26 + $0x580] sm:$0xff] }
 0x2b9   : > { %6847 = vmatpush.bf16.msra.mxu0 %v8610_v4  ;;  %v8664_v4 = vld [vmem:[%s10024_s26 + $0x5c0] sm:$0xff] }
 0x2ba   : > { %6861 = vmatpush.bf16.msra.mxu1 %v8618_v5  ;;  %v8679_v5 = vld [vmem:[%s10024_s26 + $0x638] sm:$0xff] }
 0x2bb   : > { %6875 = vmatpush.bf16.msra.mxu2 %v8626_v6  ;;  %v8687_v6 = vld [vmem:[%s10024_s26 + $0x678] sm:$0xff] }
 0x2bc   : > { %6889 = vmatpush.bf16.msra.mxu3 %v8634_v7  ;;  %v7372_v7 = vld [vmem:[%s10059_s6 + $0x50] sm:$0xf] }
 0x2bd   : > { %6848 = vmatpush.bf16.msra.mxu0 %v8609_v8  ;;  %v8474_v8 = vld [vmem:[%s10059_s6 + $0xcc] sm:$0x10] }
 0x2be   : > { %6862 = vmatpush.bf16.msra.mxu1 %v8617_v9  ;;  %v7380_v9 = vld [vmem:[%s10059_s6 + $0x58] sm:$0xf] }
 0x2bf   : > { %6876 = vmatpush.bf16.msra.mxu2 %v8625_v10  ;;  %v8475_v10 = vld [vmem:[%s10059_s6 + $0xd4] sm:$0x10] }
 0x2c0   : > { %6890 = vmatpush.bf16.msra.mxu3 %v8633_v11  ;;  %v8458_v11 = vld [vmem:[%s10059_s6 + $0x54] sm:$0xf]  ;;  %v7381_v18 = vor.u32 %v8475_v10, %v7380_v9  ;;  %v8725_v9 = vld [vmem:[%s10024_s26 + $0x7a8] sm:$0xff] }
 0x2c1   : > { %6849 = vmatpush.bf16.msra.mxu0 %v8608_v12  ;;  %v6627_v41 = vpop.f32.mrf.mxu0  ;;  %v7374_v12 = vld [vmem:[%s10059_s6 + $0xd0] sm:$0x10]  ;;  %v8733_v10 = vld [vmem:[%s10024_s26 + $0x7e8] sm:$0xff] }
 0x2c2   : > { %6863 = vmatpush.bf16.msra.mxu1 %v8616_v13  ;;  %v6628_v44 = vadd.f32 %v10256_v38, %v6627_v41  ;;  %v6641_v47 = vpop.f32.mrf.mxu1  ;;  %v8459_v13 = vld [vmem:[%s10059_s6 + $0x5c] sm:$0xf]  ;;  %v7377_v19 = vor.u32 %v8458_v11, %v7374_v12  ;;  %v8698_v41 = vld [vmem:[%s10024_s26 + $0x6d0] sm:$0xff]  ;;  %v8708_v11 = vld [vmem:[%s10024_s26 + $0x720] sm:$0xff] }
 0x2c3   : > { %6877 = vmatpush.bf16.msra.mxu2 %v8624_v14  ;;  %v7382_v14 = vld [vmem:[%s10059_s6 + $0xd8] sm:$0x10]  ;;  %v8716_v12 = vld [vmem:[%s10024_s26 + $0x760] sm:$0xff] }
 0x2c4   : > { %6891 = vmatpush.bf16.msra.mxu3 %v8632_v15  ;;  %6850 = vmatmul.bf16.vlgmr.msra.gmra.mxu0 %v7357_v28  ;;  %v6642_v48 = vadd.f32 %v6641_v47, %v6628_v44  ;;  %v8695_v15 = vld [vmem:[%s10024_s26 + $0x6b8] sm:$0xff]  ;;  %v7385_v20 = vor.u32 %v8459_v13, %v7382_v14  ;;  %v8701_v28 = vld [vmem:[%s10024_s26 + $0x6e8] sm:$0xff]  ;;  %v8680_v47 = vld [vmem:[%s10024_s26 + $0x640] sm:$0xff] }
 0x2c5   : > { %6898 = vmatpush.bf16.msrb.mxu0 %v8647_v16  ;;  %6864 = vmatmul.bf16.vlgmr.msra.gmra.mxu1 %v7361_v30  ;;  %v8703_v16 = vld [vmem:[%s10024_s26 + $0x6f8] sm:$0xff]  ;;  %v8684_v30 = vld [vmem:[%s10024_s26 + $0x660] sm:$0xff]  ;;  %v8689_v44 = vld [vmem:[%s10024_s26 + $0x688] sm:$0xff] }
 0x2c6   : > { %6912 = vmatpush.bf16.msrb.mxu1 %v8655_v17  ;;  %6878 = vmatmul.bf16.vlgmr.msra.gmra.mxu2 %v7365_v29  ;;  %v7373_v17 = vor.u32 %v8474_v8, %v7372_v7  ;;  %v8676_v29 = vld [vmem:[%s10024_s26 + $0x620] sm:$0xff]  ;;  %v8709_v7 = vld [vmem:[%s10024_s26 + $0x728] sm:$0xff] }
 0x2c7   : > { %6926 = vmatpush.bf16.msrb.mxu2 %v8663_v26  ;;  %6892 = vmatmul.bf16.vlgmr.msra.gmra.mxu3 %v7369_v31  ;;  %v8685_v26 = vld [vmem:[%s10024_s26 + $0x668] sm:$0xff]  ;;  %v8692_v31 = vld [vmem:[%s10024_s26 + $0x6a0] sm:$0xff] }
 0x2c8   : > { %6940 = vmatpush.bf16.msrb.mxu3 %v8671_v27  ;;  %v8693_v27 = vld [vmem:[%s10024_s26 + $0x6a8] sm:$0xff]  ;;  %v8724_v13 = vld [vmem:[%s10024_s26 + $0x7a0] sm:$0xff] }
 0x2c9   : > { %6899 = vmatpush.bf16.msrb.mxu0 %v8646_v32  ;;  %v6655_v53 = vpop.f32.mrf.mxu2  ;;  %v8700_v32 = vld [vmem:[%s10024_s26 + $0x6e0] sm:$0xff]  ;;  %v8717_v8 = vld [vmem:[%s10024_s26 + $0x768] sm:$0xff] }
 0x2ca   : > { %6913 = vmatpush.bf16.msrb.mxu1 %v8654_v33  ;;  %v6656_v54 = vadd.f32 %v6655_v53, %v6642_v48  ;;  %v6669_v55 = vpop.f32.mrf.mxu3  ;;  %v8675_v33 = vld [vmem:[%s10024_s26 + $0x618] sm:$0xff]  ;;  %v8688_v48 = vld [vmem:[%s10024_s26 + $0x680] sm:$0xff] }
 0x2cb   : > { %6927 = vmatpush.bf16.msrb.mxu2 %v8662_v34  ;;  %v8683_v34 = vld [vmem:[%s10024_s26 + $0x658] sm:$0xff]  ;;  %v8476_v53 = vld [vmem:[%s10059_s6 + $0xdc] sm:$0x10] }
 0x2cc   : > { %6941 = vmatpush.bf16.msrb.mxu3 %v8670_v35  ;;  %v10271_v58 = vadd.f32 %v6669_v55, %v6656_v54  ;;  %v8691_v35 = vld [vmem:[%s10024_s26 + $0x698] sm:$0xff]  ;;  %v7396_v54 = vld [vmem:[%s10059_s6 + $0x68] sm:$0xf]  ;;  %v8732_v14 = vld [vmem:[%s10024_s26 + $0x7e0] sm:$0xff] }
 0x2cd   : > { %6900 = vmatpush.bf16.msrb.mxu0 %v8645_v36  ;;  %v8699_v36 = vld [vmem:[%s10024_s26 + $0x6d8] sm:$0xff]  ;;  %v8477_v55 = vld [vmem:[%s10059_s6 + $0xe4] sm:$0x10] }
 0x2ce   : > { %6914 = vmatpush.bf16.msrb.mxu1 %v8653_v37  ;;  %v8674_v37 = vld [vmem:[%s10024_s26 + $0x610] sm:$0xff] }
 0x2cf   : > { %6928 = vmatpush.bf16.msrb.mxu2 %v8661_v39  ;;  %v8682_v39 = vld [vmem:[%s10024_s26 + $0x650] sm:$0xff] }
 0x2d0   : > { %6942 = vmatpush.bf16.msrb.mxu3 %v8669_v40  ;;  %v8690_v40 = vld [vmem:[%s10024_s26 + $0x690] sm:$0xff] }
 0x2d1   : > { %6901 = vmatpush.bf16.msrb.mxu0 %v8644_v42  ;;  %v8673_v42 = vld [vmem:[%s10024_s26 + $0x608] sm:$0xff] }
 0x2d2   : > { %6915 = vmatpush.bf16.msrb.mxu1 %v8652_v43  ;;  %v8681_v43 = vld [vmem:[%s10024_s26 + $0x648] sm:$0xff] }
 0x2d3   : > { %6929 = vmatpush.bf16.msrb.mxu2 %v8660_v45  ;;  %v8697_v45 = vld [vmem:[%s10024_s26 + $0x6c8] sm:$0xff] }
 0x2d4   : > { %6943 = vmatpush.bf16.msrb.mxu3 %v8668_v46  ;;  %v8672_v46 = vld [vmem:[%s10024_s26 + $0x600] sm:$0xff] }
 0x2d5   : > { %6902 = vmatpush.bf16.msrb.mxu0 %v8643_v49  ;;  %v8696_v49 = vld [vmem:[%s10024_s26 + $0x6c0] sm:$0xff] }
 0x2d6   : > { %6916 = vmatpush.bf16.msrb.mxu1 %v8651_v50  ;;  %v8711_v50 = vld [vmem:[%s10024_s26 + $0x738] sm:$0xff] }
 0x2d7   : > { %6930 = vmatpush.bf16.msrb.mxu2 %v8659_v51  ;;  %v8719_v51 = vld [vmem:[%s10024_s26 + $0x778] sm:$0xff] }
 0x2d8   : > { %6944 = vmatpush.bf16.msrb.mxu3 %v8667_v52  ;;  %v7388_v52 = vld [vmem:[%s10059_s6 + $0x60] sm:$0xf] }
 0x2d9   : > { %6903 = vmatpush.bf16.msrb.mxu0 %v8642_v56  ;;  %v8460_v56 = vld [vmem:[%s10059_s6 + $0x64] sm:$0xf] }
 0x2da   : > { %6917 = vmatpush.bf16.msrb.mxu1 %v8650_v57  ;;  %v7390_v57 = vld [vmem:[%s10059_s6 + $0xe0] sm:$0x10] }
 0x2db   : > { %6931 = vmatpush.bf16.msrb.mxu2 %v8658_v59  ;;  %v8461_v59 = vld [vmem:[%s10059_s6 + $0x6c] sm:$0xf] }
 0x2dc   : > { %6945 = vmatpush.bf16.msrb.mxu3 %v8666_v60  ;;  %v7398_v60 = vld [vmem:[%s10059_s6 + $0xe8] sm:$0x10] }
 0x2dd   : > { %6904 = vmatpush.bf16.msrb.mxu0 %v8641_v61  ;;  %v8727_v61 = vld [vmem:[%s10024_s26 + $0x7b8] sm:$0xff] }
 0x2de   : > { %6918 = vmatpush.bf16.msrb.mxu1 %v8649_v62  ;;  %v8735_v62 = vld [vmem:[%s10024_s26 + $0x7f8] sm:$0xff] }
 0x2df   : > { %6932 = vmatpush.bf16.msrb.mxu2 %v8657_v63  ;;  %v7389_v63 = vor.u32 %v8476_v53, %v7388_v52 }
 0x2e0   : > { %6946 = vmatpush.bf16.msrb.mxu3 %v8665_v0  ;;  %v7397_v0 = vor.u32 %v8477_v55, %v7396_v54 }
 0x2e1   : > { %6905 = vmatpush.bf16.msrb.mxu0 %v8640_v1  ;;  %v7393_v1 = vor.u32 %v8460_v56, %v7390_v57 }
 0x2e2   : > { %6919 = vmatpush.bf16.msrb.mxu1 %v8648_v2  ;;  %v7401_v2 = vor.u32 %v8461_v59, %v7398_v60 }
 0x2e3   : > { %6933 = vmatpush.bf16.msrb.mxu2 %v8656_v3  ;;  %v8710_v3 = vld [vmem:[%s10024_s26 + $0x730] sm:$0xff] }
 0x2e4   : > { %6947 = vmatpush.bf16.msrb.mxu3 %v8664_v4  ;;  %6906 = vmatmul.bf16.vlgmr.msrb.gmra.mxu0 %v7373_v17  ;;  %v8718_v4 = vld [vmem:[%s10024_s26 + $0x770] sm:$0xff]  ;;  %v8723_v17 = vld [vmem:[%s10024_s26 + $0x798] sm:$0xff] }
 0x2e5   : > { %6954 = vmatpush.bf16.msra.mxu0 %v8679_v5  ;;  %6920 = vmatmul.bf16.vlgmr.msrb.gmra.mxu1 %v7377_v19  ;;  %v8726_v5 = vld [vmem:[%s10024_s26 + $0x7b0] sm:$0xff] }
 0x2e6   : > { %6968 = vmatpush.bf16.msra.mxu1 %v8687_v6  ;;  %6934 = vmatmul.bf16.vlgmr.msrb.gmra.mxu2 %v7381_v18  ;;  %v8734_v6 = vld [vmem:[%s10024_s26 + $0x7f0] sm:$0xff]  ;;  %v8731_v18 = vld [vmem:[%s10024_s26 + $0x7d8] sm:$0xff] }
 0x2e7   : > { %6982 = vmatpush.bf16.msra.mxu2 %v8695_v15  ;;  %6948 = vmatmul.bf16.vlgmr.msrb.gmra.mxu3 %v7385_v20  ;;  %v8707_v15 = vld [vmem:[%s10024_s26 + $0x718] sm:$0xff]  ;;  %v8706_v19 = vld [vmem:[%s10024_s26 + $0x710] sm:$0xff] }
 0x2e8   : > { %6996 = vmatpush.bf16.msra.mxu3 %v8703_v16  ;;  %v8715_v16 = vld [vmem:[%s10024_s26 + $0x758] sm:$0xff]  ;;  %v8714_v20 = vld [vmem:[%s10024_s26 + $0x750] sm:$0xff] }
 0x2e9   : > { %6955 = vmatpush.bf16.msra.mxu0 %v8678_v21  ;;  %v8722_v21 = vld [vmem:[%s10024_s26 + $0x790] sm:$0xff] }
 0x2ea   : > { %6969 = vmatpush.bf16.msra.mxu1 %v8686_v22  ;;  %v8730_v22 = vld [vmem:[%s10024_s26 + $0x7d0] sm:$0xff] }
 0x2eb   : > { %6983 = vmatpush.bf16.msra.mxu2 %v8694_v23  ;;  %v8705_v23 = vld [vmem:[%s10024_s26 + $0x708] sm:$0xff] }
 0x2ec   : > { %6997 = vmatpush.bf16.msra.mxu3 %v8702_v24  ;;  %v8713_v24 = vld [vmem:[%s10024_s26 + $0x748] sm:$0xff] }
 0x2ed   : > { %6956 = vmatpush.bf16.msra.mxu0 %v8677_v25  ;;  %v8721_v25 = vld [vmem:[%s10024_s26 + $0x788] sm:$0xff] }
 0x2ee   : > { %6970 = vmatpush.bf16.msra.mxu1 %v8685_v26  ;;  %v8729_v26 = vld [vmem:[%s10024_s26 + $0x7c8] sm:$0xff] }
 0x2ef   : > { %6984 = vmatpush.bf16.msra.mxu2 %v8693_v27  ;;  %v8704_v27 = vld [vmem:[%s10024_s26 + $0x700] sm:$0xff] }
 0x2f0   : > { %6998 = vmatpush.bf16.msra.mxu3 %v8701_v28  ;;  %v8712_v28 = vld [vmem:[%s10024_s26 + $0x740] sm:$0xff] }
 0x2f1   : > { %6957 = vmatpush.bf16.msra.mxu0 %v8676_v29  ;;  %v8720_v29 = vld [vmem:[%s10024_s26 + $0x780] sm:$0xff] }
 0x2f2   : > { %6971 = vmatpush.bf16.msra.mxu1 %v8684_v30  ;;  %v8728_v30 = vld [vmem:[%s10024_s26 + $0x7c0] sm:$0xff]  ;;  %s4365_s26 = scalar_lea.vmem [#allocation3], %s7287_s25 }
 0x2f3   : > { %6985 = vmatpush.bf16.msra.mxu2 %v8692_v31  ;;  %v7404_v31 = vld [vmem:[%s10059_s6 + $0x70] sm:$0xf] }
 0x2f4   : > { %6999 = vmatpush.bf16.msra.mxu3 %v8700_v32  ;;  %v8478_v32 = vld [vmem:[%s10059_s6 + $0xec] sm:$0x10] }
 0x2f5   : > { %6958 = vmatpush.bf16.msra.mxu0 %v8675_v33  ;;  %v8462_v33 = vld [vmem:[%s10059_s6 + $0x74] sm:$0xf] }
 0x2f6   : > { %6972 = vmatpush.bf16.msra.mxu1 %v8683_v34  ;;  %v7406_v34 = vld [vmem:[%s10059_s6 + $0xf0] sm:$0x10] }
 0x2f7   : > { %6986 = vmatpush.bf16.msra.mxu2 %v8691_v35  ;;  %v7412_v35 = vld [vmem:[%s10059_s6 + $0x78] sm:$0xf] }
 0x2f8   : > { %7000 = vmatpush.bf16.msra.mxu3 %v8699_v36  ;;  %v8479_v36 = vld [vmem:[%s10059_s6 + $0xf4] sm:$0x10] }
 0x2f9   : > { %6959 = vmatpush.bf16.msra.mxu0 %v8674_v37  ;;  %v8463_v37 = vld [vmem:[%s10059_s6 + $0x7c] sm:$0xf] }
 0x2fa   : > { %6973 = vmatpush.bf16.msra.mxu1 %v8682_v39  ;;  %v7414_v39 = vld [vmem:[%s10059_s6 + $0xf8] sm:$0x10]  ;;  %s7134_s6 = scalar_lea.vmem (%p8975_p9), %s10414_s3, %s8444_s27 }
 0x2fb   : > { %6987 = vmatpush.bf16.msra.mxu2 %v8690_v40  ;;  %v7405_v40 = vor.u32 %v8478_v32, %v7404_v31 }
 0x2fc   : > { %7001 = vmatpush.bf16.msra.mxu3 %v8698_v41  ;;  %v7409_v41 = vor.u32 %v8462_v33, %v7406_v34 }
 0x2fd   : > { %6960 = vmatpush.bf16.msra.mxu0 %v8673_v42  ;;  %v7413_v42 = vor.u32 %v8479_v36, %v7412_v35 }
 0x2fe   : > { %6974 = vmatpush.bf16.msra.mxu1 %v8681_v43  ;;  %v7417_v43 = vor.u32 %v8463_v37, %v7414_v39 }
 0x2ff   : > { %6988 = vmatpush.bf16.msra.mxu2 %v8689_v44  ;;  %v6629_v44 = vpop.f32.mrf.mxu0 }
 0x300   : > { %7002 = vmatpush.bf16.msra.mxu3 %v8697_v45  ;;  %v6643_v45 = vpop.f32.mrf.mxu1 }
 0x301   : > { %6961 = vmatpush.bf16.msra.mxu0 %v8672_v46  ;;  %v6657_v46 = vpop.f32.mrf.mxu2 }
 0x302   : > { %6975 = vmatpush.bf16.msra.mxu1 %v8680_v47  ;;  %v6671_v47 = vpop.f32.mrf.mxu3 }
 0x303   : > { %6989 = vmatpush.bf16.msra.mxu2 %v8688_v48 }
 0x304   : > { %7003 = vmatpush.bf16.msra.mxu3 %v8696_v49  ;;  %6962 = vmatmul.bf16.vlgmr.msra.gmra.mxu0 %v7389_v63 }
 0x305   : > { %7010 = vmatpush.bf16.msrb.mxu0 %v8711_v50  ;;  %6976 = vmatmul.bf16.vlgmr.msra.gmra.mxu1 %v7393_v1 }
 0x306   : > { %7024 = vmatpush.bf16.msrb.mxu1 %v8719_v51  ;;  %6990 = vmatmul.bf16.vlgmr.msra.gmra.mxu2 %v7397_v0 }
 0x307   : > { %7038 = vmatpush.bf16.msrb.mxu2 %v8727_v61  ;;  %7004 = vmatmul.bf16.vlgmr.msra.gmra.mxu3 %v7401_v2  ;;  %v6683_v48 = vpop.f32.mrf.mxu0 }
 0x308   : > { %7052 = vmatpush.bf16.msrb.mxu3 %v8735_v62  ;;  %v6697_v49 = vpop.f32.mrf.mxu1  ;;  %v6630_v62 = vadd.f32 %v10256_v38, %v6629_v44 }
 0x309   : > { %7011 = vmatpush.bf16.msrb.mxu0 %v8710_v3  ;;  %v6711_v50 = vpop.f32.mrf.mxu2 }
 0x30a   : > { %7025 = vmatpush.bf16.msrb.mxu1 %v8718_v4  ;;  %v6725_v51 = vpop.f32.mrf.mxu3  ;;  %v6644_v0 = vadd.f32 %v6643_v45, %v6630_v62 }
 0x30b   : > { %7039 = vmatpush.bf16.msrb.mxu2 %v8726_v5 }
 0x30c   : > { %7053 = vmatpush.bf16.msrb.mxu3 %v8734_v6  ;;  %v6658_v4 = vadd.f32 %v6657_v46, %v6644_v0 }
 0x30d   : > { %7012 = vmatpush.bf16.msrb.mxu0 %v8709_v7  ;;  %v6684_v7 = vadd.f32 %v6683_v48, %v10271_v58 }
 0x30e   : > { %7026 = vmatpush.bf16.msrb.mxu1 %v8717_v8  ;;  %v6672_v6 = vadd.f32 %v6671_v47, %v6658_v4 }
 0x30f   : > { %7040 = vmatpush.bf16.msrb.mxu2 %v8725_v9  ;;  %v6685_v52 = vpop.f32.mrf.mxu0 }
 0x310   : > { %7054 = vmatpush.bf16.msrb.mxu3 %v8733_v10  ;;  %v6699_v53 = vpop.f32.mrf.mxu1  ;;  %v6686_v10 = vadd.f32 %v6685_v52, %v6672_v6 }
 0x311   : > { %7013 = vmatpush.bf16.msrb.mxu0 %v8708_v11  ;;  %v6713_v54 = vpop.f32.mrf.mxu2 }
 0x312   : > { %7027 = vmatpush.bf16.msrb.mxu1 %v8716_v12  ;;  %v6727_v55 = vpop.f32.mrf.mxu3  ;;  %v6698_v12 = vadd.f32 %v6697_v49, %v6684_v7 }
 0x313   : > { %7041 = vmatpush.bf16.msrb.mxu2 %v8724_v13 }
 0x314   : > { %7055 = vmatpush.bf16.msrb.mxu3 %v8732_v14  ;;  %v6700_v14 = vadd.f32 %v6699_v53, %v6686_v10 }
 0x315   : > { %7014 = vmatpush.bf16.msrb.mxu0 %v8707_v15  ;;  %v6712_v15 = vadd.f32 %v6711_v50, %v6698_v12 }
 0x316   : > { %7028 = vmatpush.bf16.msrb.mxu1 %v8715_v16  ;;  %v6714_v16 = vadd.f32 %v6713_v54, %v6700_v14 }
 0x317   : > { %7042 = vmatpush.bf16.msrb.mxu2 %v8723_v17  ;;  %v6739_v56 = vpop.f32.mrf.mxu0 }
 0x318   : > { %7056 = vmatpush.bf16.msrb.mxu3 %v8731_v18  ;;  %v6753_v57 = vpop.f32.mrf.mxu1 }
 0x319   : > { %7015 = vmatpush.bf16.msrb.mxu0 %v8706_v19  ;;  %v6767_v59 = vpop.f32.mrf.mxu2  ;;  %v6726_v19 = vadd.f32 %v6725_v51, %v6712_v15 }
 0x31a   : > { %7029 = vmatpush.bf16.msrb.mxu1 %v8714_v20  ;;  %v6781_v60 = vpop.f32.mrf.mxu3  ;;  %v6728_v20 = vadd.f32 %v6727_v55, %v6714_v16 }
 0x31b   : > { %7043 = vmatpush.bf16.msrb.mxu2 %v8722_v21  ;;  %v6740_v21 = vadd.f32 %v6739_v56, %v6726_v19 }
 0x31c   : > { %7057 = vmatpush.bf16.msrb.mxu3 %v8730_v22 }
 0x31d   : > { %7016 = vmatpush.bf16.msrb.mxu0 %v8705_v23 }
 0x31e   : > { %7030 = vmatpush.bf16.msrb.mxu1 %v8713_v24  ;;  %v6754_v24 = vadd.f32 %v6753_v57, %v6740_v21 }
 0x31f   : > { %7044 = vmatpush.bf16.msrb.mxu2 %v8721_v25  ;;  %v6741_v61 = vpop.f32.mrf.mxu0 }
 0x320   : > { %7058 = vmatpush.bf16.msrb.mxu3 %v8729_v26  ;;  %v6755_v63 = vpop.f32.mrf.mxu1  ;;  %v6742_v23 = vadd.f32 %v6741_v61, %v6728_v20 }
 0x321   : > { %7017 = vmatpush.bf16.msrb.mxu0 %v8704_v27  ;;  %v6769_v1 = vpop.f32.mrf.mxu2  ;;  %v6768_v27 = vadd.f32 %v6767_v59, %v6754_v24 }
 0x322   : > { %7031 = vmatpush.bf16.msrb.mxu1 %v8712_v28  ;;  %v6783_v2 = vpop.f32.mrf.mxu3  ;;  %v6756_v26 = vadd.f32 %v6755_v63, %v6742_v23  ;;  %v8886_v23 = vmov 9.0  }
 0x323   : > { %7045 = vmatpush.bf16.msrb.mxu2 %v8720_v29  ;;  %8810 = vrcp.f32 %v8886_v23 }
 0x324   : > { %7059 = vmatpush.bf16.msrb.mxu3 %v8728_v30  ;;  %7018 = vmatmul.bf16.vlgmr.msrb.gmra.mxu0 %v7405_v40  ;;  %v6770_v28 = vadd.f32 %v6769_v1, %v6756_v26  ;;  %v6782_v30 = vadd.f32 %v6781_v60, %v6768_v27 }
 0x325   : > { %7032 = vmatmul.bf16.vlgmr.msrb.gmra.mxu1 %v7409_v41 }
 0x326   : > { %7046 = vmatmul.bf16.vlgmr.msrb.gmra.mxu2 %v7413_v42  ;;  %v6784_v32 = vadd.f32 %v6783_v2, %v6770_v28 }
 0x327   : > { %7060 = vmatmul.bf16.vlgmr.msrb.gmra.mxu3 %v7417_v43  ;;  %v6795_v3 = vpop.f32.mrf.mxu0 }
 0x328   : > { %v6809_v5 = vpop.f32.mrf.mxu1  ;;  %v6796_v33 = vadd.f32 %v6795_v3, %v6782_v30 }
 0x329   : > { %v6823_v8 = vpop.f32.mrf.mxu2  ;;  %v8811_v27 = vpop.eup %8810 }
 0x32a   : > { %v6837_v9 = vpop.f32.mrf.mxu3  ;;  %v6810_v39 = vadd.f32 %v6809_v5, %v6796_v33  ;;  %vm7080_vm1 = vweird.f32 %v8811_v27 }
 0x32c   : > { %v6824_v41 = vadd.f32 %v6823_v8, %v6810_v39 }
 0x32e   : > { %v6838_v44 = vadd.f32 %v6837_v9, %v6824_v41 }
 0x32f   : > { %v6797_v11 = vpop.f32.mrf.mxu0 }
 0x330   : > { %v6811_v13 = vpop.f32.mrf.mxu1  ;;  %v6798_v34 = vadd.f32 %v6797_v11, %v6784_v32 }
 0x331   : > { %v6825_v38 = vpop.f32.mrf.mxu2 }
 0x332   : > { %v6839_v17 = vpop.f32.mrf.mxu3  ;;  %v6812_v40 = vadd.f32 %v6811_v13, %v6798_v34  ;;  %v7076_v34 = vmul.f32 9.0, %v8811_v27 }
 0x334   : > { %v6826_v43 = vadd.f32 %v6825_v38, %v6812_v40  ;;  %v7077_v40 = vsub.f32 1.0, %v7076_v34 }
 0x336   : > { %v6840_v47 = vadd.f32 %v6839_v17, %v6826_v43  ;;  %v7078_v43 = vmul.f32 %v8811_v27, %v7077_v40 }
 0x341   : > { %v6851_v18 = vpop.f32.mrf.mxu0 }
 0x342   : > { %v6865_v22 = vpop.f32.mrf.mxu1  ;;  %v6852_v48 = vadd.f32 %v6851_v18, %v6838_v44 }
 0x344   : > { %v6866_v51 = vadd.f32 %v6865_v22, %v6852_v48 }
 0x349   : > { %v6879_v25 = vpop.f32.mrf.mxu2  ;;  %v6853_v29 = vpop.f32.mrf.mxu0 }
 0x34a   : > { %v6893_v58 = vpop.f32.mrf.mxu3  ;;  %v6867_v31 = vpop.f32.mrf.mxu1  ;;  %v6854_v49 = vadd.f32 %v6853_v29, %v6840_v47  ;;  %v6880_v54 = vadd.f32 %v6879_v25, %v6866_v51 }
 0x34c   : > { %v6868_v53 = vadd.f32 %v6867_v31, %v6854_v49  ;;  %v6894_v60 = vadd.f32 %v6893_v58, %v6880_v54 }
 0x351   : > { %v6881_v35 = vpop.f32.mrf.mxu2 }
 0x352   : > { %v6895_v36 = vpop.f32.mrf.mxu3  ;;  %v6882_v55 = vadd.f32 %v6881_v35, %v6868_v53 }
 0x354   : > { %v6896_v61 = vadd.f32 %v6895_v36, %v6882_v55 }
 0x361   : > { %v6907_v37 = vpop.f32.mrf.mxu0 }
 0x362   : > { %v6921_v42 = vpop.f32.mrf.mxu1  ;;  %v6908_v62 = vadd.f32 %v6907_v37, %v6894_v60 }
 0x364   : > { %v6922_v1 = vadd.f32 %v6921_v42, %v6908_v62 }
 0x369   : > { %v6935_v45 = vpop.f32.mrf.mxu2  ;;  %v6909_v50 = vpop.f32.mrf.mxu0 }
 0x36a   : > { %v6949_v46 = vpop.f32.mrf.mxu3  ;;  %v6923_v52 = vpop.f32.mrf.mxu1  ;;  %v6910_v0 = vadd.f32 %v6909_v50, %v6896_v61  ;;  %v6936_v5 = vadd.f32 %v6935_v45, %v6922_v1 }
 0x36c   : > { %v6924_v4 = vadd.f32 %v6923_v52, %v6910_v0  ;;  %v6950_v8 = vadd.f32 %v6949_v46, %v6936_v5  ;;  %v7079_v46 = vadd.f32 %v8811_v27, %v7078_v43 }
 0x36e   : > { %v7081_v49 = vsel %vm7080_vm1, %v8811_v27, %v7079_v46 }
 0x371   : > { %v6937_v56 = vpop.f32.mrf.mxu2 }
 0x372   : > { %v6951_v57 = vpop.f32.mrf.mxu3  ;;  %v6938_v6 = vadd.f32 %v6937_v56, %v6924_v4 }
 0x374   : > { %v6952_v10 = vadd.f32 %v6951_v57, %v6938_v6 }
 0x381   : > { %v6963_v59 = vpop.f32.mrf.mxu0 }
 0x382   : > { %v6977_v63 = vpop.f32.mrf.mxu1  ;;  %v6964_v11 = vadd.f32 %v6963_v59, %v6950_v8 }
 0x384   : > { %v6978_v16 = vadd.f32 %v6977_v63, %v6964_v11 }
 0x389   : > { %v6991_v2 = vpop.f32.mrf.mxu2  ;;  %v6965_v7 = vpop.f32.mrf.mxu0 }
 0x38a   : > { %v7005_v3 = vpop.f32.mrf.mxu3  ;;  %v6979_v9 = vpop.f32.mrf.mxu1  ;;  %v6966_v12 = vadd.f32 %v6965_v7, %v6952_v10  ;;  %v6992_v17 = vadd.f32 %v6991_v2, %v6978_v16  ;;  %v7121_v16 = vld [vmem:[%s4365_s26 + $0x4] sm:$0x1] }
 0x38c   : > { %v6980_v38 = vadd.f32 %v6979_v9, %v6966_v12  ;;  %v7006_v20 = vadd.f32 %v7005_v3, %v6992_v17 }
 0x391   : > { %v6993_v13 = vpop.f32.mrf.mxu2 }
 0x392   : > { %v7007_v14 = vpop.f32.mrf.mxu3  ;;  %v6994_v19 = vadd.f32 %v6993_v13, %v6980_v38 }
 0x394   : > { %v7008_v24 = vadd.f32 %v7007_v14, %v6994_v19 }
 0x3a1   : > { %v7019_v15 = vpop.f32.mrf.mxu0 }
 0x3a2   : > { %v7033_v18 = vpop.f32.mrf.mxu1  ;;  %v7020_v58 = vadd.f32 %v7019_v15, %v7006_v20 }
 0x3a4   : > { %v7034_v28 = vadd.f32 %v7033_v18, %v7020_v58 }
 0x3a9   : > { %v7047_v21 = vpop.f32.mrf.mxu2  ;;  %v7021_v25 = vpop.f32.mrf.mxu0 }
 0x3aa   : > { %v7061_v22 = vpop.f32.mrf.mxu3  ;;  %v7022_v26 = vadd.f32 %v7021_v25, %v7008_v24  ;;  %v7035_v29 = vpop.f32.mrf.mxu1  ;;  %v7048_v31 = vadd.f32 %v7047_v21, %v7034_v28 }
 0x3ac   : > { %v7036_v30 = vadd.f32 %v7035_v29, %v7022_v26  ;;  %v7062_v37 = vadd.f32 %v7061_v22, %v7048_v31 }
 0x3b1   : > { %v7049_v32 = vpop.f32.mrf.mxu2 }
 0x3b2   : > { %v7050_v33 = vadd.f32 %v7049_v32, %v7036_v30  ;;  %v7063_v35 = vpop.f32.mrf.mxu3 }
 0x3b4   : > { %v7064_v36 = vadd.f32 %v7063_v35, %v7050_v33 }
 0x3b6   : > { %v7067_v39 = vsel %vm7066_vm0, %v7064_v36, 0.0 }
 0x3b7   : > { %v7068_v41 = vadd.f32 %v7067_v39, %v7062_v37 }
 0x3b9   : > { %v7069_v42 = vrot.slane %v7068_v41, 4 }
 0x3bb   : > { %v7070_v44 = vadd.f32 %v7069_v42, %v7068_v41 }
 0x3bd   : > { %v7071_v45 = vrot.slane %v7070_v44, 2 }
 0x3bf   : > { %v7072_v47 = vadd.f32 %v7071_v45, %v7070_v44 }
 0x3c1   : > { %v7073_v48 = vrot.slane %v7072_v47, 1 }
 0x3c3   : > { %v7074_v50 = vadd.f32 %v7073_v48, %v7072_v47 }
 0x3c5   : > { %v7082_v51 = vmul.f32 %v7081_v49, %v7074_v50 }
 0x3c7   : > { %v7083_v52 = vsub.f32 %v7062_v37, %v7082_v51  ;;  %v7084_v53 = vsub.f32 %v7064_v36, %v7082_v51 }
 0x3c9   : > { %v7085_v54 = vmul.f32 %v7083_v52, %v7083_v52  ;;  %v7086_v55 = vmul.f32 %v7084_v53, %v7084_v53 }
 0x3cb   : > { %v7087_v56 = vsel %vm7066_vm0, %v7086_v55, 0.0 }
 0x3cc   : > { %v7088_v57 = vadd.f32 %v7087_v56, %v7085_v54 }
 0x3ce   : > { %v7089_v59 = vrot.slane %v7088_v57, 4 }
 0x3d0   : > { %v7090_v60 = vadd.f32 %v7089_v59, %v7088_v57 }
 0x3d2   : > { %v7091_v61 = vrot.slane %v7090_v60, 2 }
 0x3d4   : > { %v7092_v62 = vadd.f32 %v7091_v61, %v7090_v60 }
 0x3d6   : > { %v7093_v63 = vrot.slane %v7092_v62, 1 }
 0x3d8   : > { %v7094_v0 = vadd.f32 %v7093_v63, %v7092_v62 }
 0x3da   : > { %v7095_v1 = vmul.f32 %v7094_v0, %v7081_v49 }
 0x3dc   : > { %v7096_v2 = vadd.f32 1e-05, %v7095_v1 }
 0x3de   : > { %8812 = vrsqrt.f32 %v7096_v2  ;;  %vm7103_vm3 = vweird.f32 %v7096_v2 }
 0x3e4   : > { %v8813_v3 = vpop.eup %8812 }
 0x3e5   : > { %v7098_v4 = vmul.f32 %v8813_v3, %v7096_v2  ;;  %vm7104_vm2 = vweird.f32 %v8813_v3 }
 0x3e6   : > { %vm7105_vm4 = vmor %vm7103_vm3, %vm7104_vm2 }
 0x3e7   : > { %v7099_v5 = vmul.f32 %v8813_v3, %v7098_v4 }
 0x3e9   : > { %v7100_v6 = vmul.f32 0.5, %v7099_v5 }
 0x3eb   : > { %v7101_v7 = vsub.f32 1.5, %v7100_v6 }
 0x3ed   : > { %v7102_v8 = vmul.f32 %v8813_v3, %v7101_v7 }
 0x3ef   : > { %v7106_v9 = vsel %vm7105_vm4, %v8813_v3, %v7102_v8 }
 0x3f0   : > { %v7107_v10 = vmul.f32 %v7106_v9, %v7083_v52  ;;  %v7108_v11 = vmul.f32 %v7106_v9, %v7084_v53 }
 0x3f2   : > { %vm7109_vm6 = vcmp.gt.f32.partialorder %v7107_v10, 0.0  ;;  %vm7110_vm7 = vcmp.gt.f32.partialorder %v7108_v11, 0.0  ;;  %v7111_v12 = vmul.f32 0.2, %v7107_v10  ;;  %v7112_v13 = vmul.f32 0.2, %v7108_v11 }
 0x3f4   : > { %v7113_v14 = vsel %vm7109_vm6, %v7107_v10, %v7111_v12  ;;  %v7114_v15 = vsel %vm7110_vm7, %v7108_v11, %v7112_v13  ;;  %7130 = sbr.rel (!%p8975_p9) target bundleno = 1025 (0x401), region = 88 }
 0x3f5   : > { %v7115_v38 = vpack.c.bf16 %v7113_v14, %v7113_v14  ;;  %v7116_v17 = vpack.c.bf16 %v7114_v15, %v7114_v15 }
 0x3f7   : > { %7117 = vst [vmem:[%s4365_s26] sm:$0xf] %v7115_v38  ;;  %v7122_v18 = vsel %vm7120_vm8, %v7116_v17, %v7121_v16 }
 0x3f8   : > { %7123 = vst [vmem:[%s4365_s26 + $0x4] sm:$0x1] %v7122_v18 }
 0x3fe   : > { %v7151_v19 = vld [vmem:[%s4365_s26] sm:$0xf] }
 0x3ff   : > { %v7153_v20 = vld [vmem:[%s4365_s26 + $0x4] sm:$0xf]  ;;  %7152 = vst [vmem:[%s7134_s6] sm:$0xf] %v7151_v19 }
 0x400   : > { %7154 = vst [vmem:[%s7134_s6 + $0x10] sm:$0xf] %v7153_v20 }
 0x401 PF: > { %s13_s20 = sadd.s32 1, %s8884_s20   ;;  %s10417_s12 = smov %s8856_s13 }
 0x402   : > { %p10_p2 = scmp.ge.s32.totalorder %s13_s20, 10   ;;  %s10418_s13 = smov %s8983_s5 }
 0x403   : > { %s10419_s14 = smov %s8864_s15  ;;  %s10420_s15 = smov %s8980_s4 }
 0x404   : > { %s10421_s16 = smov %s8876_s18  ;;  %s10422_s17 = smov %s8880_s19 }
 0x405   : > { %s10423_s18 = smov %s10426_s21  ;;  %s10424_s19 = smov %s10430_s22 }
 0x406   :  { %12 = sbr.rel (!%p10_p2) target bundleno = 5 (0x5), region = 170 }

// kernel: discriminator_forward.9
= control target key start
LH: loop header
LB: loop body
LE: loop exit
PB: predicated region body
PF: predicated region fallthrough
CT: control target
= control target key end

     0   :  { %s8077_s14 = smov 0   ;;  %s8079_s15 = smov 0   ;;  %s9777_s0 = inlined_call_operand.vmem [shape: bf16[2,4,8192], index: 0, kind: input, shape index: {}]   ;;  %s9778_s1 = inlined_call_operand.vmem [shape: bf16[8192,1], index: 1, kind: input, shape index: {}]   ;;  %s9779_s2 = inlined_call_operand.<no memory space> [shape: f32[1,1], index: 2, kind: input, shape index: {}]   ;;  %s9780_s3 = inlined_call_operand.vmem [shape: f32[2,4,1], index: 3, kind: output, shape index: {}]  }
   0x1   :  { %v8_v0 = vstv %s9779_s2  ;;  %s8081_s16 = smov 0  }
   0x2   :  { %9 = vst [vmem:[#allocation2] sm:$0x1] %v8_v0 }
   0x3 LB: > { %s24_s2 = sadd.s32 1, %s8048_s15  ;;  %p5438_p0 = scmp.ge.s32.totalorder %s8052_s16, 1  ;;  %s8052_s16 = sphi %s8081_s16, %s15_s16   ;;  %s8048_s15 = sphi %s8079_s15, %s9782_s15   ;;  %s8044_s14 = sphi %s8077_s14, %s9781_s14  }
   0x4   : > { %p25_p1 = scmp.ge.s32.totalorder %s24_s2, 2  ;;  %p170_p2 = scmp.lt.s32.totalorder %s8052_s16, 3 }
   0x6   : > { %s9784_s2 = smov (%p25_p1, %s24_s2), 0  ;;  %p171_p3 = pnand %p5438_p0, %p170_p2 }
   0x7   : > { %p203_p4 = scmp.lt.s32.totalorder (!%p171_p3), %s8044_s14, 1 }
   0x8   : > { %174 = sbr.rel (%p171_p3) target bundleno = 668 (0x29c), region = 32 }
   0xd   : > { %v7500_v1 = vld [vmem:[%s9778_s1 + $0x38] sm:$0xff]  ;;  %v7499_v5 = vld [vmem:[%s9778_s1 + $0x30] sm:$0xff]  ;;  %v7498_v9 = vld [vmem:[%s9778_s1 + $0x28] sm:$0xff]  ;;  %s9786_s14 = smov (!%p203_p4, %s8044_s14), 1  ;;  %vm5331_vm0 = vcmask 3072  }
   0xe   : > { %v7508_v2 = vld [vmem:[%s9778_s1 + $0x78] sm:$0xff]  ;;  %4499 = vmatpush.bf16.msra.mxu0 %v7500_v1  ;;  %v7507_v6 = vld [vmem:[%s9778_s1 + $0x70] sm:$0xff]  ;;  %v7506_v10 = vld [vmem:[%s9778_s1 + $0x68] sm:$0xff]  ;;  %s7492_s25 = sshll.u32 %s9786_s14, 7  ;;  %s5441_s23 = sshll.u32 %s9786_s14, 2 }
   0xf   : > { %v7516_v3 = vld [vmem:[%s9778_s1 + $0xb8] sm:$0xff]  ;;  %4512 = vmatpush.bf16.msra.mxu1 %v7508_v2  ;;  %v7515_v7 = vld [vmem:[%s9778_s1 + $0xb0] sm:$0xff]  ;;  %v7514_v11 = vld [vmem:[%s9778_s1 + $0xa8] sm:$0xff]  ;;  %s8159_s5 = scalar_lea.vmem %s9777_s0, %s7492_s25  ;;  %s221_s26 = scalar_lea.vmem %s9780_s3, %s5441_s23 }
  0x10   : > { %v7524_v4 = vld [vmem:[%s9778_s1 + $0xf8] sm:$0xff]  ;;  %4525 = vmatpush.bf16.msra.mxu2 %v7516_v3  ;;  %v7523_v8 = vld [vmem:[%s9778_s1 + $0xf0] sm:$0xff]  ;;  %v7522_v12 = vld [vmem:[%s9778_s1 + $0xe8] sm:$0xff] }
  0x11   : > { %4538 = vmatpush.bf16.msra.mxu3 %v7524_v4  ;;  %v7497_v13 = vld [vmem:[%s9778_s1 + $0x20] sm:$0xff]  ;;  %v7496_v17 = vld [vmem:[%s9778_s1 + $0x18] sm:$0xff]  ;;  %v7495_v22 = vld [vmem:[%s9778_s1 + $0x10] sm:$0xff] }
  0x12   : > { %4500 = vmatpush.bf16.msra.mxu0 %v7499_v5  ;;  %v7505_v14 = vld [vmem:[%s9778_s1 + $0x60] sm:$0xff]  ;;  %v7504_v18 = vld [vmem:[%s9778_s1 + $0x58] sm:$0xff]  ;;  %v7503_v23 = vld [vmem:[%s9778_s1 + $0x50] sm:$0xff] }
  0x13   : > { %4513 = vmatpush.bf16.msra.mxu1 %v7507_v6  ;;  %v7513_v15 = vld [vmem:[%s9778_s1 + $0xa0] sm:$0xff]  ;;  %v7512_v19 = vld [vmem:[%s9778_s1 + $0x98] sm:$0xff]  ;;  %v7511_v24 = vld [vmem:[%s9778_s1 + $0x90] sm:$0xff] }
  0x14   : > { %4526 = vmatpush.bf16.msra.mxu2 %v7515_v7  ;;  %v7521_v16 = vld [vmem:[%s9778_s1 + $0xe0] sm:$0xff]  ;;  %v7520_v20 = vld [vmem:[%s9778_s1 + $0xd8] sm:$0xff]  ;;  %v7519_v25 = vld [vmem:[%s9778_s1 + $0xd0] sm:$0xff] }
  0x15   : > { %4539 = vmatpush.bf16.msra.mxu3 %v7523_v8  ;;  %v222_v21 = vld [vmem:[%s8159_s5] sm:$0xff]  ;;  %v7494_v26 = vld [vmem:[%s9778_s1 + $0x8] sm:$0xff]  ;;  %v224_v32 = vld [vmem:[%s8159_s5 + $0x10] sm:$0xff] }
  0x16   : > { %4501 = vmatpush.bf16.msra.mxu0 %v7498_v9  ;;  %1267 = vst [vmem:[#allocation1] ss:$4 sm:$0xff] %v222_v21  ;;  %v7502_v27 = vld [vmem:[%s9778_s1 + $0x48] sm:$0xff]  ;;  %v7493_v30 = vld [vmem:[%s9778_s1] sm:$0xff]  ;;  %v7532_v39 = vld [vmem:[%s9778_s1 + $0x138] sm:$0xff] }
  0x17   : > { %4514 = vmatpush.bf16.msra.mxu1 %v7506_v10  ;;  %v7510_v28 = vld [vmem:[%s9778_s1 + $0x88] sm:$0xff]  ;;  %v7501_v31 = vld [vmem:[%s9778_s1 + $0x40] sm:$0xff]  ;;  %v7540_v40 = vld [vmem:[%s9778_s1 + $0x178] sm:$0xff] }
  0x18   : > { %4527 = vmatpush.bf16.msra.mxu2 %v7514_v11  ;;  %v7518_v29 = vld [vmem:[%s9778_s1 + $0xc8] sm:$0xff]  ;;  %v7509_v37 = vld [vmem:[%s9778_s1 + $0x80] sm:$0xff]  ;;  %v7548_v41 = vld [vmem:[%s9778_s1 + $0x1b8] sm:$0xff] }
  0x19   : > { %4540 = vmatpush.bf16.msra.mxu3 %v7522_v12  ;;  %v7517_v38 = vld [vmem:[%s9778_s1 + $0xc0] sm:$0xff]  ;;  %v7556_v42 = vld [vmem:[%s9778_s1 + $0x1f8] sm:$0xff]  ;;  %v223_v43 = vld [vmem:[%s8159_s5 + $0x8] sm:$0xff] }
  0x1a   : > { %4502 = vmatpush.bf16.msra.mxu0 %v7497_v13  ;;  %1270 = vst [vmem:[#allocation1 + $0x20] ss:$4 sm:$0xff] %v223_v43  ;;  %v7531_v44 = vld [vmem:[%s9778_s1 + $0x130] sm:$0xff]  ;;  %v7530_v48 = vld [vmem:[%s9778_s1 + $0x128] sm:$0xff]  ;;  %v225_v55 = vld [vmem:[%s8159_s5 + $0x18] sm:$0xff] }
  0x1b   : > { %4515 = vmatpush.bf16.msra.mxu1 %v7505_v14  ;;  %v7539_v45 = vld [vmem:[%s9778_s1 + $0x170] sm:$0xff]  ;;  %v7538_v49 = vld [vmem:[%s9778_s1 + $0x168] sm:$0xff]  ;;  %v7529_v57 = vld [vmem:[%s9778_s1 + $0x120] sm:$0xff] }
  0x1c   : > { %4528 = vmatpush.bf16.msra.mxu2 %v7513_v15  ;;  %v7547_v46 = vld [vmem:[%s9778_s1 + $0x1b0] sm:$0xff]  ;;  %v7546_v50 = vld [vmem:[%s9778_s1 + $0x1a8] sm:$0xff]  ;;  %v7537_v58 = vld [vmem:[%s9778_s1 + $0x160] sm:$0xff] }
  0x1d   : > { %4541 = vmatpush.bf16.msra.mxu3 %v7521_v16  ;;  %v1273_v33 = vld.sshfl [vmem:[#allocation1 + $0x10] sm:$0xff pattern:$0x73625140]  ;;  %v1271_v34 = vld.sshfl [vmem:[#allocation1] sm:$0xff pattern:$0x73625140] }
  0x1e   : > { %4503 = vmatpush.bf16.msra.mxu0 %v7496_v17  ;;  %v1274_v35 = vld.sshfl [vmem:[#allocation1 + $0x18] sm:$0xff pattern:$0x73625140]  ;;  %v1272_v36 = vld.sshfl [vmem:[#allocation1 + $0x8] sm:$0xff pattern:$0x73625140] }
  0x1f   : > { %4516 = vmatpush.bf16.msra.mxu1 %v7504_v18  ;;  %1280 = vst [vmem:[#allocation1] ss:$4 sm:$0xff] %v224_v32  ;;  %v7555_v47 = vld [vmem:[%s9778_s1 + $0x1f0] sm:$0xff]  ;;  %v7554_v51 = vld [vmem:[%s9778_s1 + $0x1e8] sm:$0xff]  ;;  %v7545_v59 = vld [vmem:[%s9778_s1 + $0x1a0] sm:$0xff] }
  0x20   : > { %4529 = vmatpush.bf16.msra.mxu2 %v7512_v19  ;;  %v7553_v60 = vld [vmem:[%s9778_s1 + $0x1e0] sm:$0xff]  ;;  %v7528_v61 = vld [vmem:[%s9778_s1 + $0x118] sm:$0xff]  ;;  %v7527_v1 = vld [vmem:[%s9778_s1 + $0x110] sm:$0xff] }
  0x21   : > { %4542 = vmatpush.bf16.msra.mxu3 %v7520_v20  ;;  %v8242_v52 = vld.sshfl [vmem:[#allocation1 + $0x30] sm:$0xff pattern:$0x73625140]  ;;  %v8244_v53 = vld.sshfl [vmem:[#allocation1 + $0x20] sm:$0xff pattern:$0x73625140] }
  0x22   : > { %4504 = vmatpush.bf16.msra.mxu0 %v7495_v22  ;;  %v8246_v54 = vld.sshfl [vmem:[#allocation1 + $0x38] sm:$0xff pattern:$0x73625140]  ;;  %v8249_v56 = vld.sshfl [vmem:[#allocation1 + $0x28] sm:$0xff pattern:$0x73625140] }
  0x23   : > { %4517 = vmatpush.bf16.msra.mxu1 %v7503_v23  ;;  %1282 = vst [vmem:[#allocation1 + $0x20] ss:$4 sm:$0xff] %v225_v55  ;;  %v7536_v62 = vld [vmem:[%s9778_s1 + $0x158] sm:$0xff]  ;;  %v7535_v2 = vld [vmem:[%s9778_s1 + $0x150] sm:$0xff]  ;;  %v7526_v5 = vld [vmem:[%s9778_s1 + $0x108] sm:$0xff] }
  0x24   : > { %4530 = vmatpush.bf16.msra.mxu2 %v7511_v24  ;;  %v7544_v63 = vld [vmem:[%s9778_s1 + $0x198] sm:$0xff]  ;;  %v7543_v3 = vld [vmem:[%s9778_s1 + $0x190] sm:$0xff]  ;;  %v7534_v6 = vld [vmem:[%s9778_s1 + $0x148] sm:$0xff] }
  0x25   : > { %4543 = vmatpush.bf16.msra.mxu3 %v7519_v25  ;;  %v7552_v0 = vld [vmem:[%s9778_s1 + $0x1d8] sm:$0xff]  ;;  %v7551_v4 = vld [vmem:[%s9778_s1 + $0x1d0] sm:$0xff]  ;;  %v7542_v7 = vld [vmem:[%s9778_s1 + $0x188] sm:$0xff] }
  0x26   : > { %4505 = vmatpush.bf16.msra.mxu0 %v7494_v26  ;;  %v7550_v8 = vld [vmem:[%s9778_s1 + $0x1c8] sm:$0xff]  ;;  %v7525_v9 = vld [vmem:[%s9778_s1 + $0x100] sm:$0xff]  ;;  %v7564_v13 = vld [vmem:[%s9778_s1 + $0x238] sm:$0xff] }
  0x27   : > { %4518 = vmatpush.bf16.msra.mxu1 %v7502_v27  ;;  %v7533_v10 = vld [vmem:[%s9778_s1 + $0x140] sm:$0xff]  ;;  %v7572_v14 = vld [vmem:[%s9778_s1 + $0x278] sm:$0xff]  ;;  %v7563_v17 = vld [vmem:[%s9778_s1 + $0x230] sm:$0xff] }
  0x28   : > { %4531 = vmatpush.bf16.msra.mxu2 %v7510_v28  ;;  %v7541_v11 = vld [vmem:[%s9778_s1 + $0x180] sm:$0xff]  ;;  %v7580_v15 = vld [vmem:[%s9778_s1 + $0x2b8] sm:$0xff]  ;;  %v7571_v18 = vld [vmem:[%s9778_s1 + $0x270] sm:$0xff] }
  0x29   : > { %4544 = vmatpush.bf16.msra.mxu3 %v7518_v29  ;;  %v7549_v12 = vld [vmem:[%s9778_s1 + $0x1c0] sm:$0xff]  ;;  %v7588_v16 = vld [vmem:[%s9778_s1 + $0x2f8] sm:$0xff]  ;;  %v7579_v19 = vld [vmem:[%s9778_s1 + $0x2b0] sm:$0xff] }
  0x2a   : > { %4506 = vmatpush.bf16.msra.mxu0 %v7493_v30  ;;  %v8332_v20 = vld.sshfl [vmem:[#allocation1] sm:$0xff pattern:$0x73625140]  ;;  %v8334_v21 = vld.sshfl [vmem:[#allocation1 + $0x10] sm:$0xff pattern:$0x73625140] }
  0x2b   : > { %4519 = vmatpush.bf16.msra.mxu1 %v7501_v31  ;;  %v8336_v22 = vld.sshfl [vmem:[#allocation1 + $0x8] sm:$0xff pattern:$0x73625140]  ;;  %v7587_v23 = vld [vmem:[%s9778_s1 + $0x2f0] sm:$0xff]  ;;  %v226_v24 = vld [vmem:[%s8159_s5 + $0x20] sm:$0xff] }
  0x2c   : > { %4532 = vmatpush.bf16.msra.mxu2 %v7509_v37  ;;  %v8342_v25 = vld.sshfl [vmem:[#allocation1 + $0x18] sm:$0xff pattern:$0x73625140]  ;;  %v7562_v26 = vld [vmem:[%s9778_s1 + $0x228] sm:$0xff]  ;;  %v7561_v30 = vld [vmem:[%s9778_s1 + $0x220] sm:$0xff] }
  0x2d   : > { %4545 = vmatpush.bf16.msra.mxu3 %v7517_v38  ;;  %4507 = vmatmul.bf16.vlgmr.msra.gmra.mxu0 %v1271_v34  ;;  %1292 = vst [vmem:[#allocation1] ss:$4 sm:$0xff] %v226_v24  ;;  %v7570_v27 = vld [vmem:[%s9778_s1 + $0x268] sm:$0xff]  ;;  %v7569_v31 = vld [vmem:[%s9778_s1 + $0x260] sm:$0xff]  ;;  %v7560_v34 = vld [vmem:[%s9778_s1 + $0x218] sm:$0xff] }
  0x2e   : > { %4551 = vmatpush.bf16.msrb.mxu0 %v7532_v39  ;;  %4520 = vmatmul.bf16.vlgmr.msra.gmra.mxu1 %v1272_v36  ;;  %v7578_v28 = vld [vmem:[%s9778_s1 + $0x2a8] sm:$0xff]  ;;  %v7577_v32 = vld [vmem:[%s9778_s1 + $0x2a0] sm:$0xff]  ;;  %v7576_v36 = vld [vmem:[%s9778_s1 + $0x298] sm:$0xff] }
  0x2f   : > { %4564 = vmatpush.bf16.msrb.mxu1 %v7540_v40  ;;  %4533 = vmatmul.bf16.vlgmr.msra.gmra.mxu2 %v1273_v33  ;;  %v7586_v29 = vld [vmem:[%s9778_s1 + $0x2e8] sm:$0xff]  ;;  %v7585_v33 = vld [vmem:[%s9778_s1 + $0x2e0] sm:$0xff]  ;;  %v7584_v37 = vld [vmem:[%s9778_s1 + $0x2d8] sm:$0xff] }
  0x30   : > { %4577 = vmatpush.bf16.msrb.mxu2 %v7548_v41  ;;  %4546 = vmatmul.bf16.vlgmr.msra.gmra.mxu3 %v1274_v35  ;;  %v7568_v35 = vld [vmem:[%s9778_s1 + $0x258] sm:$0xff]  ;;  %v7559_v38 = vld [vmem:[%s9778_s1 + $0x210] sm:$0xff]  ;;  %v7566_v43 = vld [vmem:[%s9778_s1 + $0x248] sm:$0xff] }
  0x31   : > { %4590 = vmatpush.bf16.msrb.mxu3 %v7556_v42  ;;  %v7567_v39 = vld [vmem:[%s9778_s1 + $0x250] sm:$0xff]  ;;  %v7558_v42 = vld [vmem:[%s9778_s1 + $0x208] sm:$0xff]  ;;  %v7636_v24 = vld [vmem:[%s9778_s1 + $0x478] sm:$0xff] }
  0x32   : > { %4552 = vmatpush.bf16.msrb.mxu0 %v7531_v44  ;;  %v7575_v40 = vld [vmem:[%s9778_s1 + $0x290] sm:$0xff]  ;;  %v7574_v44 = vld [vmem:[%s9778_s1 + $0x288] sm:$0xff] }
  0x33   : > { %4565 = vmatpush.bf16.msrb.mxu1 %v7539_v45  ;;  %v7583_v41 = vld [vmem:[%s9778_s1 + $0x2d0] sm:$0xff]  ;;  %v7582_v45 = vld [vmem:[%s9778_s1 + $0x2c8] sm:$0xff] }
  0x34   : > { %4578 = vmatpush.bf16.msrb.mxu2 %v7547_v46  ;;  %v7557_v46 = vld [vmem:[%s9778_s1 + $0x200] sm:$0xff]  ;;  %v7603_v55 = vld [vmem:[%s9778_s1 + $0x370] sm:$0xff] }
  0x35   : > { %4591 = vmatpush.bf16.msrb.mxu3 %v7555_v47  ;;  %v7565_v47 = vld [vmem:[%s9778_s1 + $0x240] sm:$0xff] }
  0x36   : > { %4553 = vmatpush.bf16.msrb.mxu0 %v7530_v48  ;;  %v7573_v48 = vld [vmem:[%s9778_s1 + $0x280] sm:$0xff] }
  0x37   : > { %4566 = vmatpush.bf16.msrb.mxu1 %v7538_v49  ;;  %v7581_v49 = vld [vmem:[%s9778_s1 + $0x2c0] sm:$0xff] }
  0x38   : > { %4579 = vmatpush.bf16.msrb.mxu2 %v7546_v50  ;;  %v7596_v50 = vld [vmem:[%s9778_s1 + $0x338] sm:$0xff] }
  0x39   : > { %4592 = vmatpush.bf16.msrb.mxu3 %v7554_v51  ;;  %v7604_v51 = vld [vmem:[%s9778_s1 + $0x378] sm:$0xff] }
  0x3a   : > { %4554 = vmatpush.bf16.msrb.mxu0 %v7529_v57  ;;  %v8441_v57 = vld.sshfl [vmem:[#allocation1 + $0x20] sm:$0xff pattern:$0x73625140] }
  0x3b   : > { %4567 = vmatpush.bf16.msrb.mxu1 %v7537_v58  ;;  %v8443_v58 = vld.sshfl [vmem:[#allocation1 + $0x30] sm:$0xff pattern:$0x73625140] }
  0x3c   : > { %4580 = vmatpush.bf16.msrb.mxu2 %v7545_v59  ;;  %v8445_v59 = vld.sshfl [vmem:[#allocation1 + $0x28] sm:$0xff pattern:$0x73625140] }
  0x3d   : > { %4593 = vmatpush.bf16.msrb.mxu3 %v7553_v60  ;;  %v7619_v60 = vld [vmem:[%s9778_s1 + $0x3f0] sm:$0xff] }
  0x3e   : > { %4555 = vmatpush.bf16.msrb.mxu0 %v7528_v61  ;;  %v227_v61 = vld [vmem:[%s8159_s5 + $0x28] sm:$0xff] }
  0x3f   : > { %4568 = vmatpush.bf16.msrb.mxu1 %v7536_v62  ;;  %v8451_v62 = vld.sshfl [vmem:[#allocation1 + $0x38] sm:$0xff pattern:$0x73625140] }
  0x40   : > { %4581 = vmatpush.bf16.msrb.mxu2 %v7544_v63  ;;  %1294 = vst [vmem:[#allocation1 + $0x20] ss:$4 sm:$0xff] %v227_v61  ;;  %v7594_v63 = vld [vmem:[%s9778_s1 + $0x328] sm:$0xff] }
  0x41   : > { %4594 = vmatpush.bf16.msrb.mxu3 %v7552_v0  ;;  %v7602_v0 = vld [vmem:[%s9778_s1 + $0x368] sm:$0xff] }
  0x42   : > { %4556 = vmatpush.bf16.msrb.mxu0 %v7527_v1  ;;  %v7610_v1 = vld [vmem:[%s9778_s1 + $0x3a8] sm:$0xff] }
  0x43   : > { %4569 = vmatpush.bf16.msrb.mxu1 %v7535_v2  ;;  %v7618_v2 = vld [vmem:[%s9778_s1 + $0x3e8] sm:$0xff] }
  0x44   : > { %4582 = vmatpush.bf16.msrb.mxu2 %v7543_v3  ;;  %v7593_v3 = vld [vmem:[%s9778_s1 + $0x320] sm:$0xff]  ;;  %v1296_v61 = vld.sshfl [vmem:[#allocation1 + $0x8] sm:$0xff pattern:$0x73625140] }
  0x45   : > { %4595 = vmatpush.bf16.msrb.mxu3 %v7551_v4  ;;  %v7601_v4 = vld [vmem:[%s9778_s1 + $0x360] sm:$0xff] }
  0x46   : > { %4557 = vmatpush.bf16.msrb.mxu0 %v7526_v5  ;;  %v7609_v5 = vld [vmem:[%s9778_s1 + $0x3a0] sm:$0xff] }
  0x47   : > { %4570 = vmatpush.bf16.msrb.mxu1 %v7534_v6  ;;  %v7617_v6 = vld [vmem:[%s9778_s1 + $0x3e0] sm:$0xff] }
  0x48   : > { %4583 = vmatpush.bf16.msrb.mxu2 %v7542_v7  ;;  %v7592_v7 = vld [vmem:[%s9778_s1 + $0x318] sm:$0xff] }
  0x49   : > { %4596 = vmatpush.bf16.msrb.mxu3 %v7550_v8  ;;  %v7600_v8 = vld [vmem:[%s9778_s1 + $0x358] sm:$0xff] }
  0x4a   : > { %4558 = vmatpush.bf16.msrb.mxu0 %v7525_v9  ;;  %v7608_v9 = vld [vmem:[%s9778_s1 + $0x398] sm:$0xff] }
  0x4b   : > { %4571 = vmatpush.bf16.msrb.mxu1 %v7533_v10  ;;  %v7616_v10 = vld [vmem:[%s9778_s1 + $0x3d8] sm:$0xff] }
  0x4c   : > { %4584 = vmatpush.bf16.msrb.mxu2 %v7541_v11  ;;  %v7591_v11 = vld [vmem:[%s9778_s1 + $0x310] sm:$0xff] }
  0x4d   : > { %4597 = vmatpush.bf16.msrb.mxu3 %v7549_v12  ;;  %4559 = vmatmul.bf16.vlgmr.msrb.gmra.mxu0 %v8244_v53  ;;  %v7620_v53 = vld [vmem:[%s9778_s1 + $0x3f8] sm:$0xff]  ;;  %v7599_v12 = vld [vmem:[%s9778_s1 + $0x350] sm:$0xff] }
  0x4e   : > { %4603 = vmatpush.bf16.msra.mxu0 %v7564_v13  ;;  %4572 = vmatmul.bf16.vlgmr.msrb.gmra.mxu1 %v8249_v56  ;;  %v7611_v56 = vld [vmem:[%s9778_s1 + $0x3b0] sm:$0xff] }
  0x4f   : > { %4616 = vmatpush.bf16.msra.mxu1 %v7572_v14  ;;  %4585 = vmatmul.bf16.vlgmr.msrb.gmra.mxu2 %v8242_v52  ;;  %v7612_v52 = vld [vmem:[%s9778_s1 + $0x3b8] sm:$0xff]  ;;  %v7607_v13 = vld [vmem:[%s9778_s1 + $0x390] sm:$0xff] }
  0x50   : > { %4629 = vmatpush.bf16.msra.mxu2 %v7580_v15  ;;  %4598 = vmatmul.bf16.vlgmr.msrb.gmra.mxu3 %v8246_v54  ;;  %v7595_v54 = vld [vmem:[%s9778_s1 + $0x330] sm:$0xff]  ;;  %v7590_v15 = vld [vmem:[%s9778_s1 + $0x308] sm:$0xff] }
  0x51   : > { %4642 = vmatpush.bf16.msra.mxu3 %v7588_v16  ;;  %v7615_v14 = vld [vmem:[%s9778_s1 + $0x3d0] sm:$0xff]  ;;  %v7598_v16 = vld [vmem:[%s9778_s1 + $0x348] sm:$0xff] }
  0x52   : > { %4604 = vmatpush.bf16.msra.mxu0 %v7563_v17  ;;  %v7606_v17 = vld [vmem:[%s9778_s1 + $0x388] sm:$0xff] }
  0x53   : > { %4617 = vmatpush.bf16.msra.mxu1 %v7571_v18  ;;  %v7614_v18 = vld [vmem:[%s9778_s1 + $0x3c8] sm:$0xff] }
  0x54   : > { %4630 = vmatpush.bf16.msra.mxu2 %v7579_v19  ;;  %v7589_v19 = vld [vmem:[%s9778_s1 + $0x300] sm:$0xff] }
  0x55   : > { %4643 = vmatpush.bf16.msra.mxu3 %v7587_v23  ;;  %v7628_v23 = vld [vmem:[%s9778_s1 + $0x438] sm:$0xff] }
  0x56   : > { %4605 = vmatpush.bf16.msra.mxu0 %v7562_v26  ;;  %v7652_v26 = vld [vmem:[%s9778_s1 + $0x4f8] sm:$0xff] }
  0x57   : > { %4618 = vmatpush.bf16.msra.mxu1 %v7570_v27  ;;  %v7627_v27 = vld [vmem:[%s9778_s1 + $0x430] sm:$0xff] }
  0x58   : > { %4631 = vmatpush.bf16.msra.mxu2 %v7578_v28  ;;  %v7635_v28 = vld [vmem:[%s9778_s1 + $0x470] sm:$0xff] }
  0x59   : > { %4644 = vmatpush.bf16.msra.mxu3 %v7586_v29  ;;  %v7643_v29 = vld [vmem:[%s9778_s1 + $0x4b0] sm:$0xff] }
  0x5a   : > { %4606 = vmatpush.bf16.msra.mxu0 %v7561_v30  ;;  %v7651_v30 = vld [vmem:[%s9778_s1 + $0x4f0] sm:$0xff] }
  0x5b   : > { %4619 = vmatpush.bf16.msra.mxu1 %v7569_v31  ;;  %v7626_v31 = vld [vmem:[%s9778_s1 + $0x428] sm:$0xff] }
  0x5c   : > { %4632 = vmatpush.bf16.msra.mxu2 %v7577_v32  ;;  %v7634_v32 = vld [vmem:[%s9778_s1 + $0x468] sm:$0xff] }
  0x5d   : > { %4645 = vmatpush.bf16.msra.mxu3 %v7585_v33  ;;  %v7642_v33 = vld [vmem:[%s9778_s1 + $0x4a8] sm:$0xff] }
  0x5e   : > { %4607 = vmatpush.bf16.msra.mxu0 %v7560_v34  ;;  %v7650_v34 = vld [vmem:[%s9778_s1 + $0x4e8] sm:$0xff] }
  0x5f   : > { %4620 = vmatpush.bf16.msra.mxu1 %v7568_v35  ;;  %v7625_v35 = vld [vmem:[%s9778_s1 + $0x420] sm:$0xff] }
  0x60   : > { %4633 = vmatpush.bf16.msra.mxu2 %v7576_v36  ;;  %v7633_v36 = vld [vmem:[%s9778_s1 + $0x460] sm:$0xff] }
  0x61   : > { %4646 = vmatpush.bf16.msra.mxu3 %v7584_v37  ;;  %v7641_v37 = vld [vmem:[%s9778_s1 + $0x4a0] sm:$0xff] }
  0x62   : > { %4608 = vmatpush.bf16.msra.mxu0 %v7559_v38  ;;  %v7649_v38 = vld [vmem:[%s9778_s1 + $0x4e0] sm:$0xff] }
  0x63   : > { %4621 = vmatpush.bf16.msra.mxu1 %v7567_v39  ;;  %v7624_v39 = vld [vmem:[%s9778_s1 + $0x418] sm:$0xff] }
  0x64   : > { %4634 = vmatpush.bf16.msra.mxu2 %v7575_v40  ;;  %v7632_v40 = vld [vmem:[%s9778_s1 + $0x458] sm:$0xff] }
  0x65   : > { %4647 = vmatpush.bf16.msra.mxu3 %v7583_v41  ;;  %v7640_v41 = vld [vmem:[%s9778_s1 + $0x498] sm:$0xff] }
  0x66   : > { %4609 = vmatpush.bf16.msra.mxu0 %v7558_v42  ;;  %v7648_v42 = vld [vmem:[%s9778_s1 + $0x4d8] sm:$0xff] }
  0x67   : > { %4622 = vmatpush.bf16.msra.mxu1 %v7566_v43  ;;  %v7623_v43 = vld [vmem:[%s9778_s1 + $0x410] sm:$0xff] }
  0x68   : > { %4635 = vmatpush.bf16.msra.mxu2 %v7574_v44  ;;  %v7631_v44 = vld [vmem:[%s9778_s1 + $0x450] sm:$0xff] }
  0x69   : > { %4648 = vmatpush.bf16.msra.mxu3 %v7582_v45  ;;  %v7639_v45 = vld [vmem:[%s9778_s1 + $0x490] sm:$0xff] }
  0x6a   : > { %4610 = vmatpush.bf16.msra.mxu0 %v7557_v46  ;;  %v7647_v46 = vld [vmem:[%s9778_s1 + $0x4d0] sm:$0xff] }
  0x6b   : > { %4623 = vmatpush.bf16.msra.mxu1 %v7565_v47  ;;  %v7622_v47 = vld [vmem:[%s9778_s1 + $0x408] sm:$0xff] }
  0x6c   : > { %4636 = vmatpush.bf16.msra.mxu2 %v7573_v48  ;;  %v7630_v48 = vld [vmem:[%s9778_s1 + $0x448] sm:$0xff] }
  0x6d   : > { %4649 = vmatpush.bf16.msra.mxu3 %v7581_v49  ;;  %4611 = vmatmul.bf16.vlgmr.msra.gmra.mxu0 %v8332_v20  ;;  %v7597_v20 = vld [vmem:[%s9778_s1 + $0x340] sm:$0xff]  ;;  %v7638_v49 = vld [vmem:[%s9778_s1 + $0x488] sm:$0xff] }
  0x6e   : > { %4655 = vmatpush.bf16.msrb.mxu0 %v7596_v50  ;;  %4624 = vmatmul.bf16.vlgmr.msra.gmra.mxu1 %v8336_v22  ;;  %v7613_v22 = vld [vmem:[%s9778_s1 + $0x3c0] sm:$0xff]  ;;  %v7646_v50 = vld [vmem:[%s9778_s1 + $0x4c8] sm:$0xff] }
  0x6f   : > { %4668 = vmatpush.bf16.msrb.mxu1 %v7604_v51  ;;  %4637 = vmatmul.bf16.vlgmr.msra.gmra.mxu2 %v8334_v21  ;;  %v7605_v21 = vld [vmem:[%s9778_s1 + $0x380] sm:$0xff] }
  0x70   : > { %4681 = vmatpush.bf16.msrb.mxu2 %v7612_v52  ;;  %4650 = vmatmul.bf16.vlgmr.msra.gmra.mxu3 %v8342_v25  ;;  %v7644_v25 = vld [vmem:[%s9778_s1 + $0x4b8] sm:$0xff]  ;;  %v7621_v51 = vld [vmem:[%s9778_s1 + $0x400] sm:$0xff] }
  0x71   : > { %4694 = vmatpush.bf16.msrb.mxu3 %v7620_v53  ;;  %v7629_v52 = vld [vmem:[%s9778_s1 + $0x440] sm:$0xff] }
  0x72   : > { %4656 = vmatpush.bf16.msrb.mxu0 %v7595_v54  ;;  %v7637_v53 = vld [vmem:[%s9778_s1 + $0x480] sm:$0xff] }
  0x73   : > { %4669 = vmatpush.bf16.msrb.mxu1 %v7603_v55  ;;  %v7645_v54 = vld [vmem:[%s9778_s1 + $0x4c0] sm:$0xff]  ;;  %v7660_v55 = vld [vmem:[%s9778_s1 + $0x538] sm:$0xff] }
  0x74   : > { %4682 = vmatpush.bf16.msrb.mxu2 %v7611_v56  ;;  %v7668_v56 = vld [vmem:[%s9778_s1 + $0x578] sm:$0xff] }
  0x75   : > { %4695 = vmatpush.bf16.msrb.mxu3 %v7619_v60  ;;  %v1297_v60 = vld.sshfl [vmem:[#allocation1 + $0x10] sm:$0xff pattern:$0x73625140] }
  0x76   : > { %4657 = vmatpush.bf16.msrb.mxu0 %v7594_v63  ;;  %v7659_v63 = vld [vmem:[%s9778_s1 + $0x530] sm:$0xff] }
  0x77   : > { %4670 = vmatpush.bf16.msrb.mxu1 %v7602_v0  ;;  %v7667_v0 = vld [vmem:[%s9778_s1 + $0x570] sm:$0xff] }
  0x78   : > { %4683 = vmatpush.bf16.msrb.mxu2 %v7610_v1  ;;  %v7675_v1 = vld [vmem:[%s9778_s1 + $0x5b0] sm:$0xff] }
  0x79   : > { %4696 = vmatpush.bf16.msrb.mxu3 %v7618_v2  ;;  %v7683_v2 = vld [vmem:[%s9778_s1 + $0x5f0] sm:$0xff] }
  0x7a   : > { %4658 = vmatpush.bf16.msrb.mxu0 %v7593_v3  ;;  %v7658_v3 = vld [vmem:[%s9778_s1 + $0x528] sm:$0xff] }
  0x7b   : > { %4671 = vmatpush.bf16.msrb.mxu1 %v7601_v4  ;;  %v7666_v4 = vld [vmem:[%s9778_s1 + $0x568] sm:$0xff] }
  0x7c   : > { %4684 = vmatpush.bf16.msrb.mxu2 %v7609_v5  ;;  %v8029_v5 = vld [vmem:[#allocation2] ss:$0 sm:$0xff] }
  0x7d   : > { %4697 = vmatpush.bf16.msrb.mxu3 %v7617_v6  ;;  %v7674_v6 = vld [vmem:[%s9778_s1 + $0x5a8] sm:$0xff] }
  0x7e   : > { %4659 = vmatpush.bf16.msrb.mxu0 %v7592_v7  ;;  %v7682_v7 = vld [vmem:[%s9778_s1 + $0x5e8] sm:$0xff] }
  0x7f   : > { %4672 = vmatpush.bf16.msrb.mxu1 %v7600_v8 }
  0x80   : > { %4685 = vmatpush.bf16.msrb.mxu2 %v7608_v9  ;;  %v7657_v9 = vld [vmem:[%s9778_s1 + $0x520] sm:$0xff] }
  0x81   : > { %4698 = vmatpush.bf16.msrb.mxu3 %v7616_v10  ;;  %v7665_v10 = vld [vmem:[%s9778_s1 + $0x560] sm:$0xff] }
  0x82   : > { %4660 = vmatpush.bf16.msrb.mxu0 %v7591_v11 }
  0x83   : > { %4673 = vmatpush.bf16.msrb.mxu1 %v7599_v12 }
  0x84   : > { %4686 = vmatpush.bf16.msrb.mxu2 %v7607_v13  ;;  %v7673_v13 = vld [vmem:[%s9778_s1 + $0x5a0] sm:$0xff] }
  0x85   : > { %4699 = vmatpush.bf16.msrb.mxu3 %v7615_v14  ;;  %v7681_v14 = vld [vmem:[%s9778_s1 + $0x5e0] sm:$0xff] }
  0x86   : > { %4661 = vmatpush.bf16.msrb.mxu0 %v7590_v15 }
  0x87   : > { %4674 = vmatpush.bf16.msrb.mxu1 %v7598_v16  ;;  %v7656_v16 = vld [vmem:[%s9778_s1 + $0x518] sm:$0xff] }
  0x88   : > { %4687 = vmatpush.bf16.msrb.mxu2 %v7606_v17  ;;  %v7664_v17 = vld [vmem:[%s9778_s1 + $0x558] sm:$0xff] }
  0x89   : > { %4700 = vmatpush.bf16.msrb.mxu3 %v7614_v18  ;;  %v7672_v18 = vld [vmem:[%s9778_s1 + $0x598] sm:$0xff] }
  0x8a   : > { %4662 = vmatpush.bf16.msrb.mxu0 %v7589_v19  ;;  %v7680_v19 = vld [vmem:[%s9778_s1 + $0x5d8] sm:$0xff] }
  0x8b   : > { %4675 = vmatpush.bf16.msrb.mxu1 %v7597_v20 }
  0x8c   : > { %4688 = vmatpush.bf16.msrb.mxu2 %v7605_v21 }
  0x8d   : > { %4701 = vmatpush.bf16.msrb.mxu3 %v7613_v22  ;;  %4663 = vmatmul.bf16.vlgmr.msrb.gmra.mxu0 %v8441_v57  ;;  %v7676_v57 = vld [vmem:[%s9778_s1 + $0x5b8] sm:$0xff] }
  0x8e   : > { %4707 = vmatpush.bf16.msra.mxu0 %v7628_v23  ;;  %4676 = vmatmul.bf16.vlgmr.msrb.gmra.mxu1 %v8445_v59  ;;  %v1295_v59 = vld.sshfl [vmem:[#allocation1] sm:$0xff pattern:$0x73625140] }
  0x8f   : > { %4720 = vmatpush.bf16.msra.mxu1 %v7636_v24  ;;  %4689 = vmatmul.bf16.vlgmr.msrb.gmra.mxu2 %v8443_v58  ;;  %v7684_v58 = vld [vmem:[%s9778_s1 + $0x5f8] sm:$0xff]  ;;  %v7655_v24 = vld [vmem:[%s9778_s1 + $0x510] sm:$0xff] }
  0x90   : > { %4733 = vmatpush.bf16.msra.mxu2 %v7644_v25  ;;  %4702 = vmatmul.bf16.vlgmr.msrb.gmra.mxu3 %v8451_v62  ;;  %v1298_v62 = vld.sshfl [vmem:[#allocation1 + $0x18] sm:$0xff pattern:$0x73625140]  ;;  %v7663_v25 = vld [vmem:[%s9778_s1 + $0x550] sm:$0xff] }
  0x91   : > { %4746 = vmatpush.bf16.msra.mxu3 %v7652_v26 }
  0x92   : > { %4708 = vmatpush.bf16.msra.mxu0 %v7627_v27 }
  0x93   : > { %4721 = vmatpush.bf16.msra.mxu1 %v7635_v28  ;;  %v7671_v28 = vld [vmem:[%s9778_s1 + $0x590] sm:$0xff] }
  0x94   : > { %4734 = vmatpush.bf16.msra.mxu2 %v7643_v29  ;;  %v7679_v29 = vld [vmem:[%s9778_s1 + $0x5d0] sm:$0xff] }
  0x95   : > { %4747 = vmatpush.bf16.msra.mxu3 %v7651_v30  ;;  %v7654_v30 = vld [vmem:[%s9778_s1 + $0x508] sm:$0xff] }
  0x96   : > { %4709 = vmatpush.bf16.msra.mxu0 %v7626_v31  ;;  %v7662_v31 = vld [vmem:[%s9778_s1 + $0x548] sm:$0xff] }
  0x97   : > { %4722 = vmatpush.bf16.msra.mxu1 %v7634_v32  ;;  %v7670_v32 = vld [vmem:[%s9778_s1 + $0x588] sm:$0xff] }
  0x98   : > { %4735 = vmatpush.bf16.msra.mxu2 %v7642_v33  ;;  %v7678_v33 = vld [vmem:[%s9778_s1 + $0x5c8] sm:$0xff] }
  0x99   : > { %4748 = vmatpush.bf16.msra.mxu3 %v7650_v34 }
  0x9a   : > { %4710 = vmatpush.bf16.msra.mxu0 %v7625_v35 }
  0x9b   : > { %4723 = vmatpush.bf16.msra.mxu1 %v7633_v36  ;;  %v228_v36 = vld [vmem:[%s8159_s5 + $0x30] sm:$0xff] }
  0x9c   : > { %4736 = vmatpush.bf16.msra.mxu2 %v7641_v37  ;;  %1304 = vst [vmem:[#allocation1] ss:$4 sm:$0xff] %v228_v36  ;;  %v7653_v37 = vld [vmem:[%s9778_s1 + $0x500] sm:$0xff]  ;;  %v7739_v36 = vld [vmem:[%s9778_s1 + $0x7b0] sm:$0xff] }
  0x9d   : > { %4749 = vmatpush.bf16.msra.mxu3 %v7649_v38  ;;  %v7661_v38 = vld [vmem:[%s9778_s1 + $0x540] sm:$0xff] }
  0x9e   : > { %4711 = vmatpush.bf16.msra.mxu0 %v7624_v39  ;;  %v7669_v39 = vld [vmem:[%s9778_s1 + $0x580] sm:$0xff] }
  0x9f   : > { %4724 = vmatpush.bf16.msra.mxu1 %v7632_v40  ;;  %v7677_v40 = vld [vmem:[%s9778_s1 + $0x5c0] sm:$0xff] }
  0xa0   : > { %4737 = vmatpush.bf16.msra.mxu2 %v7640_v41  ;;  %v7692_v41 = vld [vmem:[%s9778_s1 + $0x638] sm:$0xff] }
  0xa1   : > { %4750 = vmatpush.bf16.msra.mxu3 %v7648_v42  ;;  %v7700_v42 = vld [vmem:[%s9778_s1 + $0x678] sm:$0xff] }
  0xa2   : > { %4712 = vmatpush.bf16.msra.mxu0 %v7623_v43  ;;  %v7708_v43 = vld [vmem:[%s9778_s1 + $0x6b8] sm:$0xff] }
  0xa3   : > { %4725 = vmatpush.bf16.msra.mxu1 %v7631_v44  ;;  %v7716_v44 = vld [vmem:[%s9778_s1 + $0x6f8] sm:$0xff] }
  0xa4   : > { %4738 = vmatpush.bf16.msra.mxu2 %v7639_v45  ;;  %v1299_v45 = vld.sshfl [vmem:[#allocation1 + $0x20] sm:$0xff pattern:$0x73625140] }
  0xa5   : > { %4751 = vmatpush.bf16.msra.mxu3 %v7647_v46  ;;  %v1301_v46 = vld.sshfl [vmem:[#allocation1 + $0x30] sm:$0xff pattern:$0x73625140] }
  0xa6   : > { %4713 = vmatpush.bf16.msra.mxu0 %v7622_v47  ;;  %v1300_v47 = vld.sshfl [vmem:[#allocation1 + $0x28] sm:$0xff pattern:$0x73625140] }
  0xa7   : > { %4726 = vmatpush.bf16.msra.mxu1 %v7630_v48  ;;  %v1302_v48 = vld.sshfl [vmem:[#allocation1 + $0x38] sm:$0xff pattern:$0x73625140] }
  0xa8   : > { %4739 = vmatpush.bf16.msra.mxu2 %v7638_v49  ;;  %v7691_v49 = vld [vmem:[%s9778_s1 + $0x630] sm:$0xff] }
  0xa9   : > { %4752 = vmatpush.bf16.msra.mxu3 %v7646_v50  ;;  %v7699_v50 = vld [vmem:[%s9778_s1 + $0x670] sm:$0xff] }
  0xaa   : > { %4714 = vmatpush.bf16.msra.mxu0 %v7621_v51  ;;  %v4508_v8 = vpop.f32.mrf.mxu0  ;;  %v7707_v51 = vld [vmem:[%s9778_s1 + $0x6b0] sm:$0xff] }
  0xab   : > { %4727 = vmatpush.bf16.msra.mxu1 %v7629_v52  ;;  %v4509_v11 = vadd.f32 %v8029_v5, %v4508_v8  ;;  %v4521_v12 = vpop.f32.mrf.mxu1  ;;  %v7715_v52 = vld [vmem:[%s9778_s1 + $0x6f0] sm:$0xff] }
  0xac   : > { %4740 = vmatpush.bf16.msra.mxu2 %v7637_v53  ;;  %v7690_v53 = vld [vmem:[%s9778_s1 + $0x628] sm:$0xff] }
  0xad   : > { %4753 = vmatpush.bf16.msra.mxu3 %v7645_v54  ;;  %4715 = vmatmul.bf16.vlgmr.msra.gmra.mxu0 %v1295_v59  ;;  %v4522_v15 = vadd.f32 %v4521_v12, %v4509_v11  ;;  %v7698_v54 = vld [vmem:[%s9778_s1 + $0x668] sm:$0xff]  ;;  %v7697_v59 = vld [vmem:[%s9778_s1 + $0x660] sm:$0xff] }
  0xae   : > { %4759 = vmatpush.bf16.msrb.mxu0 %v7660_v55  ;;  %4728 = vmatmul.bf16.vlgmr.msra.gmra.mxu1 %v1296_v61  ;;  %v7706_v55 = vld [vmem:[%s9778_s1 + $0x6a8] sm:$0xff] }
  0xaf   : > { %4772 = vmatpush.bf16.msrb.mxu1 %v7668_v56  ;;  %4741 = vmatmul.bf16.vlgmr.msra.gmra.mxu2 %v1297_v60  ;;  %v7714_v56 = vld [vmem:[%s9778_s1 + $0x6e8] sm:$0xff] }
  0xb0   : > { %4785 = vmatpush.bf16.msrb.mxu2 %v7676_v57  ;;  %4754 = vmatmul.bf16.vlgmr.msra.gmra.mxu3 %v1298_v62  ;;  %v7705_v62 = vld [vmem:[%s9778_s1 + $0x6a0] sm:$0xff] }
  0xb1   : > { %4798 = vmatpush.bf16.msrb.mxu3 %v7684_v58  ;;  %v7689_v58 = vld [vmem:[%s9778_s1 + $0x620] sm:$0xff] }
  0xb2   : > { %4760 = vmatpush.bf16.msrb.mxu0 %v7659_v63  ;;  %v4534_v20 = vpop.f32.mrf.mxu2  ;;  %v4510_v23 = vpop.f32.mrf.mxu0  ;;  %v7713_v63 = vld [vmem:[%s9778_s1 + $0x6e0] sm:$0xff] }
  0xb3   : > { %4773 = vmatpush.bf16.msrb.mxu1 %v7667_v0  ;;  %v4535_v21 = vadd.f32 %v4534_v20, %v4522_v15  ;;  %v4547_v22 = vpop.f32.mrf.mxu3  ;;  %v4523_v27 = vpop.f32.mrf.mxu1  ;;  %v7686_v15 = vld [vmem:[%s9778_s1 + $0x608] sm:$0xff]  ;;  %v7693_v23 = vld [vmem:[%s9778_s1 + $0x640] sm:$0xff] }
  0xb4   : > { %4786 = vmatpush.bf16.msrb.mxu2 %v7675_v1  ;;  %v7688_v1 = vld [vmem:[%s9778_s1 + $0x618] sm:$0xff] }
  0xb5   : > { %4799 = vmatpush.bf16.msrb.mxu3 %v7683_v2  ;;  %v8695_v26 = vadd.f32 %v4547_v22, %v4535_v21  ;;  %v7696_v2 = vld [vmem:[%s9778_s1 + $0x658] sm:$0xff]  ;;  %v7685_v22 = vld [vmem:[%s9778_s1 + $0x600] sm:$0xff] }
  0xb6   : > { %4761 = vmatpush.bf16.msrb.mxu0 %v7658_v3  ;;  %v7704_v3 = vld [vmem:[%s9778_s1 + $0x698] sm:$0xff] }
  0xb7   : > { %4774 = vmatpush.bf16.msrb.mxu1 %v7666_v4  ;;  %v7712_v4 = vld [vmem:[%s9778_s1 + $0x6d8] sm:$0xff] }
  0xb8   : > { %4787 = vmatpush.bf16.msrb.mxu2 %v7674_v6  ;;  %v229_v21 = vld [vmem:[%s8159_s5 + $0x38] sm:$0xff] }
  0xb9   : > { %4800 = vmatpush.bf16.msrb.mxu3 %v7682_v7  ;;  %1306 = vst [vmem:[#allocation1 + $0x20] ss:$4 sm:$0xff] %v229_v21  ;;  %v7732_v27 = vld [vmem:[%s9778_s1 + $0x778] sm:$0xff]  ;;  %v7771_v21 = vld [vmem:[%s9778_s1 + $0x8b0] sm:$0xff] }
  0xba   : > { %4762 = vmatpush.bf16.msrb.mxu0 %v7657_v9  ;;  %v4536_v34 = vpop.f32.mrf.mxu2  ;;  %v7687_v9 = vld [vmem:[%s9778_s1 + $0x610] sm:$0xff] }
  0xbb   : > { %4775 = vmatpush.bf16.msrb.mxu1 %v7665_v10  ;;  %v4549_v35 = vpop.f32.mrf.mxu3  ;;  %v7695_v10 = vld [vmem:[%s9778_s1 + $0x650] sm:$0xff] }
  0xbc   : > { %4788 = vmatpush.bf16.msrb.mxu2 %v7673_v13  ;;  %v7703_v13 = vld [vmem:[%s9778_s1 + $0x690] sm:$0xff] }
  0xbd   : > { %4801 = vmatpush.bf16.msrb.mxu3 %v7681_v14  ;;  %v7711_v14 = vld [vmem:[%s9778_s1 + $0x6d0] sm:$0xff] }
  0xbe   : > { %4763 = vmatpush.bf16.msrb.mxu0 %v7656_v16  ;;  %v7694_v16 = vld [vmem:[%s9778_s1 + $0x648] sm:$0xff]  ;;  %v7723_v34 = vld [vmem:[%s9778_s1 + $0x730] sm:$0xff] }
  0xbf   : > { %4776 = vmatpush.bf16.msrb.mxu1 %v7664_v17  ;;  %v7702_v17 = vld [vmem:[%s9778_s1 + $0x688] sm:$0xff]  ;;  %v7731_v35 = vld [vmem:[%s9778_s1 + $0x770] sm:$0xff] }
  0xc0   : > { %4789 = vmatpush.bf16.msrb.mxu2 %v7672_v18  ;;  %v7710_v18 = vld [vmem:[%s9778_s1 + $0x6c8] sm:$0xff] }
  0xc1   : > { %4802 = vmatpush.bf16.msrb.mxu3 %v7680_v19 }
  0xc2   : > { %4764 = vmatpush.bf16.msrb.mxu0 %v7655_v24  ;;  %v7701_v24 = vld [vmem:[%s9778_s1 + $0x680] sm:$0xff] }
  0xc3   : > { %4777 = vmatpush.bf16.msrb.mxu1 %v7663_v25  ;;  %v7709_v25 = vld [vmem:[%s9778_s1 + $0x6c0] sm:$0xff] }
  0xc4   : > { %4790 = vmatpush.bf16.msrb.mxu2 %v7671_v28  ;;  %v7740_v28 = vld [vmem:[%s9778_s1 + $0x7b8] sm:$0xff] }
  0xc5   : > { %4803 = vmatpush.bf16.msrb.mxu3 %v7679_v29  ;;  %v7748_v29 = vld [vmem:[%s9778_s1 + $0x7f8] sm:$0xff] }
  0xc6   : > { %4765 = vmatpush.bf16.msrb.mxu0 %v7654_v30  ;;  %v1307_v30 = vld.sshfl [vmem:[#allocation1] sm:$0xff pattern:$0x73625140] }
  0xc7   : > { %4778 = vmatpush.bf16.msrb.mxu1 %v7662_v31  ;;  %v1309_v31 = vld.sshfl [vmem:[#allocation1 + $0x10] sm:$0xff pattern:$0x73625140] }
  0xc8   : > { %4791 = vmatpush.bf16.msrb.mxu2 %v7670_v32  ;;  %v1308_v32 = vld.sshfl [vmem:[#allocation1 + $0x8] sm:$0xff pattern:$0x73625140] }
  0xc9   : > { %4804 = vmatpush.bf16.msrb.mxu3 %v7678_v33  ;;  %v1310_v33 = vld.sshfl [vmem:[#allocation1 + $0x18] sm:$0xff pattern:$0x73625140] }
  0xca   : > { %4766 = vmatpush.bf16.msrb.mxu0 %v7653_v37  ;;  %v4560_v57 = vpop.f32.mrf.mxu0  ;;  %v7747_v37 = vld [vmem:[%s9778_s1 + $0x7f0] sm:$0xff] }
  0xcb   : > { %4779 = vmatpush.bf16.msrb.mxu1 %v7661_v38  ;;  %v4561_v60 = vadd.f32 %v4560_v57, %v8695_v26  ;;  %v4573_v61 = vpop.f32.mrf.mxu1  ;;  %v7724_v26 = vld [vmem:[%s9778_s1 + $0x738] sm:$0xff]  ;;  %v7722_v38 = vld [vmem:[%s9778_s1 + $0x728] sm:$0xff] }
  0xcc   : > { %4792 = vmatpush.bf16.msrb.mxu2 %v7669_v39  ;;  %v7730_v39 = vld [vmem:[%s9778_s1 + $0x768] sm:$0xff] }
  0xcd   : > { %4805 = vmatpush.bf16.msrb.mxu3 %v7677_v40  ;;  %4767 = vmatmul.bf16.vlgmr.msrb.gmra.mxu0 %v1299_v45  ;;  %v4574_v0 = vadd.f32 %v4573_v61, %v4561_v60  ;;  %v7738_v40 = vld [vmem:[%s9778_s1 + $0x7a8] sm:$0xff]  ;;  %v7729_v45 = vld [vmem:[%s9778_s1 + $0x760] sm:$0xff]  ;;  %v7727_v60 = vld [vmem:[%s9778_s1 + $0x750] sm:$0xff] }
  0xce   : > { %4811 = vmatpush.bf16.msra.mxu0 %v7692_v41  ;;  %4780 = vmatmul.bf16.vlgmr.msrb.gmra.mxu1 %v1300_v47  ;;  %v7746_v41 = vld [vmem:[%s9778_s1 + $0x7e8] sm:$0xff]  ;;  %v7737_v47 = vld [vmem:[%s9778_s1 + $0x7a0] sm:$0xff] }
  0xcf   : > { %4824 = vmatpush.bf16.msra.mxu1 %v7700_v42  ;;  %4793 = vmatmul.bf16.vlgmr.msrb.gmra.mxu2 %v1301_v46 }
  0xd0   : > { %4837 = vmatpush.bf16.msra.mxu2 %v7708_v43  ;;  %4806 = vmatmul.bf16.vlgmr.msrb.gmra.mxu3 %v1302_v48  ;;  %v7745_v48 = vld [vmem:[%s9778_s1 + $0x7e0] sm:$0xff] }
  0xd1   : > { %4850 = vmatpush.bf16.msra.mxu3 %v7716_v44  ;;  %v7721_v44 = vld [vmem:[%s9778_s1 + $0x720] sm:$0xff] }
  0xd2   : > { %4812 = vmatpush.bf16.msra.mxu0 %v7691_v49  ;;  %v4586_v5 = vpop.f32.mrf.mxu2  ;;  %v4562_v8 = vpop.f32.mrf.mxu0 }
  0xd3   : > { %4825 = vmatpush.bf16.msra.mxu1 %v7699_v50  ;;  %v4587_v6 = vadd.f32 %v4586_v5, %v4574_v0  ;;  %v4599_v7 = vpop.f32.mrf.mxu3  ;;  %v4575_v12 = vpop.f32.mrf.mxu1  ;;  %v7720_v50 = vld [vmem:[%s9778_s1 + $0x718] sm:$0xff]  ;;  %v7718_v0 = vld [vmem:[%s9778_s1 + $0x708] sm:$0xff]  ;;  %v7725_v8 = vld [vmem:[%s9778_s1 + $0x740] sm:$0xff] }
  0xd4   : > { %4838 = vmatpush.bf16.msra.mxu2 %v7707_v51  ;;  %v7728_v51 = vld [vmem:[%s9778_s1 + $0x758] sm:$0xff] }
  0xd5   : > { %4851 = vmatpush.bf16.msra.mxu3 %v7715_v52  ;;  %v4600_v11 = vadd.f32 %v4599_v7, %v4587_v6  ;;  %v7736_v52 = vld [vmem:[%s9778_s1 + $0x798] sm:$0xff]  ;;  %v230_v6 = vld [vmem:[%s8159_s5 + $0x40] sm:$0xff] }
  0xd6   : > { %4813 = vmatpush.bf16.msra.mxu0 %v7690_v53  ;;  %v7744_v53 = vld [vmem:[%s9778_s1 + $0x7d8] sm:$0xff]  ;;  %1316 = vst [vmem:[#allocation1] ss:$4 sm:$0xff] %v230_v6  ;;  %v7717_v7 = vld [vmem:[%s9778_s1 + $0x700] sm:$0xff]  ;;  %v7803_v6 = vld [vmem:[%s9778_s1 + $0x9b0] sm:$0xff] }
  0xd7   : > { %4826 = vmatpush.bf16.msra.mxu1 %v7698_v54  ;;  %v7764_v12 = vld [vmem:[%s9778_s1 + $0x878] sm:$0xff] }
  0xd8   : > { %4839 = vmatpush.bf16.msra.mxu2 %v7706_v55 }
  0xd9   : > { %4852 = vmatpush.bf16.msra.mxu3 %v7714_v56 }
  0xda   : > { %4814 = vmatpush.bf16.msra.mxu0 %v7689_v58  ;;  %v4588_v19 = vpop.f32.mrf.mxu2 }
  0xdb   : > { %4827 = vmatpush.bf16.msra.mxu1 %v7697_v59  ;;  %v4601_v20 = vpop.f32.mrf.mxu3  ;;  %v7719_v59 = vld [vmem:[%s9778_s1 + $0x710] sm:$0xff] }
  0xdc   : > { %4840 = vmatpush.bf16.msra.mxu2 %v7705_v62  ;;  %v7735_v62 = vld [vmem:[%s9778_s1 + $0x790] sm:$0xff] }
  0xdd   : > { %4853 = vmatpush.bf16.msra.mxu3 %v7713_v63  ;;  %v7743_v63 = vld [vmem:[%s9778_s1 + $0x7d0] sm:$0xff] }
  0xde   : > { %4815 = vmatpush.bf16.msra.mxu0 %v7688_v1  ;;  %v7726_v1 = vld [vmem:[%s9778_s1 + $0x748] sm:$0xff]  ;;  %v7755_v19 = vld [vmem:[%s9778_s1 + $0x830] sm:$0xff] }
  0xdf   : > { %4828 = vmatpush.bf16.msra.mxu1 %v7696_v2  ;;  %v7734_v2 = vld [vmem:[%s9778_s1 + $0x788] sm:$0xff]  ;;  %v7763_v20 = vld [vmem:[%s9778_s1 + $0x870] sm:$0xff] }
  0xe0   : > { %4841 = vmatpush.bf16.msra.mxu2 %v7704_v3  ;;  %v7742_v3 = vld [vmem:[%s9778_s1 + $0x7c8] sm:$0xff] }
  0xe1   : > { %4854 = vmatpush.bf16.msra.mxu3 %v7712_v4 }
  0xe2   : > { %4816 = vmatpush.bf16.msra.mxu0 %v7687_v9  ;;  %v7733_v9 = vld [vmem:[%s9778_s1 + $0x780] sm:$0xff] }
  0xe3   : > { %4829 = vmatpush.bf16.msra.mxu1 %v7695_v10  ;;  %v7741_v10 = vld [vmem:[%s9778_s1 + $0x7c0] sm:$0xff] }
  0xe4   : > { %4842 = vmatpush.bf16.msra.mxu2 %v7703_v13  ;;  %v7772_v13 = vld [vmem:[%s9778_s1 + $0x8b8] sm:$0xff] }
  0xe5   : > { %4855 = vmatpush.bf16.msra.mxu3 %v7711_v14  ;;  %v7780_v14 = vld [vmem:[%s9778_s1 + $0x8f8] sm:$0xff] }
  0xe6   : > { %4817 = vmatpush.bf16.msra.mxu0 %v7686_v15  ;;  %v1311_v15 = vld.sshfl [vmem:[#allocation1 + $0x20] sm:$0xff pattern:$0x73625140] }
  0xe7   : > { %4830 = vmatpush.bf16.msra.mxu1 %v7694_v16  ;;  %v1313_v16 = vld.sshfl [vmem:[#allocation1 + $0x30] sm:$0xff pattern:$0x73625140] }
  0xe8   : > { %4843 = vmatpush.bf16.msra.mxu2 %v7702_v17  ;;  %v1312_v17 = vld.sshfl [vmem:[#allocation1 + $0x28] sm:$0xff pattern:$0x73625140] }
  0xe9   : > { %4856 = vmatpush.bf16.msra.mxu3 %v7710_v18  ;;  %v1314_v18 = vld.sshfl [vmem:[#allocation1 + $0x38] sm:$0xff pattern:$0x73625140] }
  0xea   : > { %4818 = vmatpush.bf16.msra.mxu0 %v7685_v22  ;;  %v4612_v42 = vpop.f32.mrf.mxu0  ;;  %v7779_v22 = vld [vmem:[%s9778_s1 + $0x8f0] sm:$0xff] }
  0xeb   : > { %4831 = vmatpush.bf16.msra.mxu1 %v7693_v23  ;;  %v4613_v43 = vadd.f32 %v4612_v42, %v4600_v11  ;;  %v4625_v46 = vpop.f32.mrf.mxu1  ;;  %v7756_v11 = vld [vmem:[%s9778_s1 + $0x838] sm:$0xff]  ;;  %v7754_v23 = vld [vmem:[%s9778_s1 + $0x828] sm:$0xff] }
  0xec   : > { %4844 = vmatpush.bf16.msra.mxu2 %v7701_v24  ;;  %v7762_v24 = vld [vmem:[%s9778_s1 + $0x868] sm:$0xff] }
  0xed   : > { %4857 = vmatpush.bf16.msra.mxu3 %v7709_v25  ;;  %4819 = vmatmul.bf16.vlgmr.msra.gmra.mxu0 %v1307_v30  ;;  %v4626_v49 = vadd.f32 %v4625_v46, %v4613_v43  ;;  %v7770_v25 = vld [vmem:[%s9778_s1 + $0x8a8] sm:$0xff]  ;;  %v7761_v30 = vld [vmem:[%s9778_s1 + $0x860] sm:$0xff] }
  0xee   : > { %4863 = vmatpush.bf16.msrb.mxu0 %v7724_v26  ;;  %4832 = vmatmul.bf16.vlgmr.msra.gmra.mxu1 %v1308_v32  ;;  %v7778_v26 = vld [vmem:[%s9778_s1 + $0x8e8] sm:$0xff]  ;;  %v7769_v32 = vld [vmem:[%s9778_s1 + $0x8a0] sm:$0xff] }
  0xef   : > { %4876 = vmatpush.bf16.msrb.mxu1 %v7732_v27  ;;  %4845 = vmatmul.bf16.vlgmr.msra.gmra.mxu2 %v1309_v31 }
  0xf0   : > { %4889 = vmatpush.bf16.msrb.mxu2 %v7740_v28  ;;  %4858 = vmatmul.bf16.vlgmr.msra.gmra.mxu3 %v1310_v33  ;;  %v7777_v33 = vld [vmem:[%s9778_s1 + $0x8e0] sm:$0xff] }
  0xf1   : > { %4902 = vmatpush.bf16.msrb.mxu3 %v7748_v29  ;;  %v7753_v29 = vld [vmem:[%s9778_s1 + $0x820] sm:$0xff] }
  0xf2   : > { %4864 = vmatpush.bf16.msrb.mxu0 %v7723_v34  ;;  %v4638_v54 = vpop.f32.mrf.mxu2  ;;  %v4614_v57 = vpop.f32.mrf.mxu0 }
  0xf3   : > { %4877 = vmatpush.bf16.msrb.mxu1 %v7731_v35  ;;  %v4639_v55 = vadd.f32 %v4638_v54, %v4626_v49  ;;  %v4651_v56 = vpop.f32.mrf.mxu3  ;;  %v4627_v61 = vpop.f32.mrf.mxu1  ;;  %v7752_v35 = vld [vmem:[%s9778_s1 + $0x818] sm:$0xff]  ;;  %v7750_v49 = vld [vmem:[%s9778_s1 + $0x808] sm:$0xff]  ;;  %v7757_v57 = vld [vmem:[%s9778_s1 + $0x840] sm:$0xff] }
  0xf4   : > { %4890 = vmatpush.bf16.msrb.mxu2 %v7739_v36  ;;  %v7760_v36 = vld [vmem:[%s9778_s1 + $0x858] sm:$0xff] }
  0xf5   : > { %4903 = vmatpush.bf16.msrb.mxu3 %v7747_v37  ;;  %v8886_v58 = vadd.f32 %v4651_v56, %v4639_v55  ;;  %v7768_v37 = vld [vmem:[%s9778_s1 + $0x898] sm:$0xff]  ;;  %v231_v55 = vld [vmem:[%s8159_s5 + $0x48] sm:$0xff]  ;;  %v7749_v56 = vld [vmem:[%s9778_s1 + $0x800] sm:$0xff] }
  0xf6   : > { %4865 = vmatpush.bf16.msrb.mxu0 %v7722_v38  ;;  %v7776_v38 = vld [vmem:[%s9778_s1 + $0x8d8] sm:$0xff]  ;;  %1318 = vst [vmem:[#allocation1 + $0x20] ss:$4 sm:$0xff] %v231_v55  ;;  %v7827_v55 = vld [vmem:[%s9778_s1 + $0xa70] sm:$0xff] }
  0xf7   : > { %4878 = vmatpush.bf16.msrb.mxu1 %v7730_v39  ;;  %v7796_v61 = vld [vmem:[%s9778_s1 + $0x978] sm:$0xff] }
  0xf8   : > { %4891 = vmatpush.bf16.msrb.mxu2 %v7738_v40 }
  0xf9   : > { %4904 = vmatpush.bf16.msrb.mxu3 %v7746_v41 }
  0xfa   : > { %4866 = vmatpush.bf16.msrb.mxu0 %v7721_v44  ;;  %v4640_v4 = vpop.f32.mrf.mxu2  ;;  %v7751_v44 = vld [vmem:[%s9778_s1 + $0x810] sm:$0xff] }
  0xfb   : > { %4879 = vmatpush.bf16.msrb.mxu1 %v7729_v45  ;;  %v4653_v5 = vpop.f32.mrf.mxu3  ;;  %v7759_v45 = vld [vmem:[%s9778_s1 + $0x850] sm:$0xff] }
  0xfc   : > { %4892 = vmatpush.bf16.msrb.mxu2 %v7737_v47  ;;  %v7767_v47 = vld [vmem:[%s9778_s1 + $0x890] sm:$0xff] }
  0xfd   : > { %4905 = vmatpush.bf16.msrb.mxu3 %v7745_v48  ;;  %v7775_v48 = vld [vmem:[%s9778_s1 + $0x8d0] sm:$0xff] }
  0xfe   : > { %4867 = vmatpush.bf16.msrb.mxu0 %v7720_v50  ;;  %v7758_v50 = vld [vmem:[%s9778_s1 + $0x848] sm:$0xff]  ;;  %v7787_v4 = vld [vmem:[%s9778_s1 + $0x930] sm:$0xff] }
  0xff   : > { %4880 = vmatpush.bf16.msrb.mxu1 %v7728_v51  ;;  %v7766_v51 = vld [vmem:[%s9778_s1 + $0x888] sm:$0xff]  ;;  %v7795_v5 = vld [vmem:[%s9778_s1 + $0x970] sm:$0xff] }
 0x100   : > { %4893 = vmatpush.bf16.msrb.mxu2 %v7736_v52  ;;  %v7774_v52 = vld [vmem:[%s9778_s1 + $0x8c8] sm:$0xff] }
 0x101   : > { %4906 = vmatpush.bf16.msrb.mxu3 %v7744_v53 }
 0x102   : > { %4868 = vmatpush.bf16.msrb.mxu0 %v7719_v59  ;;  %v7773_v59 = vld [vmem:[%s9778_s1 + $0x8c0] sm:$0xff] }
 0x103   : > { %4881 = vmatpush.bf16.msrb.mxu1 %v7727_v60  ;;  %v7788_v60 = vld [vmem:[%s9778_s1 + $0x938] sm:$0xff] }
 0x104   : > { %4894 = vmatpush.bf16.msrb.mxu2 %v7735_v62  ;;  %v7804_v62 = vld [vmem:[%s9778_s1 + $0x9b8] sm:$0xff] }
 0x105   : > { %4907 = vmatpush.bf16.msrb.mxu3 %v7743_v63  ;;  %v7812_v63 = vld [vmem:[%s9778_s1 + $0x9f8] sm:$0xff] }
 0x106   : > { %4869 = vmatpush.bf16.msrb.mxu0 %v7718_v0  ;;  %v1319_v0 = vld.sshfl [vmem:[#allocation1] sm:$0xff pattern:$0x73625140] }
 0x107   : > { %4882 = vmatpush.bf16.msrb.mxu1 %v7726_v1  ;;  %v1321_v1 = vld.sshfl [vmem:[#allocation1 + $0x10] sm:$0xff pattern:$0x73625140] }
 0x108   : > { %4895 = vmatpush.bf16.msrb.mxu2 %v7734_v2  ;;  %v1320_v2 = vld.sshfl [vmem:[#allocation1 + $0x8] sm:$0xff pattern:$0x73625140] }
 0x109   : > { %4908 = vmatpush.bf16.msrb.mxu3 %v7742_v3  ;;  %v1322_v3 = vld.sshfl [vmem:[#allocation1 + $0x18] sm:$0xff pattern:$0x73625140] }
 0x10a   : > { %4870 = vmatpush.bf16.msrb.mxu0 %v7717_v7  ;;  %v4664_v27 = vpop.f32.mrf.mxu0  ;;  %v7811_v7 = vld [vmem:[%s9778_s1 + $0x9f0] sm:$0xff] }
 0x10b   : > { %4883 = vmatpush.bf16.msrb.mxu1 %v7725_v8  ;;  %v4665_v28 = vadd.f32 %v4664_v27, %v8886_v58  ;;  %v4677_v31 = vpop.f32.mrf.mxu1  ;;  %v7765_v58 = vld [vmem:[%s9778_s1 + $0x880] sm:$0xff]  ;;  %v7786_v8 = vld [vmem:[%s9778_s1 + $0x928] sm:$0xff] }
 0x10c   : > { %4896 = vmatpush.bf16.msrb.mxu2 %v7733_v9  ;;  %v7794_v9 = vld [vmem:[%s9778_s1 + $0x968] sm:$0xff] }
 0x10d   : > { %4909 = vmatpush.bf16.msrb.mxu3 %v7741_v10  ;;  %4871 = vmatmul.bf16.vlgmr.msrb.gmra.mxu0 %v1311_v15  ;;  %v4678_v34 = vadd.f32 %v4677_v31, %v4665_v28  ;;  %v7802_v10 = vld [vmem:[%s9778_s1 + $0x9a8] sm:$0xff]  ;;  %v7793_v15 = vld [vmem:[%s9778_s1 + $0x960] sm:$0xff] }
 0x10e   : > { %4915 = vmatpush.bf16.msra.mxu0 %v7756_v11  ;;  %4884 = vmatmul.bf16.vlgmr.msrb.gmra.mxu1 %v1312_v17  ;;  %v7810_v11 = vld [vmem:[%s9778_s1 + $0x9e8] sm:$0xff]  ;;  %v7801_v17 = vld [vmem:[%s9778_s1 + $0x9a0] sm:$0xff] }
 0x10f   : > { %4928 = vmatpush.bf16.msra.mxu1 %v7764_v12  ;;  %4897 = vmatmul.bf16.vlgmr.msrb.gmra.mxu2 %v1313_v16 }
 0x110   : > { %4941 = vmatpush.bf16.msra.mxu2 %v7772_v13  ;;  %4910 = vmatmul.bf16.vlgmr.msrb.gmra.mxu3 %v1314_v18  ;;  %v7809_v18 = vld [vmem:[%s9778_s1 + $0x9e0] sm:$0xff] }
 0x111   : > { %4954 = vmatpush.bf16.msra.mxu3 %v7780_v14  ;;  %v7785_v14 = vld [vmem:[%s9778_s1 + $0x920] sm:$0xff] }
 0x112   : > { %4916 = vmatpush.bf16.msra.mxu0 %v7755_v19  ;;  %v4690_v39 = vpop.f32.mrf.mxu2  ;;  %v4666_v42 = vpop.f32.mrf.mxu0 }
 0x113   : > { %4929 = vmatpush.bf16.msra.mxu1 %v7763_v20  ;;  %v4691_v40 = vadd.f32 %v4690_v39, %v4678_v34  ;;  %v4703_v41 = vpop.f32.mrf.mxu3  ;;  %v4679_v46 = vpop.f32.mrf.mxu1  ;;  %v7784_v20 = vld [vmem:[%s9778_s1 + $0x918] sm:$0xff]  ;;  %v7782_v34 = vld [vmem:[%s9778_s1 + $0x908] sm:$0xff]  ;;  %v7789_v42 = vld [vmem:[%s9778_s1 + $0x940] sm:$0xff] }
 0x114   : > { %4942 = vmatpush.bf16.msra.mxu2 %v7771_v21  ;;  %v7792_v21 = vld [vmem:[%s9778_s1 + $0x958] sm:$0xff] }
 0x115   : > { %4955 = vmatpush.bf16.msra.mxu3 %v7779_v22  ;;  %v8986_v43 = vadd.f32 %v4703_v41, %v4691_v40  ;;  %v7800_v22 = vld [vmem:[%s9778_s1 + $0x998] sm:$0xff]  ;;  %v232_v40 = vld [vmem:[%s8159_s5 + $0x50] sm:$0xff]  ;;  %v7781_v41 = vld [vmem:[%s9778_s1 + $0x900] sm:$0xff] }
 0x116   : > { %4917 = vmatpush.bf16.msra.mxu0 %v7754_v23  ;;  %v7808_v23 = vld [vmem:[%s9778_s1 + $0x9d8] sm:$0xff]  ;;  %1328 = vst [vmem:[#allocation1] ss:$4 sm:$0xff] %v232_v40  ;;  %v7851_v40 = vld [vmem:[%s9778_s1 + $0xb30] sm:$0xff] }
 0x117   : > { %4930 = vmatpush.bf16.msra.mxu1 %v7762_v24  ;;  %v7828_v46 = vld [vmem:[%s9778_s1 + $0xa78] sm:$0xff] }
 0x118   : > { %4943 = vmatpush.bf16.msra.mxu2 %v7770_v25 }
 0x119   : > { %4956 = vmatpush.bf16.msra.mxu3 %v7778_v26 }
 0x11a   : > { %4918 = vmatpush.bf16.msra.mxu0 %v7753_v29  ;;  %v4692_v53 = vpop.f32.mrf.mxu2  ;;  %v7783_v29 = vld [vmem:[%s9778_s1 + $0x910] sm:$0xff] }
 0x11b   : > { %4931 = vmatpush.bf16.msra.mxu1 %v7761_v30  ;;  %v4705_v54 = vpop.f32.mrf.mxu3  ;;  %v7791_v30 = vld [vmem:[%s9778_s1 + $0x950] sm:$0xff]  ;;  %v1326_v53 = vld.sshfl [vmem:[#allocation1 + $0x38] sm:$0xff pattern:$0x73625140] }
 0x11c   : > { %4944 = vmatpush.bf16.msra.mxu2 %v7769_v32  ;;  %v7799_v32 = vld [vmem:[%s9778_s1 + $0x990] sm:$0xff] }
 0x11d   : > { %4957 = vmatpush.bf16.msra.mxu3 %v7777_v33  ;;  %v7807_v33 = vld [vmem:[%s9778_s1 + $0x9d0] sm:$0xff] }
 0x11e   : > { %4919 = vmatpush.bf16.msra.mxu0 %v7752_v35  ;;  %v7790_v35 = vld [vmem:[%s9778_s1 + $0x948] sm:$0xff]  ;;  %v7819_v54 = vld [vmem:[%s9778_s1 + $0xa30] sm:$0xff] }
 0x11f   : > { %4932 = vmatpush.bf16.msra.mxu1 %v7760_v36  ;;  %v7798_v36 = vld [vmem:[%s9778_s1 + $0x988] sm:$0xff] }
 0x120   : > { %4945 = vmatpush.bf16.msra.mxu2 %v7768_v37  ;;  %v7806_v37 = vld [vmem:[%s9778_s1 + $0x9c8] sm:$0xff] }
 0x121   : > { %4958 = vmatpush.bf16.msra.mxu3 %v7776_v38 }
 0x122   : > { %4920 = vmatpush.bf16.msra.mxu0 %v7751_v44  ;;  %v7805_v44 = vld [vmem:[%s9778_s1 + $0x9c0] sm:$0xff] }
 0x123   : > { %4933 = vmatpush.bf16.msra.mxu1 %v7759_v45  ;;  %v7820_v45 = vld [vmem:[%s9778_s1 + $0xa38] sm:$0xff] }
 0x124   : > { %4946 = vmatpush.bf16.msra.mxu2 %v7767_v47  ;;  %v7836_v47 = vld [vmem:[%s9778_s1 + $0xab8] sm:$0xff] }
 0x125   : > { %4959 = vmatpush.bf16.msra.mxu3 %v7775_v48  ;;  %v7844_v48 = vld [vmem:[%s9778_s1 + $0xaf8] sm:$0xff] }
 0x126   : > { %4921 = vmatpush.bf16.msra.mxu0 %v7750_v49  ;;  %v1323_v49 = vld.sshfl [vmem:[#allocation1 + $0x20] sm:$0xff pattern:$0x73625140] }
 0x127   : > { %4934 = vmatpush.bf16.msra.mxu1 %v7758_v50  ;;  %v1325_v50 = vld.sshfl [vmem:[#allocation1 + $0x30] sm:$0xff pattern:$0x73625140] }
 0x128   : > { %4947 = vmatpush.bf16.msra.mxu2 %v7766_v51  ;;  %v234_v51 = vld [vmem:[%s8159_s5 + $0x60] sm:$0xff] }
 0x129   : > { %4960 = vmatpush.bf16.msra.mxu3 %v7774_v52  ;;  %v1324_v52 = vld.sshfl [vmem:[#allocation1 + $0x28] sm:$0xff pattern:$0x73625140] }
 0x12a   : > { %4922 = vmatpush.bf16.msra.mxu0 %v7749_v56  ;;  %v4716_v12 = vpop.f32.mrf.mxu0  ;;  %v7835_v56 = vld [vmem:[%s9778_s1 + $0xab0] sm:$0xff] }
 0x12b   : > { %4935 = vmatpush.bf16.msra.mxu1 %v7757_v57  ;;  %v4717_v13 = vadd.f32 %v4716_v12, %v8986_v43  ;;  %v4729_v16 = vpop.f32.mrf.mxu1  ;;  %v7797_v43 = vld [vmem:[%s9778_s1 + $0x980] sm:$0xff]  ;;  %v7843_v57 = vld [vmem:[%s9778_s1 + $0xaf0] sm:$0xff]  ;;  %v7832_v12 = vld [vmem:[%s9778_s1 + $0xa98] sm:$0xff] }
 0x12c   : > { %4948 = vmatpush.bf16.msra.mxu2 %v7765_v58  ;;  %v9150_v58 = vld.sshfl [vmem:[#allocation1] sm:$0xff pattern:$0x73625140] }
 0x12d   : > { %4961 = vmatpush.bf16.msra.mxu3 %v7773_v59  ;;  %4923 = vmatmul.bf16.vlgmr.msra.gmra.mxu0 %v1319_v0  ;;  %v4730_v19 = vadd.f32 %v4729_v16, %v4717_v13  ;;  %v9152_v59 = vld.sshfl [vmem:[#allocation1 + $0x10] sm:$0xff pattern:$0x73625140]  ;;  %v7834_v0 = vld [vmem:[%s9778_s1 + $0xaa8] sm:$0xff]  ;;  %v7840_v13 = vld [vmem:[%s9778_s1 + $0xad8] sm:$0xff] }
 0x12e   : > { %4967 = vmatpush.bf16.msrb.mxu0 %v7788_v60  ;;  %4936 = vmatmul.bf16.vlgmr.msra.gmra.mxu1 %v1320_v2  ;;  %v9154_v60 = vld.sshfl [vmem:[#allocation1 + $0x8] sm:$0xff pattern:$0x73625140] }
 0x12f   : > { %4980 = vmatpush.bf16.msrb.mxu1 %v7796_v61  ;;  %4949 = vmatmul.bf16.vlgmr.msra.gmra.mxu2 %v1321_v1  ;;  %v9156_v61 = vld.sshfl [vmem:[#allocation1 + $0x18] sm:$0xff pattern:$0x73625140]  ;;  %v7842_v1 = vld [vmem:[%s9778_s1 + $0xae8] sm:$0xff] }
 0x130   : > { %4993 = vmatpush.bf16.msrb.mxu2 %v7804_v62  ;;  %4962 = vmatmul.bf16.vlgmr.msra.gmra.mxu3 %v1322_v3  ;;  %1340 = vst [vmem:[#allocation1] ss:$4 sm:$0xff] %v234_v51  ;;  %v7818_v62 = vld [vmem:[%s9778_s1 + $0xa28] sm:$0xff] }
 0x131   : > { %5006 = vmatpush.bf16.msrb.mxu3 %v7812_v63  ;;  %v7826_v63 = vld [vmem:[%s9778_s1 + $0xa68] sm:$0xff] }
 0x132   : > { %4968 = vmatpush.bf16.msrb.mxu0 %v7787_v4  ;;  %v4742_v24 = vpop.f32.mrf.mxu2  ;;  %v4718_v27 = vpop.f32.mrf.mxu0  ;;  %v7817_v4 = vld [vmem:[%s9778_s1 + $0xa20] sm:$0xff]  ;;  %v7874_v51 = vld [vmem:[%s9778_s1 + $0xbe8] sm:$0xff] }
 0x133   : > { %4981 = vmatpush.bf16.msrb.mxu1 %v7795_v5  ;;  %v4743_v25 = vadd.f32 %v4742_v24, %v4730_v19  ;;  %v4755_v26 = vpop.f32.mrf.mxu3  ;;  %v4731_v31 = vpop.f32.mrf.mxu1  ;;  %v7825_v5 = vld [vmem:[%s9778_s1 + $0xa60] sm:$0xff]  ;;  %v7815_v19 = vld [vmem:[%s9778_s1 + $0xa10] sm:$0xff]  ;;  %v7814_v24 = vld [vmem:[%s9778_s1 + $0xa08] sm:$0xff] }
 0x134   : > { %4994 = vmatpush.bf16.msrb.mxu2 %v7803_v6  ;;  %v7838_v27 = vld [vmem:[%s9778_s1 + $0xac8] sm:$0xff]  ;;  %v7813_v31 = vld [vmem:[%s9778_s1 + $0xa00] sm:$0xff] }
 0x135   : > { %5007 = vmatpush.bf16.msrb.mxu3 %v7811_v7  ;;  %v9086_v28 = vadd.f32 %v4755_v26, %v4743_v25  ;;  %v7833_v7 = vld [vmem:[%s9778_s1 + $0xaa0] sm:$0xff]  ;;  %v7822_v25 = vld [vmem:[%s9778_s1 + $0xa48] sm:$0xff] }
 0x136   : > { %4969 = vmatpush.bf16.msrb.mxu0 %v7786_v8  ;;  %v7841_v8 = vld [vmem:[%s9778_s1 + $0xae0] sm:$0xff]  ;;  %v7830_v26 = vld [vmem:[%s9778_s1 + $0xa88] sm:$0xff] }
 0x137   : > { %4982 = vmatpush.bf16.msrb.mxu1 %v7794_v9 }
 0x138   : > { %4995 = vmatpush.bf16.msrb.mxu2 %v7802_v10  ;;  %v7816_v10 = vld [vmem:[%s9778_s1 + $0xa18] sm:$0xff] }
 0x139   : > { %5008 = vmatpush.bf16.msrb.mxu3 %v7810_v11  ;;  %v7824_v11 = vld [vmem:[%s9778_s1 + $0xa58] sm:$0xff] }
 0x13a   : > { %4970 = vmatpush.bf16.msrb.mxu0 %v7785_v14  ;;  %v4744_v38 = vpop.f32.mrf.mxu2 }
 0x13b   : > { %4983 = vmatpush.bf16.msrb.mxu1 %v7793_v15  ;;  %v4757_v39 = vpop.f32.mrf.mxu3  ;;  %v7876_v38 = vld [vmem:[%s9778_s1 + $0xbf8] sm:$0xff] }
 0x13c   : > { %4996 = vmatpush.bf16.msrb.mxu2 %v7801_v17  ;;  %v235_v39 = vld [vmem:[%s8159_s5 + $0x68] sm:$0xff] }
 0x13d   : > { %5009 = vmatpush.bf16.msrb.mxu3 %v7809_v18 }
 0x13e   : > { %4971 = vmatpush.bf16.msrb.mxu0 %v7784_v20  ;;  %v7823_v20 = vld [vmem:[%s9778_s1 + $0xa50] sm:$0xff] }
 0x13f   : > { %4984 = vmatpush.bf16.msrb.mxu1 %v7792_v21 }
 0x140   : > { %4997 = vmatpush.bf16.msrb.mxu2 %v7800_v22  ;;  %v7831_v22 = vld [vmem:[%s9778_s1 + $0xa90] sm:$0xff] }
 0x141   : > { %5010 = vmatpush.bf16.msrb.mxu3 %v7808_v23  ;;  %v7839_v23 = vld [vmem:[%s9778_s1 + $0xad0] sm:$0xff] }
 0x142   : > { %4972 = vmatpush.bf16.msrb.mxu0 %v7783_v29 }
 0x143   : > { %4985 = vmatpush.bf16.msrb.mxu1 %v7791_v30  ;;  %v233_v30 = vld [vmem:[%s8159_s5 + $0x58] sm:$0xff] }
 0x144   : > { %4998 = vmatpush.bf16.msrb.mxu2 %v7799_v32  ;;  %1330 = vst [vmem:[#allocation1 + $0x20] ss:$4 sm:$0xff] %v233_v30  ;;  %v7821_v32 = vld [vmem:[%s9778_s1 + $0xa40] sm:$0xff]  ;;  %v9373_v30 = vld.sshfl [vmem:[#allocation1 + $0x10] sm:$0xff pattern:$0x73625140] }
 0x145   : > { %5011 = vmatpush.bf16.msrb.mxu3 %v7807_v33  ;;  %v7829_v33 = vld [vmem:[%s9778_s1 + $0xa80] sm:$0xff] }
 0x146   : > { %4973 = vmatpush.bf16.msrb.mxu0 %v7782_v34  ;;  %v7837_v34 = vld [vmem:[%s9778_s1 + $0xac0] sm:$0xff] }
 0x147   : > { %4986 = vmatpush.bf16.msrb.mxu1 %v7790_v35  ;;  %v7852_v35 = vld [vmem:[%s9778_s1 + $0xb38] sm:$0xff] }
 0x148   : > { %4999 = vmatpush.bf16.msrb.mxu2 %v7798_v36  ;;  %v7860_v36 = vld [vmem:[%s9778_s1 + $0xb78] sm:$0xff] }
 0x149   : > { %5012 = vmatpush.bf16.msrb.mxu3 %v7806_v37  ;;  %v7868_v37 = vld [vmem:[%s9778_s1 + $0xbb8] sm:$0xff] }
 0x14a   : > { %4974 = vmatpush.bf16.msrb.mxu0 %v7781_v41  ;;  %v4768_v2 = vpop.f32.mrf.mxu0  ;;  %v7859_v41 = vld [vmem:[%s9778_s1 + $0xb70] sm:$0xff] }
 0x14b   : > { %4987 = vmatpush.bf16.msrb.mxu1 %v7789_v42  ;;  %v4769_v3 = vadd.f32 %v4768_v2, %v9086_v28  ;;  %v4781_v6 = vpop.f32.mrf.mxu1  ;;  %v7867_v42 = vld [vmem:[%s9778_s1 + $0xbb0] sm:$0xff] }
 0x14c   : > { %5000 = vmatpush.bf16.msrb.mxu2 %v7797_v43  ;;  %v7875_v43 = vld [vmem:[%s9778_s1 + $0xbf0] sm:$0xff] }
 0x14d   : > { %5013 = vmatpush.bf16.msrb.mxu3 %v7805_v44  ;;  %4975 = vmatmul.bf16.vlgmr.msrb.gmra.mxu0 %v1323_v49  ;;  %v4782_v9 = vadd.f32 %v4781_v6, %v4769_v3  ;;  %v9259_v44 = vld.sshfl [vmem:[#allocation1 + $0x20] sm:$0xff pattern:$0x73625140]  ;;  %v7858_v49 = vld [vmem:[%s9778_s1 + $0xb68] sm:$0xff]  ;;  %v7855_v6 = vld [vmem:[%s9778_s1 + $0xb50] sm:$0xff] }
 0x14e   : > { %5019 = vmatpush.bf16.msra.mxu0 %v7820_v45  ;;  %4988 = vmatmul.bf16.vlgmr.msrb.gmra.mxu1 %v1324_v52  ;;  %v9261_v45 = vld.sshfl [vmem:[#allocation1 + $0x30] sm:$0xff pattern:$0x73625140] }
 0x14f   : > { %5032 = vmatpush.bf16.msra.mxu1 %v7828_v46  ;;  %5001 = vmatmul.bf16.vlgmr.msrb.gmra.mxu2 %v1325_v50  ;;  %v9263_v46 = vld.sshfl [vmem:[#allocation1 + $0x28] sm:$0xff pattern:$0x73625140] }
 0x150   : > { %5045 = vmatpush.bf16.msra.mxu2 %v7836_v47  ;;  %5014 = vmatmul.bf16.vlgmr.msrb.gmra.mxu3 %v1326_v53  ;;  %v9265_v47 = vld.sshfl [vmem:[#allocation1 + $0x38] sm:$0xff pattern:$0x73625140]  ;;  %v7866_v50 = vld [vmem:[%s9778_s1 + $0xba8] sm:$0xff] }
 0x151   : > { %5058 = vmatpush.bf16.msra.mxu3 %v7844_v48  ;;  %1342 = vst [vmem:[#allocation1 + $0x20] ss:$4 sm:$0xff] %v235_v39  ;;  %v7850_v48 = vld [vmem:[%s9778_s1 + $0xb28] sm:$0xff]  ;;  %v7881_v39 = vld [vmem:[%s9778_s1 + $0xc20] sm:$0xff] }
 0x152   : > { %5020 = vmatpush.bf16.msra.mxu0 %v7819_v54  ;;  %v4794_v14 = vpop.f32.mrf.mxu2  ;;  %v4770_v17 = vpop.f32.mrf.mxu0  ;;  %v7849_v54 = vld [vmem:[%s9778_s1 + $0xb20] sm:$0xff] }
 0x153   : > { %5033 = vmatpush.bf16.msra.mxu1 %v7827_v55  ;;  %v4795_v15 = vadd.f32 %v4794_v14, %v4782_v9  ;;  %v4807_v16 = vpop.f32.mrf.mxu3  ;;  %v4783_v21 = vpop.f32.mrf.mxu1  ;;  %v7857_v55 = vld [vmem:[%s9778_s1 + $0xb60] sm:$0xff]  ;;  %v7871_v9 = vld [vmem:[%s9778_s1 + $0xbd0] sm:$0xff] }
 0x154   : > { %5046 = vmatpush.bf16.msra.mxu2 %v7835_v56  ;;  %v7853_v17 = vld [vmem:[%s9778_s1 + $0xb40] sm:$0xff]  ;;  %v7892_v21 = vld [vmem:[%s9778_s1 + $0xc78] sm:$0xff] }
 0x155   : > { %5059 = vmatpush.bf16.msra.mxu3 %v7843_v57  ;;  %v9195_v18 = vadd.f32 %v4807_v16, %v4795_v15  ;;  %v7865_v57 = vld [vmem:[%s9778_s1 + $0xba0] sm:$0xff] }
 0x156   : > { %5021 = vmatpush.bf16.msra.mxu0 %v7818_v62  ;;  %v7864_v62 = vld [vmem:[%s9778_s1 + $0xb98] sm:$0xff]  ;;  %v7845_v16 = vld [vmem:[%s9778_s1 + $0xb00] sm:$0xff] }
 0x157   : > { %5034 = vmatpush.bf16.msra.mxu1 %v7826_v63  ;;  %v7872_v63 = vld [vmem:[%s9778_s1 + $0xbd8] sm:$0xff] }
 0x158   : > { %5047 = vmatpush.bf16.msra.mxu2 %v7834_v0 }
 0x159   : > { %5060 = vmatpush.bf16.msra.mxu3 %v7842_v1 }
 0x15a   : > { %5022 = vmatpush.bf16.msra.mxu0 %v7817_v4  ;;  %v4796_v28 = vpop.f32.mrf.mxu2 }
 0x15b   : > { %5035 = vmatpush.bf16.msra.mxu1 %v7825_v5  ;;  %v4809_v29 = vpop.f32.mrf.mxu3  ;;  %v7847_v5 = vld [vmem:[%s9778_s1 + $0xb10] sm:$0xff] }
 0x15c   : > { %5048 = vmatpush.bf16.msra.mxu2 %v7833_v7  ;;  %v7907_v28 = vld [vmem:[%s9778_s1 + $0xcf0] sm:$0xff]  ;;  %v9371_v29 = vld.sshfl [vmem:[#allocation1] sm:$0xff pattern:$0x73625140] }
 0x15d   : > { %5061 = vmatpush.bf16.msra.mxu3 %v7841_v8  ;;  %v7863_v8 = vld [vmem:[%s9778_s1 + $0xb90] sm:$0xff] }
 0x15e   : > { %5023 = vmatpush.bf16.msra.mxu0 %v7816_v10  ;;  %v7846_v10 = vld [vmem:[%s9778_s1 + $0xb08] sm:$0xff] }
 0x15f   : > { %5036 = vmatpush.bf16.msra.mxu1 %v7824_v11  ;;  %v7854_v11 = vld [vmem:[%s9778_s1 + $0xb48] sm:$0xff] }
 0x160   : > { %5049 = vmatpush.bf16.msra.mxu2 %v7832_v12  ;;  %v7862_v12 = vld [vmem:[%s9778_s1 + $0xb88] sm:$0xff] }
 0x161   : > { %5062 = vmatpush.bf16.msra.mxu3 %v7840_v13  ;;  %v7870_v13 = vld [vmem:[%s9778_s1 + $0xbc8] sm:$0xff] }
 0x162   : > { %5024 = vmatpush.bf16.msra.mxu0 %v7815_v19  ;;  %v7869_v19 = vld [vmem:[%s9778_s1 + $0xbc0] sm:$0xff] }
 0x163   : > { %5037 = vmatpush.bf16.msra.mxu1 %v7823_v20  ;;  %v7884_v20 = vld [vmem:[%s9778_s1 + $0xc38] sm:$0xff] }
 0x164   : > { %5050 = vmatpush.bf16.msra.mxu2 %v7831_v22  ;;  %v7900_v22 = vld [vmem:[%s9778_s1 + $0xcb8] sm:$0xff] }
 0x165   : > { %5063 = vmatpush.bf16.msra.mxu3 %v7839_v23  ;;  %v7908_v23 = vld [vmem:[%s9778_s1 + $0xcf8] sm:$0xff] }
 0x166   : > { %5025 = vmatpush.bf16.msra.mxu0 %v7814_v24  ;;  %v236_v24 = vld [vmem:[%s8159_s5 + $0x70] sm:$0xff] }
 0x167   : > { %5038 = vmatpush.bf16.msra.mxu1 %v7822_v25  ;;  %v7883_v25 = vld [vmem:[%s9778_s1 + $0xc30] sm:$0xff] }
 0x168   : > { %5051 = vmatpush.bf16.msra.mxu2 %v7830_v26  ;;  %v7891_v26 = vld [vmem:[%s9778_s1 + $0xc70] sm:$0xff] }
 0x169   : > { %5064 = vmatpush.bf16.msra.mxu3 %v7838_v27  ;;  %v7899_v27 = vld [vmem:[%s9778_s1 + $0xcb0] sm:$0xff] }
 0x16a   : > { %5026 = vmatpush.bf16.msra.mxu0 %v7813_v31  ;;  %v4820_v52 = vpop.f32.mrf.mxu0  ;;  %v9375_v31 = vld.sshfl [vmem:[#allocation1 + $0x8] sm:$0xff pattern:$0x73625140] }
 0x16b   : > { %5039 = vmatpush.bf16.msra.mxu1 %v7821_v32  ;;  %v4821_v53 = vadd.f32 %v4820_v52, %v9195_v18  ;;  %v4833_v56 = vpop.f32.mrf.mxu1  ;;  %v7861_v18 = vld [vmem:[%s9778_s1 + $0xb80] sm:$0xff]  ;;  %v9377_v32 = vld.sshfl [vmem:[#allocation1 + $0x18] sm:$0xff pattern:$0x73625140] }
 0x16c   : > { %5052 = vmatpush.bf16.msra.mxu2 %v7829_v33  ;;  %1352 = vst [vmem:[#allocation1] ss:$4 sm:$0xff] %v236_v24  ;;  %v7882_v33 = vld [vmem:[%s9778_s1 + $0xc28] sm:$0xff]  ;;  %v7913_v24 = vld [vmem:[%s9778_s1 + $0xd20] sm:$0xff] }
 0x16d   : > { %5065 = vmatpush.bf16.msra.mxu3 %v7837_v34  ;;  %5027 = vmatmul.bf16.vlgmr.msra.gmra.mxu0 %v9150_v58  ;;  %v7873_v58 = vld [vmem:[%s9778_s1 + $0xbe0] sm:$0xff]  ;;  %v7890_v34 = vld [vmem:[%s9778_s1 + $0xc68] sm:$0xff] }
 0x16e   : > { %5071 = vmatpush.bf16.msrb.mxu0 %v7852_v35  ;;  %5040 = vmatmul.bf16.vlgmr.msra.gmra.mxu1 %v9154_v60  ;;  %v7848_v60 = vld [vmem:[%s9778_s1 + $0xb18] sm:$0xff]  ;;  %v7898_v35 = vld [vmem:[%s9778_s1 + $0xca8] sm:$0xff] }
 0x16f   : > { %5084 = vmatpush.bf16.msrb.mxu1 %v7860_v36  ;;  %5053 = vmatmul.bf16.vlgmr.msra.gmra.mxu2 %v9152_v59  ;;  %v4834_v59 = vadd.f32 %v4833_v56, %v4821_v53  ;;  %v7906_v36 = vld [vmem:[%s9778_s1 + $0xce8] sm:$0xff] }
 0x170   : > { %5097 = vmatpush.bf16.msrb.mxu2 %v7868_v37  ;;  %5066 = vmatmul.bf16.vlgmr.msra.gmra.mxu3 %v9156_v61  ;;  %v7856_v61 = vld [vmem:[%s9778_s1 + $0xb58] sm:$0xff] }
 0x171   : > { %5110 = vmatpush.bf16.msrb.mxu3 %v7876_v38 }
 0x172   : > { %5072 = vmatpush.bf16.msrb.mxu0 %v7851_v40  ;;  %v4846_v0 = vpop.f32.mrf.mxu2  ;;  %v4822_v3 = vpop.f32.mrf.mxu0  ;;  %v7889_v40 = vld [vmem:[%s9778_s1 + $0xc60] sm:$0xff] }
 0x173   : > { %5085 = vmatpush.bf16.msrb.mxu1 %v7859_v41  ;;  %v4847_v1 = vadd.f32 %v4846_v0, %v4834_v59  ;;  %v4859_v2 = vpop.f32.mrf.mxu3  ;;  %v4835_v7 = vpop.f32.mrf.mxu1  ;;  %v7878_v59 = vld [vmem:[%s9778_s1 + $0xc08] sm:$0xff]  ;;  %v7893_v3 = vld [vmem:[%s9778_s1 + $0xc80] sm:$0xff] }
 0x174   : > { %5098 = vmatpush.bf16.msrb.mxu2 %v7867_v42  ;;  %v7897_v42 = vld [vmem:[%s9778_s1 + $0xca0] sm:$0xff]  ;;  %v7932_v7 = vld [vmem:[%s9778_s1 + $0xdb8] sm:$0xff] }
 0x175   : > { %5111 = vmatpush.bf16.msrb.mxu3 %v7875_v43  ;;  %v9308_v4 = vadd.f32 %v4859_v2, %v4847_v1  ;;  %v7905_v43 = vld [vmem:[%s9778_s1 + $0xce0] sm:$0xff] }
 0x176   : > { %5073 = vmatpush.bf16.msrb.mxu0 %v7850_v48  ;;  %v7904_v48 = vld [vmem:[%s9778_s1 + $0xcd8] sm:$0xff]  ;;  %v7877_v1 = vld [vmem:[%s9778_s1 + $0xc00] sm:$0xff] }
 0x177   : > { %5086 = vmatpush.bf16.msrb.mxu1 %v7858_v49  ;;  %v7885_v2 = vld [vmem:[%s9778_s1 + $0xc40] sm:$0xff] }
 0x178   : > { %5099 = vmatpush.bf16.msrb.mxu2 %v7866_v50 }
 0x179   : > { %5112 = vmatpush.bf16.msrb.mxu3 %v7874_v51 }
 0x17a   : > { %5074 = vmatpush.bf16.msrb.mxu0 %v7849_v54  ;;  %v4848_v14 = vpop.f32.mrf.mxu2  ;;  %v7879_v54 = vld [vmem:[%s9778_s1 + $0xc10] sm:$0xff] }
 0x17b   : > { %5087 = vmatpush.bf16.msrb.mxu1 %v7857_v55  ;;  %v4861_v15 = vpop.f32.mrf.mxu3  ;;  %v7887_v55 = vld [vmem:[%s9778_s1 + $0xc50] sm:$0xff]  ;;  %v9483_v14 = vld.sshfl [vmem:[#allocation1 + $0x20] sm:$0xff pattern:$0x73625140] }
 0x17c   : > { %5100 = vmatpush.bf16.msrb.mxu2 %v7865_v57  ;;  %v7895_v57 = vld [vmem:[%s9778_s1 + $0xc90] sm:$0xff] }
 0x17d   : > { %5113 = vmatpush.bf16.msrb.mxu3 %v7873_v58  ;;  %v7903_v58 = vld [vmem:[%s9778_s1 + $0xcd0] sm:$0xff] }
 0x17e   : > { %5075 = vmatpush.bf16.msrb.mxu0 %v7848_v60  ;;  %v7886_v60 = vld [vmem:[%s9778_s1 + $0xc48] sm:$0xff]  ;;  %v9485_v15 = vld.sshfl [vmem:[#allocation1 + $0x30] sm:$0xff pattern:$0x73625140] }
 0x17f   : > { %5088 = vmatpush.bf16.msrb.mxu1 %v7856_v61  ;;  %v7894_v61 = vld [vmem:[%s9778_s1 + $0xc88] sm:$0xff] }
 0x180   : > { %5101 = vmatpush.bf16.msrb.mxu2 %v7864_v62  ;;  %v7902_v62 = vld [vmem:[%s9778_s1 + $0xcc8] sm:$0xff] }
 0x181   : > { %5114 = vmatpush.bf16.msrb.mxu3 %v7872_v63 }
 0x182   : > { %5076 = vmatpush.bf16.msrb.mxu0 %v7847_v5  ;;  %v7916_v5 = vld [vmem:[%s9778_s1 + $0xd38] sm:$0xff] }
 0x183   : > { %5089 = vmatpush.bf16.msrb.mxu1 %v7855_v6  ;;  %v7924_v6 = vld [vmem:[%s9778_s1 + $0xd78] sm:$0xff] }
 0x184   : > { %5102 = vmatpush.bf16.msrb.mxu2 %v7863_v8  ;;  %v7940_v8 = vld [vmem:[%s9778_s1 + $0xdf8] sm:$0xff] }
 0x185   : > { %5115 = vmatpush.bf16.msrb.mxu3 %v7871_v9  ;;  %v237_v9 = vld [vmem:[%s8159_s5 + $0x78] sm:$0xff] }
 0x186   : > { %5077 = vmatpush.bf16.msrb.mxu0 %v7846_v10  ;;  %v7915_v10 = vld [vmem:[%s9778_s1 + $0xd30] sm:$0xff] }
 0x187   : > { %5090 = vmatpush.bf16.msrb.mxu1 %v7854_v11  ;;  %v7923_v11 = vld [vmem:[%s9778_s1 + $0xd70] sm:$0xff] }
 0x188   : > { %5103 = vmatpush.bf16.msrb.mxu2 %v7862_v12  ;;  %v7931_v12 = vld [vmem:[%s9778_s1 + $0xdb0] sm:$0xff] }
 0x189   : > { %5116 = vmatpush.bf16.msrb.mxu3 %v7870_v13  ;;  %v7939_v13 = vld [vmem:[%s9778_s1 + $0xdf0] sm:$0xff] }
 0x18a   : > { %5078 = vmatpush.bf16.msrb.mxu0 %v7845_v16  ;;  %v4872_v37 = vpop.f32.mrf.mxu0  ;;  %v9487_v16 = vld.sshfl [vmem:[#allocation1 + $0x28] sm:$0xff pattern:$0x73625140] }
 0x18b   : > { %5091 = vmatpush.bf16.msrb.mxu1 %v7853_v17  ;;  %v4873_v38 = vadd.f32 %v4872_v37, %v9308_v4  ;;  %v4885_v41 = vpop.f32.mrf.mxu1  ;;  %v7901_v4 = vld [vmem:[%s9778_s1 + $0xcc0] sm:$0xff]  ;;  %v9489_v17 = vld.sshfl [vmem:[#allocation1 + $0x38] sm:$0xff pattern:$0x73625140] }
 0x18c   : > { %5104 = vmatpush.bf16.msrb.mxu2 %v7861_v18  ;;  %1354 = vst [vmem:[#allocation1 + $0x20] ss:$4 sm:$0xff] %v237_v9  ;;  %v7914_v18 = vld [vmem:[%s9778_s1 + $0xd28] sm:$0xff] }
 0x18d   : > { %5117 = vmatpush.bf16.msrb.mxu3 %v7869_v19  ;;  %5079 = vmatmul.bf16.vlgmr.msrb.gmra.mxu0 %v9259_v44  ;;  %v4886_v44 = vadd.f32 %v4885_v41, %v4873_v38  ;;  %v7922_v19 = vld [vmem:[%s9778_s1 + $0xd68] sm:$0xff] }
 0x18e   : > { %5123 = vmatpush.bf16.msra.mxu0 %v7884_v20  ;;  %5092 = vmatmul.bf16.vlgmr.msrb.gmra.mxu1 %v9263_v46  ;;  %v7888_v46 = vld [vmem:[%s9778_s1 + $0xc58] sm:$0xff]  ;;  %v7930_v20 = vld [vmem:[%s9778_s1 + $0xda8] sm:$0xff] }
 0x18f   : > { %5136 = vmatpush.bf16.msra.mxu1 %v7892_v21  ;;  %5105 = vmatmul.bf16.vlgmr.msrb.gmra.mxu2 %v9261_v45  ;;  %v7880_v45 = vld [vmem:[%s9778_s1 + $0xc18] sm:$0xff]  ;;  %v7938_v21 = vld [vmem:[%s9778_s1 + $0xde8] sm:$0xff] }
 0x190   : > { %5149 = vmatpush.bf16.msra.mxu2 %v7900_v22  ;;  %5118 = vmatmul.bf16.vlgmr.msrb.gmra.mxu3 %v9265_v47  ;;  %v7896_v47 = vld [vmem:[%s9778_s1 + $0xc98] sm:$0xff] }
 0x191   : > { %5162 = vmatpush.bf16.msra.mxu3 %v7908_v23 }
 0x192   : > { %5124 = vmatpush.bf16.msra.mxu0 %v7883_v25  ;;  %v4898_v49 = vpop.f32.mrf.mxu2  ;;  %v4874_v52 = vpop.f32.mrf.mxu0  ;;  %v7921_v25 = vld [vmem:[%s9778_s1 + $0xd60] sm:$0xff] }
 0x193   : > { %5137 = vmatpush.bf16.msra.mxu1 %v7891_v26  ;;  %v4899_v50 = vadd.f32 %v4898_v49, %v4886_v44  ;;  %v4911_v51 = vpop.f32.mrf.mxu3  ;;  %v4887_v56 = vpop.f32.mrf.mxu1  ;;  %v7910_v44 = vld [vmem:[%s9778_s1 + $0xd08] sm:$0xff]  ;;  %v7925_v52 = vld [vmem:[%s9778_s1 + $0xd80] sm:$0xff] }
 0x194   : > { %5150 = vmatpush.bf16.msra.mxu2 %v7899_v27  ;;  %v7929_v27 = vld [vmem:[%s9778_s1 + $0xda0] sm:$0xff]  ;;  %v7964_v56 = vld [vmem:[%s9778_s1 + $0xeb8] sm:$0xff] }
 0x195   : > { %5163 = vmatpush.bf16.msra.mxu3 %v7907_v28  ;;  %v9420_v53 = vadd.f32 %v4911_v51, %v4899_v50  ;;  %v7937_v28 = vld [vmem:[%s9778_s1 + $0xde0] sm:$0xff] }
 0x196   : > { %5125 = vmatpush.bf16.msra.mxu0 %v7882_v33  ;;  %v7936_v33 = vld [vmem:[%s9778_s1 + $0xdd8] sm:$0xff]  ;;  %v7909_v50 = vld [vmem:[%s9778_s1 + $0xd00] sm:$0xff] }
 0x197   : > { %5138 = vmatpush.bf16.msra.mxu1 %v7890_v34  ;;  %v7917_v51 = vld [vmem:[%s9778_s1 + $0xd40] sm:$0xff] }
 0x198   : > { %5151 = vmatpush.bf16.msra.mxu2 %v7898_v35 }
 0x199   : > { %5164 = vmatpush.bf16.msra.mxu3 %v7906_v36 }
 0x19a   : > { %5126 = vmatpush.bf16.msra.mxu0 %v7881_v39  ;;  %v4900_v63 = vpop.f32.mrf.mxu2  ;;  %v7911_v39 = vld [vmem:[%s9778_s1 + $0xd10] sm:$0xff] }
 0x19b   : > { %5139 = vmatpush.bf16.msra.mxu1 %v7889_v40  ;;  %v4913_v0 = vpop.f32.mrf.mxu3  ;;  %v7919_v40 = vld [vmem:[%s9778_s1 + $0xd50] sm:$0xff]  ;;  %v7954_v63 = vld [vmem:[%s9778_s1 + $0xe68] sm:$0xff] }
 0x19c   : > { %5152 = vmatpush.bf16.msra.mxu2 %v7897_v42  ;;  %v7927_v42 = vld [vmem:[%s9778_s1 + $0xd90] sm:$0xff]  ;;  %v7962_v0 = vld [vmem:[%s9778_s1 + $0xea8] sm:$0xff] }
 0x19d   : > { %5165 = vmatpush.bf16.msra.mxu3 %v7905_v43  ;;  %v7935_v43 = vld [vmem:[%s9778_s1 + $0xdd0] sm:$0xff] }
 0x19e   : > { %5127 = vmatpush.bf16.msra.mxu0 %v7880_v45  ;;  %v7918_v45 = vld [vmem:[%s9778_s1 + $0xd48] sm:$0xff] }
 0x19f   : > { %5140 = vmatpush.bf16.msra.mxu1 %v7888_v46  ;;  %v7926_v46 = vld [vmem:[%s9778_s1 + $0xd88] sm:$0xff] }
 0x1a0   : > { %5153 = vmatpush.bf16.msra.mxu2 %v7896_v47  ;;  %v7934_v47 = vld [vmem:[%s9778_s1 + $0xdc8] sm:$0xff] }
 0x1a1   : > { %5166 = vmatpush.bf16.msra.mxu3 %v7904_v48 }
 0x1a2   : > { %5128 = vmatpush.bf16.msra.mxu0 %v7879_v54  ;;  %v7948_v54 = vld [vmem:[%s9778_s1 + $0xe38] sm:$0xff] }
 0x1a3   : > { %5141 = vmatpush.bf16.msra.mxu1 %v7887_v55  ;;  %v7956_v55 = vld [vmem:[%s9778_s1 + $0xe78] sm:$0xff] }
 0x1a4   : > { %5154 = vmatpush.bf16.msra.mxu2 %v7895_v57  ;;  %v7972_v57 = vld [vmem:[%s9778_s1 + $0xef8] sm:$0xff] }
 0x1a5   : > { %5167 = vmatpush.bf16.msra.mxu3 %v7903_v58  ;;  %v7947_v58 = vld [vmem:[%s9778_s1 + $0xe30] sm:$0xff] }
 0x1a6   : > { %5129 = vmatpush.bf16.msra.mxu0 %v7878_v59  ;;  %v7955_v59 = vld [vmem:[%s9778_s1 + $0xe70] sm:$0xff] }
 0x1a7   : > { %5142 = vmatpush.bf16.msra.mxu1 %v7886_v60  ;;  %v7963_v60 = vld [vmem:[%s9778_s1 + $0xeb0] sm:$0xff] }
 0x1a8   : > { %5155 = vmatpush.bf16.msra.mxu2 %v7894_v61  ;;  %v7971_v61 = vld [vmem:[%s9778_s1 + $0xef0] sm:$0xff] }
 0x1a9   : > { %5168 = vmatpush.bf16.msra.mxu3 %v7902_v62  ;;  %v7946_v62 = vld [vmem:[%s9778_s1 + $0xe28] sm:$0xff] }
 0x1aa   : > { %5130 = vmatpush.bf16.msra.mxu0 %v7877_v1  ;;  %v4924_v22 = vpop.f32.mrf.mxu0  ;;  %v7970_v1 = vld [vmem:[%s9778_s1 + $0xee8] sm:$0xff] }
 0x1ab   : > { %5143 = vmatpush.bf16.msra.mxu1 %v7885_v2  ;;  %v4925_v23 = vadd.f32 %v4924_v22, %v9420_v53  ;;  %v4937_v26 = vpop.f32.mrf.mxu1  ;;  %v7933_v53 = vld [vmem:[%s9778_s1 + $0xdc0] sm:$0xff]  ;;  %v7959_v22 = vld [vmem:[%s9778_s1 + $0xe90] sm:$0xff] }
 0x1ac   : > { %5156 = vmatpush.bf16.msra.mxu2 %v7893_v3 }
 0x1ad   : > { %5169 = vmatpush.bf16.msra.mxu3 %v7901_v4  ;;  %5131 = vmatmul.bf16.vlgmr.msra.gmra.mxu0 %v9371_v29  ;;  %v4938_v29 = vadd.f32 %v4937_v26, %v4925_v23  ;;  %v7945_v4 = vld [vmem:[%s9778_s1 + $0xe20] sm:$0xff]  ;;  %v7967_v23 = vld [vmem:[%s9778_s1 + $0xed0] sm:$0xff]  ;;  %v7958_v26 = vld [vmem:[%s9778_s1 + $0xe88] sm:$0xff] }
 0x1ae   : > { %5175 = vmatpush.bf16.msrb.mxu0 %v7916_v5  ;;  %5144 = vmatmul.bf16.vlgmr.msra.gmra.mxu1 %v9375_v31  ;;  %v7920_v31 = vld [vmem:[%s9778_s1 + $0xd58] sm:$0xff]  ;;  %v7953_v5 = vld [vmem:[%s9778_s1 + $0xe60] sm:$0xff] }
 0x1af   : > { %5188 = vmatpush.bf16.msrb.mxu1 %v7924_v6  ;;  %5157 = vmatmul.bf16.vlgmr.msra.gmra.mxu2 %v9373_v30  ;;  %v7912_v30 = vld [vmem:[%s9778_s1 + $0xd18] sm:$0xff] }
 0x1b0   : > { %5201 = vmatpush.bf16.msrb.mxu2 %v7932_v7  ;;  %5170 = vmatmul.bf16.vlgmr.msra.gmra.mxu3 %v9377_v32  ;;  %v7928_v32 = vld [vmem:[%s9778_s1 + $0xd98] sm:$0xff]  ;;  %v7961_v7 = vld [vmem:[%s9778_s1 + $0xea0] sm:$0xff] }
 0x1b1   : > { %5214 = vmatpush.bf16.msrb.mxu3 %v7940_v8  ;;  %v7969_v8 = vld [vmem:[%s9778_s1 + $0xee0] sm:$0xff] }
 0x1b2   : > { %5176 = vmatpush.bf16.msrb.mxu0 %v7915_v10  ;;  %v4950_v34 = vpop.f32.mrf.mxu2  ;;  %v4926_v37 = vpop.f32.mrf.mxu0  ;;  %v7944_v10 = vld [vmem:[%s9778_s1 + $0xe18] sm:$0xff] }
 0x1b3   : > { %5189 = vmatpush.bf16.msrb.mxu1 %v7923_v11  ;;  %v4951_v35 = vadd.f32 %v4950_v34, %v4938_v29  ;;  %v4963_v36 = vpop.f32.mrf.mxu3  ;;  %v4939_v41 = vpop.f32.mrf.mxu1  ;;  %v7952_v11 = vld [vmem:[%s9778_s1 + $0xe58] sm:$0xff] }
 0x1b4   : > { %5202 = vmatpush.bf16.msrb.mxu2 %v7931_v12  ;;  %v7960_v12 = vld [vmem:[%s9778_s1 + $0xe98] sm:$0xff] }
 0x1b5   : > { %5215 = vmatpush.bf16.msrb.mxu3 %v7939_v13  ;;  %v4964_v38 = vadd.f32 %v4963_v36, %v4951_v35  ;;  %v7968_v13 = vld [vmem:[%s9778_s1 + $0xed8] sm:$0xff] }
 0x1b6   : > { %5177 = vmatpush.bf16.msrb.mxu0 %v7914_v18  ;;  %v7980_v34 = vld [vmem:[%s9778_s1 + $0xf38] sm:$0xff] }
 0x1b7   : > { %5190 = vmatpush.bf16.msrb.mxu1 %v7922_v19  ;;  %v7943_v19 = vld [vmem:[%s9778_s1 + $0xe10] sm:$0xff]  ;;  %v7988_v35 = vld [vmem:[%s9778_s1 + $0xf78] sm:$0xff] }
 0x1b8   : > { %5203 = vmatpush.bf16.msrb.mxu2 %v7930_v20  ;;  %v7951_v20 = vld [vmem:[%s9778_s1 + $0xe50] sm:$0xff]  ;;  %v7996_v36 = vld [vmem:[%s9778_s1 + $0xfb8] sm:$0xff] }
 0x1b9   : > { %5216 = vmatpush.bf16.msrb.mxu3 %v7938_v21  ;;  %v8004_v37 = vld [vmem:[%s9778_s1 + $0xff8] sm:$0xff] }
 0x1ba   : > { %5178 = vmatpush.bf16.msrb.mxu0 %v7913_v24  ;;  %v4952_v48 = vpop.f32.mrf.mxu2  ;;  %v7942_v24 = vld [vmem:[%s9778_s1 + $0xe08] sm:$0xff]  ;;  %v1358_v41 = vld.sshfl [vmem:[#allocation1 + $0x18] sm:$0xff pattern:$0x73625140] }
 0x1bb   : > { %5191 = vmatpush.bf16.msrb.mxu1 %v7921_v25  ;;  %v4965_v49 = vpop.f32.mrf.mxu3  ;;  %v7950_v25 = vld [vmem:[%s9778_s1 + $0xe48] sm:$0xff] }
 0x1bc   : > { %5204 = vmatpush.bf16.msrb.mxu2 %v7929_v27  ;;  %v7966_v27 = vld [vmem:[%s9778_s1 + $0xec8] sm:$0xff] }
 0x1bd   : > { %5217 = vmatpush.bf16.msrb.mxu3 %v7937_v28  ;;  %v7994_v48 = vld [vmem:[%s9778_s1 + $0xfa8] sm:$0xff] }
 0x1be   : > { %5179 = vmatpush.bf16.msrb.mxu0 %v7912_v30  ;;  %v7941_v30 = vld [vmem:[%s9778_s1 + $0xe00] sm:$0xff]  ;;  %v8002_v49 = vld [vmem:[%s9778_s1 + $0xfe8] sm:$0xff] }
 0x1bf   : > { %5192 = vmatpush.bf16.msrb.mxu1 %v7920_v31  ;;  %v7949_v31 = vld [vmem:[%s9778_s1 + $0xe40] sm:$0xff] }
 0x1c0   : > { %5205 = vmatpush.bf16.msrb.mxu2 %v7928_v32  ;;  %v7957_v32 = vld [vmem:[%s9778_s1 + $0xe80] sm:$0xff] }
 0x1c1   : > { %5218 = vmatpush.bf16.msrb.mxu3 %v7936_v33  ;;  %v7965_v33 = vld [vmem:[%s9778_s1 + $0xec0] sm:$0xff] }
 0x1c2   : > { %5180 = vmatpush.bf16.msrb.mxu0 %v7911_v39  ;;  %v1357_v39 = vld.sshfl [vmem:[#allocation1 + $0x10] sm:$0xff pattern:$0x73625140] }
 0x1c3   : > { %5193 = vmatpush.bf16.msrb.mxu1 %v7919_v40  ;;  %v1356_v40 = vld.sshfl [vmem:[#allocation1 + $0x8] sm:$0xff pattern:$0x73625140] }
 0x1c4   : > { %5206 = vmatpush.bf16.msrb.mxu2 %v7927_v42  ;;  %v7979_v42 = vld [vmem:[%s9778_s1 + $0xf30] sm:$0xff] }
 0x1c5   : > { %5219 = vmatpush.bf16.msrb.mxu3 %v7935_v43  ;;  %v7987_v43 = vld [vmem:[%s9778_s1 + $0xf70] sm:$0xff] }
 0x1c6   : > { %5181 = vmatpush.bf16.msrb.mxu0 %v7910_v44  ;;  %v7995_v44 = vld [vmem:[%s9778_s1 + $0xfb0] sm:$0xff] }
 0x1c7   : > { %5194 = vmatpush.bf16.msrb.mxu1 %v7918_v45  ;;  %v8003_v45 = vld [vmem:[%s9778_s1 + $0xff0] sm:$0xff] }
 0x1c8   : > { %5207 = vmatpush.bf16.msrb.mxu2 %v7926_v46  ;;  %v7978_v46 = vld [vmem:[%s9778_s1 + $0xf28] sm:$0xff] }
 0x1c9   : > { %5220 = vmatpush.bf16.msrb.mxu3 %v7934_v47  ;;  %v7986_v47 = vld [vmem:[%s9778_s1 + $0xf68] sm:$0xff] }
 0x1ca   : > { %5182 = vmatpush.bf16.msrb.mxu0 %v7909_v50  ;;  %v4976_v2 = vpop.f32.mrf.mxu0 }
 0x1cb   : > { %5195 = vmatpush.bf16.msrb.mxu1 %v7917_v51  ;;  %v4977_v3 = vadd.f32 %v4976_v2, %v4964_v38  ;;  %v4989_v6 = vpop.f32.mrf.mxu1  ;;  %v1355_v38 = vld.sshfl [vmem:[#allocation1] sm:$0xff pattern:$0x73625140] }
 0x1cc   : > { %5208 = vmatpush.bf16.msrb.mxu2 %v7925_v52  ;;  %v7977_v52 = vld [vmem:[%s9778_s1 + $0xf20] sm:$0xff] }
 0x1cd   : > { %5221 = vmatpush.bf16.msrb.mxu3 %v7933_v53  ;;  %5183 = vmatmul.bf16.vlgmr.msrb.gmra.mxu0 %v9483_v14  ;;  %v4990_v9 = vadd.f32 %v4989_v6, %v4977_v3  ;;  %v7985_v53 = vld [vmem:[%s9778_s1 + $0xf60] sm:$0xff]  ;;  %v7975_v3 = vld [vmem:[%s9778_s1 + $0xf10] sm:$0xff] }
 0x1ce   : > { %5227 = vmatpush.bf16.msra.mxu0 %v7948_v54  ;;  %5196 = vmatmul.bf16.vlgmr.msrb.gmra.mxu1 %v9487_v16  ;;  %v7991_v6 = vld [vmem:[%s9778_s1 + $0xf90] sm:$0xff] }
 0x1cf   : > { %5240 = vmatpush.bf16.msra.mxu1 %v7956_v55  ;;  %5209 = vmatmul.bf16.vlgmr.msrb.gmra.mxu2 %v9485_v15  ;;  %v7993_v55 = vld [vmem:[%s9778_s1 + $0xfa0] sm:$0xff] }
 0x1d0   : > { %5253 = vmatpush.bf16.msra.mxu2 %v7964_v56  ;;  %5222 = vmatmul.bf16.vlgmr.msrb.gmra.mxu3 %v9489_v17  ;;  %v8001_v56 = vld [vmem:[%s9778_s1 + $0xfe0] sm:$0xff] }
 0x1d1   : > { %5266 = vmatpush.bf16.msra.mxu3 %v7972_v57 }
 0x1d2   : > { %5228 = vmatpush.bf16.msra.mxu0 %v7947_v58  ;;  %v5002_v14 = vpop.f32.mrf.mxu2  ;;  %v4978_v17 = vpop.f32.mrf.mxu0  ;;  %v7976_v58 = vld [vmem:[%s9778_s1 + $0xf18] sm:$0xff] }
 0x1d3   : > { %5241 = vmatpush.bf16.msra.mxu1 %v7955_v59  ;;  %v5003_v15 = vadd.f32 %v5002_v14, %v4990_v9  ;;  %v5015_v16 = vpop.f32.mrf.mxu3  ;;  %v4991_v21 = vpop.f32.mrf.mxu1  ;;  %v7984_v59 = vld [vmem:[%s9778_s1 + $0xf58] sm:$0xff]  ;;  %v7982_v9 = vld [vmem:[%s9778_s1 + $0xf48] sm:$0xff]  ;;  %v7973_v14 = vld [vmem:[%s9778_s1 + $0xf00] sm:$0xff] }
 0x1d4   : > { %5254 = vmatpush.bf16.msra.mxu2 %v7963_v60  ;;  %v7992_v60 = vld [vmem:[%s9778_s1 + $0xf98] sm:$0xff]  ;;  %v7997_v17 = vld [vmem:[%s9778_s1 + $0xfc0] sm:$0xff] }
 0x1d5   : > { %5267 = vmatpush.bf16.msra.mxu3 %v7971_v61  ;;  %v5016_v18 = vadd.f32 %v5015_v16, %v5003_v15  ;;  %v8000_v61 = vld [vmem:[%s9778_s1 + $0xfd8] sm:$0xff]  ;;  %v7981_v15 = vld [vmem:[%s9778_s1 + $0xf40] sm:$0xff] }
 0x1d6   : > { %5229 = vmatpush.bf16.msra.mxu0 %v7946_v62  ;;  %v7989_v16 = vld [vmem:[%s9778_s1 + $0xf80] sm:$0xff]  ;;  %v1362_v21 = vld.sshfl [vmem:[#allocation1 + $0x38] sm:$0xff pattern:$0x73625140] }
 0x1d7   : > { %5242 = vmatpush.bf16.msra.mxu1 %v7954_v63 }
 0x1d8   : > { %5255 = vmatpush.bf16.msra.mxu2 %v7962_v0 }
 0x1d9   : > { %5268 = vmatpush.bf16.msra.mxu3 %v7970_v1 }
 0x1da   : > { %5230 = vmatpush.bf16.msra.mxu0 %v7945_v4  ;;  %v5004_v28 = vpop.f32.mrf.mxu2  ;;  %v7983_v4 = vld [vmem:[%s9778_s1 + $0xf50] sm:$0xff] }
 0x1db   : > { %5243 = vmatpush.bf16.msra.mxu1 %v7953_v5  ;;  %v5017_v29 = vpop.f32.mrf.mxu3 }
 0x1dc   : > { %5256 = vmatpush.bf16.msra.mxu2 %v7961_v7  ;;  %v7999_v7 = vld [vmem:[%s9778_s1 + $0xfd0] sm:$0xff] }
 0x1dd   : > { %5269 = vmatpush.bf16.msra.mxu3 %v7969_v8  ;;  %v7974_v8 = vld [vmem:[%s9778_s1 + $0xf08] sm:$0xff] }
 0x1de   : > { %5231 = vmatpush.bf16.msra.mxu0 %v7944_v10  ;;  %v7990_v10 = vld [vmem:[%s9778_s1 + $0xf88] sm:$0xff] }
 0x1df   : > { %5244 = vmatpush.bf16.msra.mxu1 %v7952_v11  ;;  %v7998_v11 = vld [vmem:[%s9778_s1 + $0xfc8] sm:$0xff] }
 0x1e0   : > { %5257 = vmatpush.bf16.msra.mxu2 %v7960_v12 }
 0x1e1   : > { %5270 = vmatpush.bf16.msra.mxu3 %v7968_v13 }
 0x1e2   : > { %5232 = vmatpush.bf16.msra.mxu0 %v7943_v19  ;;  %v1360_v19 = vld.sshfl [vmem:[#allocation1 + $0x28] sm:$0xff pattern:$0x73625140] }
 0x1e3   : > { %5245 = vmatpush.bf16.msra.mxu1 %v7951_v20  ;;  %v1361_v20 = vld.sshfl [vmem:[#allocation1 + $0x30] sm:$0xff pattern:$0x73625140] }
 0x1e4   : > { %5258 = vmatpush.bf16.msra.mxu2 %v7959_v22 }
 0x1e5   : > { %5271 = vmatpush.bf16.msra.mxu3 %v7967_v23 }
 0x1e6   : > { %5233 = vmatpush.bf16.msra.mxu0 %v7942_v24 }
 0x1e7   : > { %5246 = vmatpush.bf16.msra.mxu1 %v7950_v25 }
 0x1e8   : > { %5259 = vmatpush.bf16.msra.mxu2 %v7958_v26 }
 0x1e9   : > { %5272 = vmatpush.bf16.msra.mxu3 %v7966_v27 }
 0x1ea   : > { %5234 = vmatpush.bf16.msra.mxu0 %v7941_v30  ;;  %v5028_v50 = vpop.f32.mrf.mxu0 }
 0x1eb   : > { %5247 = vmatpush.bf16.msra.mxu1 %v7949_v31  ;;  %v5029_v51 = vadd.f32 %v5028_v50, %v5016_v18  ;;  %v5041_v54 = vpop.f32.mrf.mxu1  ;;  %v1359_v18 = vld.sshfl [vmem:[#allocation1 + $0x20] sm:$0xff pattern:$0x73625140] }
 0x1ec   : > { %5260 = vmatpush.bf16.msra.mxu2 %v7957_v32 }
 0x1ed   : > { %5273 = vmatpush.bf16.msra.mxu3 %v7965_v33  ;;  %5235 = vmatmul.bf16.vlgmr.msra.gmra.mxu0 %v1355_v38  ;;  %v5042_v57 = vadd.f32 %v5041_v54, %v5029_v51 }
 0x1ee   : > { %5279 = vmatpush.bf16.msrb.mxu0 %v7980_v34  ;;  %5248 = vmatmul.bf16.vlgmr.msra.gmra.mxu1 %v1356_v40 }
 0x1ef   : > { %5292 = vmatpush.bf16.msrb.mxu1 %v7988_v35  ;;  %5261 = vmatmul.bf16.vlgmr.msra.gmra.mxu2 %v1357_v39 }
 0x1f0   : > { %5305 = vmatpush.bf16.msrb.mxu2 %v7996_v36  ;;  %5274 = vmatmul.bf16.vlgmr.msra.gmra.mxu3 %v1358_v41 }
 0x1f1   : > { %5318 = vmatpush.bf16.msrb.mxu3 %v8004_v37 }
 0x1f2   : > { %5280 = vmatpush.bf16.msrb.mxu0 %v7979_v42  ;;  %v5054_v62 = vpop.f32.mrf.mxu2  ;;  %v5030_v1 = vpop.f32.mrf.mxu0 }
 0x1f3   : > { %5293 = vmatpush.bf16.msrb.mxu1 %v7987_v43  ;;  %v5055_v63 = vadd.f32 %v5054_v62, %v5042_v57  ;;  %v5067_v0 = vpop.f32.mrf.mxu3  ;;  %v5043_v5 = vpop.f32.mrf.mxu1 }
 0x1f4   : > { %5306 = vmatpush.bf16.msrb.mxu2 %v7995_v44 }
 0x1f5   : > { %5319 = vmatpush.bf16.msrb.mxu3 %v8003_v45  ;;  %v5068_v2 = vadd.f32 %v5067_v0, %v5055_v63 }
 0x1f6   : > { %5281 = vmatpush.bf16.msrb.mxu0 %v7978_v46 }
 0x1f7   : > { %5294 = vmatpush.bf16.msrb.mxu1 %v7986_v47 }
 0x1f8   : > { %5307 = vmatpush.bf16.msrb.mxu2 %v7994_v48 }
 0x1f9   : > { %5320 = vmatpush.bf16.msrb.mxu3 %v8002_v49 }
 0x1fa   : > { %5282 = vmatpush.bf16.msrb.mxu0 %v7977_v52  ;;  %v5056_v12 = vpop.f32.mrf.mxu2 }
 0x1fb   : > { %5295 = vmatpush.bf16.msrb.mxu1 %v7985_v53  ;;  %v5069_v13 = vpop.f32.mrf.mxu3 }
 0x1fc   : > { %5308 = vmatpush.bf16.msrb.mxu2 %v7993_v55 }
 0x1fd   : > { %5321 = vmatpush.bf16.msrb.mxu3 %v8001_v56 }
 0x1fe   : > { %5283 = vmatpush.bf16.msrb.mxu0 %v7976_v58 }
 0x1ff   : > { %5296 = vmatpush.bf16.msrb.mxu1 %v7984_v59 }
 0x200   : > { %5309 = vmatpush.bf16.msrb.mxu2 %v7992_v60 }
 0x201   : > { %5322 = vmatpush.bf16.msrb.mxu3 %v8000_v61 }
 0x202   : > { %5284 = vmatpush.bf16.msrb.mxu0 %v7975_v3 }
 0x203   : > { %5297 = vmatpush.bf16.msrb.mxu1 %v7983_v4 }
 0x204   : > { %5310 = vmatpush.bf16.msrb.mxu2 %v7991_v6 }
 0x205   : > { %5323 = vmatpush.bf16.msrb.mxu3 %v7999_v7 }
 0x206   : > { %5285 = vmatpush.bf16.msrb.mxu0 %v7974_v8 }
 0x207   : > { %5298 = vmatpush.bf16.msrb.mxu1 %v7982_v9 }
 0x208   : > { %5311 = vmatpush.bf16.msrb.mxu2 %v7990_v10 }
 0x209   : > { %5324 = vmatpush.bf16.msrb.mxu3 %v7998_v11 }
 0x20a   : > { %5286 = vmatpush.bf16.msrb.mxu0 %v7973_v14  ;;  %v5080_v22 = vpop.f32.mrf.mxu0 }
 0x20b   : > { %5299 = vmatpush.bf16.msrb.mxu1 %v7981_v15  ;;  %v5081_v23 = vadd.f32 %v5080_v22, %v5068_v2  ;;  %v5093_v24 = vpop.f32.mrf.mxu1 }
 0x20c   : > { %5312 = vmatpush.bf16.msrb.mxu2 %v7989_v16 }
 0x20d   : > { %5325 = vmatpush.bf16.msrb.mxu3 %v7997_v17  ;;  %5287 = vmatmul.bf16.vlgmr.msrb.gmra.mxu0 %v1359_v18  ;;  %v5094_v25 = vadd.f32 %v5093_v24, %v5081_v23 }
 0x20e   : > { %5300 = vmatmul.bf16.vlgmr.msrb.gmra.mxu1 %v1360_v19 }
 0x20f   : > { %5313 = vmatmul.bf16.vlgmr.msrb.gmra.mxu2 %v1361_v20 }
 0x210   : > { %5326 = vmatmul.bf16.vlgmr.msrb.gmra.mxu3 %v1362_v21 }
 0x212   : > { %v5106_v26 = vpop.f32.mrf.mxu2  ;;  %v5082_v29 = vpop.f32.mrf.mxu0 }
 0x213   : > { %v5107_v27 = vadd.f32 %v5106_v26, %v5094_v25  ;;  %v5119_v28 = vpop.f32.mrf.mxu3  ;;  %v5095_v31 = vpop.f32.mrf.mxu1 }
 0x215   : > { %v5120_v30 = vadd.f32 %v5119_v28, %v5107_v27 }
 0x21a   : > { %v5108_v32 = vpop.f32.mrf.mxu2 }
 0x21b   : > { %v5121_v33 = vpop.f32.mrf.mxu3 }
 0x22a   : > { %v5132_v34 = vpop.f32.mrf.mxu0 }
 0x22b   : > { %v5133_v35 = vadd.f32 %v5132_v34, %v5120_v30  ;;  %v5145_v36 = vpop.f32.mrf.mxu1 }
 0x22d   : > { %v5146_v37 = vadd.f32 %v5145_v36, %v5133_v35 }
 0x232   : > { %v5158_v38 = vpop.f32.mrf.mxu2  ;;  %v5134_v41 = vpop.f32.mrf.mxu0 }
 0x233   : > { %v5159_v39 = vadd.f32 %v5158_v38, %v5146_v37  ;;  %v5171_v40 = vpop.f32.mrf.mxu3  ;;  %v5147_v43 = vpop.f32.mrf.mxu1 }
 0x235   : > { %v5172_v42 = vadd.f32 %v5171_v40, %v5159_v39 }
 0x23a   : > { %v5160_v44 = vpop.f32.mrf.mxu2 }
 0x23b   : > { %v5173_v45 = vpop.f32.mrf.mxu3 }
 0x24a   : > { %v5184_v46 = vpop.f32.mrf.mxu0 }
 0x24b   : > { %v5197_v47 = vpop.f32.mrf.mxu1  ;;  %v5185_v57 = vadd.f32 %v5184_v46, %v5172_v42 }
 0x24d   : > { %v5198_v61 = vadd.f32 %v5197_v47, %v5185_v57 }
 0x252   : > { %v5210_v48 = vpop.f32.mrf.mxu2  ;;  %v5186_v50 = vpop.f32.mrf.mxu0 }
 0x253   : > { %v5223_v49 = vpop.f32.mrf.mxu3  ;;  %v5199_v51 = vpop.f32.mrf.mxu1  ;;  %v5211_v62 = vadd.f32 %v5210_v48, %v5198_v61 }
 0x255   : > { %v5224_v1 = vadd.f32 %v5223_v49, %v5211_v62 }
 0x25a   : > { %v5212_v52 = vpop.f32.mrf.mxu2 }
 0x25b   : > { %v5225_v53 = vpop.f32.mrf.mxu3 }
 0x26a   : > { %v5236_v54 = vpop.f32.mrf.mxu0 }
 0x26b   : > { %v5249_v55 = vpop.f32.mrf.mxu1  ;;  %v5237_v2 = vadd.f32 %v5236_v54, %v5224_v1 }
 0x26d   : > { %v5250_v3 = vadd.f32 %v5249_v55, %v5237_v2 }
 0x272   : > { %v5262_v56 = vpop.f32.mrf.mxu2  ;;  %v5238_v59 = vpop.f32.mrf.mxu0 }
 0x273   : > { %v5275_v58 = vpop.f32.mrf.mxu3  ;;  %v5251_v60 = vpop.f32.mrf.mxu1  ;;  %v5263_v4 = vadd.f32 %v5262_v56, %v5250_v3 }
 0x275   : > { %v5276_v5 = vadd.f32 %v5275_v58, %v5263_v4 }
 0x27a   : > { %v5264_v63 = vpop.f32.mrf.mxu2 }
 0x27b   : > { %v5277_v0 = vpop.f32.mrf.mxu3 }
 0x28a   : > { %v5288_v6 = vpop.f32.mrf.mxu0 }
 0x28b   : > { %v5301_v7 = vpop.f32.mrf.mxu1  ;;  %v5289_v8 = vadd.f32 %v5288_v6, %v5276_v5 }
 0x28d   : > { %v5302_v9 = vadd.f32 %v5301_v7, %v5289_v8 }
 0x292   : > { %v5314_v10 = vpop.f32.mrf.mxu2  ;;  %v5290_v13 = vpop.f32.mrf.mxu0 }
 0x293   : > { %v5327_v11 = vpop.f32.mrf.mxu3  ;;  %v5315_v12 = vadd.f32 %v5314_v10, %v5302_v9  ;;  %v5303_v14 = vpop.f32.mrf.mxu1 }
 0x295   : > { %v5328_v15 = vadd.f32 %v5327_v11, %v5315_v12 }
 0x297   : > { %5332 = vst.msk [vmem:[%s221_s26] sm:$0xf] %vm5331_vm0, %v5328_v15 }
 0x29a   : > { %v5316_v16 = vpop.f32.mrf.mxu2 }
 0x29b   : > { %v5329_v17 = vpop.f32.mrf.mxu3 }
 0x29c PF: > { %s15_s16 = sadd.s32 1, %s8052_s16   ;;  %s9781_s14 = smov %s8048_s15 }
 0x29d   : > { %p12_p5 = scmp.ge.s32.totalorder %s15_s16, 4   ;;  %s9782_s15 = smov %s9784_s2 }
 0x29f   :  { %14 = sbr.rel (!%p12_p5) target bundleno = 3 (0x3), region = 69 }

</bundles_post_ra>
